<compile_context>
chip_gen: v7x
topology: tpu7x:2x2x1
jax: 0.10.0
libtpu: 0.0.40
codegen_flags: <defaults>
</compile_context>

<pallas_src>
import functools

import jax
import jax.numpy as jnp
from jax.experimental import pallas as pl
from jax.experimental.pallas import tpu as pltpu


# ------------------------------- small helpers ------------------------------

def _round_up(x, m):
    return (x + m - 1) // m * m


@functools.lru_cache(maxsize=None)
def _vmem_limit_bytes():
    """Scoped-VMEM budget: ~3/4 of physical VMEM, capped at 96 MiB."""
    try:
        cap = pltpu.get_tpu_info().vmem_capacity_bytes
    except Exception:
        cap = 64 << 20          # conservative fallback (safe on v5e/v6e/v7x)
    return int(min(96 << 20, (cap * 3) // 4))


def _tile_budget_bytes():
    return (_vmem_limit_bytes() * 6) // 10


def _pick_conv_row_tile(H, Wpad, K, Cout, budget):
    """Largest even divisor of H whose per-step VMEM footprint fits the budget."""
    def footprint(tr):
        inp = 2 * tr * Wpad * K * 2            # main input, double-buffered bf16
        halo = 2 * 2 * Wpad * K * 2            # halo rows, double-buffered bf16
        wgt = 2 * 3 * K * Cout * 2             # weights, double-buffered bf16
        acc = tr * Wpad * Cout * 4             # f32 accumulator scratch
        out = 2 * tr * Wpad * Cout * 4         # output block (counted as f32)
        return inp + halo + wgt + acc + out
    for tr in range(H, 1, -1):
        if H % tr == 0 and tr % 2 == 0 and footprint(tr) <= budget:
            return tr
    return 2


def _pick_pool_row_tile(H2, W2, C, budget):
    def footprint(tr):
        return 2 * (tr * 2 * W2 * 2 * C * 2) + 2 * (tr * W2 * C * 2)
    for tr in range(H2, 0, -1):
        if H2 % tr == 0 and footprint(tr) <= budget:
            return tr
    return 1


# ----------------------------- conv 3x3 kernels -----------------------------

def _conv3_kernel(x_ref, h_ref, w_ref, b_ref, o_ref, acc_ref, *, Wpad, relu):
    # x_ref:   (1, L, K)       main rows of the flattened padded image (bf16)
    # h_ref:   (1, 2*Wpad, K)  the 2 halo rows just below this tile (bf16)
    # w_ref:   (3, K, Cout)    kx-folded weights, one (K, Cout) matrix per ky
    # b_ref:   (1, Cout)       bias (f32)
    # o_ref:   (1, L, Cout)    output rows (bf16)
    # acc_ref: (L, Cout)       f32 accumulator scratch
    L = o_ref.shape[1]
    acc_ref[...] = jnp.dot(x_ref[0], w_ref[0], preferred_element_type=jnp.float32)
    for ky in (1, 2):                           # static unroll, aligned offsets
        main = L - ky * Wpad
        if main > 0:
            acc_ref[0:main, :] += jnp.dot(
                x_ref[0, ky * Wpad:L, :], w_ref[ky],
                preferred_element_type=jnp.float32)
        acc_ref[main:L, :] += jnp.dot(
            h_ref[0, 0:ky * Wpad, :], w_ref[ky],
            preferred_element_type=jnp.float32)
    out = acc_ref[...] + b_ref[...]
    if relu:
        out = jnp.maximum(out, 0.0)
    o_ref[0] = out.astype(o_ref.dtype)


def _conv_im2col_kernel(x_ref, w_ref, b_ref, o_ref, *, relu):
    # x_ref: (1, L, 9*Cin) pre-gathered 3x3 patches; w_ref: (9*Cin, Cout)
    out = jnp.dot(x_ref[0], w_ref[...], preferred_element_type=jnp.float32)
    out = out + b_ref[...]
    if relu:
        out = jnp.maximum(out, 0.0)
    o_ref[0] = out.astype(o_ref.dtype)


def conv3x3(x, w, b, *, relu):
    """3x3 stride-1 'same' conv. x: (N,H,W,Cin), w: (3,3,Cin,Cout), b: (Cout,)."""
    N, H, W, Cin = x.shape
    Cout = w.shape[-1]
    assert H % 2 == 0, "row tiling / halo assumes an even image height"
    Wpad = _round_up(W + 2, 8)                  # sublane-aligned row stride
    K = 3 * Cin

    # zero-pad (1 row top/bottom, 1 col left, Wpad+1-W cols right), then fold
    # the 3 kx column shifts into the channel dimension.
    xp = jnp.pad(x.astype(jnp.bfloat16),
                 ((0, 0), (1, 1), (1, Wpad + 1 - W), (0, 0)))
    xcat = jnp.concatenate([xp[:, :, dx:dx + Wpad, :] for dx in range(3)], axis=-1)
    xf = xcat.reshape(N, (H + 2) * Wpad, K)

    wf = w.reshape(3, K, Cout).astype(jnp.bfloat16)
    bf = b.reshape(1, Cout).astype(jnp.float32)

    TR = _pick_conv_row_tile(H, Wpad, K, Cout, _tile_budget_bytes())
    T = H // TR
    L = TR * Wpad

    kern = functools.partial(_conv3_kernel, Wpad=Wpad, relu=relu)
    out_flat = pl.pallas_call(
        kern,
        out_shape=jax.ShapeDtypeStruct((N, H * Wpad, Cout), jnp.bfloat16),
        grid=(N, T),
        in_specs=[
            # main rows of this tile
            pl.BlockSpec((1, L, K), lambda n, t: (n, t, 0)),
            # 2-row halo just below the tile (TR even -> 2-row aligned)
            pl.BlockSpec((1, 2 * Wpad, K), lambda n, t: (n, (t + 1) * (TR // 2), 0)),
            pl.BlockSpec((3, K, Cout), lambda n, t: (0, 0, 0)),
            pl.BlockSpec((1, Cout), lambda n, t: (0, 0)),
        ],
        out_specs=pl.BlockSpec((1, L, Cout), lambda n, t: (n, t, 0)),
        scratch_shapes=[pltpu.VMEM((L, Cout), jnp.float32)],
        compiler_params=pltpu.CompilerParams(
            dimension_semantics=("parallel", "parallel"),
            vmem_limit_bytes=_vmem_limit_bytes()),
    )(xf, xf, wf, bf)
    # un-flatten and crop the padding columns of each row
    return out_flat.reshape(N, H, Wpad, Cout)[:, :, :W, :]


def conv3x3_first(x, w, b, *, relu):
    """First conv (Cin=3) as a single im2col matmul with K = 27."""
    N, H, W, Cin = x.shape
    Cout = w.shape[-1]
    Wpad = _round_up(W + 2, 8)
    K = 9 * Cin

    xp = jnp.pad(x.astype(jnp.bfloat16),
                 ((0, 0), (1, 1), (1, Wpad + 1 - W), (0, 0)))
    patches = jnp.concatenate(
        [xp[:, dy:dy + H, dx:dx + Wpad, :] for dy in range(3) for dx in range(3)],
        axis=-1)                                # (N, H, Wpad, 27)
    xf = patches.reshape(N, H * Wpad, K)

    wf = w.reshape(K, Cout).astype(jnp.bfloat16)
    bf = b.reshape(1, Cout).astype(jnp.float32)

    TR = _pick_conv_row_tile(H, Wpad, K, Cout, _tile_budget_bytes())
    T = H // TR
    L = TR * Wpad

    kern = functools.partial(_conv_im2col_kernel, relu=relu)
    out_flat = pl.pallas_call(
        kern,
        out_shape=jax.ShapeDtypeStruct((N, H * Wpad, Cout), jnp.bfloat16),
        grid=(N, T),
        in_specs=[
            pl.BlockSpec((1, L, K), lambda n, t: (n, t, 0)),
            pl.BlockSpec((K, Cout), lambda n, t: (0, 0)),
            pl.BlockSpec((1, Cout), lambda n, t: (0, 0)),
        ],
        out_specs=pl.BlockSpec((1, L, Cout), lambda n, t: (n, t, 0)),
        compiler_params=pltpu.CompilerParams(
            dimension_semantics=("parallel", "parallel"),
            vmem_limit_bytes=_vmem_limit_bytes()),
    )(xf, wf, bf)
    return out_flat.reshape(N, H, Wpad, Cout)[:, :, :W, :]


# ----------------------------- maxpool 2x2 kernel ---------------------------

def _maxpool_kernel(x_ref, o_ref):
    # x_ref: (1, TRp, 2, W2, 2C)  row pairs on axis 2, column parity in lanes
    # o_ref: (1, TRp, W2, C)
    C = o_ref.shape[-1]
    m = jnp.maximum(x_ref[0, :, 0, :, :], x_ref[0, :, 1, :, :])
    o_ref[0] = jnp.maximum(m[:, :, :C], m[:, :, C:])


def maxpool2x2(x):
    """2x2 max pool, stride 2, row-tiled. x: (N,H,W,C) with H, W even."""
    N, H, W, C = x.shape
    assert H % 2 == 0 and W % 2 == 0
    H2, W2 = H // 2, W // 2
    xr = x.reshape(N, H2, 2, W2, 2 * C)
    TRp = _pick_pool_row_tile(H2, W2, C, _tile_budget_bytes())
    T = H2 // TRp
    return pl.pallas_call(
        _maxpool_kernel,
        out_shape=jax.ShapeDtypeStruct((N, H2, W2, C), x.dtype),
        grid=(N, T),
        in_specs=[pl.BlockSpec((1, TRp, 2, W2, 2 * C), lambda n, t: (n, t, 0, 0, 0))],
        out_specs=pl.BlockSpec((1, TRp, W2, C), lambda n, t: (n, t, 0, 0)),
        compiler_params=pltpu.CompilerParams(
            dimension_semantics=("parallel", "parallel"),
            vmem_limit_bytes=_vmem_limit_bytes()),
    )(xr)


# ----------------------------- VGG16 features[:15] --------------------------

VGG_CFG = [
    ("conv", 3, 64, True),      # features[0] Conv2d + [1] ReLU
    ("conv", 64, 64, True),     # [2] + [3]
    ("pool",),                  # [4]
    ("conv", 64, 128, True),    # [5] + [6]
    ("conv", 128, 128, True),   # [7] + [8]
    ("pool",),                  # [9]
    ("conv", 128, 256, True),   # [10] + [11]
    ("conv", 256, 256, True),   # [12] + [13]
    ("conv", 256, 256, False),  # [14]   (ReLU at [15] excluded by the slice)
]


def init_params(key):
    # TODO(synk): torchvision pretrained VGG16 weights cannot be fetched here;
    # use deterministic He-normal synthetic weights with the exact same shapes.
    params = []
    for layer in VGG_CFG:
        if layer[0] == "conv":
            _, cin, cout, _ = layer
            key, kw, kb = jax.random.split(key, 3)
            std = (2.0 / (9 * cin)) ** 0.5
            w = jax.random.normal(kw, (3, 3, cin, cout), jnp.float32) * std  # HWIO
            b = jax.random.normal(kb, (cout,), jnp.float32) * 0.01
            params.append((w, b))
        else:
            params.append(None)
    return params


def feature_extractor(x_nchw, params):
    """Forward pass of the PyTorch FeatureExtractor. Input/output are NCHW f32."""
    x = jnp.transpose(x_nchw, (0, 2, 3, 1)).astype(jnp.bfloat16)   # NCHW -> NHWC
    for layer, p in zip(VGG_CFG, params):
        if layer[0] == "conv":
            _, cin, _, relu = layer
            w, b = p
            if cin == 3:
                x = conv3x3_first(x, w, b, relu=relu)
            else:
                x = conv3x3(x, w, b, relu=relu)
        else:
            x = maxpool2x2(x)
    return jnp.transpose(x, (0, 3, 1, 2)).astype(jnp.float32)      # NHWC -> NCHW


# ----------------------------- pure-JAX reference ---------------------------

def _reference(x_nchw, params):
    x = jnp.transpose(x_nchw, (0, 2, 3, 1)).astype(jnp.float32)
    for layer, p in zip(VGG_CFG, params):
        if layer[0] == "conv":
            w, b = p
            x = jax.lax.conv_general_dilated(
                x, w, (1, 1), "SAME",
                dimension_numbers=("NHWC", "HWIO", "NHWC"),
                precision=jax.lax.Precision.HIGHEST) + b
            if layer[3]:
                x = jnp.maximum(x, 0.0)
        else:
            n, h, wd, c = x.shape
            x = x.reshape(n, h // 2, 2, wd // 2, 2, c).max(axis=(2, 4))
    return jnp.transpose(x, (0, 3, 1, 2))


if __name__ == "__main__":
    key = jax.random.PRNGKey(0)
    kx, kp = jax.random.split(key)
    # Same convention as the torch module: NCHW images with 3 input channels.
    x = jax.random.normal(kx, (2, 3, 16, 16), jnp.float32)
    params = init_params(kp)

    fwd = jax.jit(feature_extractor)
    out = jax.block_until_ready(fwd(x, params))
    assert out.shape == (2, 256, 4, 4), out.shape

    ref = jax.block_until_ready(_reference(x, params))
    err = float(jnp.max(jnp.abs(out - ref)))
    scale = float(jnp.max(jnp.abs(ref)))
    # bf16 MXU operands + bf16 inter-layer activations vs. an f32 reference.
    assert err <= 5e-2 * scale + 7.5e-2, (err, scale)

    print("KERNEL_OK")
</pallas_src>

<mosaic_0001>
module attributes {stable_mosaic.version = 11 : i64} {
  func.func @_conv_im2col_kernel(%arg0: i32, %arg1: i32, %arg2: memref<1x384x27xbf16, #tpu.memory_space<vmem>>, %arg3: memref<27x64xbf16, #tpu.memory_space<vmem>>, %arg4: memref<1x64xf32, #tpu.memory_space<vmem>>, %arg5: memref<1x384x64xbf16, #tpu.memory_space<vmem>>) attributes {dimension_semantics = [#tpu.dimension_semantics<parallel>, #tpu.dimension_semantics<parallel>], iteration_bounds = array<i64: 2, 1>, scalar_prefetch = 0 : i64, scratch_operands = 0 : i64, tpu.core_type = #tpu.core_type<tc>, window_params = [{transform_indices = @transform_0, window_bounds = array<i64: 1, 384, 27>}, {pipeline_mode = #tpu.pipeline_mode<synchronous>, transform_indices = @transform_1, window_bounds = array<i64: 27, 64>}, {pipeline_mode = #tpu.pipeline_mode<synchronous>, transform_indices = @transform_2, window_bounds = array<i64: 1, 64>}, {transform_indices = @transform_3, window_bounds = array<i64: 1, 384, 64>}]} {
    %c0 = arith.constant 0 : index
    %c0_0 = arith.constant 0 : index
    %c0_1 = arith.constant 0 : index
    %0 = vector.load %arg2[%c0, %c0_0, %c0_1] : memref<1x384x27xbf16, #tpu.memory_space<vmem>>, vector<1x384x27xbf16>
    %1 = vector.shape_cast %0 : vector<1x384x27xbf16> to vector<384x27xbf16>
    %c0_2 = arith.constant 0 : index
    %c0_3 = arith.constant 0 : index
    %2 = vector.load %arg3[%c0_2, %c0_3] : memref<27x64xbf16, #tpu.memory_space<vmem>>, vector<27x64xbf16>
    %cst = arith.constant dense<0.000000e+00> : vector<384x64xf32>
    %3 = tpu.matmul %1, %2, %cst {dimension_numbers = #tpu.dot_dimension_numbers<[1], [0], [0], [1], [0, 0, 1, 1], [], []>} : vector<384x27xbf16>, vector<27x64xbf16>, vector<384x64xf32> -> vector<384x64xf32>
    %c0_4 = arith.constant 0 : index
    %c0_5 = arith.constant 0 : index
    %4 = vector.load %arg4[%c0_4, %c0_5] : memref<1x64xf32, #tpu.memory_space<vmem>>, vector<1x64xf32>
    %5 = vector.broadcast %4 : vector<1x64xf32> to vector<384x64xf32>
    %6 = arith.addf %3, %5 : vector<384x64xf32>
    %cst_6 = arith.constant 0.000000e+00 : f32
    %7 = vector.broadcast %cst_6 : f32 to vector<384x64xf32>
    %8 = arith.maximumf %6, %7 : vector<384x64xf32>
    %9 = arith.truncf %8 : vector<384x64xf32> to vector<384x64xbf16>
    %c0_7 = arith.constant 0 : index
    %c0_8 = arith.constant 0 : index
    %c0_9 = arith.constant 0 : index
    %10 = vector.load %arg5[%c0_7, %c0_8, %c0_9] : memref<1x384x64xbf16, #tpu.memory_space<vmem>>, vector<1x384x64xbf16>
    %11 = vector.shape_cast %10 : vector<1x384x64xbf16> to vector<384x64xbf16>
    %12 = vector.shape_cast %9 : vector<384x64xbf16> to vector<1x384x64xbf16>
    tpu.vector_store %arg5[%c0_7, %c0_8, %c0_9], %12 {strides = array<i32>} : memref<1x384x64xbf16, #tpu.memory_space<vmem>>, vector<1x384x64xbf16>,
    return
  }
  func.func @transform_0(%arg0: i32, %arg1: i32) -> (i32, i32, i32) {
    %c0_i32 = arith.constant 0 : i32
    %c0_i32_0 = arith.constant 0 : i32
    return %arg0, %arg1, %c0_i32 : i32, i32, i32
  }
  func.func @transform_1(%arg0: i32, %arg1: i32) -> (i32, i32) {
    %c0_i32 = arith.constant 0 : i32
    %c0_i32_0 = arith.constant 0 : i32
    %c0_i32_1 = arith.constant 0 : i32
    return %c0_i32, %c0_i32_0 : i32, i32
  }
  func.func @transform_2(%arg0: i32, %arg1: i32) -> (i32, i32) {
    %c0_i32 = arith.constant 0 : i32
    %c0_i32_0 = arith.constant 0 : i32
    %c0_i32_1 = arith.constant 0 : i32
    return %c0_i32, %c0_i32_0 : i32, i32
  }
  func.func @transform_3(%arg0: i32, %arg1: i32) -> (i32, i32, i32) {
    %c0_i32 = arith.constant 0 : i32
    %c0_i32_0 = arith.constant 0 : i32
    return %arg0, %arg1, %c0_i32 : i32, i32, i32
  }
}

module attributes {stable_mosaic.version = 11 : i64} {
  func.func @_conv3_kernel(%arg0: i32, %arg1: i32, %arg2: memref<1x384x192xbf16, #tpu.memory_space<vmem>>, %arg3: memref<1x48x192xbf16, #tpu.memory_space<vmem>>, %arg4: memref<3x192x64xbf16, #tpu.memory_space<vmem>>, %arg5: memref<1x64xf32, #tpu.memory_space<vmem>>, %arg6: memref<1x384x64xbf16, #tpu.memory_space<vmem>>, %arg7: memref<384x64xf32, #tpu.memory_space<vmem>>) attributes {dimension_semantics = [#tpu.dimension_semantics<parallel>, #tpu.dimension_semantics<parallel>], iteration_bounds = array<i64: 2, 1>, scalar_prefetch = 0 : i64, scratch_operands = 1 : i64, tpu.core_type = #tpu.core_type<tc>, window_params = [{transform_indices = @transform_0, window_bounds = array<i64: 1, 384, 192>}, {transform_indices = @transform_1, window_bounds = array<i64: 1, 48, 192>}, {pipeline_mode = #tpu.pipeline_mode<synchronous>, transform_indices = @transform_2, window_bounds = array<i64: 3, 192, 64>}, {pipeline_mode = #tpu.pipeline_mode<synchronous>, transform_indices = @transform_3, window_bounds = array<i64: 1, 64>}, {transform_indices = @transform_4, window_bounds = array<i64: 1, 384, 64>}]} {
    %c0 = arith.constant 0 : index
    %c0_0 = arith.constant 0 : index
    %c0_1 = arith.constant 0 : index
    %0 = vector.load %arg2[%c0, %c0_0, %c0_1] : memref<1x384x192xbf16, #tpu.memory_space<vmem>>, vector<1x384x192xbf16>
    %1 = vector.shape_cast %0 : vector<1x384x192xbf16> to vector<384x192xbf16>
    %c0_2 = arith.constant 0 : index
    %c0_3 = arith.constant 0 : index
    %c0_4 = arith.constant 0 : index
    %2 = vector.load %arg4[%c0_2, %c0_3, %c0_4] : memref<3x192x64xbf16, #tpu.memory_space<vmem>>, vector<1x192x64xbf16>
    %3 = vector.shape_cast %2 : vector<1x192x64xbf16> to vector<192x64xbf16>
    %cst = arith.constant dense<0.000000e+00> : vector<384x64xf32>
    %4 = tpu.matmul %1, %3, %cst {dimension_numbers = #tpu.dot_dimension_numbers<[1], [0], [0], [1], [0, 0, 1, 1], [], []>} : vector<384x192xbf16>, vector<192x64xbf16>, vector<384x64xf32> -> vector<384x64xf32>
    %c0_5 = arith.constant 0 : index
    %c0_6 = arith.constant 0 : index
    %5 = vector.load %arg7[%c0_5, %c0_6] : memref<384x64xf32, #tpu.memory_space<vmem>>, vector<384x64xf32>
    tpu.vector_store %arg7[%c0_5, %c0_6], %4 {strides = array<i32>} : memref<384x64xf32, #tpu.memory_space<vmem>>, vector<384x64xf32>,
    %c0_7 = arith.constant 0 : index
    %c0_8 = arith.constant 0 : index
    %6 = vector.load %arg7[%c0_7, %c0_8] : memref<384x64xf32, #tpu.memory_space<vmem>>, vector<360x64xf32>
    %c0_9 = arith.constant 0 : index
    %c24 = arith.constant 24 : index
    %c0_10 = arith.constant 0 : index
    %7 = vector.load %arg2[%c0_9, %c24, %c0_10] : memref<1x384x192xbf16, #tpu.memory_space<vmem>>, vector<1x360x192xbf16>
    %8 = vector.shape_cast %7 : vector<1x360x192xbf16> to vector<360x192xbf16>
    %c1 = arith.constant 1 : index
    %c0_11 = arith.constant 0 : index
    %c0_12 = arith.constant 0 : index
    %9 = vector.load %arg4[%c1, %c0_11, %c0_12] : memref<3x192x64xbf16, #tpu.memory_space<vmem>>, vector<1x192x64xbf16>
    %10 = vector.shape_cast %9 : vector<1x192x64xbf16> to vector<192x64xbf16>
    %cst_13 = arith.constant dense<0.000000e+00> : vector<360x64xf32>
    %11 = tpu.matmul %8, %10, %cst_13 {dimension_numbers = #tpu.dot_dimension_numbers<[1], [0], [0], [1], [0, 0, 1, 1], [], []>} : vector<360x192xbf16>, vector<192x64xbf16>, vector<360x64xf32> -> vector<360x64xf32>
    %12 = arith.addf %6, %11 : vector<360x64xf32>
    %c0_14 = arith.constant 0 : index
    %c0_15 = arith.constant 0 : index
    %13 = vector.load %arg7[%c0_14, %c0_15] : memref<384x64xf32, #tpu.memory_space<vmem>>, vector<360x64xf32>
    tpu.vector_store %arg7[%c0_14, %c0_15], %12 {strides = array<i32>} : memref<384x64xf32, #tpu.memory_space<vmem>>, vector<360x64xf32>,
    %c360 = arith.constant 360 : index
    %c0_16 = arith.constant 0 : index
    %14 = vector.load %arg7[%c360, %c0_16] : memref<384x64xf32, #tpu.memory_space<vmem>>, vector<24x64xf32>
    %c0_17 = arith.constant 0 : index
    %c0_18 = arith.constant 0 : index
    %c0_19 = arith.constant 0 : index
    %15 = vector.load %arg3[%c0_17, %c0_18, %c0_19] : memref<1x48x192xbf16, #tpu.memory_space<vmem>>, vector<1x24x192xbf16>
    %16 = vector.shape_cast %15 : vector<1x24x192xbf16> to vector<24x192xbf16>
    %c1_20 = arith.constant 1 : index
    %c0_21 = arith.constant 0 : index
    %c0_22 = arith.constant 0 : index
    %17 = vector.load %arg4[%c1_20, %c0_21, %c0_22] : memref<3x192x64xbf16, #tpu.memory_space<vmem>>, vector<1x192x64xbf16>
    %18 = vector.shape_cast %17 : vector<1x192x64xbf16> to vector<192x64xbf16>
    %cst_23 = arith.constant dense<0.000000e+00> : vector<24x64xf32>
    %19 = tpu.matmul %16, %18, %cst_23 {dimension_numbers = #tpu.dot_dimension_numbers<[1], [0], [0], [1], [0, 0, 1, 1], [], []>} : vector<24x192xbf16>, vector<192x64xbf16>, vector<24x64xf32> -> vector<24x64xf32>
    %20 = arith.addf %14, %19 : vector<24x64xf32>
    %c360_24 = arith.constant 360 : index
    %c0_25 = arith.constant 0 : index
    %21 = vector.load %arg7[%c360_24, %c0_25] : memref<384x64xf32, #tpu.memory_space<vmem>>, vector<24x64xf32>
    tpu.vector_store %arg7[%c360_24, %c0_25], %20 {strides = array<i32>} : memref<384x64xf32, #tpu.memory_space<vmem>>, vector<24x64xf32>,
    %c0_26 = arith.constant 0 : index
    %c0_27 = arith.constant 0 : index
    %22 = vector.load %arg7[%c0_26, %c0_27] : memref<384x64xf32, #tpu.memory_space<vmem>>, vector<336x64xf32>
    %c0_28 = arith.constant 0 : index
    %c48 = arith.constant 48 : index
    %c0_29 = arith.constant 0 : index
    %23 = vector.load %arg2[%c0_28, %c48, %c0_29] : memref<1x384x192xbf16, #tpu.memory_space<vmem>>, vector<1x336x192xbf16>
    %24 = vector.shape_cast %23 : vector<1x336x192xbf16> to vector<336x192xbf16>
    %c2 = arith.constant 2 : index
    %c0_30 = arith.constant 0 : index
    %c0_31 = arith.constant 0 : index
    %25 = vector.load %arg4[%c2, %c0_30, %c0_31] : memref<3x192x64xbf16, #tpu.memory_space<vmem>>, vector<1x192x64xbf16>
    %26 = vector.shape_cast %25 : vector<1x192x64xbf16> to vector<192x64xbf16>
    %cst_32 = arith.constant dense<0.000000e+00> : vector<336x64xf32>
    %27 = tpu.matmul %24, %26, %cst_32 {dimension_numbers = #tpu.dot_dimension_numbers<[1], [0], [0], [1], [0, 0, 1, 1], [], []>} : vector<336x192xbf16>, vector<192x64xbf16>, vector<336x64xf32> -> vector<336x64xf32>
    %28 = arith.addf %22, %27 : vector<336x64xf32>
    %c0_33 = arith.constant 0 : index
    %c0_34 = arith.constant 0 : index
    %29 = vector.load %arg7[%c0_33, %c0_34] : memref<384x64xf32, #tpu.memory_space<vmem>>, vector<336x64xf32>
    tpu.vector_store %arg7[%c0_33, %c0_34], %28 {strides = array<i32>} : memref<384x64xf32, #tpu.memory_space<vmem>>, vector<336x64xf32>,
    %c336 = arith.constant 336 : index
    %c0_35 = arith.constant 0 : index
    %30 = vector.load %arg7[%c336, %c0_35] : memref<384x64xf32, #tpu.memory_space<vmem>>, vector<48x64xf32>
    %c0_36 = arith.constant 0 : index
    %c0_37 = arith.constant 0 : index
    %c0_38 = arith.constant 0 : index
    %31 = vector.load %arg3[%c0_36, %c0_37, %c0_38] : memref<1x48x192xbf16, #tpu.memory_space<vmem>>, vector<1x48x192xbf16>
    %32 = vector.shape_cast %31 : vector<1x48x192xbf16> to vector<48x192xbf16>
    %c2_39 = arith.constant 2 : index
    %c0_40 = arith.constant 0 : index
    %c0_41 = arith.constant 0 : index
    %33 = vector.load %arg4[%c2_39, %c0_40, %c0_41] : memref<3x192x64xbf16, #tpu.memory_space<vmem>>, vector<1x192x64xbf16>
    %34 = vector.shape_cast %33 : vector<1x192x64xbf16> to vector<192x64xbf16>
    %cst_42 = arith.constant dense<0.000000e+00> : vector<48x64xf32>
    %35 = tpu.matmul %32, %34, %cst_42 {dimension_numbers = #tpu.dot_dimension_numbers<[1], [0], [0], [1], [0, 0, 1, 1], [], []>} : vector<48x192xbf16>, vector<192x64xbf16>, vector<48x64xf32> -> vector<48x64xf32>
    %36 = arith.addf %30, %35 : vector<48x64xf32>
    %c336_43 = arith.constant 336 : index
    %c0_44 = arith.constant 0 : index
    %37 = vector.load %arg7[%c336_43, %c0_44] : memref<384x64xf32, #tpu.memory_space<vmem>>, vector<48x64xf32>
    tpu.vector_store %arg7[%c336_43, %c0_44], %36 {strides = array<i32>} : memref<384x64xf32, #tpu.memory_space<vmem>>, vector<48x64xf32>,
    %c0_45 = arith.constant 0 : index
    %c0_46 = arith.constant 0 : index
    %38 = vector.load %arg7[%c0_45, %c0_46] : memref<384x64xf32, #tpu.memory_space<vmem>>, vector<384x64xf32>
    %c0_47 = arith.constant 0 : index
    %c0_48 = arith.constant 0 : index
    %39 = vector.load %arg5[%c0_47, %c0_48] : memref<1x64xf32, #tpu.memory_space<vmem>>, vector<1x64xf32>
    %40 = vector.broadcast %39 : vector<1x64xf32> to vector<384x64xf32>
    %41 = arith.addf %38, %40 : vector<384x64xf32>
    %cst_49 = arith.constant 0.000000e+00 : f32
    %42 = vector.broadcast %cst_49 : f32 to vector<384x64xf32>
    %43 = arith.maximumf %41, %42 : vector<384x64xf32>
    %44 = arith.truncf %43 : vector<384x64xf32> to vector<384x64xbf16>
    %c0_50 = arith.constant 0 : index
    %c0_51 = arith.constant 0 : index
    %c0_52 = arith.constant 0 : index
    %45 = vector.load %arg6[%c0_50, %c0_51, %c0_52] : memref<1x384x64xbf16, #tpu.memory_space<vmem>>, vector<1x384x64xbf16>
    %46 = vector.shape_cast %45 : vector<1x384x64xbf16> to vector<384x64xbf16>
    %47 = vector.shape_cast %44 : vector<384x64xbf16> to vector<1x384x64xbf16>
    tpu.vector_store %arg6[%c0_50, %c0_51, %c0_52], %47 {strides = array<i32>} : memref<1x384x64xbf16, #tpu.memory_space<vmem>>, vector<1x384x64xbf16>,
    return
  }
  func.func @transform_0(%arg0: i32, %arg1: i32) -> (i32, i32, i32) {
    %c0_i32 = arith.constant 0 : i32
    %c0_i32_0 = arith.constant 0 : i32
    return %arg0, %arg1, %c0_i32 : i32, i32, i32
  }
  func.func @transform_1(%arg0: i32, %arg1: i32) -> (i32, i32, i32) {
    %c1_i32 = arith.constant 1 : i32
    %0 = arith.addi %arg1, %c1_i32 : i32
    %c8_i32 = arith.constant 8 : i32
    %1 = arith.muli %0, %c8_i32 : i32
    %c0_i32 = arith.constant 0 : i32
    %c0_i32_0 = arith.constant 0 : i32
    return %arg0, %1, %c0_i32 : i32, i32, i32
  }
  func.func @transform_2(%arg0: i32, %arg1: i32) -> (i32, i32, i32) {
    %c0_i32 = arith.constant 0 : i32
    %c0_i32_0 = arith.constant 0 : i32
    %c0_i32_1 = arith.constant 0 : i32
    %c0_i32_2 = arith.constant 0 : i32
    return %c0_i32, %c0_i32_0, %c0_i32_1 : i32, i32, i32
  }
  func.func @transform_3(%arg0: i32, %arg1: i32) -> (i32, i32) {
    %c0_i32 = arith.constant 0 : i32
    %c0_i32_0 = arith.constant 0 : i32
    %c0_i32_1 = arith.constant 0 : i32
    return %c0_i32, %c0_i32_0 : i32, i32
  }
  func.func @transform_4(%arg0: i32, %arg1: i32) -> (i32, i32, i32) {
    %c0_i32 = arith.constant 0 : i32
    %c0_i32_0 = arith.constant 0 : i32
    return %arg0, %arg1, %c0_i32 : i32, i32, i32
  }
}

module attributes {stable_mosaic.version = 11 : i64} {
  func.func @_maxpool_kernel(%arg0: i32, %arg1: i32, %arg2: memref<1x8x2x8x128xbf16, #tpu.memory_space<vmem>>, %arg3: memref<1x8x8x64xbf16, #tpu.memory_space<vmem>>) attributes {dimension_semantics = [#tpu.dimension_semantics<parallel>, #tpu.dimension_semantics<parallel>], iteration_bounds = array<i64: 2, 1>, scalar_prefetch = 0 : i64, scratch_operands = 0 : i64, tpu.core_type = #tpu.core_type<tc>, window_params = [{transform_indices = @transform_0, window_bounds = array<i64: 1, 8, 2, 8, 128>}, {transform_indices = @transform_1, window_bounds = array<i64: 1, 8, 8, 64>}]} {
    %c0 = arith.constant 0 : index
    %c0_0 = arith.constant 0 : index
    %c0_1 = arith.constant 0 : index
    %c0_2 = arith.constant 0 : index
    %c0_3 = arith.constant 0 : index
    %0 = vector.load %arg2[%c0, %c0_0, %c0_1, %c0_2, %c0_3] : memref<1x8x2x8x128xbf16, #tpu.memory_space<vmem>>, vector<1x8x1x8x128xbf16>
    %1 = vector.shape_cast %0 : vector<1x8x1x8x128xbf16> to vector<8x8x128xbf16>
    %c0_4 = arith.constant 0 : index
    %c0_5 = arith.constant 0 : index
    %c1 = arith.constant 1 : index
    %c0_6 = arith.constant 0 : index
    %c0_7 = arith.constant 0 : index
    %2 = vector.load %arg2[%c0_4, %c0_5, %c1, %c0_6, %c0_7] : memref<1x8x2x8x128xbf16, #tpu.memory_space<vmem>>, vector<1x8x1x8x128xbf16>
    %3 = vector.shape_cast %2 : vector<1x8x1x8x128xbf16> to vector<8x8x128xbf16>
    %4 = arith.maximumf %1, %3 : vector<8x8x128xbf16>
    %5 = vector.extract_strided_slice %4 {offsets = [0, 0, 0], sizes = [8, 8, 64], strides = [1, 1, 1]} : vector<8x8x128xbf16> to vector<8x8x64xbf16>
    %6 = vector.extract_strided_slice %4 {offsets = [0, 0, 64], sizes = [8, 8, 64], strides = [1, 1, 1]} : vector<8x8x128xbf16> to vector<8x8x64xbf16>
    %7 = arith.maximumf %5, %6 : vector<8x8x64xbf16>
    %c0_8 = arith.constant 0 : index
    %c0_9 = arith.constant 0 : index
    %c0_10 = arith.constant 0 : index
    %c0_11 = arith.constant 0 : index
    %8 = vector.load %arg3[%c0_8, %c0_9, %c0_10, %c0_11] : memref<1x8x8x64xbf16, #tpu.memory_space<vmem>>, vector<1x8x8x64xbf16>
    %9 = vector.shape_cast %8 : vector<1x8x8x64xbf16> to vector<8x8x64xbf16>
    %10 = vector.shape_cast %7 : vector<8x8x64xbf16> to vector<1x8x8x64xbf16>
    tpu.vector_store %arg3[%c0_8, %c0_9, %c0_10, %c0_11], %10 {strides = array<i32>} : memref<1x8x8x64xbf16, #tpu.memory_space<vmem>>, vector<1x8x8x64xbf16>,
    return
  }
  func.func @transform_0(%arg0: i32, %arg1: i32) -> (i32, i32, i32, i32, i32) {
    %c0_i32 = arith.constant 0 : i32
    %c0_i32_0 = arith.constant 0 : i32
    %c0_i32_1 = arith.constant 0 : i32
    %c0_i32_2 = arith.constant 0 : i32
    return %arg0, %arg1, %c0_i32, %c0_i32_0, %c0_i32_1 : i32, i32, i32, i32, i32
  }
  func.func @transform_1(%arg0: i32, %arg1: i32) -> (i32, i32, i32, i32) {
    %c0_i32 = arith.constant 0 : i32
    %c0_i32_0 = arith.constant 0 : i32
    %c0_i32_1 = arith.constant 0 : i32
    return %arg0, %arg1, %c0_i32, %c0_i32_0 : i32, i32, i32, i32
  }
}

module attributes {stable_mosaic.version = 11 : i64} {
  func.func @_conv3_kernel(%arg0: i32, %arg1: i32, %arg2: memref<1x128x192xbf16, #tpu.memory_space<vmem>>, %arg3: memref<1x32x192xbf16, #tpu.memory_space<vmem>>, %arg4: memref<3x192x128xbf16, #tpu.memory_space<vmem>>, %arg5: memref<1x128xf32, #tpu.memory_space<vmem>>, %arg6: memref<1x128x128xbf16, #tpu.memory_space<vmem>>, %arg7: memref<128x128xf32, #tpu.memory_space<vmem>>) attributes {dimension_semantics = [#tpu.dimension_semantics<parallel>, #tpu.dimension_semantics<parallel>], iteration_bounds = array<i64: 2, 1>, scalar_prefetch = 0 : i64, scratch_operands = 1 : i64, tpu.core_type = #tpu.core_type<tc>, window_params = [{transform_indices = @transform_0, window_bounds = array<i64: 1, 128, 192>}, {transform_indices = @transform_1, window_bounds = array<i64: 1, 32, 192>}, {pipeline_mode = #tpu.pipeline_mode<synchronous>, transform_indices = @transform_2, window_bounds = array<i64: 3, 192, 128>}, {pipeline_mode = #tpu.pipeline_mode<synchronous>, transform_indices = @transform_3, window_bounds = array<i64: 1, 128>}, {transform_indices = @transform_4, window_bounds = array<i64: 1, 128, 128>}]} {
    %c0 = arith.constant 0 : index
    %c0_0 = arith.constant 0 : index
    %c0_1 = arith.constant 0 : index
    %0 = vector.load %arg2[%c0, %c0_0, %c0_1] : memref<1x128x192xbf16, #tpu.memory_space<vmem>>, vector<1x128x192xbf16>
    %1 = vector.shape_cast %0 : vector<1x128x192xbf16> to vector<128x192xbf16>
    %c0_2 = arith.constant 0 : index
    %c0_3 = arith.constant 0 : index
    %c0_4 = arith.constant 0 : index
    %2 = vector.load %arg4[%c0_2, %c0_3, %c0_4] : memref<3x192x128xbf16, #tpu.memory_space<vmem>>, vector<1x192x128xbf16>
    %3 = vector.shape_cast %2 : vector<1x192x128xbf16> to vector<192x128xbf16>
    %cst = arith.constant dense<0.000000e+00> : vector<128x128xf32>
    %4 = tpu.matmul %1, %3, %cst {dimension_numbers = #tpu.dot_dimension_numbers<[1], [0], [0], [1], [0, 0, 1, 1], [], []>} : vector<128x192xbf16>, vector<192x128xbf16>, vector<128x128xf32> -> vector<128x128xf32>
    %c0_5 = arith.constant 0 : index
    %c0_6 = arith.constant 0 : index
    %5 = vector.load %arg7[%c0_5, %c0_6] : memref<128x128xf32, #tpu.memory_space<vmem>>, vector<128x128xf32>
    tpu.vector_store %arg7[%c0_5, %c0_6], %4 {strides = array<i32>} : memref<128x128xf32, #tpu.memory_space<vmem>>, vector<128x128xf32>,
    %c0_7 = arith.constant 0 : index
    %c0_8 = arith.constant 0 : index
    %6 = vector.load %arg7[%c0_7, %c0_8] : memref<128x128xf32, #tpu.memory_space<vmem>>, vector<112x128xf32>
    %c0_9 = arith.constant 0 : index
    %c16 = arith.constant 16 : index
    %c0_10 = arith.constant 0 : index
    %7 = vector.load %arg2[%c0_9, %c16, %c0_10] : memref<1x128x192xbf16, #tpu.memory_space<vmem>>, vector<1x112x192xbf16>
    %8 = vector.shape_cast %7 : vector<1x112x192xbf16> to vector<112x192xbf16>
    %c1 = arith.constant 1 : index
    %c0_11 = arith.constant 0 : index
    %c0_12 = arith.constant 0 : index
    %9 = vector.load %arg4[%c1, %c0_11, %c0_12] : memref<3x192x128xbf16, #tpu.memory_space<vmem>>, vector<1x192x128xbf16>
    %10 = vector.shape_cast %9 : vector<1x192x128xbf16> to vector<192x128xbf16>
    %cst_13 = arith.constant dense<0.000000e+00> : vector<112x128xf32>
    %11 = tpu.matmul %8, %10, %cst_13 {dimension_numbers = #tpu.dot_dimension_numbers<[1], [0], [0], [1], [0, 0, 1, 1], [], []>} : vector<112x192xbf16>, vector<192x128xbf16>, vector<112x128xf32> -> vector<112x128xf32>
    %12 = arith.addf %6, %11 : vector<112x128xf32>
    %c0_14 = arith.constant 0 : index
    %c0_15 = arith.constant 0 : index
    %13 = vector.load %arg7[%c0_14, %c0_15] : memref<128x128xf32, #tpu.memory_space<vmem>>, vector<112x128xf32>
    tpu.vector_store %arg7[%c0_14, %c0_15], %12 {strides = array<i32>} : memref<128x128xf32, #tpu.memory_space<vmem>>, vector<112x128xf32>,
    %c112 = arith.constant 112 : index
    %c0_16 = arith.constant 0 : index
    %14 = vector.load %arg7[%c112, %c0_16] : memref<128x128xf32, #tpu.memory_space<vmem>>, vector<16x128xf32>
    %c0_17 = arith.constant 0 : index
    %c0_18 = arith.constant 0 : index
    %c0_19 = arith.constant 0 : index
    %15 = vector.load %arg3[%c0_17, %c0_18, %c0_19] : memref<1x32x192xbf16, #tpu.memory_space<vmem>>, vector<1x16x192xbf16>
    %16 = vector.shape_cast %15 : vector<1x16x192xbf16> to vector<16x192xbf16>
    %c1_20 = arith.constant 1 : index
    %c0_21 = arith.constant 0 : index
    %c0_22 = arith.constant 0 : index
    %17 = vector.load %arg4[%c1_20, %c0_21, %c0_22] : memref<3x192x128xbf16, #tpu.memory_space<vmem>>, vector<1x192x128xbf16>
    %18 = vector.shape_cast %17 : vector<1x192x128xbf16> to vector<192x128xbf16>
    %cst_23 = arith.constant dense<0.000000e+00> : vector<16x128xf32>
    %19 = tpu.matmul %16, %18, %cst_23 {dimension_numbers = #tpu.dot_dimension_numbers<[1], [0], [0], [1], [0, 0, 1, 1], [], []>} : vector<16x192xbf16>, vector<192x128xbf16>, vector<16x128xf32> -> vector<16x128xf32>
    %20 = arith.addf %14, %19 : vector<16x128xf32>
    %c112_24 = arith.constant 112 : index
    %c0_25 = arith.constant 0 : index
    %21 = vector.load %arg7[%c112_24, %c0_25] : memref<128x128xf32, #tpu.memory_space<vmem>>, vector<16x128xf32>
    tpu.vector_store %arg7[%c112_24, %c0_25], %20 {strides = array<i32>} : memref<128x128xf32, #tpu.memory_space<vmem>>, vector<16x128xf32>,
    %c0_26 = arith.constant 0 : index
    %c0_27 = arith.constant 0 : index
    %22 = vector.load %arg7[%c0_26, %c0_27] : memref<128x128xf32, #tpu.memory_space<vmem>>, vector<96x128xf32>
    %c0_28 = arith.constant 0 : index
    %c32 = arith.constant 32 : index
    %c0_29 = arith.constant 0 : index
    %23 = vector.load %arg2[%c0_28, %c32, %c0_29] : memref<1x128x192xbf16, #tpu.memory_space<vmem>>, vector<1x96x192xbf16>
    %24 = vector.shape_cast %23 : vector<1x96x192xbf16> to vector<96x192xbf16>
    %c2 = arith.constant 2 : index
    %c0_30 = arith.constant 0 : index
    %c0_31 = arith.constant 0 : index
    %25 = vector.load %arg4[%c2, %c0_30, %c0_31] : memref<3x192x128xbf16, #tpu.memory_space<vmem>>, vector<1x192x128xbf16>
    %26 = vector.shape_cast %25 : vector<1x192x128xbf16> to vector<192x128xbf16>
    %cst_32 = arith.constant dense<0.000000e+00> : vector<96x128xf32>
    %27 = tpu.matmul %24, %26, %cst_32 {dimension_numbers = #tpu.dot_dimension_numbers<[1], [0], [0], [1], [0, 0, 1, 1], [], []>} : vector<96x192xbf16>, vector<192x128xbf16>, vector<96x128xf32> -> vector<96x128xf32>
    %28 = arith.addf %22, %27 : vector<96x128xf32>
    %c0_33 = arith.constant 0 : index
    %c0_34 = arith.constant 0 : index
    %29 = vector.load %arg7[%c0_33, %c0_34] : memref<128x128xf32, #tpu.memory_space<vmem>>, vector<96x128xf32>
    tpu.vector_store %arg7[%c0_33, %c0_34], %28 {strides = array<i32>} : memref<128x128xf32, #tpu.memory_space<vmem>>, vector<96x128xf32>,
    %c96 = arith.constant 96 : index
    %c0_35 = arith.constant 0 : index
    %30 = vector.load %arg7[%c96, %c0_35] : memref<128x128xf32, #tpu.memory_space<vmem>>, vector<32x128xf32>
    %c0_36 = arith.constant 0 : index
    %c0_37 = arith.constant 0 : index
    %c0_38 = arith.constant 0 : index
    %31 = vector.load %arg3[%c0_36, %c0_37, %c0_38] : memref<1x32x192xbf16, #tpu.memory_space<vmem>>, vector<1x32x192xbf16>
    %32 = vector.shape_cast %31 : vector<1x32x192xbf16> to vector<32x192xbf16>
    %c2_39 = arith.constant 2 : index
    %c0_40 = arith.constant 0 : index
    %c0_41 = arith.constant 0 : index
    %33 = vector.load %arg4[%c2_39, %c0_40, %c0_41] : memref<3x192x128xbf16, #tpu.memory_space<vmem>>, vector<1x192x128xbf16>
    %34 = vector.shape_cast %33 : vector<1x192x128xbf16> to vector<192x128xbf16>
    %cst_42 = arith.constant dense<0.000000e+00> : vector<32x128xf32>
    %35 = tpu.matmul %32, %34, %cst_42 {dimension_numbers = #tpu.dot_dimension_numbers<[1], [0], [0], [1], [0, 0, 1, 1], [], []>} : vector<32x192xbf16>, vector<192x128xbf16>, vector<32x128xf32> -> vector<32x128xf32>
    %36 = arith.addf %30, %35 : vector<32x128xf32>
    %c96_43 = arith.constant 96 : index
    %c0_44 = arith.constant 0 : index
    %37 = vector.load %arg7[%c96_43, %c0_44] : memref<128x128xf32, #tpu.memory_space<vmem>>, vector<32x128xf32>
    tpu.vector_store %arg7[%c96_43, %c0_44], %36 {strides = array<i32>} : memref<128x128xf32, #tpu.memory_space<vmem>>, vector<32x128xf32>,
    %c0_45 = arith.constant 0 : index
    %c0_46 = arith.constant 0 : index
    %38 = vector.load %arg7[%c0_45, %c0_46] : memref<128x128xf32, #tpu.memory_space<vmem>>, vector<128x128xf32>
    %c0_47 = arith.constant 0 : index
    %c0_48 = arith.constant 0 : index
    %39 = vector.load %arg5[%c0_47, %c0_48] : memref<1x128xf32, #tpu.memory_space<vmem>>, vector<1x128xf32>
    %40 = vector.broadcast %39 : vector<1x128xf32> to vector<128x128xf32>
    %41 = arith.addf %38, %40 : vector<128x128xf32>
    %cst_49 = arith.constant 0.000000e+00 : f32
    %42 = vector.broadcast %cst_49 : f32 to vector<128x128xf32>
    %43 = arith.maximumf %41, %42 : vector<128x128xf32>
    %44 = arith.truncf %43 : vector<128x128xf32> to vector<128x128xbf16>
    %c0_50 = arith.constant 0 : index
    %c0_51 = arith.constant 0 : index
    %c0_52 = arith.constant 0 : index
    %45 = vector.load %arg6[%c0_50, %c0_51, %c0_52] : memref<1x128x128xbf16, #tpu.memory_space<vmem>>, vector<1x128x128xbf16>
    %46 = vector.shape_cast %45 : vector<1x128x128xbf16> to vector<128x128xbf16>
    %47 = vector.shape_cast %44 : vector<128x128xbf16> to vector<1x128x128xbf16>
    tpu.vector_store %arg6[%c0_50, %c0_51, %c0_52], %47 {strides = array<i32>} : memref<1x128x128xbf16, #tpu.memory_space<vmem>>, vector<1x128x128xbf16>,
    return
  }
  func.func @transform_0(%arg0: i32, %arg1: i32) -> (i32, i32, i32) {
    %c0_i32 = arith.constant 0 : i32
    %c0_i32_0 = arith.constant 0 : i32
    return %arg0, %arg1, %c0_i32 : i32, i32, i32
  }
  func.func @transform_1(%arg0: i32, %arg1: i32) -> (i32, i32, i32) {
    %c1_i32 = arith.constant 1 : i32
    %0 = arith.addi %arg1, %c1_i32 : i32
    %c4_i32 = arith.constant 4 : i32
    %1 = arith.muli %0, %c4_i32 : i32
    %c0_i32 = arith.constant 0 : i32
    %c0_i32_0 = arith.constant 0 : i32
    return %arg0, %1, %c0_i32 : i32, i32, i32
  }
  func.func @transform_2(%arg0: i32, %arg1: i32) -> (i32, i32, i32) {
    %c0_i32 = arith.constant 0 : i32
    %c0_i32_0 = arith.constant 0 : i32
    %c0_i32_1 = arith.constant 0 : i32
    %c0_i32_2 = arith.constant 0 : i32
    return %c0_i32, %c0_i32_0, %c0_i32_1 : i32, i32, i32
  }
  func.func @transform_3(%arg0: i32, %arg1: i32) -> (i32, i32) {
    %c0_i32 = arith.constant 0 : i32
    %c0_i32_0 = arith.constant 0 : i32
    %c0_i32_1 = arith.constant 0 : i32
    return %c0_i32, %c0_i32_0 : i32, i32
  }
  func.func @transform_4(%arg0: i32, %arg1: i32) -> (i32, i32, i32) {
    %c0_i32 = arith.constant 0 : i32
    %c0_i32_0 = arith.constant 0 : i32
    return %arg0, %arg1, %c0_i32 : i32, i32, i32
  }
}

module attributes {stable_mosaic.version = 11 : i64} {
  func.func @_conv3_kernel(%arg0: i32, %arg1: i32, %arg2: memref<1x128x384xbf16, #tpu.memory_space<vmem>>, %arg3: memref<1x32x384xbf16, #tpu.memory_space<vmem>>, %arg4: memref<3x384x128xbf16, #tpu.memory_space<vmem>>, %arg5: memref<1x128xf32, #tpu.memory_space<vmem>>, %arg6: memref<1x128x128xbf16, #tpu.memory_space<vmem>>, %arg7: memref<128x128xf32, #tpu.memory_space<vmem>>) attributes {dimension_semantics = [#tpu.dimension_semantics<parallel>, #tpu.dimension_semantics<parallel>], iteration_bounds = array<i64: 2, 1>, scalar_prefetch = 0 : i64, scratch_operands = 1 : i64, tpu.core_type = #tpu.core_type<tc>, window_params = [{transform_indices = @transform_0, window_bounds = array<i64: 1, 128, 384>}, {transform_indices = @transform_1, window_bounds = array<i64: 1, 32, 384>}, {pipeline_mode = #tpu.pipeline_mode<synchronous>, transform_indices = @transform_2, window_bounds = array<i64: 3, 384, 128>}, {pipeline_mode = #tpu.pipeline_mode<synchronous>, transform_indices = @transform_3, window_bounds = array<i64: 1, 128>}, {transform_indices = @transform_4, window_bounds = array<i64: 1, 128, 128>}]} {
    %c0 = arith.constant 0 : index
    %c0_0 = arith.constant 0 : index
    %c0_1 = arith.constant 0 : index
    %0 = vector.load %arg2[%c0, %c0_0, %c0_1] : memref<1x128x384xbf16, #tpu.memory_space<vmem>>, vector<1x128x384xbf16>
    %1 = vector.shape_cast %0 : vector<1x128x384xbf16> to vector<128x384xbf16>
    %c0_2 = arith.constant 0 : index
    %c0_3 = arith.constant 0 : index
    %c0_4 = arith.constant 0 : index
    %2 = vector.load %arg4[%c0_2, %c0_3, %c0_4] : memref<3x384x128xbf16, #tpu.memory_space<vmem>>, vector<1x384x128xbf16>
    %3 = vector.shape_cast %2 : vector<1x384x128xbf16> to vector<384x128xbf16>
    %cst = arith.constant dense<0.000000e+00> : vector<128x128xf32>
    %4 = tpu.matmul %1, %3, %cst {dimension_numbers = #tpu.dot_dimension_numbers<[1], [0], [0], [1], [0, 0, 1, 1], [], []>} : vector<128x384xbf16>, vector<384x128xbf16>, vector<128x128xf32> -> vector<128x128xf32>
    %c0_5 = arith.constant 0 : index
    %c0_6 = arith.constant 0 : index
    %5 = vector.load %arg7[%c0_5, %c0_6] : memref<128x128xf32, #tpu.memory_space<vmem>>, vector<128x128xf32>
    tpu.vector_store %arg7[%c0_5, %c0_6], %4 {strides = array<i32>} : memref<128x128xf32, #tpu.memory_space<vmem>>, vector<128x128xf32>,
    %c0_7 = arith.constant 0 : index
    %c0_8 = arith.constant 0 : index
    %6 = vector.load %arg7[%c0_7, %c0_8] : memref<128x128xf32, #tpu.memory_space<vmem>>, vector<112x128xf32>
    %c0_9 = arith.constant 0 : index
    %c16 = arith.constant 16 : index
    %c0_10 = arith.constant 0 : index
    %7 = vector.load %arg2[%c0_9, %c16, %c0_10] : memref<1x128x384xbf16, #tpu.memory_space<vmem>>, vector<1x112x384xbf16>
    %8 = vector.shape_cast %7 : vector<1x112x384xbf16> to vector<112x384xbf16>
    %c1 = arith.constant 1 : index
    %c0_11 = arith.constant 0 : index
    %c0_12 = arith.constant 0 : index
    %9 = vector.load %arg4[%c1, %c0_11, %c0_12] : memref<3x384x128xbf16, #tpu.memory_space<vmem>>, vector<1x384x128xbf16>
    %10 = vector.shape_cast %9 : vector<1x384x128xbf16> to vector<384x128xbf16>
    %cst_13 = arith.constant dense<0.000000e+00> : vector<112x128xf32>
    %11 = tpu.matmul %8, %10, %cst_13 {dimension_numbers = #tpu.dot_dimension_numbers<[1], [0], [0], [1], [0, 0, 1, 1], [], []>} : vector<112x384xbf16>, vector<384x128xbf16>, vector<112x128xf32> -> vector<112x128xf32>
    %12 = arith.addf %6, %11 : vector<112x128xf32>
    %c0_14 = arith.constant 0 : index
    %c0_15 = arith.constant 0 : index
    %13 = vector.load %arg7[%c0_14, %c0_15] : memref<128x128xf32, #tpu.memory_space<vmem>>, vector<112x128xf32>
    tpu.vector_store %arg7[%c0_14, %c0_15], %12 {strides = array<i32>} : memref<128x128xf32, #tpu.memory_space<vmem>>, vector<112x128xf32>,
    %c112 = arith.constant 112 : index
    %c0_16 = arith.constant 0 : index
    %14 = vector.load %arg7[%c112, %c0_16] : memref<128x128xf32, #tpu.memory_space<vmem>>, vector<16x128xf32>
    %c0_17 = arith.constant 0 : index
    %c0_18 = arith.constant 0 : index
    %c0_19 = arith.constant 0 : index
    %15 = vector.load %arg3[%c0_17, %c0_18, %c0_19] : memref<1x32x384xbf16, #tpu.memory_space<vmem>>, vector<1x16x384xbf16>
    %16 = vector.shape_cast %15 : vector<1x16x384xbf16> to vector<16x384xbf16>
    %c1_20 = arith.constant 1 : index
    %c0_21 = arith.constant 0 : index
    %c0_22 = arith.constant 0 : index
    %17 = vector.load %arg4[%c1_20, %c0_21, %c0_22] : memref<3x384x128xbf16, #tpu.memory_space<vmem>>, vector<1x384x128xbf16>
    %18 = vector.shape_cast %17 : vector<1x384x128xbf16> to vector<384x128xbf16>
    %cst_23 = arith.constant dense<0.000000e+00> : vector<16x128xf32>
    %19 = tpu.matmul %16, %18, %cst_23 {dimension_numbers = #tpu.dot_dimension_numbers<[1], [0], [0], [1], [0, 0, 1, 1], [], []>} : vector<16x384xbf16>, vector<384x128xbf16>, vector<16x128xf32> -> vector<16x128xf32>
    %20 = arith.addf %14, %19 : vector<16x128xf32>
    %c112_24 = arith.constant 112 : index
    %c0_25 = arith.constant 0 : index
    %21 = vector.load %arg7[%c112_24, %c0_25] : memref<128x128xf32, #tpu.memory_space<vmem>>, vector<16x128xf32>
    tpu.vector_store %arg7[%c112_24, %c0_25], %20 {strides = array<i32>} : memref<128x128xf32, #tpu.memory_space<vmem>>, vector<16x128xf32>,
    %c0_26 = arith.constant 0 : index
    %c0_27 = arith.constant 0 : index
    %22 = vector.load %arg7[%c0_26, %c0_27] : memref<128x128xf32, #tpu.memory_space<vmem>>, vector<96x128xf32>
    %c0_28 = arith.constant 0 : index
    %c32 = arith.constant 32 : index
    %c0_29 = arith.constant 0 : index
    %23 = vector.load %arg2[%c0_28, %c32, %c0_29] : memref<1x128x384xbf16, #tpu.memory_space<vmem>>, vector<1x96x384xbf16>
    %24 = vector.shape_cast %23 : vector<1x96x384xbf16> to vector<96x384xbf16>
    %c2 = arith.constant 2 : index
    %c0_30 = arith.constant 0 : index
    %c0_31 = arith.constant 0 : index
    %25 = vector.load %arg4[%c2, %c0_30, %c0_31] : memref<3x384x128xbf16, #tpu.memory_space<vmem>>, vector<1x384x128xbf16>
    %26 = vector.shape_cast %25 : vector<1x384x128xbf16> to vector<384x128xbf16>
    %cst_32 = arith.constant dense<0.000000e+00> : vector<96x128xf32>
    %27 = tpu.matmul %24, %26, %cst_32 {dimension_numbers = #tpu.dot_dimension_numbers<[1], [0], [0], [1], [0, 0, 1, 1], [], []>} : vector<96x384xbf16>, vector<384x128xbf16>, vector<96x128xf32> -> vector<96x128xf32>
    %28 = arith.addf %22, %27 : vector<96x128xf32>
    %c0_33 = arith.constant 0 : index
    %c0_34 = arith.constant 0 : index
    %29 = vector.load %arg7[%c0_33, %c0_34] : memref<128x128xf32, #tpu.memory_space<vmem>>, vector<96x128xf32>
    tpu.vector_store %arg7[%c0_33, %c0_34], %28 {strides = array<i32>} : memref<128x128xf32, #tpu.memory_space<vmem>>, vector<96x128xf32>,
    %c96 = arith.constant 96 : index
    %c0_35 = arith.constant 0 : index
    %30 = vector.load %arg7[%c96, %c0_35] : memref<128x128xf32, #tpu.memory_space<vmem>>, vector<32x128xf32>
    %c0_36 = arith.constant 0 : index
    %c0_37 = arith.constant 0 : index
    %c0_38 = arith.constant 0 : index
    %31 = vector.load %arg3[%c0_36, %c0_37, %c0_38] : memref<1x32x384xbf16, #tpu.memory_space<vmem>>, vector<1x32x384xbf16>
    %32 = vector.shape_cast %31 : vector<1x32x384xbf16> to vector<32x384xbf16>
    %c2_39 = arith.constant 2 : index
    %c0_40 = arith.constant 0 : index
    %c0_41 = arith.constant 0 : index
    %33 = vector.load %arg4[%c2_39, %c0_40, %c0_41] : memref<3x384x128xbf16, #tpu.memory_space<vmem>>, vector<1x384x128xbf16>
    %34 = vector.shape_cast %33 : vector<1x384x128xbf16> to vector<384x128xbf16>
    %cst_42 = arith.constant dense<0.000000e+00> : vector<32x128xf32>
    %35 = tpu.matmul %32, %34, %cst_42 {dimension_numbers = #tpu.dot_dimension_numbers<[1], [0], [0], [1], [0, 0, 1, 1], [], []>} : vector<32x384xbf16>, vector<384x128xbf16>, vector<32x128xf32> -> vector<32x128xf32>
    %36 = arith.addf %30, %35 : vector<32x128xf32>
    %c96_43 = arith.constant 96 : index
    %c0_44 = arith.constant 0 : index
    %37 = vector.load %arg7[%c96_43, %c0_44] : memref<128x128xf32, #tpu.memory_space<vmem>>, vector<32x128xf32>
    tpu.vector_store %arg7[%c96_43, %c0_44], %36 {strides = array<i32>} : memref<128x128xf32, #tpu.memory_space<vmem>>, vector<32x128xf32>,
    %c0_45 = arith.constant 0 : index
    %c0_46 = arith.constant 0 : index
    %38 = vector.load %arg7[%c0_45, %c0_46] : memref<128x128xf32, #tpu.memory_space<vmem>>, vector<128x128xf32>
    %c0_47 = arith.constant 0 : index
    %c0_48 = arith.constant 0 : index
    %39 = vector.load %arg5[%c0_47, %c0_48] : memref<1x128xf32, #tpu.memory_space<vmem>>, vector<1x128xf32>
    %40 = vector.broadcast %39 : vector<1x128xf32> to vector<128x128xf32>
    %41 = arith.addf %38, %40 : vector<128x128xf32>
    %cst_49 = arith.constant 0.000000e+00 : f32
    %42 = vector.broadcast %cst_49 : f32 to vector<128x128xf32>
    %43 = arith.maximumf %41, %42 : vector<128x128xf32>
    %44 = arith.truncf %43 : vector<128x128xf32> to vector<128x128xbf16>
    %c0_50 = arith.constant 0 : index
    %c0_51 = arith.constant 0 : index
    %c0_52 = arith.constant 0 : index
    %45 = vector.load %arg6[%c0_50, %c0_51, %c0_52] : memref<1x128x128xbf16, #tpu.memory_space<vmem>>, vector<1x128x128xbf16>
    %46 = vector.shape_cast %45 : vector<1x128x128xbf16> to vector<128x128xbf16>
    %47 = vector.shape_cast %44 : vector<128x128xbf16> to vector<1x128x128xbf16>
    tpu.vector_store %arg6[%c0_50, %c0_51, %c0_52], %47 {strides = array<i32>} : memref<1x128x128xbf16, #tpu.memory_space<vmem>>, vector<1x128x128xbf16>,
    return
  }
  func.func @transform_0(%arg0: i32, %arg1: i32) -> (i32, i32, i32) {
    %c0_i32 = arith.constant 0 : i32
    %c0_i32_0 = arith.constant 0 : i32
    return %arg0, %arg1, %c0_i32 : i32, i32, i32
  }
  func.func @transform_1(%arg0: i32, %arg1: i32) -> (i32, i32, i32) {
    %c1_i32 = arith.constant 1 : i32
    %0 = arith.addi %arg1, %c1_i32 : i32
    %c4_i32 = arith.constant 4 : i32
    %1 = arith.muli %0, %c4_i32 : i32
    %c0_i32 = arith.constant 0 : i32
    %c0_i32_0 = arith.constant 0 : i32
    return %arg0, %1, %c0_i32 : i32, i32, i32
  }
  func.func @transform_2(%arg0: i32, %arg1: i32) -> (i32, i32, i32) {
    %c0_i32 = arith.constant 0 : i32
    %c0_i32_0 = arith.constant 0 : i32
    %c0_i32_1 = arith.constant 0 : i32
    %c0_i32_2 = arith.constant 0 : i32
    return %c0_i32, %c0_i32_0, %c0_i32_1 : i32, i32, i32
  }
  func.func @transform_3(%arg0: i32, %arg1: i32) -> (i32, i32) {
    %c0_i32 = arith.constant 0 : i32
    %c0_i32_0 = arith.constant 0 : i32
    %c0_i32_1 = arith.constant 0 : i32
    return %c0_i32, %c0_i32_0 : i32, i32
  }
  func.func @transform_4(%arg0: i32, %arg1: i32) -> (i32, i32, i32) {
    %c0_i32 = arith.constant 0 : i32
    %c0_i32_0 = arith.constant 0 : i32
    return %arg0, %arg1, %c0_i32 : i32, i32, i32
  }
}

module attributes {stable_mosaic.version = 11 : i64} {
  func.func @_maxpool_kernel(%arg0: i32, %arg1: i32, %arg2: memref<1x4x2x4x256xbf16, #tpu.memory_space<vmem>>, %arg3: memref<1x4x4x128xbf16, #tpu.memory_space<vmem>>) attributes {dimension_semantics = [#tpu.dimension_semantics<parallel>, #tpu.dimension_semantics<parallel>], iteration_bounds = array<i64: 2, 1>, scalar_prefetch = 0 : i64, scratch_operands = 0 : i64, tpu.core_type = #tpu.core_type<tc>, window_params = [{transform_indices = @transform_0, window_bounds = array<i64: 1, 4, 2, 4, 256>}, {transform_indices = @transform_1, window_bounds = array<i64: 1, 4, 4, 128>}]} {
    %c0 = arith.constant 0 : index
    %c0_0 = arith.constant 0 : index
    %c0_1 = arith.constant 0 : index
    %c0_2 = arith.constant 0 : index
    %c0_3 = arith.constant 0 : index
    %0 = vector.load %arg2[%c0, %c0_0, %c0_1, %c0_2, %c0_3] : memref<1x4x2x4x256xbf16, #tpu.memory_space<vmem>>, vector<1x4x1x4x256xbf16>
    %1 = vector.shape_cast %0 : vector<1x4x1x4x256xbf16> to vector<4x4x256xbf16>
    %c0_4 = arith.constant 0 : index
    %c0_5 = arith.constant 0 : index
    %c1 = arith.constant 1 : index
    %c0_6 = arith.constant 0 : index
    %c0_7 = arith.constant 0 : index
    %2 = vector.load %arg2[%c0_4, %c0_5, %c1, %c0_6, %c0_7] : memref<1x4x2x4x256xbf16, #tpu.memory_space<vmem>>, vector<1x4x1x4x256xbf16>
    %3 = vector.shape_cast %2 : vector<1x4x1x4x256xbf16> to vector<4x4x256xbf16>
    %4 = arith.maximumf %1, %3 : vector<4x4x256xbf16>
    %5 = vector.extract_strided_slice %4 {offsets = [0, 0, 0], sizes = [4, 4, 128], strides = [1, 1, 1]} : vector<4x4x256xbf16> to vector<4x4x128xbf16>
    %6 = vector.extract_strided_slice %4 {offsets = [0, 0, 128], sizes = [4, 4, 128], strides = [1, 1, 1]} : vector<4x4x256xbf16> to vector<4x4x128xbf16>
    %7 = arith.maximumf %5, %6 : vector<4x4x128xbf16>
    %c0_8 = arith.constant 0 : index
    %c0_9 = arith.constant 0 : index
    %c0_10 = arith.constant 0 : index
    %c0_11 = arith.constant 0 : index
    %8 = vector.load %arg3[%c0_8, %c0_9, %c0_10, %c0_11] : memref<1x4x4x128xbf16, #tpu.memory_space<vmem>>, vector<1x4x4x128xbf16>
    %9 = vector.shape_cast %8 : vector<1x4x4x128xbf16> to vector<4x4x128xbf16>
    %10 = vector.shape_cast %7 : vector<4x4x128xbf16> to vector<1x4x4x128xbf16>
    tpu.vector_store %arg3[%c0_8, %c0_9, %c0_10, %c0_11], %10 {strides = array<i32>} : memref<1x4x4x128xbf16, #tpu.memory_space<vmem>>, vector<1x4x4x128xbf16>,
    return
  }
  func.func @transform_0(%arg0: i32, %arg1: i32) -> (i32, i32, i32, i32, i32) {
    %c0_i32 = arith.constant 0 : i32
    %c0_i32_0 = arith.constant 0 : i32
    %c0_i32_1 = arith.constant 0 : i32
    %c0_i32_2 = arith.constant 0 : i32
    return %arg0, %arg1, %c0_i32, %c0_i32_0, %c0_i32_1 : i32, i32, i32, i32, i32
  }
  func.func @transform_1(%arg0: i32, %arg1: i32) -> (i32, i32, i32, i32) {
    %c0_i32 = arith.constant 0 : i32
    %c0_i32_0 = arith.constant 0 : i32
    %c0_i32_1 = arith.constant 0 : i32
    return %arg0, %arg1, %c0_i32, %c0_i32_0 : i32, i32, i32, i32
  }
}

module attributes {stable_mosaic.version = 11 : i64} {
  func.func @_conv3_kernel(%arg0: i32, %arg1: i32, %arg2: memref<1x32x384xbf16, #tpu.memory_space<vmem>>, %arg3: memref<1x16x384xbf16, #tpu.memory_space<vmem>>, %arg4: memref<3x384x256xbf16, #tpu.memory_space<vmem>>, %arg5: memref<1x256xf32, #tpu.memory_space<vmem>>, %arg6: memref<1x32x256xbf16, #tpu.memory_space<vmem>>, %arg7: memref<32x256xf32, #tpu.memory_space<vmem>>) attributes {dimension_semantics = [#tpu.dimension_semantics<parallel>, #tpu.dimension_semantics<parallel>], iteration_bounds = array<i64: 2, 1>, scalar_prefetch = 0 : i64, scratch_operands = 1 : i64, tpu.core_type = #tpu.core_type<tc>, window_params = [{transform_indices = @transform_0, window_bounds = array<i64: 1, 32, 384>}, {transform_indices = @transform_1, window_bounds = array<i64: 1, 16, 384>}, {pipeline_mode = #tpu.pipeline_mode<synchronous>, transform_indices = @transform_2, window_bounds = array<i64: 3, 384, 256>}, {pipeline_mode = #tpu.pipeline_mode<synchronous>, transform_indices = @transform_3, window_bounds = array<i64: 1, 256>}, {transform_indices = @transform_4, window_bounds = array<i64: 1, 32, 256>}]} {
    %c0 = arith.constant 0 : index
    %c0_0 = arith.constant 0 : index
    %c0_1 = arith.constant 0 : index
    %0 = vector.load %arg2[%c0, %c0_0, %c0_1] : memref<1x32x384xbf16, #tpu.memory_space<vmem>>, vector<1x32x384xbf16>
    %1 = vector.shape_cast %0 : vector<1x32x384xbf16> to vector<32x384xbf16>
    %c0_2 = arith.constant 0 : index
    %c0_3 = arith.constant 0 : index
    %c0_4 = arith.constant 0 : index
    %2 = vector.load %arg4[%c0_2, %c0_3, %c0_4] : memref<3x384x256xbf16, #tpu.memory_space<vmem>>, vector<1x384x256xbf16>
    %3 = vector.shape_cast %2 : vector<1x384x256xbf16> to vector<384x256xbf16>
    %cst = arith.constant dense<0.000000e+00> : vector<32x256xf32>
    %4 = tpu.matmul %1, %3, %cst {dimension_numbers = #tpu.dot_dimension_numbers<[1], [0], [0], [1], [0, 0, 1, 1], [], []>} : vector<32x384xbf16>, vector<384x256xbf16>, vector<32x256xf32> -> vector<32x256xf32>
    %c0_5 = arith.constant 0 : index
    %c0_6 = arith.constant 0 : index
    %5 = vector.load %arg7[%c0_5, %c0_6] : memref<32x256xf32, #tpu.memory_space<vmem>>, vector<32x256xf32>
    tpu.vector_store %arg7[%c0_5, %c0_6], %4 {strides = array<i32>} : memref<32x256xf32, #tpu.memory_space<vmem>>, vector<32x256xf32>,
    %c0_7 = arith.constant 0 : index
    %c0_8 = arith.constant 0 : index
    %6 = vector.load %arg7[%c0_7, %c0_8] : memref<32x256xf32, #tpu.memory_space<vmem>>, vector<24x256xf32>
    %c0_9 = arith.constant 0 : index
    %c8 = arith.constant 8 : index
    %c0_10 = arith.constant 0 : index
    %7 = vector.load %arg2[%c0_9, %c8, %c0_10] : memref<1x32x384xbf16, #tpu.memory_space<vmem>>, vector<1x24x384xbf16>
    %8 = vector.shape_cast %7 : vector<1x24x384xbf16> to vector<24x384xbf16>
    %c1 = arith.constant 1 : index
    %c0_11 = arith.constant 0 : index
    %c0_12 = arith.constant 0 : index
    %9 = vector.load %arg4[%c1, %c0_11, %c0_12] : memref<3x384x256xbf16, #tpu.memory_space<vmem>>, vector<1x384x256xbf16>
    %10 = vector.shape_cast %9 : vector<1x384x256xbf16> to vector<384x256xbf16>
    %cst_13 = arith.constant dense<0.000000e+00> : vector<24x256xf32>
    %11 = tpu.matmul %8, %10, %cst_13 {dimension_numbers = #tpu.dot_dimension_numbers<[1], [0], [0], [1], [0, 0, 1, 1], [], []>} : vector<24x384xbf16>, vector<384x256xbf16>, vector<24x256xf32> -> vector<24x256xf32>
    %12 = arith.addf %6, %11 : vector<24x256xf32>
    %c0_14 = arith.constant 0 : index
    %c0_15 = arith.constant 0 : index
    %13 = vector.load %arg7[%c0_14, %c0_15] : memref<32x256xf32, #tpu.memory_space<vmem>>, vector<24x256xf32>
    tpu.vector_store %arg7[%c0_14, %c0_15], %12 {strides = array<i32>} : memref<32x256xf32, #tpu.memory_space<vmem>>, vector<24x256xf32>,
    %c24 = arith.constant 24 : index
    %c0_16 = arith.constant 0 : index
    %14 = vector.load %arg7[%c24, %c0_16] : memref<32x256xf32, #tpu.memory_space<vmem>>, vector<8x256xf32>
    %c0_17 = arith.constant 0 : index
    %c0_18 = arith.constant 0 : index
    %c0_19 = arith.constant 0 : index
    %15 = vector.load %arg3[%c0_17, %c0_18, %c0_19] : memref<1x16x384xbf16, #tpu.memory_space<vmem>>, vector<1x8x384xbf16>
    %16 = vector.shape_cast %15 : vector<1x8x384xbf16> to vector<8x384xbf16>
    %c1_20 = arith.constant 1 : index
    %c0_21 = arith.constant 0 : index
    %c0_22 = arith.constant 0 : index
    %17 = vector.load %arg4[%c1_20, %c0_21, %c0_22] : memref<3x384x256xbf16, #tpu.memory_space<vmem>>, vector<1x384x256xbf16>
    %18 = vector.shape_cast %17 : vector<1x384x256xbf16> to vector<384x256xbf16>
    %cst_23 = arith.constant dense<0.000000e+00> : vector<8x256xf32>
    %19 = tpu.matmul %16, %18, %cst_23 {dimension_numbers = #tpu.dot_dimension_numbers<[1], [0], [0], [1], [0, 0, 1, 1], [], []>} : vector<8x384xbf16>, vector<384x256xbf16>, vector<8x256xf32> -> vector<8x256xf32>
    %20 = arith.addf %14, %19 : vector<8x256xf32>
    %c24_24 = arith.constant 24 : index
    %c0_25 = arith.constant 0 : index
    %21 = vector.load %arg7[%c24_24, %c0_25] : memref<32x256xf32, #tpu.memory_space<vmem>>, vector<8x256xf32>
    tpu.vector_store %arg7[%c24_24, %c0_25], %20 {strides = array<i32>} : memref<32x256xf32, #tpu.memory_space<vmem>>, vector<8x256xf32>,
    %c0_26 = arith.constant 0 : index
    %c0_27 = arith.constant 0 : index
    %22 = vector.load %arg7[%c0_26, %c0_27] : memref<32x256xf32, #tpu.memory_space<vmem>>, vector<16x256xf32>
    %c0_28 = arith.constant 0 : index
    %c16 = arith.constant 16 : index
    %c0_29 = arith.constant 0 : index
    %23 = vector.load %arg2[%c0_28, %c16, %c0_29] : memref<1x32x384xbf16, #tpu.memory_space<vmem>>, vector<1x16x384xbf16>
    %24 = vector.shape_cast %23 : vector<1x16x384xbf16> to vector<16x384xbf16>
    %c2 = arith.constant 2 : index
    %c0_30 = arith.constant 0 : index
    %c0_31 = arith.constant 0 : index
    %25 = vector.load %arg4[%c2, %c0_30, %c0_31] : memref<3x384x256xbf16, #tpu.memory_space<vmem>>, vector<1x384x256xbf16>
    %26 = vector.shape_cast %25 : vector<1x384x256xbf16> to vector<384x256xbf16>
    %cst_32 = arith.constant dense<0.000000e+00> : vector<16x256xf32>
    %27 = tpu.matmul %24, %26, %cst_32 {dimension_numbers = #tpu.dot_dimension_numbers<[1], [0], [0], [1], [0, 0, 1, 1], [], []>} : vector<16x384xbf16>, vector<384x256xbf16>, vector<16x256xf32> -> vector<16x256xf32>
    %28 = arith.addf %22, %27 : vector<16x256xf32>
    %c0_33 = arith.constant 0 : index
    %c0_34 = arith.constant 0 : index
    %29 = vector.load %arg7[%c0_33, %c0_34] : memref<32x256xf32, #tpu.memory_space<vmem>>, vector<16x256xf32>
    tpu.vector_store %arg7[%c0_33, %c0_34], %28 {strides = array<i32>} : memref<32x256xf32, #tpu.memory_space<vmem>>, vector<16x256xf32>,
    %c16_35 = arith.constant 16 : index
    %c0_36 = arith.constant 0 : index
    %30 = vector.load %arg7[%c16_35, %c0_36] : memref<32x256xf32, #tpu.memory_space<vmem>>, vector<16x256xf32>
    %c0_37 = arith.constant 0 : index
    %c0_38 = arith.constant 0 : index
    %c0_39 = arith.constant 0 : index
    %31 = vector.load %arg3[%c0_37, %c0_38, %c0_39] : memref<1x16x384xbf16, #tpu.memory_space<vmem>>, vector<1x16x384xbf16>
    %32 = vector.shape_cast %31 : vector<1x16x384xbf16> to vector<16x384xbf16>
    %c2_40 = arith.constant 2 : index
    %c0_41 = arith.constant 0 : index
    %c0_42 = arith.constant 0 : index
    %33 = vector.load %arg4[%c2_40, %c0_41, %c0_42] : memref<3x384x256xbf16, #tpu.memory_space<vmem>>, vector<1x384x256xbf16>
    %34 = vector.shape_cast %33 : vector<1x384x256xbf16> to vector<384x256xbf16>
    %cst_43 = arith.constant dense<0.000000e+00> : vector<16x256xf32>
    %35 = tpu.matmul %32, %34, %cst_43 {dimension_numbers = #tpu.dot_dimension_numbers<[1], [0], [0], [1], [0, 0, 1, 1], [], []>} : vector<16x384xbf16>, vector<384x256xbf16>, vector<16x256xf32> -> vector<16x256xf32>
    %36 = arith.addf %30, %35 : vector<16x256xf32>
    %c16_44 = arith.constant 16 : index
    %c0_45 = arith.constant 0 : index
    %37 = vector.load %arg7[%c16_44, %c0_45] : memref<32x256xf32, #tpu.memory_space<vmem>>, vector<16x256xf32>
    tpu.vector_store %arg7[%c16_44, %c0_45], %36 {strides = array<i32>} : memref<32x256xf32, #tpu.memory_space<vmem>>, vector<16x256xf32>,
    %c0_46 = arith.constant 0 : index
    %c0_47 = arith.constant 0 : index
    %38 = vector.load %arg7[%c0_46, %c0_47] : memref<32x256xf32, #tpu.memory_space<vmem>>, vector<32x256xf32>
    %c0_48 = arith.constant 0 : index
    %c0_49 = arith.constant 0 : index
    %39 = vector.load %arg5[%c0_48, %c0_49] : memref<1x256xf32, #tpu.memory_space<vmem>>, vector<1x256xf32>
    %40 = vector.broadcast %39 : vector<1x256xf32> to vector<32x256xf32>
    %41 = arith.addf %38, %40 : vector<32x256xf32>
    %cst_50 = arith.constant 0.000000e+00 : f32
    %42 = vector.broadcast %cst_50 : f32 to vector<32x256xf32>
    %43 = arith.maximumf %41, %42 : vector<32x256xf32>
    %44 = arith.truncf %43 : vector<32x256xf32> to vector<32x256xbf16>
    %c0_51 = arith.constant 0 : index
    %c0_52 = arith.constant 0 : index
    %c0_53 = arith.constant 0 : index
    %45 = vector.load %arg6[%c0_51, %c0_52, %c0_53] : memref<1x32x256xbf16, #tpu.memory_space<vmem>>, vector<1x32x256xbf16>
    %46 = vector.shape_cast %45 : vector<1x32x256xbf16> to vector<32x256xbf16>
    %47 = vector.shape_cast %44 : vector<32x256xbf16> to vector<1x32x256xbf16>
    tpu.vector_store %arg6[%c0_51, %c0_52, %c0_53], %47 {strides = array<i32>} : memref<1x32x256xbf16, #tpu.memory_space<vmem>>, vector<1x32x256xbf16>,
    return
  }
  func.func @transform_0(%arg0: i32, %arg1: i32) -> (i32, i32, i32) {
    %c0_i32 = arith.constant 0 : i32
    %c0_i32_0 = arith.constant 0 : i32
    return %arg0, %arg1, %c0_i32 : i32, i32, i32
  }
  func.func @transform_1(%arg0: i32, %arg1: i32) -> (i32, i32, i32) {
    %c1_i32 = arith.constant 1 : i32
    %0 = arith.addi %arg1, %c1_i32 : i32
    %c2_i32 = arith.constant 2 : i32
    %1 = arith.muli %0, %c2_i32 : i32
    %c0_i32 = arith.constant 0 : i32
    %c0_i32_0 = arith.constant 0 : i32
    return %arg0, %1, %c0_i32 : i32, i32, i32
  }
  func.func @transform_2(%arg0: i32, %arg1: i32) -> (i32, i32, i32) {
    %c0_i32 = arith.constant 0 : i32
    %c0_i32_0 = arith.constant 0 : i32
    %c0_i32_1 = arith.constant 0 : i32
    %c0_i32_2 = arith.constant 0 : i32
    return %c0_i32, %c0_i32_0, %c0_i32_1 : i32, i32, i32
  }
  func.func @transform_3(%arg0: i32, %arg1: i32) -> (i32, i32) {
    %c0_i32 = arith.constant 0 : i32
    %c0_i32_0 = arith.constant 0 : i32
    %c0_i32_1 = arith.constant 0 : i32
    return %c0_i32, %c0_i32_0 : i32, i32
  }
  func.func @transform_4(%arg0: i32, %arg1: i32) -> (i32, i32, i32) {
    %c0_i32 = arith.constant 0 : i32
    %c0_i32_0 = arith.constant 0 : i32
    return %arg0, %arg1, %c0_i32 : i32, i32, i32
  }
}

module attributes {stable_mosaic.version = 11 : i64} {
  func.func @_conv3_kernel(%arg0: i32, %arg1: i32, %arg2: memref<1x32x768xbf16, #tpu.memory_space<vmem>>, %arg3: memref<1x16x768xbf16, #tpu.memory_space<vmem>>, %arg4: memref<3x768x256xbf16, #tpu.memory_space<vmem>>, %arg5: memref<1x256xf32, #tpu.memory_space<vmem>>, %arg6: memref<1x32x256xbf16, #tpu.memory_space<vmem>>, %arg7: memref<32x256xf32, #tpu.memory_space<vmem>>) attributes {dimension_semantics = [#tpu.dimension_semantics<parallel>, #tpu.dimension_semantics<parallel>], iteration_bounds = array<i64: 2, 1>, scalar_prefetch = 0 : i64, scratch_operands = 1 : i64, tpu.core_type = #tpu.core_type<tc>, window_params = [{transform_indices = @transform_0, window_bounds = array<i64: 1, 32, 768>}, {transform_indices = @transform_1, window_bounds = array<i64: 1, 16, 768>}, {pipeline_mode = #tpu.pipeline_mode<synchronous>, transform_indices = @transform_2, window_bounds = array<i64: 3, 768, 256>}, {pipeline_mode = #tpu.pipeline_mode<synchronous>, transform_indices = @transform_3, window_bounds = array<i64: 1, 256>}, {transform_indices = @transform_4, window_bounds = array<i64: 1, 32, 256>}]} {
    %c0 = arith.constant 0 : index
    %c0_0 = arith.constant 0 : index
    %c0_1 = arith.constant 0 : index
    %0 = vector.load %arg2[%c0, %c0_0, %c0_1] : memref<1x32x768xbf16, #tpu.memory_space<vmem>>, vector<1x32x768xbf16>
    %1 = vector.shape_cast %0 : vector<1x32x768xbf16> to vector<32x768xbf16>
    %c0_2 = arith.constant 0 : index
    %c0_3 = arith.constant 0 : index
    %c0_4 = arith.constant 0 : index
    %2 = vector.load %arg4[%c0_2, %c0_3, %c0_4] : memref<3x768x256xbf16, #tpu.memory_space<vmem>>, vector<1x768x256xbf16>
    %3 = vector.shape_cast %2 : vector<1x768x256xbf16> to vector<768x256xbf16>
    %cst = arith.constant dense<0.000000e+00> : vector<32x256xf32>
    %4 = tpu.matmul %1, %3, %cst {dimension_numbers = #tpu.dot_dimension_numbers<[1], [0], [0], [1], [0, 0, 1, 1], [], []>} : vector<32x768xbf16>, vector<768x256xbf16>, vector<32x256xf32> -> vector<32x256xf32>
    %c0_5 = arith.constant 0 : index
    %c0_6 = arith.constant 0 : index
    %5 = vector.load %arg7[%c0_5, %c0_6] : memref<32x256xf32, #tpu.memory_space<vmem>>, vector<32x256xf32>
    tpu.vector_store %arg7[%c0_5, %c0_6], %4 {strides = array<i32>} : memref<32x256xf32, #tpu.memory_space<vmem>>, vector<32x256xf32>,
    %c0_7 = arith.constant 0 : index
    %c0_8 = arith.constant 0 : index
    %6 = vector.load %arg7[%c0_7, %c0_8] : memref<32x256xf32, #tpu.memory_space<vmem>>, vector<24x256xf32>
    %c0_9 = arith.constant 0 : index
    %c8 = arith.constant 8 : index
    %c0_10 = arith.constant 0 : index
    %7 = vector.load %arg2[%c0_9, %c8, %c0_10] : memref<1x32x768xbf16, #tpu.memory_space<vmem>>, vector<1x24x768xbf16>
    %8 = vector.shape_cast %7 : vector<1x24x768xbf16> to vector<24x768xbf16>
    %c1 = arith.constant 1 : index
    %c0_11 = arith.constant 0 : index
    %c0_12 = arith.constant 0 : index
    %9 = vector.load %arg4[%c1, %c0_11, %c0_12] : memref<3x768x256xbf16, #tpu.memory_space<vmem>>, vector<1x768x256xbf16>
    %10 = vector.shape_cast %9 : vector<1x768x256xbf16> to vector<768x256xbf16>
    %cst_13 = arith.constant dense<0.000000e+00> : vector<24x256xf32>
    %11 = tpu.matmul %8, %10, %cst_13 {dimension_numbers = #tpu.dot_dimension_numbers<[1], [0], [0], [1], [0, 0, 1, 1], [], []>} : vector<24x768xbf16>, vector<768x256xbf16>, vector<24x256xf32> -> vector<24x256xf32>
    %12 = arith.addf %6, %11 : vector<24x256xf32>
    %c0_14 = arith.constant 0 : index
    %c0_15 = arith.constant 0 : index
    %13 = vector.load %arg7[%c0_14, %c0_15] : memref<32x256xf32, #tpu.memory_space<vmem>>, vector<24x256xf32>
    tpu.vector_store %arg7[%c0_14, %c0_15], %12 {strides = array<i32>} : memref<32x256xf32, #tpu.memory_space<vmem>>, vector<24x256xf32>,
    %c24 = arith.constant 24 : index
    %c0_16 = arith.constant 0 : index
    %14 = vector.load %arg7[%c24, %c0_16] : memref<32x256xf32, #tpu.memory_space<vmem>>, vector<8x256xf32>
    %c0_17 = arith.constant 0 : index
    %c0_18 = arith.constant 0 : index
    %c0_19 = arith.constant 0 : index
    %15 = vector.load %arg3[%c0_17, %c0_18, %c0_19] : memref<1x16x768xbf16, #tpu.memory_space<vmem>>, vector<1x8x768xbf16>
    %16 = vector.shape_cast %15 : vector<1x8x768xbf16> to vector<8x768xbf16>
    %c1_20 = arith.constant 1 : index
    %c0_21 = arith.constant 0 : index
    %c0_22 = arith.constant 0 : index
    %17 = vector.load %arg4[%c1_20, %c0_21, %c0_22] : memref<3x768x256xbf16, #tpu.memory_space<vmem>>, vector<1x768x256xbf16>
    %18 = vector.shape_cast %17 : vector<1x768x256xbf16> to vector<768x256xbf16>
    %cst_23 = arith.constant dense<0.000000e+00> : vector<8x256xf32>
    %19 = tpu.matmul %16, %18, %cst_23 {dimension_numbers = #tpu.dot_dimension_numbers<[1], [0], [0], [1], [0, 0, 1, 1], [], []>} : vector<8x768xbf16>, vector<768x256xbf16>, vector<8x256xf32> -> vector<8x256xf32>
    %20 = arith.addf %14, %19 : vector<8x256xf32>
    %c24_24 = arith.constant 24 : index
    %c0_25 = arith.constant 0 : index
    %21 = vector.load %arg7[%c24_24, %c0_25] : memref<32x256xf32, #tpu.memory_space<vmem>>, vector<8x256xf32>
    tpu.vector_store %arg7[%c24_24, %c0_25], %20 {strides = array<i32>} : memref<32x256xf32, #tpu.memory_space<vmem>>, vector<8x256xf32>,
    %c0_26 = arith.constant 0 : index
    %c0_27 = arith.constant 0 : index
    %22 = vector.load %arg7[%c0_26, %c0_27] : memref<32x256xf32, #tpu.memory_space<vmem>>, vector<16x256xf32>
    %c0_28 = arith.constant 0 : index
    %c16 = arith.constant 16 : index
    %c0_29 = arith.constant 0 : index
    %23 = vector.load %arg2[%c0_28, %c16, %c0_29] : memref<1x32x768xbf16, #tpu.memory_space<vmem>>, vector<1x16x768xbf16>
    %24 = vector.shape_cast %23 : vector<1x16x768xbf16> to vector<16x768xbf16>
    %c2 = arith.constant 2 : index
    %c0_30 = arith.constant 0 : index
    %c0_31 = arith.constant 0 : index
    %25 = vector.load %arg4[%c2, %c0_30, %c0_31] : memref<3x768x256xbf16, #tpu.memory_space<vmem>>, vector<1x768x256xbf16>
    %26 = vector.shape_cast %25 : vector<1x768x256xbf16> to vector<768x256xbf16>
    %cst_32 = arith.constant dense<0.000000e+00> : vector<16x256xf32>
    %27 = tpu.matmul %24, %26, %cst_32 {dimension_numbers = #tpu.dot_dimension_numbers<[1], [0], [0], [1], [0, 0, 1, 1], [], []>} : vector<16x768xbf16>, vector<768x256xbf16>, vector<16x256xf32> -> vector<16x256xf32>
    %28 = arith.addf %22, %27 : vector<16x256xf32>
    %c0_33 = arith.constant 0 : index
    %c0_34 = arith.constant 0 : index
    %29 = vector.load %arg7[%c0_33, %c0_34] : memref<32x256xf32, #tpu.memory_space<vmem>>, vector<16x256xf32>
    tpu.vector_store %arg7[%c0_33, %c0_34], %28 {strides = array<i32>} : memref<32x256xf32, #tpu.memory_space<vmem>>, vector<16x256xf32>,
    %c16_35 = arith.constant 16 : index
    %c0_36 = arith.constant 0 : index
    %30 = vector.load %arg7[%c16_35, %c0_36] : memref<32x256xf32, #tpu.memory_space<vmem>>, vector<16x256xf32>
    %c0_37 = arith.constant 0 : index
    %c0_38 = arith.constant 0 : index
    %c0_39 = arith.constant 0 : index
    %31 = vector.load %arg3[%c0_37, %c0_38, %c0_39] : memref<1x16x768xbf16, #tpu.memory_space<vmem>>, vector<1x16x768xbf16>
    %32 = vector.shape_cast %31 : vector<1x16x768xbf16> to vector<16x768xbf16>
    %c2_40 = arith.constant 2 : index
    %c0_41 = arith.constant 0 : index
    %c0_42 = arith.constant 0 : index
    %33 = vector.load %arg4[%c2_40, %c0_41, %c0_42] : memref<3x768x256xbf16, #tpu.memory_space<vmem>>, vector<1x768x256xbf16>
    %34 = vector.shape_cast %33 : vector<1x768x256xbf16> to vector<768x256xbf16>
    %cst_43 = arith.constant dense<0.000000e+00> : vector<16x256xf32>
    %35 = tpu.matmul %32, %34, %cst_43 {dimension_numbers = #tpu.dot_dimension_numbers<[1], [0], [0], [1], [0, 0, 1, 1], [], []>} : vector<16x768xbf16>, vector<768x256xbf16>, vector<16x256xf32> -> vector<16x256xf32>
    %36 = arith.addf %30, %35 : vector<16x256xf32>
    %c16_44 = arith.constant 16 : index
    %c0_45 = arith.constant 0 : index
    %37 = vector.load %arg7[%c16_44, %c0_45] : memref<32x256xf32, #tpu.memory_space<vmem>>, vector<16x256xf32>
    tpu.vector_store %arg7[%c16_44, %c0_45], %36 {strides = array<i32>} : memref<32x256xf32, #tpu.memory_space<vmem>>, vector<16x256xf32>,
    %c0_46 = arith.constant 0 : index
    %c0_47 = arith.constant 0 : index
    %38 = vector.load %arg7[%c0_46, %c0_47] : memref<32x256xf32, #tpu.memory_space<vmem>>, vector<32x256xf32>
    %c0_48 = arith.constant 0 : index
    %c0_49 = arith.constant 0 : index
    %39 = vector.load %arg5[%c0_48, %c0_49] : memref<1x256xf32, #tpu.memory_space<vmem>>, vector<1x256xf32>
    %40 = vector.broadcast %39 : vector<1x256xf32> to vector<32x256xf32>
    %41 = arith.addf %38, %40 : vector<32x256xf32>
    %cst_50 = arith.constant 0.000000e+00 : f32
    %42 = vector.broadcast %cst_50 : f32 to vector<32x256xf32>
    %43 = arith.maximumf %41, %42 : vector<32x256xf32>
    %44 = arith.truncf %43 : vector<32x256xf32> to vector<32x256xbf16>
    %c0_51 = arith.constant 0 : index
    %c0_52 = arith.constant 0 : index
    %c0_53 = arith.constant 0 : index
    %45 = vector.load %arg6[%c0_51, %c0_52, %c0_53] : memref<1x32x256xbf16, #tpu.memory_space<vmem>>, vector<1x32x256xbf16>
    %46 = vector.shape_cast %45 : vector<1x32x256xbf16> to vector<32x256xbf16>
    %47 = vector.shape_cast %44 : vector<32x256xbf16> to vector<1x32x256xbf16>
    tpu.vector_store %arg6[%c0_51, %c0_52, %c0_53], %47 {strides = array<i32>} : memref<1x32x256xbf16, #tpu.memory_space<vmem>>, vector<1x32x256xbf16>,
    return
  }
  func.func @transform_0(%arg0: i32, %arg1: i32) -> (i32, i32, i32) {
    %c0_i32 = arith.constant 0 : i32
    %c0_i32_0 = arith.constant 0 : i32
    return %arg0, %arg1, %c0_i32 : i32, i32, i32
  }
  func.func @transform_1(%arg0: i32, %arg1: i32) -> (i32, i32, i32) {
    %c1_i32 = arith.constant 1 : i32
    %0 = arith.addi %arg1, %c1_i32 : i32
    %c2_i32 = arith.constant 2 : i32
    %1 = arith.muli %0, %c2_i32 : i32
    %c0_i32 = arith.constant 0 : i32
    %c0_i32_0 = arith.constant 0 : i32
    return %arg0, %1, %c0_i32 : i32, i32, i32
  }
  func.func @transform_2(%arg0: i32, %arg1: i32) -> (i32, i32, i32) {
    %c0_i32 = arith.constant 0 : i32
    %c0_i32_0 = arith.constant 0 : i32
    %c0_i32_1 = arith.constant 0 : i32
    %c0_i32_2 = arith.constant 0 : i32
    return %c0_i32, %c0_i32_0, %c0_i32_1 : i32, i32, i32
  }
  func.func @transform_3(%arg0: i32, %arg1: i32) -> (i32, i32) {
    %c0_i32 = arith.constant 0 : i32
    %c0_i32_0 = arith.constant 0 : i32
    %c0_i32_1 = arith.constant 0 : i32
    return %c0_i32, %c0_i32_0 : i32, i32
  }
  func.func @transform_4(%arg0: i32, %arg1: i32) -> (i32, i32, i32) {
    %c0_i32 = arith.constant 0 : i32
    %c0_i32_0 = arith.constant 0 : i32
    return %arg0, %arg1, %c0_i32 : i32, i32, i32
  }
}

module attributes {stable_mosaic.version = 11 : i64} {
  func.func @_conv3_kernel(%arg0: i32, %arg1: i32, %arg2: memref<1x32x768xbf16, #tpu.memory_space<vmem>>, %arg3: memref<1x16x768xbf16, #tpu.memory_space<vmem>>, %arg4: memref<3x768x256xbf16, #tpu.memory_space<vmem>>, %arg5: memref<1x256xf32, #tpu.memory_space<vmem>>, %arg6: memref<1x32x256xbf16, #tpu.memory_space<vmem>>, %arg7: memref<32x256xf32, #tpu.memory_space<vmem>>) attributes {dimension_semantics = [#tpu.dimension_semantics<parallel>, #tpu.dimension_semantics<parallel>], iteration_bounds = array<i64: 2, 1>, scalar_prefetch = 0 : i64, scratch_operands = 1 : i64, tpu.core_type = #tpu.core_type<tc>, window_params = [{transform_indices = @transform_0, window_bounds = array<i64: 1, 32, 768>}, {transform_indices = @transform_1, window_bounds = array<i64: 1, 16, 768>}, {pipeline_mode = #tpu.pipeline_mode<synchronous>, transform_indices = @transform_2, window_bounds = array<i64: 3, 768, 256>}, {pipeline_mode = #tpu.pipeline_mode<synchronous>, transform_indices = @transform_3, window_bounds = array<i64: 1, 256>}, {transform_indices = @transform_4, window_bounds = array<i64: 1, 32, 256>}]} {
    %c0 = arith.constant 0 : index
    %c0_0 = arith.constant 0 : index
    %c0_1 = arith.constant 0 : index
    %0 = vector.load %arg2[%c0, %c0_0, %c0_1] : memref<1x32x768xbf16, #tpu.memory_space<vmem>>, vector<1x32x768xbf16>
    %1 = vector.shape_cast %0 : vector<1x32x768xbf16> to vector<32x768xbf16>
    %c0_2 = arith.constant 0 : index
    %c0_3 = arith.constant 0 : index
    %c0_4 = arith.constant 0 : index
    %2 = vector.load %arg4[%c0_2, %c0_3, %c0_4] : memref<3x768x256xbf16, #tpu.memory_space<vmem>>, vector<1x768x256xbf16>
    %3 = vector.shape_cast %2 : vector<1x768x256xbf16> to vector<768x256xbf16>
    %cst = arith.constant dense<0.000000e+00> : vector<32x256xf32>
    %4 = tpu.matmul %1, %3, %cst {dimension_numbers = #tpu.dot_dimension_numbers<[1], [0], [0], [1], [0, 0, 1, 1], [], []>} : vector<32x768xbf16>, vector<768x256xbf16>, vector<32x256xf32> -> vector<32x256xf32>
    %c0_5 = arith.constant 0 : index
    %c0_6 = arith.constant 0 : index
    %5 = vector.load %arg7[%c0_5, %c0_6] : memref<32x256xf32, #tpu.memory_space<vmem>>, vector<32x256xf32>
    tpu.vector_store %arg7[%c0_5, %c0_6], %4 {strides = array<i32>} : memref<32x256xf32, #tpu.memory_space<vmem>>, vector<32x256xf32>,
    %c0_7 = arith.constant 0 : index
    %c0_8 = arith.constant 0 : index
    %6 = vector.load %arg7[%c0_7, %c0_8] : memref<32x256xf32, #tpu.memory_space<vmem>>, vector<24x256xf32>
    %c0_9 = arith.constant 0 : index
    %c8 = arith.constant 8 : index
    %c0_10 = arith.constant 0 : index
    %7 = vector.load %arg2[%c0_9, %c8, %c0_10] : memref<1x32x768xbf16, #tpu.memory_space<vmem>>, vector<1x24x768xbf16>
    %8 = vector.shape_cast %7 : vector<1x24x768xbf16> to vector<24x768xbf16>
    %c1 = arith.constant 1 : index
    %c0_11 = arith.constant 0 : index
    %c0_12 = arith.constant 0 : index
    %9 = vector.load %arg4[%c1, %c0_11, %c0_12] : memref<3x768x256xbf16, #tpu.memory_space<vmem>>, vector<1x768x256xbf16>
    %10 = vector.shape_cast %9 : vector<1x768x256xbf16> to vector<768x256xbf16>
    %cst_13 = arith.constant dense<0.000000e+00> : vector<24x256xf32>
    %11 = tpu.matmul %8, %10, %cst_13 {dimension_numbers = #tpu.dot_dimension_numbers<[1], [0], [0], [1], [0, 0, 1, 1], [], []>} : vector<24x768xbf16>, vector<768x256xbf16>, vector<24x256xf32> -> vector<24x256xf32>
    %12 = arith.addf %6, %11 : vector<24x256xf32>
    %c0_14 = arith.constant 0 : index
    %c0_15 = arith.constant 0 : index
    %13 = vector.load %arg7[%c0_14, %c0_15] : memref<32x256xf32, #tpu.memory_space<vmem>>, vector<24x256xf32>
    tpu.vector_store %arg7[%c0_14, %c0_15], %12 {strides = array<i32>} : memref<32x256xf32, #tpu.memory_space<vmem>>, vector<24x256xf32>,
    %c24 = arith.constant 24 : index
    %c0_16 = arith.constant 0 : index
    %14 = vector.load %arg7[%c24, %c0_16] : memref<32x256xf32, #tpu.memory_space<vmem>>, vector<8x256xf32>
    %c0_17 = arith.constant 0 : index
    %c0_18 = arith.constant 0 : index
    %c0_19 = arith.constant 0 : index
    %15 = vector.load %arg3[%c0_17, %c0_18, %c0_19] : memref<1x16x768xbf16, #tpu.memory_space<vmem>>, vector<1x8x768xbf16>
    %16 = vector.shape_cast %15 : vector<1x8x768xbf16> to vector<8x768xbf16>
    %c1_20 = arith.constant 1 : index
    %c0_21 = arith.constant 0 : index
    %c0_22 = arith.constant 0 : index
    %17 = vector.load %arg4[%c1_20, %c0_21, %c0_22] : memref<3x768x256xbf16, #tpu.memory_space<vmem>>, vector<1x768x256xbf16>
    %18 = vector.shape_cast %17 : vector<1x768x256xbf16> to vector<768x256xbf16>
    %cst_23 = arith.constant dense<0.000000e+00> : vector<8x256xf32>
    %19 = tpu.matmul %16, %18, %cst_23 {dimension_numbers = #tpu.dot_dimension_numbers<[1], [0], [0], [1], [0, 0, 1, 1], [], []>} : vector<8x768xbf16>, vector<768x256xbf16>, vector<8x256xf32> -> vector<8x256xf32>
    %20 = arith.addf %14, %19 : vector<8x256xf32>
    %c24_24 = arith.constant 24 : index
    %c0_25 = arith.constant 0 : index
    %21 = vector.load %arg7[%c24_24, %c0_25] : memref<32x256xf32, #tpu.memory_space<vmem>>, vector<8x256xf32>
    tpu.vector_store %arg7[%c24_24, %c0_25], %20 {strides = array<i32>} : memref<32x256xf32, #tpu.memory_space<vmem>>, vector<8x256xf32>,
    %c0_26 = arith.constant 0 : index
    %c0_27 = arith.constant 0 : index
    %22 = vector.load %arg7[%c0_26, %c0_27] : memref<32x256xf32, #tpu.memory_space<vmem>>, vector<16x256xf32>
    %c0_28 = arith.constant 0 : index
    %c16 = arith.constant 16 : index
    %c0_29 = arith.constant 0 : index
    %23 = vector.load %arg2[%c0_28, %c16, %c0_29] : memref<1x32x768xbf16, #tpu.memory_space<vmem>>, vector<1x16x768xbf16>
    %24 = vector.shape_cast %23 : vector<1x16x768xbf16> to vector<16x768xbf16>
    %c2 = arith.constant 2 : index
    %c0_30 = arith.constant 0 : index
    %c0_31 = arith.constant 0 : index
    %25 = vector.load %arg4[%c2, %c0_30, %c0_31] : memref<3x768x256xbf16, #tpu.memory_space<vmem>>, vector<1x768x256xbf16>
    %26 = vector.shape_cast %25 : vector<1x768x256xbf16> to vector<768x256xbf16>
    %cst_32 = arith.constant dense<0.000000e+00> : vector<16x256xf32>
    %27 = tpu.matmul %24, %26, %cst_32 {dimension_numbers = #tpu.dot_dimension_numbers<[1], [0], [0], [1], [0, 0, 1, 1], [], []>} : vector<16x768xbf16>, vector<768x256xbf16>, vector<16x256xf32> -> vector<16x256xf32>
    %28 = arith.addf %22, %27 : vector<16x256xf32>
    %c0_33 = arith.constant 0 : index
    %c0_34 = arith.constant 0 : index
    %29 = vector.load %arg7[%c0_33, %c0_34] : memref<32x256xf32, #tpu.memory_space<vmem>>, vector<16x256xf32>
    tpu.vector_store %arg7[%c0_33, %c0_34], %28 {strides = array<i32>} : memref<32x256xf32, #tpu.memory_space<vmem>>, vector<16x256xf32>,
    %c16_35 = arith.constant 16 : index
    %c0_36 = arith.constant 0 : index
    %30 = vector.load %arg7[%c16_35, %c0_36] : memref<32x256xf32, #tpu.memory_space<vmem>>, vector<16x256xf32>
    %c0_37 = arith.constant 0 : index
    %c0_38 = arith.constant 0 : index
    %c0_39 = arith.constant 0 : index
    %31 = vector.load %arg3[%c0_37, %c0_38, %c0_39] : memref<1x16x768xbf16, #tpu.memory_space<vmem>>, vector<1x16x768xbf16>
    %32 = vector.shape_cast %31 : vector<1x16x768xbf16> to vector<16x768xbf16>
    %c2_40 = arith.constant 2 : index
    %c0_41 = arith.constant 0 : index
    %c0_42 = arith.constant 0 : index
    %33 = vector.load %arg4[%c2_40, %c0_41, %c0_42] : memref<3x768x256xbf16, #tpu.memory_space<vmem>>, vector<1x768x256xbf16>
    %34 = vector.shape_cast %33 : vector<1x768x256xbf16> to vector<768x256xbf16>
    %cst_43 = arith.constant dense<0.000000e+00> : vector<16x256xf32>
    %35 = tpu.matmul %32, %34, %cst_43 {dimension_numbers = #tpu.dot_dimension_numbers<[1], [0], [0], [1], [0, 0, 1, 1], [], []>} : vector<16x768xbf16>, vector<768x256xbf16>, vector<16x256xf32> -> vector<16x256xf32>
    %36 = arith.addf %30, %35 : vector<16x256xf32>
    %c16_44 = arith.constant 16 : index
    %c0_45 = arith.constant 0 : index
    %37 = vector.load %arg7[%c16_44, %c0_45] : memref<32x256xf32, #tpu.memory_space<vmem>>, vector<16x256xf32>
    tpu.vector_store %arg7[%c16_44, %c0_45], %36 {strides = array<i32>} : memref<32x256xf32, #tpu.memory_space<vmem>>, vector<16x256xf32>,
    %c0_46 = arith.constant 0 : index
    %c0_47 = arith.constant 0 : index
    %38 = vector.load %arg7[%c0_46, %c0_47] : memref<32x256xf32, #tpu.memory_space<vmem>>, vector<32x256xf32>
    %c0_48 = arith.constant 0 : index
    %c0_49 = arith.constant 0 : index
    %39 = vector.load %arg5[%c0_48, %c0_49] : memref<1x256xf32, #tpu.memory_space<vmem>>, vector<1x256xf32>
    %40 = vector.broadcast %39 : vector<1x256xf32> to vector<32x256xf32>
    %41 = arith.addf %38, %40 : vector<32x256xf32>
    %42 = arith.truncf %41 : vector<32x256xf32> to vector<32x256xbf16>
    %c0_50 = arith.constant 0 : index
    %c0_51 = arith.constant 0 : index
    %c0_52 = arith.constant 0 : index
    %43 = vector.load %arg6[%c0_50, %c0_51, %c0_52] : memref<1x32x256xbf16, #tpu.memory_space<vmem>>, vector<1x32x256xbf16>
    %44 = vector.shape_cast %43 : vector<1x32x256xbf16> to vector<32x256xbf16>
    %45 = vector.shape_cast %42 : vector<32x256xbf16> to vector<1x32x256xbf16>
    tpu.vector_store %arg6[%c0_50, %c0_51, %c0_52], %45 {strides = array<i32>} : memref<1x32x256xbf16, #tpu.memory_space<vmem>>, vector<1x32x256xbf16>,
    return
  }
  func.func @transform_0(%arg0: i32, %arg1: i32) -> (i32, i32, i32) {
    %c0_i32 = arith.constant 0 : i32
    %c0_i32_0 = arith.constant 0 : i32
    return %arg0, %arg1, %c0_i32 : i32, i32, i32
  }
  func.func @transform_1(%arg0: i32, %arg1: i32) -> (i32, i32, i32) {
    %c1_i32 = arith.constant 1 : i32
    %0 = arith.addi %arg1, %c1_i32 : i32
    %c2_i32 = arith.constant 2 : i32
    %1 = arith.muli %0, %c2_i32 : i32
    %c0_i32 = arith.constant 0 : i32
    %c0_i32_0 = arith.constant 0 : i32
    return %arg0, %1, %c0_i32 : i32, i32, i32
  }
  func.func @transform_2(%arg0: i32, %arg1: i32) -> (i32, i32, i32) {
    %c0_i32 = arith.constant 0 : i32
    %c0_i32_0 = arith.constant 0 : i32
    %c0_i32_1 = arith.constant 0 : i32
    %c0_i32_2 = arith.constant 0 : i32
    return %c0_i32, %c0_i32_0, %c0_i32_1 : i32, i32, i32
  }
  func.func @transform_3(%arg0: i32, %arg1: i32) -> (i32, i32) {
    %c0_i32 = arith.constant 0 : i32
    %c0_i32_0 = arith.constant 0 : i32
    %c0_i32_1 = arith.constant 0 : i32
    return %c0_i32, %c0_i32_0 : i32, i32
  }
  func.func @transform_4(%arg0: i32, %arg1: i32) -> (i32, i32, i32) {
    %c0_i32 = arith.constant 0 : i32
    %c0_i32_0 = arith.constant 0 : i32
    return %arg0, %arg1, %c0_i32 : i32, i32, i32
  }
}

</mosaic_0001>

<bundles_post_ra>
// kernel: feature_extractor.9
= control target key start
LH: loop header
LB: loop body
LE: loop exit
PB: predicated region body
PF: predicated region fallthrough
CT: control target
= control target key end

     0   :  { %8 = vsyncpa [#allocation3], 0  ;;  %s1488_s12 = smov 0   ;;  %s1490_s13 = smov 0   ;;  %s1775_s0 = inlined_call_operand.vmem [shape: bf16[2,384,27], index: 0, kind: input, shape index: {}]   ;;  %s1776_s1 = inlined_call_operand.vmem [shape: bf16[27,64], index: 1, kind: input, shape index: {}]   ;;  %s1777_s2 = inlined_call_operand.hbm [shape: f32[1,64], index: 2, kind: input, shape index: {}]   ;;  %s1778_s3 = inlined_call_operand.vmem [shape: bf16[2,384,64], index: 3, kind: output, shape index: {}]  }
   0x1   :  { %s1492_s14 = smov 0  }
   0x2 LB: > { %s1107_s15 = sadd.s32 4294967295, %s1464_s14   ;;  %s26_s16 = sadd.s32 1, %s1460_s13  ;;  %s1464_s14 = sphi %s1492_s14, %s14_s14   ;;  %s1460_s13 = sphi %s1490_s13, %s1788_s13   ;;  %s1456_s12 = sphi %s1488_s12, %s1787_s12  }
   0x3   : > { %p28_p0 = scmp.ge.s32.totalorder %s26_s16, 2  ;;  %p1109_p1 = scmp.ge.s32.totalorder %s1464_s14, 1 }
   0x4   : > { %p129_p2 = scmp.lt.s32.totalorder %s1464_s14, 3  ;;  %p1513_p4 = scmp.eq.s32.totalorder %s1107_s15, 0 }
   0x5   : > { %s1790_s16 = smov (%p28_p0, %s26_s16), 0  ;;  %s1466_s19 = smov [#allocation2]  }
   0x6   : > { %p1509_p3 = pnand %p1109_p1, %p129_p2  ;;  %s145_s20 = sshll.u32 %s1466_s19, 4  ;;  %s146_s20 = int_to_ptr.vmem [resolvable:$true] %s145_s20 }
   0x7   : > { %s1783_s18 = scalar_select %p1513_p4, 1, 0 }
   0x8   : > { %s1782_s17 = scalar_select %p1509_p3, 1, 0 }
   0x9   : > { %p1352_p5 = pneg %p1509_p3  ;;  %s1410_s24 = scalar_lea.hbm %s1777_s2, 16 }
   0xa   : > { %p1411_p7 = scmp.ne.s32.totalorder %s1777_s2, %s1410_s24  ;;  %p1417_p11 = scmp.lt.u32.totalorder %s1410_s24, %s1777_s2 }
   0xb   : > { %p1521_p6 = pnand %p1513_p4, %p1352_p5 }
   0xd   : > { %p1412_p8 = pneg %p1521_p6 }
   0xf   : > { %p1413_p9 = pnand %p1412_p8, %p1411_p7 }
  0x11   : > { %p1414_p10 = pneg %p1413_p9 }
  0x13   : > { %p1419_p12 = pnand %p1417_p11, %p1414_p10 }
  0x15   : > { %1422 = shalt.err (!%p1419_p12)
}
  0x16   : > { %s1423_s29 = scalar_lea.vmem %s146_s20, 16  ;;  %s1430_s30 = scalar_lea.vmem %s146_s20, 32 }
  0x17   : > { %p1424_p13 = scmp.ne.s32.totalorder %s146_s20, %s1423_s29  ;;  %p1431_p2 = scmp.lt.s32.totalorder %s146_s20, %s146_s20 }
  0x18   : > { %p1432_p5 = scmp.lt.s32.totalorder %s1430_s30, %s1423_s29 }
  0x19   : > { %p1426_p0 = pnand %p1424_p13, %p1412_p8 }
  0x1a   : > { %p1433_p4 = por %p1432_p5, %p1431_p2 }
  0x1b   : > { %p1427_p1 = pneg %p1426_p0 }
  0x1d   : > { %p1434_p3 = pnand %p1433_p4, %p1427_p1 }
  0x1f   : > { %1437 = shalt.err (!%p1434_p3)
}
  0x20   : > { %1355 = dma.hbm_to_vmem [thread:$0]  (!%p1521_p6), %s1777_s2, 16, %s146_s20, [#allocation3]  }
  0x21   : > { %p1785_p7 = scmp.ne.s32.totalorder %s1782_s17, 0 }
  0x22   : > { %p1786_p9 = scmp.ne.s32.totalorder (!%p1785_p7), %s1783_s18, 0 }
  0x23   : > { %171 = sbr.rel (%p1785_p7) target bundleno = 316 (0x13c), region = 32 }
  0x2a   : > { %1451 = dma.done.wait (%p1786_p9), [#allocation3], 16  }
  0x2b   : > { %1453 = vsyncadd (%p1786_p9), [#allocation3], 4294967280  ;;  %p204_p8 = scmp.lt.s32.totalorder %s1456_s12, 1  ;;  %vm487_vm0 = vcmask 1044480   ;;  %vm488_vm1 = vcmask 1045504   ;;  %v1467_v0 = vmov 65535  }
  0x2c   : > { %v489_v1 = vsel %vm487_vm0, 4294967295, %v1467_v0  ;;  %vm414_vm2 = vcmask 220160   ;;  %v1384_v2 = vld [vmem:[%s1776_s1] sm:$0xff]   ;;  %v1385_v4 = vld [vmem:[%s1776_s1 + $0x8] sm:$0x3f]   ;;  %vm959_vm3 = vcmask 519168  }
  0x2d   : > { %s1792_s12 = smov (!%p204_p8, %s1456_s12), 1  ;;  %v490_v3 = vsel %vm488_vm1, %v489_v1, 0  ;;  %1291 = vmatprep.subr.bf16.mxu0 %v1384_v2  ;;  %1343 = vmatprep.subr.bf16.mxu1 %v1384_v2  ;;  %v1613_v30 = vld [vmem:[#allocation2] ss:$0 sm:$0xff] }
  0x2e   : > { %s1347_s6 = smul.u32 192, %s1792_s12  ;;  %1292 = vmatpush3.bf16.msra.mxu0 %v1384_v2  ;;  %1345 = vmatpush3.bf16.msra.mxu1 %v1384_v2  ;;  %v492_v6 = vand.u32 %v1385_v4, %v490_v3 }
  0x30   : > { %s1557_s9 = scalar_lea.vmem %s1775_s0, %s1347_s6  ;;  %1293 = vmatprep.subr.bf16.mxu0 %v492_v6  ;;  %1344 = vmatprep.subr.bf16.mxu1 %v492_v6  ;;  %s1626_s20 = scalar_lea.vmem %s1778_s3, %s1347_s6 }
  0x31   : > { %v1386_v5 = vld [vmem:[%s1557_s9] sm:$0xff]   ;;  %v1388_v8 = vld [vmem:[%s1557_s9 + $0x8] sm:$0xff]   ;;  %v1390_v10 = vld [vmem:[%s1557_s9 + $0x10] sm:$0xff]  }
  0x32   : > { %v1387_v7 = vld [vmem:[%s1557_s9 + $0x60] sm:$0xff]   ;;  %1295 = vmatprep.mubr.msk.bf16.mxu0 %vm414_vm2, %v1386_v5  ;;  %v1389_v9 = vld [vmem:[%s1557_s9 + $0x68] sm:$0xff]   ;;  %1294 = vmatpush3.bf16.msra.mxu0 %v492_v6  ;;  %v1391_v11 = vld [vmem:[%s1557_s9 + $0x70] sm:$0xff]  }
  0x33   : > { %1319 = vmatprep.mubr.msk.bf16.mxu1 %vm414_vm2, %v1387_v7  ;;  %1346 = vmatpush3.bf16.msra.mxu1 %v492_v6  ;;  %v1392_v12 = vld [vmem:[%s1557_s9 + $0x18] sm:$0xff]   ;;  %v1394_v14 = vld [vmem:[%s1557_s9 + $0x20] sm:$0xff]   ;;  %v1396_v16 = vld [vmem:[%s1557_s9 + $0x28] sm:$0xff]  }
  0x34   : > { %v1393_v13 = vld [vmem:[%s1557_s9 + $0x78] sm:$0xff]   ;;  %v1395_v15 = vld [vmem:[%s1557_s9 + $0x80] sm:$0xff]   ;;  %v1397_v17 = vld [vmem:[%s1557_s9 + $0x88] sm:$0xff]  }
  0x35   : > { %1296 = vmatmul.mubr.msk.bf16.vlgmr.msra.gmra.mrb[0].mxu0 %vm414_vm2, %v1388_v8  ;;  %v1398_v18 = vld [vmem:[%s1557_s9 + $0x30] sm:$0xff]   ;;  %v1400_v20 = vld [vmem:[%s1557_s9 + $0x38] sm:$0xff]   ;;  %v1402_v22 = vld [vmem:[%s1557_s9 + $0x40] sm:$0xff]  }
  0x36   : > { %1320 = vmatmul.mubr.msk.bf16.vlgmr.msra.gmra.mrb[0].mxu1 %vm414_vm2, %v1389_v9  ;;  %1299 = vmatprep.mubr.msk.bf16.mxu0 %vm414_vm2, %v1390_v10  ;;  %v1399_v19 = vld [vmem:[%s1557_s9 + $0x90] sm:$0xff]   ;;  %v1401_v21 = vld [vmem:[%s1557_s9 + $0x98] sm:$0xff]   ;;  %v1403_v23 = vld [vmem:[%s1557_s9 + $0xa0] sm:$0xff]  }
  0x37   : > { %1323 = vmatprep.mubr.msk.bf16.mxu1 %vm414_vm2, %v1391_v11  ;;  %v1404_v24 = vld [vmem:[%s1557_s9 + $0x48] sm:$0xff]   ;;  %v1406_v26 = vld [vmem:[%s1557_s9 + $0x50] sm:$0xff]   ;;  %v1408_v28 = vld [vmem:[%s1557_s9 + $0x58] sm:$0xff]  }
  0x38   : > { %v1405_v25 = vld [vmem:[%s1557_s9 + $0xa8] sm:$0xff]   ;;  %v1407_v27 = vld [vmem:[%s1557_s9 + $0xb0] sm:$0xff]   ;;  %v1409_v29 = vld [vmem:[%s1557_s9 + $0xb8] sm:$0xff]  }
  0x3d   : > { %1300 = vmatmul.mubr.msk.bf16.gmra.mrb[4].mxu0 %vm414_vm2, %v1392_v12 }
  0x3e   : > { %1324 = vmatmul.mubr.msk.bf16.gmra.mrb[4].mxu1 %vm414_vm2, %v1393_v13  ;;  %1303 = vmatprep.mubr.msk.bf16.mxu0 %vm414_vm2, %v1394_v14 }
  0x3f   : > { %1327 = vmatprep.mubr.msk.bf16.mxu1 %vm414_vm2, %v1395_v15 }
  0x45   : > { %1304 = vmatmul.mubr.msk.bf16.gmra.mrb[8].mxu0 %vm414_vm2, %v1396_v16 }
  0x46   : > { %1328 = vmatmul.mubr.msk.bf16.gmra.mrb[8].mxu1 %vm414_vm2, %v1397_v17  ;;  %1307 = vmatprep.mubr.msk.bf16.mxu0 %vm414_vm2, %v1398_v18 }
  0x47   : > { %1331 = vmatprep.mubr.msk.bf16.mxu1 %vm414_vm2, %v1399_v19 }
  0x4d   : > { %1308 = vmatmul.mubr.msk.bf16.gmra.mrb[12].mxu0 %vm414_vm2, %v1400_v20 }
  0x4e   : > { %1332 = vmatmul.mubr.msk.bf16.gmra.mrb[12].mxu1 %vm414_vm2, %v1401_v21  ;;  %1311 = vmatprep.mubr.msk.bf16.mxu0 %vm414_vm2, %v1402_v22 }
  0x4f   : > { %1335 = vmatprep.mubr.msk.bf16.mxu1 %vm414_vm2, %v1403_v23 }
  0x55   : > { %1312 = vmatmul.mubr.msk.bf16.gmra.mrb[16].mxu0 %vm414_vm2, %v1404_v24 }
  0x56   : > { %1336 = vmatmul.mubr.msk.bf16.gmra.mrb[16].mxu1 %vm414_vm2, %v1405_v25  ;;  %1315 = vmatprep.mubr.msk.bf16.mxu0 %vm414_vm2, %v1406_v26 }
  0x57   : > { %1339 = vmatprep.mubr.msk.bf16.mxu1 %vm414_vm2, %v1407_v27 }
  0x5d   : > { %1316 = vmatmul.mubr.msk.bf16.gmra.mrb[20].mxu0 %vm414_vm2, %v1408_v28 }
  0x5e   : > { %1340 = vmatmul.mubr.msk.bf16.gmra.mrb[20].mxu1 %vm414_vm2, %v1409_v29 }
 0x108   : > { %v1297_v31 = vpop.f32.mrb[0].mxu0 }
 0x109   : > { %v1321_v32 = vpop.f32.mrb[0].mxu1  ;;  %v537_v33 = vadd.f32 %v1297_v31, %v1613_v30  ;;  %v528_v35 = vpop.f32.mrb[1].mxu0 }
 0x10a   : > { %v633_v34 = vadd.f32 %v1321_v32, %v1613_v30  ;;  %v624_v36 = vpop.f32.mrb[1].mxu1  ;;  %v529_v37 = vadd.f32 %v1613_v30, %v528_v35  ;;  %v1298_v39 = vpop.f32.mrb[2].mxu0 }
 0x10b   : > { %v625_v38 = vadd.f32 %v1613_v30, %v624_v36  ;;  %v1322_v40 = vpop.f32.mrb[2].mxu1  ;;  %v721_v41 = vmax.f32 %v537_v33, 0.0  ;;  %v540_v43 = vadd.f32 %v1298_v39, %v1613_v30  ;;  %v531_v45 = vpop.f32.mrb[3].mxu0 }
 0x10c   : > { %v745_v42 = vmax.f32 %v633_v34, 0.0  ;;  %v636_v44 = vadd.f32 %v1322_v40, %v1613_v30  ;;  %v627_v46 = vpop.f32.mrb[3].mxu1  ;;  %v719_v47 = vmax.f32 %v529_v37, 0.0  ;;  %v532_v49 = vadd.f32 %v1613_v30, %v531_v45 }
 0x10d   : > { %v743_v48 = vmax.f32 %v625_v38, 0.0  ;;  %v628_v50 = vadd.f32 %v1613_v30, %v627_v46  ;;  %v1219_v51 = vpack.c.bf16 %v721_v41, %v721_v41  ;;  %v722_v53 = vmax.f32 %v540_v43, 0.0 }
 0x10e   : > { %v1243_v52 = vpack.c.bf16 %v745_v42, %v745_v42  ;;  %v746_v54 = vmax.f32 %v636_v44, 0.0  ;;  %v1217_v55 = vpack.c.bf16 %v719_v47, %v719_v47  ;;  %v720_v57 = vmax.f32 %v532_v49, 0.0 }
 0x10f   : > { %v1241_v56 = vpack.c.bf16 %v743_v48, %v743_v48  ;;  %v744_v58 = vmax.f32 %v628_v50, 0.0  ;;  %962 = vst.msk [vmem:[%s1626_s20 + $0x8] sm:$0xf] %vm959_vm3, %v1219_v51  ;;  %v1220_v59 = vpack.c.bf16 %v722_v53, %v722_v53 }
 0x110   : > { %986 = vst.msk [vmem:[%s1626_s20 + $0x68] sm:$0xf] %vm959_vm3, %v1243_v52  ;;  %v1244_v60 = vpack.c.bf16 %v746_v54, %v746_v54  ;;  %960 = vst.msk [vmem:[%s1626_s20] sm:$0xf] %vm959_vm3, %v1217_v55  ;;  %v1218_v61 = vpack.c.bf16 %v720_v57, %v720_v57  ;;  %v1301_v63 = vpop.f32.mrb[4].mxu0 }
 0x111   : > { %984 = vst.msk [vmem:[%s1626_s20 + $0x60] sm:$0xf] %vm959_vm3, %v1241_v56  ;;  %v1242_v62 = vpack.c.bf16 %v744_v58, %v744_v58  ;;  %v1325_v0 = vpop.f32.mrb[4].mxu1  ;;  %963 = vst.msk [vmem:[%s1626_s20 + $0xc] sm:$0xf] %vm959_vm3, %v1220_v59  ;;  %v553_v1 = vadd.f32 %v1301_v63, %v1613_v30  ;;  %v544_v3 = vpop.f32.mrb[5].mxu0 }
 0x112   : > { %987 = vst.msk [vmem:[%s1626_s20 + $0x6c] sm:$0xf] %vm959_vm3, %v1244_v60  ;;  %v649_v2 = vadd.f32 %v1325_v0, %v1613_v30  ;;  %v640_v4 = vpop.f32.mrb[5].mxu1  ;;  %961 = vst.msk [vmem:[%s1626_s20 + $0x4] sm:$0xf] %vm959_vm3, %v1218_v61  ;;  %v545_v5 = vadd.f32 %v1613_v30, %v544_v3  ;;  %v1302_v7 = vpop.f32.mrb[6].mxu0 }
 0x113   : > { %985 = vst.msk [vmem:[%s1626_s20 + $0x64] sm:$0xf] %vm959_vm3, %v1242_v62  ;;  %v641_v6 = vadd.f32 %v1613_v30, %v640_v4  ;;  %v1326_v8 = vpop.f32.mrb[6].mxu1  ;;  %v725_v9 = vmax.f32 %v553_v1, 0.0  ;;  %v556_v11 = vadd.f32 %v1302_v7, %v1613_v30  ;;  %v547_v13 = vpop.f32.mrb[7].mxu0 }
 0x114   : > { %v749_v10 = vmax.f32 %v649_v2, 0.0  ;;  %v652_v12 = vadd.f32 %v1326_v8, %v1613_v30  ;;  %v643_v14 = vpop.f32.mrb[7].mxu1  ;;  %v723_v15 = vmax.f32 %v545_v5, 0.0  ;;  %v548_v17 = vadd.f32 %v1613_v30, %v547_v13 }
 0x115   : > { %v747_v16 = vmax.f32 %v641_v6, 0.0  ;;  %v644_v18 = vadd.f32 %v1613_v30, %v643_v14  ;;  %v1223_v19 = vpack.c.bf16 %v725_v9, %v725_v9  ;;  %v726_v21 = vmax.f32 %v556_v11, 0.0 }
 0x116   : > { %v1247_v20 = vpack.c.bf16 %v749_v10, %v749_v10  ;;  %v750_v22 = vmax.f32 %v652_v12, 0.0  ;;  %v1221_v23 = vpack.c.bf16 %v723_v15, %v723_v15  ;;  %v724_v25 = vmax.f32 %v548_v17, 0.0 }
 0x117   : > { %v1245_v24 = vpack.c.bf16 %v747_v16, %v747_v16  ;;  %v748_v26 = vmax.f32 %v644_v18, 0.0  ;;  %966 = vst.msk [vmem:[%s1626_s20 + $0x18] sm:$0xf] %vm959_vm3, %v1223_v19  ;;  %v1224_v27 = vpack.c.bf16 %v726_v21, %v726_v21 }
 0x118   : > { %990 = vst.msk [vmem:[%s1626_s20 + $0x78] sm:$0xf] %vm959_vm3, %v1247_v20  ;;  %v1248_v28 = vpack.c.bf16 %v750_v22, %v750_v22  ;;  %964 = vst.msk [vmem:[%s1626_s20 + $0x10] sm:$0xf] %vm959_vm3, %v1221_v23  ;;  %v1222_v29 = vpack.c.bf16 %v724_v25, %v724_v25  ;;  %v1305_v32 = vpop.f32.mrb[8].mxu0 }
 0x119   : > { %988 = vst.msk [vmem:[%s1626_s20 + $0x70] sm:$0xf] %vm959_vm3, %v1245_v24  ;;  %v1246_v31 = vpack.c.bf16 %v748_v26, %v748_v26  ;;  %v1329_v33 = vpop.f32.mrb[8].mxu1  ;;  %967 = vst.msk [vmem:[%s1626_s20 + $0x1c] sm:$0xf] %vm959_vm3, %v1224_v27  ;;  %v569_v34 = vadd.f32 %v1305_v32, %v1613_v30  ;;  %v560_v36 = vpop.f32.mrb[9].mxu0 }
 0x11a   : > { %991 = vst.msk [vmem:[%s1626_s20 + $0x7c] sm:$0xf] %vm959_vm3, %v1248_v28  ;;  %v665_v35 = vadd.f32 %v1329_v33, %v1613_v30  ;;  %v656_v37 = vpop.f32.mrb[9].mxu1  ;;  %965 = vst.msk [vmem:[%s1626_s20 + $0x14] sm:$0xf] %vm959_vm3, %v1222_v29  ;;  %v561_v38 = vadd.f32 %v1613_v30, %v560_v36  ;;  %v1306_v40 = vpop.f32.mrb[10].mxu0 }
 0x11b   : > { %989 = vst.msk [vmem:[%s1626_s20 + $0x74] sm:$0xf] %vm959_vm3, %v1246_v31  ;;  %v657_v39 = vadd.f32 %v1613_v30, %v656_v37  ;;  %v1330_v41 = vpop.f32.mrb[10].mxu1  ;;  %v729_v42 = vmax.f32 %v569_v34, 0.0  ;;  %v572_v44 = vadd.f32 %v1306_v40, %v1613_v30  ;;  %v563_v46 = vpop.f32.mrb[11].mxu0 }
 0x11c   : > { %v753_v43 = vmax.f32 %v665_v35, 0.0  ;;  %v668_v45 = vadd.f32 %v1330_v41, %v1613_v30  ;;  %v659_v47 = vpop.f32.mrb[11].mxu1  ;;  %v727_v48 = vmax.f32 %v561_v38, 0.0  ;;  %v564_v50 = vadd.f32 %v1613_v30, %v563_v46 }
 0x11d   : > { %v751_v49 = vmax.f32 %v657_v39, 0.0  ;;  %v660_v51 = vadd.f32 %v1613_v30, %v659_v47  ;;  %v1227_v52 = vpack.c.bf16 %v729_v42, %v729_v42  ;;  %v730_v54 = vmax.f32 %v572_v44, 0.0 }
 0x11e   : > { %v1251_v53 = vpack.c.bf16 %v753_v43, %v753_v43  ;;  %v754_v55 = vmax.f32 %v668_v45, 0.0  ;;  %v1225_v56 = vpack.c.bf16 %v727_v48, %v727_v48  ;;  %v728_v58 = vmax.f32 %v564_v50, 0.0 }
 0x11f   : > { %v1249_v57 = vpack.c.bf16 %v751_v49, %v751_v49  ;;  %v752_v59 = vmax.f32 %v660_v51, 0.0  ;;  %970 = vst.msk [vmem:[%s1626_s20 + $0x28] sm:$0xf] %vm959_vm3, %v1227_v52  ;;  %v1228_v60 = vpack.c.bf16 %v730_v54, %v730_v54 }
 0x120   : > { %994 = vst.msk [vmem:[%s1626_s20 + $0x88] sm:$0xf] %vm959_vm3, %v1251_v53  ;;  %v1252_v61 = vpack.c.bf16 %v754_v55, %v754_v55  ;;  %968 = vst.msk [vmem:[%s1626_s20 + $0x20] sm:$0xf] %vm959_vm3, %v1225_v56  ;;  %v1226_v62 = vpack.c.bf16 %v728_v58, %v728_v58  ;;  %v1309_v0 = vpop.f32.mrb[12].mxu0 }
 0x121   : > { %992 = vst.msk [vmem:[%s1626_s20 + $0x80] sm:$0xf] %vm959_vm3, %v1249_v57  ;;  %v1250_v63 = vpack.c.bf16 %v752_v59, %v752_v59  ;;  %v1333_v1 = vpop.f32.mrb[12].mxu1  ;;  %971 = vst.msk [vmem:[%s1626_s20 + $0x2c] sm:$0xf] %vm959_vm3, %v1228_v60  ;;  %v585_v2 = vadd.f32 %v1309_v0, %v1613_v30  ;;  %v576_v4 = vpop.f32.mrb[13].mxu0 }
 0x122   : > { %995 = vst.msk [vmem:[%s1626_s20 + $0x8c] sm:$0xf] %vm959_vm3, %v1252_v61  ;;  %v681_v3 = vadd.f32 %v1333_v1, %v1613_v30  ;;  %v672_v5 = vpop.f32.mrb[13].mxu1  ;;  %969 = vst.msk [vmem:[%s1626_s20 + $0x24] sm:$0xf] %vm959_vm3, %v1226_v62  ;;  %v577_v6 = vadd.f32 %v1613_v30, %v576_v4  ;;  %v1310_v8 = vpop.f32.mrb[14].mxu0 }
 0x123   : > { %993 = vst.msk [vmem:[%s1626_s20 + $0x84] sm:$0xf] %vm959_vm3, %v1250_v63  ;;  %v673_v7 = vadd.f32 %v1613_v30, %v672_v5  ;;  %v1334_v9 = vpop.f32.mrb[14].mxu1  ;;  %v733_v10 = vmax.f32 %v585_v2, 0.0  ;;  %v588_v12 = vadd.f32 %v1310_v8, %v1613_v30  ;;  %v579_v14 = vpop.f32.mrb[15].mxu0 }
 0x124   : > { %v757_v11 = vmax.f32 %v681_v3, 0.0  ;;  %v684_v13 = vadd.f32 %v1334_v9, %v1613_v30  ;;  %v675_v15 = vpop.f32.mrb[15].mxu1  ;;  %v731_v16 = vmax.f32 %v577_v6, 0.0  ;;  %v580_v18 = vadd.f32 %v1613_v30, %v579_v14 }
 0x125   : > { %v755_v17 = vmax.f32 %v673_v7, 0.0  ;;  %v676_v19 = vadd.f32 %v1613_v30, %v675_v15  ;;  %v1231_v20 = vpack.c.bf16 %v733_v10, %v733_v10  ;;  %v734_v22 = vmax.f32 %v588_v12, 0.0 }
 0x126   : > { %v1255_v21 = vpack.c.bf16 %v757_v11, %v757_v11  ;;  %v758_v23 = vmax.f32 %v684_v13, 0.0  ;;  %v1229_v24 = vpack.c.bf16 %v731_v16, %v731_v16  ;;  %v732_v26 = vmax.f32 %v580_v18, 0.0 }
 0x127   : > { %v1253_v25 = vpack.c.bf16 %v755_v17, %v755_v17  ;;  %v756_v27 = vmax.f32 %v676_v19, 0.0  ;;  %974 = vst.msk [vmem:[%s1626_s20 + $0x38] sm:$0xf] %vm959_vm3, %v1231_v20  ;;  %v1232_v28 = vpack.c.bf16 %v734_v22, %v734_v22 }
 0x128   : > { %998 = vst.msk [vmem:[%s1626_s20 + $0x98] sm:$0xf] %vm959_vm3, %v1255_v21  ;;  %v1256_v29 = vpack.c.bf16 %v758_v23, %v758_v23  ;;  %972 = vst.msk [vmem:[%s1626_s20 + $0x30] sm:$0xf] %vm959_vm3, %v1229_v24  ;;  %v1230_v31 = vpack.c.bf16 %v732_v26, %v732_v26  ;;  %v1313_v33 = vpop.f32.mrb[16].mxu0 }
 0x129   : > { %996 = vst.msk [vmem:[%s1626_s20 + $0x90] sm:$0xf] %vm959_vm3, %v1253_v25  ;;  %v1254_v32 = vpack.c.bf16 %v756_v27, %v756_v27  ;;  %v1337_v34 = vpop.f32.mrb[16].mxu1  ;;  %975 = vst.msk [vmem:[%s1626_s20 + $0x3c] sm:$0xf] %vm959_vm3, %v1232_v28  ;;  %v601_v35 = vadd.f32 %v1313_v33, %v1613_v30  ;;  %v592_v37 = vpop.f32.mrb[17].mxu0 }
 0x12a   : > { %999 = vst.msk [vmem:[%s1626_s20 + $0x9c] sm:$0xf] %vm959_vm3, %v1256_v29  ;;  %v697_v36 = vadd.f32 %v1337_v34, %v1613_v30  ;;  %v688_v38 = vpop.f32.mrb[17].mxu1  ;;  %973 = vst.msk [vmem:[%s1626_s20 + $0x34] sm:$0xf] %vm959_vm3, %v1230_v31  ;;  %v593_v39 = vadd.f32 %v1613_v30, %v592_v37  ;;  %v1314_v41 = vpop.f32.mrb[18].mxu0 }
 0x12b   : > { %997 = vst.msk [vmem:[%s1626_s20 + $0x94] sm:$0xf] %vm959_vm3, %v1254_v32  ;;  %v689_v40 = vadd.f32 %v1613_v30, %v688_v38  ;;  %v1338_v42 = vpop.f32.mrb[18].mxu1  ;;  %v737_v43 = vmax.f32 %v601_v35, 0.0  ;;  %v604_v45 = vadd.f32 %v1314_v41, %v1613_v30  ;;  %v595_v47 = vpop.f32.mrb[19].mxu0 }
 0x12c   : > { %v761_v44 = vmax.f32 %v697_v36, 0.0  ;;  %v700_v46 = vadd.f32 %v1338_v42, %v1613_v30  ;;  %v691_v48 = vpop.f32.mrb[19].mxu1  ;;  %v735_v49 = vmax.f32 %v593_v39, 0.0  ;;  %v596_v51 = vadd.f32 %v1613_v30, %v595_v47 }
 0x12d   : > { %v759_v50 = vmax.f32 %v689_v40, 0.0  ;;  %v692_v52 = vadd.f32 %v1613_v30, %v691_v48  ;;  %v1235_v53 = vpack.c.bf16 %v737_v43, %v737_v43  ;;  %v738_v55 = vmax.f32 %v604_v45, 0.0 }
 0x12e   : > { %v1259_v54 = vpack.c.bf16 %v761_v44, %v761_v44  ;;  %v762_v56 = vmax.f32 %v700_v46, 0.0  ;;  %v1233_v57 = vpack.c.bf16 %v735_v49, %v735_v49  ;;  %v736_v59 = vmax.f32 %v596_v51, 0.0 }
 0x12f   : > { %v1257_v58 = vpack.c.bf16 %v759_v50, %v759_v50  ;;  %v760_v60 = vmax.f32 %v692_v52, 0.0  ;;  %978 = vst.msk [vmem:[%s1626_s20 + $0x48] sm:$0xf] %vm959_vm3, %v1235_v53  ;;  %v1236_v61 = vpack.c.bf16 %v738_v55, %v738_v55 }
 0x130   : > { %1002 = vst.msk [vmem:[%s1626_s20 + $0xa8] sm:$0xf] %vm959_vm3, %v1259_v54  ;;  %v1260_v62 = vpack.c.bf16 %v762_v56, %v762_v56  ;;  %976 = vst.msk [vmem:[%s1626_s20 + $0x40] sm:$0xf] %vm959_vm3, %v1233_v57  ;;  %v1234_v63 = vpack.c.bf16 %v736_v59, %v736_v59  ;;  %v1317_v1 = vpop.f32.mrb[20].mxu0 }
 0x131   : > { %1000 = vst.msk [vmem:[%s1626_s20 + $0xa0] sm:$0xf] %vm959_vm3, %v1257_v58  ;;  %v1258_v0 = vpack.c.bf16 %v760_v60, %v760_v60  ;;  %v1341_v2 = vpop.f32.mrb[20].mxu1  ;;  %979 = vst.msk [vmem:[%s1626_s20 + $0x4c] sm:$0xf] %vm959_vm3, %v1236_v61  ;;  %v617_v3 = vadd.f32 %v1317_v1, %v1613_v30  ;;  %v608_v5 = vpop.f32.mrb[21].mxu0 }
 0x132   : > { %1003 = vst.msk [vmem:[%s1626_s20 + $0xac] sm:$0xf] %vm959_vm3, %v1260_v62  ;;  %v713_v4 = vadd.f32 %v1341_v2, %v1613_v30  ;;  %v704_v6 = vpop.f32.mrb[21].mxu1  ;;  %977 = vst.msk [vmem:[%s1626_s20 + $0x44] sm:$0xf] %vm959_vm3, %v1234_v63  ;;  %v609_v7 = vadd.f32 %v1613_v30, %v608_v5  ;;  %v1318_v9 = vpop.f32.mrb[22].mxu0 }
 0x133   : > { %1001 = vst.msk [vmem:[%s1626_s20 + $0xa4] sm:$0xf] %vm959_vm3, %v1258_v0  ;;  %v705_v8 = vadd.f32 %v1613_v30, %v704_v6  ;;  %v1342_v10 = vpop.f32.mrb[22].mxu1  ;;  %v741_v11 = vmax.f32 %v617_v3, 0.0  ;;  %v620_v13 = vadd.f32 %v1318_v9, %v1613_v30  ;;  %v611_v15 = vpop.f32.mrb[23].mxu0 }
 0x134   : > { %v765_v12 = vmax.f32 %v713_v4, 0.0  ;;  %v716_v14 = vadd.f32 %v1342_v10, %v1613_v30  ;;  %v707_v16 = vpop.f32.mrb[23].mxu1  ;;  %v739_v17 = vmax.f32 %v609_v7, 0.0  ;;  %v612_v19 = vadd.f32 %v1613_v30, %v611_v15 }
 0x135   : > { %v763_v18 = vmax.f32 %v705_v8, 0.0  ;;  %v708_v20 = vadd.f32 %v1613_v30, %v707_v16  ;;  %v1239_v21 = vpack.c.bf16 %v741_v11, %v741_v11  ;;  %v742_v23 = vmax.f32 %v620_v13, 0.0 }
 0x136   : > { %v1263_v22 = vpack.c.bf16 %v765_v12, %v765_v12  ;;  %v766_v24 = vmax.f32 %v716_v14, 0.0  ;;  %v1237_v25 = vpack.c.bf16 %v739_v17, %v739_v17  ;;  %v740_v27 = vmax.f32 %v612_v19, 0.0 }
 0x137   : > { %v1261_v26 = vpack.c.bf16 %v763_v18, %v763_v18  ;;  %v764_v28 = vmax.f32 %v708_v20, 0.0  ;;  %982 = vst.msk [vmem:[%s1626_s20 + $0x58] sm:$0xf] %vm959_vm3, %v1239_v21  ;;  %v1240_v29 = vpack.c.bf16 %v742_v23, %v742_v23 }
 0x138   : > { %1006 = vst.msk [vmem:[%s1626_s20 + $0xb8] sm:$0xf] %vm959_vm3, %v1263_v22  ;;  %v1264_v31 = vpack.c.bf16 %v766_v24, %v766_v24  ;;  %980 = vst.msk [vmem:[%s1626_s20 + $0x50] sm:$0xf] %vm959_vm3, %v1237_v25  ;;  %v1238_v30 = vpack.c.bf16 %v740_v27, %v740_v27 }
 0x139   : > { %1004 = vst.msk [vmem:[%s1626_s20 + $0xb0] sm:$0xf] %vm959_vm3, %v1261_v26  ;;  %v1262_v32 = vpack.c.bf16 %v764_v28, %v764_v28  ;;  %983 = vst.msk [vmem:[%s1626_s20 + $0x5c] sm:$0xf] %vm959_vm3, %v1240_v29 }
 0x13a   : > { %1007 = vst.msk [vmem:[%s1626_s20 + $0xbc] sm:$0xf] %vm959_vm3, %v1264_v31  ;;  %981 = vst.msk [vmem:[%s1626_s20 + $0x54] sm:$0xf] %vm959_vm3, %v1238_v30 }
 0x13b   : > { %1005 = vst.msk [vmem:[%s1626_s20 + $0xb4] sm:$0xf] %vm959_vm3, %v1262_v32 }
 0x13c PF: > { %s14_s14 = sadd.s32 1, %s1464_s14   ;;  %s1787_s12 = smov %s1460_s13 }
 0x13d   : > { %p11_p3 = scmp.ge.s32.totalorder %s14_s14, 4   ;;  %s1788_s13 = smov %s1790_s16 }
 0x13f   :  { %13 = sbr.rel (!%p11_p3) target bundleno = 2 (0x2), region = 67 }
 0x146   :  { %1038 = vsyncpa [#allocation3], 1 }
 0x147   :  { %1040 = vsyncpa [#allocation3 + $0x1], 1 }

// kernel: feature_extractor.11
= control target key start
LH: loop header
LB: loop body
LE: loop exit
PB: predicated region body
PF: predicated region fallthrough
CT: control target
= control target key end

     0   :  { %s404_s6 = smov 0   ;;  %s406_s7 = smov 0   ;;  %s449_s0 = inlined_call_operand.vmem [shape: bf16[2,8,2,8,128], index: 0, kind: input, shape index: {}]   ;;  %s450_s1 = inlined_call_operand.vmem [shape: bf16[2,8,8,64], index: 1, kind: output, shape index: {}]  }
   0x1   :  { %s408_s8 = smov 0  }
   0x2 LB: > { %s23_s9 = sadd.s32 1, %s387_s7  ;;  %p327_p0 = scmp.ge.s32.totalorder %s391_s8, 1  ;;  %s391_s8 = sphi %s408_s8, %s11_s8   ;;  %s387_s7 = sphi %s406_s7, %s452_s7   ;;  %s383_s6 = sphi %s404_s6, %s451_s6  }
   0x3   : > { %p25_p1 = scmp.ge.s32.totalorder %s23_s9, 2  ;;  %p109_p2 = scmp.lt.s32.totalorder %s391_s8, 3 }
   0x5   : > { %s454_s9 = smov (%p25_p1, %s23_s9), 0  ;;  %p110_p3 = pnand %p327_p0, %p109_p2 }
   0x6   : > { %p139_p4 = scmp.lt.s32.totalorder (!%p110_p3), %s383_s6, 1  ;;  %s393_s14 = smov (!%p110_p3), 64   ;;  %vm224_vm0 = vcmask (!%p110_p3), 519168  }
   0x7   : > { %113 = sbr.rel (%p110_p3) target bundleno = 151 (0x97), region = 24 }
   0xe   : > { %s456_s6 = smov (!%p139_p4, %s383_s6), 1 }
   0xf   : > { %s342_s10 = sshll.u32 %s456_s6, 6  ;;  %s343_s15 = sshll.u32 %s456_s6, 5 }
  0x10   : > { %s147_s13 = scalar_lea.vmem %s449_s0, %s342_s10  ;;  %s157_s18 = scalar_lea.vmem %s450_s1, %s343_s15 }
  0x11   : > { %v161_v0 = vld [vmem:[%s147_s13 + $0x10] sm:$0xf]  ;;  %v334_v1 = vld [vmem:[%s147_s13 + $0x14] sm:$0xf]  ;;  %v159_v2 = vld [vmem:[%s147_s13] sm:$0xf] }
  0x12   : > { %v178_v3 = vmax.bf16 %v334_v1, %v161_v0  ;;  %v332_v4 = vld [vmem:[%s147_s13 + $0x4] sm:$0xf]  ;;  %v162_v5 = vld [vmem:[%s147_s13 + $0x18] sm:$0xf]  ;;  %v335_v6 = vld [vmem:[%s147_s13 + $0x1c] sm:$0xf] }
  0x13   : > { %v176_v7 = vmax.bf16 %v332_v4, %v159_v2  ;;  %v160_v8 = vld [vmem:[%s147_s13 + $0x8] sm:$0xf]  ;;  %v333_v9 = vld [vmem:[%s147_s13 + $0xc] sm:$0xf]  ;;  %v179_v10 = vmax.bf16 %v335_v6, %v162_v5  ;;  %v163_v14 = vld [vmem:[%s147_s13 + $0x20] sm:$0xf] }
  0x14   : > { %196 = vrot.lane.b32.xlu1 %v178_v3, %s393_s14  ;;  %v177_v11 = vmax.bf16 %v333_v9, %v160_v8  ;;  %v164_v12 = vld [vmem:[%s147_s13 + $0x28] sm:$0xf]  ;;  %v337_v13 = vld [vmem:[%s147_s13 + $0x2c] sm:$0xf]  ;;  %v336_v15 = vld [vmem:[%s147_s13 + $0x24] sm:$0xf] }
  0x15   : > { %192 = vrot.lane.b32.xlu0 %v176_v7, %s393_s14  ;;  %v181_v16 = vmax.bf16 %v337_v13, %v164_v12  ;;  %v180_v17 = vmax.bf16 %v336_v15, %v163_v14  ;;  %v166_v18 = vld [vmem:[%s147_s13 + $0x38] sm:$0xf]  ;;  %v339_v19 = vld [vmem:[%s147_s13 + $0x3c] sm:$0xf]  ;;  %v165_v20 = vld [vmem:[%s147_s13 + $0x30] sm:$0xf] }
  0x16   : > { %v338_v21 = vld [vmem:[%s147_s13 + $0x34] sm:$0xf]  ;;  %v183_v22 = vmax.bf16 %v339_v19, %v166_v18 }
  0x17   : > { %v182_v23 = vmax.bf16 %v338_v21, %v165_v20 }
  0x18   : > { %198 = vrot.lane.b32.xlu1 %v179_v10, %s393_s14 }
  0x19   : > { %194 = vrot.lane.b32.xlu0 %v177_v11, %s393_s14 }
  0x1c   : > { %202 = vrot.lane.b32.xlu1 %v181_v16, %s393_s14 }
  0x1d   : > { %200 = vrot.lane.b32.xlu0 %v180_v17, %s393_s14 }
  0x20   : > { %206 = vrot.lane.b32.xlu1 %v183_v22, %s393_s14 }
  0x21   : > { %204 = vrot.lane.b32.xlu0 %v182_v23, %s393_s14 }
  0x86   : > { %v197_v24 = vpop.permute.xlu1 %196 }
  0x87   : > { %v218_v25 = vmax.bf16 %v197_v24, %v178_v3  ;;  %v193_v26 = vpop.permute.xlu0 %192 }
  0x88   : > { %v216_v27 = vmax.bf16 %v193_v26, %v176_v7 }
  0x89   : > { %227 = vst.msk [vmem:[%s157_s18 + $0x8] sm:$0xf] %vm224_vm0, %v218_v25 }
  0x8a   : > { %225 = vst.msk [vmem:[%s157_s18] sm:$0xf] %vm224_vm0, %v216_v27  ;;  %v199_v28 = vpop.permute.xlu1 %198 }
  0x8b   : > { %v219_v29 = vmax.bf16 %v199_v28, %v179_v10  ;;  %v195_v30 = vpop.permute.xlu0 %194 }
  0x8c   : > { %v217_v31 = vmax.bf16 %v195_v30, %v177_v11 }
  0x8d   : > { %228 = vst.msk [vmem:[%s157_s18 + $0xc] sm:$0xf] %vm224_vm0, %v219_v29 }
  0x8e   : > { %226 = vst.msk [vmem:[%s157_s18 + $0x4] sm:$0xf] %vm224_vm0, %v217_v31  ;;  %v203_v32 = vpop.permute.xlu1 %202 }
  0x8f   : > { %v221_v33 = vmax.bf16 %v203_v32, %v181_v16  ;;  %v201_v34 = vpop.permute.xlu0 %200 }
  0x90   : > { %v220_v35 = vmax.bf16 %v201_v34, %v180_v17 }
  0x91   : > { %230 = vst.msk [vmem:[%s157_s18 + $0x14] sm:$0xf] %vm224_vm0, %v221_v33 }
  0x92   : > { %229 = vst.msk [vmem:[%s157_s18 + $0x10] sm:$0xf] %vm224_vm0, %v220_v35  ;;  %v207_v36 = vpop.permute.xlu1 %206 }
  0x93   : > { %v223_v37 = vmax.bf16 %v207_v36, %v183_v22  ;;  %v205_v38 = vpop.permute.xlu0 %204 }
  0x94   : > { %v222_v39 = vmax.bf16 %v205_v38, %v182_v23 }
  0x95   : > { %232 = vst.msk [vmem:[%s157_s18 + $0x1c] sm:$0xf] %vm224_vm0, %v223_v37 }
  0x96   : > { %231 = vst.msk [vmem:[%s157_s18 + $0x18] sm:$0xf] %vm224_vm0, %v222_v39 }
  0x97 PF: > { %s11_s8 = sadd.s32 1, %s391_s8   ;;  %s451_s6 = smov %s387_s7 }
  0x98   : > { %p8_p5 = scmp.ge.s32.totalorder %s11_s8, 4   ;;  %s452_s7 = smov %s454_s9 }
  0x9a   :  { %10 = sbr.rel (!%p8_p5) target bundleno = 2 (0x2), region = 55 }

// kernel: feature_extractor.10
= control target key start
LH: loop header
LB: loop body
LE: loop exit
PB: predicated region body
PF: predicated region fallthrough
CT: control target
= control target key end

     0   :  { %s4167_s15 = smov 0   ;;  %s4169_s16 = smov 0   ;;  %s5244_s0 = inlined_call_operand.vmem [shape: bf16[2,432,192], index: 0, kind: input, shape index: {}, may-alias: {0,1}]   ;;  %s5245_s1 = inlined_call_operand.vmem [shape: bf16[2,432,192], index: 1, kind: input, shape index: {}, may-alias: {0,1}]   ;;  %s5246_s2 = inlined_call_operand.vmem [shape: bf16[3,192,64], index: 2, kind: input, shape index: {}]   ;;  %s5247_s3 = inlined_call_operand.vmem [shape: f32[1,64], index: 3, kind: input, shape index: {}]   ;;  %s5248_s4 = inlined_call_operand.vmem [shape: bf16[2,384,64], index: 4, kind: output, shape index: {}]  }
   0x1   :  { %s4171_s17 = smov 0  }
   0x2 LB: > { %s26_s18 = sadd.s32 1, %s4135_s16  ;;  %p3406_p0 = scmp.ge.s32.totalorder %s4139_s17, 1  ;;  %s4139_s17 = sphi %s4171_s17, %s14_s17   ;;  %s4135_s16 = sphi %s4169_s16, %s5250_s16   ;;  %s4131_s15 = sphi %s4167_s15, %s5249_s15  }
   0x3   : > { %p28_p1 = scmp.ge.s32.totalorder %s26_s18, 2  ;;  %p220_p2 = scmp.lt.s32.totalorder %s4139_s17, 3 }
   0x5   : > { %s5252_s18 = smov (%p28_p1, %s26_s18), 0  ;;  %p221_p3 = pnand %p3406_p0, %p220_p2 }
   0x6   : > { %v3939_v0 = vld [vmem:[%s5246_s2] sm:$0xff] (!%p221_p3)   ;;  %v4141_v1 = vmov (!%p221_p3), 0   ;;  %p278_p4 = scmp.lt.s32.totalorder (!%p221_p3), %s4131_s15, 1  ;;  %v3940_v2 = vld [vmem:[%s5246_s2 + $0x8] sm:$0xff] (!%p221_p3)   ;;  %v3941_v3 = vld [vmem:[%s5246_s2 + $0x10] sm:$0xff] (!%p221_p3)   ;;  %vm679_vm0 = vcmask (!%p221_p3), 523264  }
   0x7   : > { %224 = sbr.rel (%p221_p3) target bundleno = 590 (0x24e), region = 36  ;;  %752 = vmatprep.subr.bf16.mxu0 (!%p221_p3), %v4141_v1  ;;  %3886 = vmatprep.subr.bf16.mxu1 (!%p221_p3), %v4141_v1  ;;  %v3942_v4 = vld [vmem:[%s5246_s2 + $0x18] sm:$0xff] (!%p221_p3)   ;;  %v3943_v8 = vld [vmem:[%s5246_s2 + $0x20] sm:$0xff] (!%p221_p3)   ;;  %v3944_v10 = vld [vmem:[%s5246_s2 + $0x28] sm:$0xff] (!%p221_p3)   ;;  %vm3242_vm1 = vcmask (!%p221_p3), 519168  }
   0x8   : > { %753 = vmatpush1.bf16.msra.mxu0 (!%p221_p3), %v3939_v0  ;;  %3898 = vmatpush1.bf16.msra.mxu1 (!%p221_p3), %v3939_v0  ;;  %v3945_v11 = vld [vmem:[%s5246_s2 + $0x30] sm:$0xff] (!%p221_p3)   ;;  %v3946_v12 = vld [vmem:[%s5246_s2 + $0x38] sm:$0xff] (!%p221_p3)   ;;  %v3947_v13 = vld [vmem:[%s5246_s2 + $0x40] sm:$0xff] (!%p221_p3)  }
   0x9   : > { %754 = vmatprep.subr.bf16.mxu0 (!%p221_p3), %v4141_v1  ;;  %3887 = vmatprep.subr.bf16.mxu1 (!%p221_p3), %v4141_v1  ;;  %v3948_v14 = vld [vmem:[%s5246_s2 + $0x48] sm:$0xff] (!%p221_p3)   ;;  %v3949_v15 = vld [vmem:[%s5246_s2 + $0x50] sm:$0xff] (!%p221_p3)   ;;  %v3950_v16 = vld [vmem:[%s5246_s2 + $0x58] sm:$0xff] (!%p221_p3)  }
   0xa   : > { %v3956_v23 = vld [vmem:[%s5246_s2 + $0x60] sm:$0xff] (!%p221_p3)   ;;  %v3958_v27 = vld [vmem:[%s5246_s2 + $0x68] sm:$0xff] (!%p221_p3)   ;;  %v3963_v35 = vld [vmem:[%s5246_s2 + $0x70] sm:$0xff] (!%p221_p3)  }
   0xb   : > { %v3957_v24 = vld [vmem:[%s5246_s2 + $0xc0] sm:$0xff] (!%p221_p3)   ;;  %v3965_v28 = vld [vmem:[%s5246_s2 + $0xc8] sm:$0xff] (!%p221_p3)   ;;  %v3964_v38 = vld [vmem:[%s5246_s2 + $0x78] sm:$0xff] (!%p221_p3)  }
   0xc   : > { %755 = vmatpush1.bf16.msra.mxu0 (!%p221_p3), %v3940_v2  ;;  %3899 = vmatpush1.bf16.msra.mxu1 (!%p221_p3), %v3940_v2  ;;  %v3977_v39 = vld [vmem:[%s5246_s2 + $0xd0] sm:$0xff] (!%p221_p3)   ;;  %v3985_v44 = vld [vmem:[%s5246_s2 + $0xd8] sm:$0xff] (!%p221_p3)   ;;  %v3970_v45 = vld [vmem:[%s5246_s2 + $0x80] sm:$0xff] (!%p221_p3)  }
   0xd   : > { %756 = vmatprep.subr.bf16.mxu0 (!%p221_p3), %v4141_v1  ;;  %3888 = vmatprep.subr.bf16.mxu1 (!%p221_p3), %v4141_v1  ;;  %v3971_v50 = vld [vmem:[%s5246_s2 + $0x88] sm:$0xff] (!%p221_p3)   ;;  %v3996_v53 = vld [vmem:[%s5246_s2 + $0xe0] sm:$0xff] (!%p221_p3)   ;;  %v3976_v56 = vld [vmem:[%s5246_s2 + $0x90] sm:$0xff] (!%p221_p3)  }
   0xe   : > { %s5254_s15 = smov (!%p278_p4, %s4131_s15), 1  ;;  %v4002_v60 = vld [vmem:[%s5246_s2 + $0xe8] sm:$0xff]   ;;  %v3978_v62 = vld [vmem:[%s5246_s2 + $0x98] sm:$0xff]  }
   0xf   : > { %s3910_s23 = smul.u32 432, %s5254_s15 }
  0x10   : > { %757 = vmatpush1.bf16.msra.mxu0 %v3941_v3  ;;  %3900 = vmatpush1.bf16.msra.mxu1 %v3941_v3  ;;  %s3912_s25 = smul.u32 192, %s5254_s15 }
  0x11   : > { %s4211_s30 = scalar_lea.vmem %s5244_s0, %s3910_s23  ;;  %758 = vmatprep.subr.bf16.mxu0 %v4141_v1  ;;  %3889 = vmatprep.subr.bf16.mxu1 %v4141_v1  ;;  %s3837_s13 = sadd.s32 384, %s3910_s23 }
  0x12   : > { %v3953_v5 = vld [vmem:[%s4211_s30 + $0x4] ss:$8 sps:$4 sm:$0xff]   ;;  %v3951_v17 = vld [vmem:[%s4211_s30] ss:$8 sps:$4 sm:$0xff]   ;;  %v321_v18 = vld [vmem:[%s4211_s30 + $0x10] sm:$0xff]  ;;  %s4715_s20 = scalar_lea.vmem %s5245_s1, %s3837_s13  ;;  %s5034_s27 = scalar_lea.vmem %s5248_s4, %s3912_s25 }
  0x13   : > { %v4217_v6 = vld [vmem:[%s4211_s30 + $0x120] sm:$0xff]  ;;  %v4220_v7 = vld [vmem:[%s4211_s30 + $0x128] sm:$0xff]  ;;  %3470 = vmatprep.mubr.msk.bf16.mxu0 %vm679_vm0, %v3953_v5  ;;  %v4269_v19 = vld [vmem:[%s4211_s30 + $0x18] sm:$0xff] }
  0x14   : > { %759 = vmatpush1.bf16.msra.mxu0 %v3942_v4  ;;  %3901 = vmatpush1.bf16.msra.mxu1 %v3942_v4  ;;  %v3447_v9 = vcombine.high %v4217_v6, %v4220_v7  ;;  %v4272_v20 = vld [vmem:[%s4211_s30 + $0x130] sm:$0xff]  ;;  %v3446_v21 = vcombine.low %v4217_v6, %v4220_v7  ;;  %v4277_v22 = vld [vmem:[%s4211_s30 + $0x138] sm:$0xff]  ;;  %v3413_v25 = vcombine.high %v321_v18, %v4269_v19  ;;  %v4297_v29 = vld [vmem:[%s4211_s30 + $0x20] sm:$0xff] }
  0x15   : > { %760 = vmatprep.subr.bf16.mxu0 %v4141_v1  ;;  %3890 = vmatprep.subr.bf16.mxu1 %v4141_v1  ;;  %v3449_v26 = vcombine.high %v4272_v20, %v4277_v22  ;;  %v4302_v30 = vld [vmem:[%s4211_s30 + $0x28] sm:$0xff]  ;;  %v4307_v31 = vld [vmem:[%s4211_s30 + $0x140] sm:$0xff]  ;;  %v3412_v33 = vcombine.low %v321_v18, %v4269_v19  ;;  %v3448_v34 = vcombine.low %v4272_v20, %v4277_v22  ;;  %v4331_v40 = vld [vmem:[%s4211_s30 + $0x30] sm:$0xff] }
  0x16   : > { %3488 = vmatprep.mubr.msk.bf16.mxu1 %vm679_vm0, %v3447_v9  ;;  %v4310_v32 = vld [vmem:[%s4211_s30 + $0x148] sm:$0xff]  ;;  %v3415_v36 = vcombine.high %v4297_v29, %v4302_v30  ;;  %v4334_v41 = vld [vmem:[%s4211_s30 + $0x38] sm:$0xff]  ;;  %v4338_v42 = vld [vmem:[%s4211_s30 + $0x150] sm:$0xff]  ;;  %v3414_v46 = vcombine.low %v4297_v29, %v4302_v30 }
  0x17   : > { %v3451_v37 = vcombine.high %v4307_v31, %v4310_v32  ;;  %v4341_v43 = vld [vmem:[%s4211_s30 + $0x158] sm:$0xff]  ;;  %v3450_v47 = vcombine.low %v4307_v31, %v4310_v32  ;;  %v4358_v48 = vcombine.high %v4331_v40, %v4334_v41  ;;  %v4367_v51 = vld [vmem:[%s4211_s30 + $0x40] sm:$0xff]  ;;  %v4370_v52 = vld [vmem:[%s4211_s30 + $0x48] sm:$0xff]  ;;  %v4391_v57 = vcombine.low %v4331_v40, %v4334_v41 }
  0x18   : > { %761 = vmatpush1.bf16.msra.mxu0 %v3943_v8  ;;  %3902 = vmatpush1.bf16.msra.mxu1 %v3943_v8  ;;  %v3453_v49 = vcombine.high %v4338_v42, %v4341_v43  ;;  %v4378_v54 = vld [vmem:[%s4211_s30 + $0x160] sm:$0xff]  ;;  %v4381_v55 = vld [vmem:[%s4211_s30 + $0x168] sm:$0xff]  ;;  %v3452_v58 = vcombine.low %v4338_v42, %v4341_v43  ;;  %v4397_v59 = vcombine.high %v4367_v51, %v4370_v52  ;;  %v4415_v63 = vld [vmem:[%s4211_s30 + $0x50] sm:$0xff] }
  0x19   : > { %762 = vmatprep.subr.bf16.mxu0 %v4141_v1  ;;  %3891 = vmatprep.subr.bf16.mxu1 %v4141_v1  ;;  %v3455_v61 = vcombine.high %v4378_v54, %v4381_v55  ;;  %v4418_v0 = vld [vmem:[%s4211_s30 + $0x58] sm:$0xff]  ;;  %v4421_v2 = vld [vmem:[%s4211_s30 + $0x170] sm:$0xff]  ;;  %v4431_v5 = vcombine.low %v4367_v51, %v4370_v52  ;;  %v3454_v8 = vcombine.low %v4378_v54, %v4381_v55  ;;  %v3983_v9 = vld [vmem:[%s5246_s2 + $0xa0] sm:$0xff]  }
  0x1a   : > { %v4424_v3 = vld [vmem:[%s4211_s30 + $0x178] sm:$0xff]  ;;  %v4011_v4 = vld [vmem:[%s5246_s2 + $0xf0] sm:$0xff]  }
  0x1b   : > { %v3990_v18 = vld [vmem:[%s5246_s2 + $0xb0] sm:$0xff]  }
  0x1c   : > { %763 = vmatpush1.bf16.msra.mxu0 %v3944_v10  ;;  %3903 = vmatpush1.bf16.msra.mxu1 %v3944_v10  ;;  %v4441_v10 = vcombine.high %v4415_v63, %v4418_v0 }
  0x1d   : > { %764 = vmatprep.subr.bf16.mxu0 %v4141_v1  ;;  %3892 = vmatprep.subr.bf16.mxu1 %v4141_v1 }
  0x20   : > { %765 = vmatpush1.bf16.msra.mxu0 %v3945_v11  ;;  %3904 = vmatpush1.bf16.msra.mxu1 %v3945_v11  ;;  %v3457_v11 = vcombine.high %v4421_v2, %v4424_v3 }
  0x21   : > { %766 = vmatprep.subr.bf16.mxu0 %v4141_v1  ;;  %3893 = vmatprep.subr.bf16.mxu1 %v4141_v1 }
  0x24   : > { %767 = vmatpush1.bf16.msra.mxu0 %v3946_v12  ;;  %3905 = vmatpush1.bf16.msra.mxu1 %v3946_v12  ;;  %v4017_v12 = vld [vmem:[%s5246_s2 + $0xf8] sm:$0xff]  }
  0x25   : > { %768 = vmatprep.subr.bf16.mxu0 %v4141_v1  ;;  %3894 = vmatprep.subr.bf16.mxu1 %v4141_v1 }
  0x28   : > { %769 = vmatpush1.bf16.msra.mxu0 %v3947_v13  ;;  %3906 = vmatpush1.bf16.msra.mxu1 %v3947_v13  ;;  %v3984_v13 = vld [vmem:[%s5246_s2 + $0xa8] sm:$0xff]  }
  0x29   : > { %770 = vmatprep.subr.bf16.mxu0 %v4141_v1  ;;  %3895 = vmatprep.subr.bf16.mxu1 %v4141_v1 }
  0x2c   : > { %771 = vmatpush1.bf16.msra.mxu0 %v3948_v14  ;;  %3907 = vmatpush1.bf16.msra.mxu1 %v3948_v14  ;;  %v4458_v14 = vld [vmem:[%s4211_s30 + $0x60] sm:$0xff] }
  0x2d   : > { %772 = vmatprep.subr.bf16.mxu0 %v4141_v1  ;;  %3896 = vmatprep.subr.bf16.mxu1 %v4141_v1 }
  0x30   : > { %773 = vmatpush1.bf16.msra.mxu0 %v3949_v15  ;;  %3908 = vmatpush1.bf16.msra.mxu1 %v3949_v15  ;;  %v4461_v15 = vld [vmem:[%s4211_s30 + $0x68] sm:$0xff] }
  0x31   : > { %774 = vmatprep.subr.bf16.mxu0 %v4141_v1  ;;  %3897 = vmatprep.subr.bf16.mxu1 %v4141_v1 }
  0x34   : > { %775 = vmatpush1.bf16.msra.mxu0 %v3950_v16  ;;  %3909 = vmatpush1.bf16.msra.mxu1 %v3950_v16  ;;  %v4466_v16 = vcombine.low %v4415_v63, %v4418_v0 }
  0x35   : > { %1485 = vmatprep.subr.bf16.mxu1 %v4141_v1  ;;  %2401 = vmatprep.subr.bf16.mxu0 %v4141_v1 }
  0x37   : > { %785 = vmatmul.mubr.bf16.vlgmr.msra.gmra.mrb[0].mxu0 %v3951_v17  ;;  %929 = vmatmul.mubr.bf16.vlgmr.msra.gmra.mrb[0].mxu1 %v3446_v21  ;;  %v3456_v17 = vcombine.low %v4421_v2, %v4424_v3  ;;  %v4475_v21 = vcombine.high %v4458_v14, %v4461_v15 }
  0x38   : > { %1486 = vmatpush1.bf16.msra.mxu1 %v3956_v23  ;;  %2402 = vmatpush1.bf16.msra.mxu0 %v3957_v24  ;;  %v3519_v23 = vcombine.high %v4269_v19, %v4297_v29  ;;  %v4027_v24 = vld [vmem:[%s5246_s2 + $0x100] sm:$0xff]  }
  0x39   : > { %1487 = vmatprep.subr.bf16.mxu1 %v4141_v1  ;;  %3471 = vmatprep.mubr.msk.bf16.mxu0 %vm679_vm0, %v3413_v25  ;;  %v3991_v25 = vld [vmem:[%s5246_s2 + $0xb8] sm:$0xff]  }
  0x3a   : > { %3489 = vmatprep.mubr.msk.bf16.mxu1 %vm679_vm0, %v3449_v26  ;;  %2403 = vmatprep.subr.bf16.mxu0 %v4141_v1  ;;  %v4493_v26 = vld [vmem:[%s4211_s30 + $0x70] sm:$0xff] }
  0x3c   : > { %1488 = vmatpush1.bf16.msra.mxu1 %v3958_v27  ;;  %2404 = vmatpush1.bf16.msra.mxu0 %v3965_v28  ;;  %v4496_v27 = vld [vmem:[%s4211_s30 + $0x78] sm:$0xff]  ;;  %v4033_v28 = vld [vmem:[%s5246_s2 + $0x108] sm:$0xff]  }
  0x3d   : > { %1489 = vmatprep.subr.bf16.mxu1 %v4141_v1  ;;  %2405 = vmatprep.subr.bf16.mxu0 %v4141_v1 }
  0x3f   : > { %793 = vmatmul.mubr.bf16.gmra.mrb[4].mxu0 %v3412_v33  ;;  %937 = vmatmul.mubr.bf16.gmra.mrb[4].mxu1 %v3448_v34  ;;  %v3518_v33 = vcombine.low %v4269_v19, %v4297_v29  ;;  %v4505_v34 = vcombine.low %v4458_v14, %v4461_v15  ;;  %v4001_v19 = vld [vmem:[%s5246_s2 + $0x60] sm:$0xff]   ;;  %v4043_v29 = vld [vmem:[%s5246_s2 + $0x110] sm:$0xff]  }
  0x40   : > { %1490 = vmatpush1.bf16.msra.mxu1 %v3963_v35  ;;  %3472 = vmatprep.mubr.msk.bf16.mxu0 %vm679_vm0, %v3415_v36  ;;  %v4510_v35 = vcombine.high %v4493_v26, %v4496_v27  ;;  %v3521_v36 = vcombine.high %v4302_v30, %v4331_v40 }
  0x41   : > { %1491 = vmatprep.subr.bf16.mxu1 %v4141_v1  ;;  %3490 = vmatprep.mubr.msk.bf16.mxu1 %vm679_vm0, %v3451_v37  ;;  %v4526_v37 = vld [vmem:[%s4211_s30 + $0x80] sm:$0xff] }
  0x42   : > { %2406 = vmatpush1.bf16.msra.mxu0 %v3977_v39  ;;  %v4012_v39 = vld [vmem:[%s5246_s2 + $0x68] sm:$0xff]  }
  0x43   : > { %2407 = vmatprep.subr.bf16.mxu0 %v4141_v1 }
  0x44   : > { %1492 = vmatpush1.bf16.msra.mxu1 %v3964_v38  ;;  %v4529_v38 = vld [vmem:[%s4211_s30 + $0x88] sm:$0xff] }
  0x45   : > { %1493 = vmatprep.subr.bf16.mxu1 %v4141_v1 }
  0x46   : > { %2408 = vmatpush1.bf16.msra.mxu0 %v3985_v44  ;;  %v4048_v44 = vld [vmem:[%s5246_s2 + $0x118] sm:$0xff]  }
  0x47   : > { %801 = vmatmul.mubr.bf16.gmra.mrb[8].mxu0 %v3414_v46  ;;  %945 = vmatmul.mubr.bf16.gmra.mrb[8].mxu1 %v3450_v47  ;;  %v3520_v46 = vcombine.low %v4302_v30, %v4331_v40  ;;  %v4548_v47 = vcombine.high %v4526_v37, %v4529_v38  ;;  %v4561_v30 = vld [vmem:[%s4211_s30 + $0x90] sm:$0xff]  ;;  %v4564_v40 = vld [vmem:[%s4211_s30 + $0x98] sm:$0xff] }
  0x48   : > { %1494 = vmatpush1.bf16.msra.mxu1 %v3970_v45  ;;  %3473 = vmatprep.mubr.msk.bf16.mxu0 %vm679_vm0, %v4358_v48  ;;  %v4541_v45 = vcombine.low %v4493_v26, %v4496_v27 }
  0x49   : > { %1495 = vmatprep.subr.bf16.mxu1 %v4141_v1  ;;  %3491 = vmatprep.mubr.msk.bf16.mxu1 %vm679_vm0, %v3453_v49  ;;  %v3523_v49 = vcombine.high %v4334_v41, %v4367_v51 }
  0x4a   : > { %2409 = vmatprep.subr.bf16.mxu0 %v4141_v1 }
  0x4b   : > { %2410 = vmatpush1.bf16.msra.mxu0 %v3996_v53  ;;  %v4032_v53 = vld [vmem:[%s5246_s2 + $0x78] sm:$0xff]  }
  0x4c   : > { %1496 = vmatpush1.bf16.msra.mxu1 %v3971_v50  ;;  %2411 = vmatprep.subr.bf16.mxu0 %v4141_v1  ;;  %v4022_v50 = vld [vmem:[%s5246_s2 + $0x70] sm:$0xff]  }
  0x4d   : > { %1497 = vmatprep.subr.bf16.mxu1 %v4141_v1 }
  0x4f   : > { %809 = vmatmul.mubr.bf16.gmra.mrb[12].mxu0 %v4391_v57  ;;  %953 = vmatmul.mubr.bf16.gmra.mrb[12].mxu1 %v3452_v58  ;;  %v3522_v58 = vcombine.low %v4334_v41, %v4367_v51  ;;  %v4591_v41 = vld [vmem:[%s4211_s30 + $0xa0] sm:$0xff]  ;;  %v4594_v51 = vld [vmem:[%s4211_s30 + $0xa8] sm:$0xff] }
  0x50   : > { %1498 = vmatpush1.bf16.msra.mxu1 %v3976_v56  ;;  %3474 = vmatprep.mubr.msk.bf16.mxu0 %vm679_vm0, %v4397_v59  ;;  %v4572_v56 = vcombine.low %v4526_v37, %v4529_v38 }
  0x51   : > { %1499 = vmatprep.subr.bf16.mxu1 %v4141_v1  ;;  %3492 = vmatprep.mubr.msk.bf16.mxu1 %vm679_vm0, %v3455_v61  ;;  %v3525_v61 = vcombine.high %v4370_v52, %v4415_v63 }
  0x52   : > { %2412 = vmatpush1.bf16.msra.mxu0 %v4002_v60  ;;  %v4578_v60 = vcombine.high %v4561_v30, %v4564_v40 }
  0x53   : > { %2413 = vmatprep.subr.bf16.mxu0 %v4141_v1 }
  0x54   : > { %1500 = vmatpush1.bf16.msra.mxu1 %v3978_v62  ;;  %v4042_v62 = vld [vmem:[%s5246_s2 + $0x80] sm:$0xff]  }
  0x55   : > { %1501 = vmatprep.subr.bf16.mxu1 %v4141_v1 }
  0x56   : > { %2414 = vmatpush1.bf16.msra.mxu0 %v4011_v4  ;;  %v4051_v4 = vld [vmem:[%s5246_s2 + $0x88] sm:$0xff]  }
  0x57   : > { %817 = vmatmul.mubr.bf16.gmra.mrb[16].mxu0 %v4431_v5  ;;  %961 = vmatmul.mubr.bf16.gmra.mrb[16].mxu1 %v3454_v8  ;;  %v4602_v8 = vcombine.low %v4561_v30, %v4564_v40 }
  0x58   : > { %1502 = vmatpush1.bf16.msra.mxu1 %v3983_v9  ;;  %3475 = vmatprep.mubr.msk.bf16.mxu0 %vm679_vm0, %v4441_v10  ;;  %v3524_v9 = vcombine.low %v4370_v52, %v4415_v63  ;;  %v4621_v52 = vld [vmem:[%s4211_s30 + $0xb0] sm:$0xff]  ;;  %v4624_v63 = vld [vmem:[%s4211_s30 + $0xb8] sm:$0xff] }
  0x59   : > { %1503 = vmatprep.subr.bf16.mxu1 %v4141_v1  ;;  %3493 = vmatprep.mubr.msk.bf16.mxu1 %vm679_vm0, %v3457_v11  ;;  %v4608_v11 = vcombine.high %v4591_v41, %v4594_v51 }
  0x5a   : > { %2415 = vmatprep.subr.bf16.mxu0 %v4141_v1 }
  0x5b   : > { %2416 = vmatpush1.bf16.msra.mxu0 %v4017_v12  ;;  %v3527_v12 = vcombine.high %v4418_v0, %v4458_v14 }
  0x5c   : > { %1504 = vmatpush1.bf16.msra.mxu1 %v3984_v13  ;;  %2417 = vmatprep.subr.bf16.mxu0 %v4141_v1  ;;  %v4056_v13 = vld [vmem:[%s5246_s2 + $0x90] sm:$0xff]  }
  0x5d   : > { %1505 = vmatprep.subr.bf16.mxu1 %v4141_v1 }
  0x5f   : > { %825 = vmatmul.mubr.bf16.gmra.mrb[20].mxu0 %v4466_v16  ;;  %969 = vmatmul.mubr.bf16.gmra.mrb[20].mxu1 %v3456_v17  ;;  %v4061_v17 = vld [vmem:[%s5246_s2 + $0x98] sm:$0xff]  }
  0x60   : > { %1506 = vmatpush1.bf16.msra.mxu1 %v3990_v18  ;;  %3476 = vmatprep.mubr.msk.bf16.mxu0 %vm679_vm0, %v4475_v21  ;;  %v4632_v18 = vcombine.low %v4591_v41, %v4594_v51 }
  0x61   : > { %1507 = vmatprep.subr.bf16.mxu1 %v4141_v1  ;;  %3576 = vmatprep.mubr.msk.bf16.mxu1 %vm679_vm0, %v3519_v23  ;;  %v3526_v23 = vcombine.low %v4418_v0, %v4458_v14  ;;  %v4651_v0 = vld [vmem:[%s4211_s30 + $0xc0] sm:$0xff]  ;;  %v4654_v14 = vld [vmem:[%s4211_s30 + $0xc8] sm:$0xff] }
  0x62   : > { %2418 = vmatpush1.bf16.msra.mxu0 %v4027_v24  ;;  %v4638_v24 = vcombine.high %v4621_v52, %v4624_v63 }
  0x63   : > { %2419 = vmatprep.subr.bf16.mxu0 %v4141_v1 }
  0x64   : > { %1508 = vmatpush1.bf16.msra.mxu1 %v3991_v25  ;;  %v3529_v25 = vcombine.high %v4461_v15, %v4493_v26 }
  0x65   : > { %1914 = vmatprep.subr.bf16.mxu1 %v4141_v1 }
  0x66   : > { %2420 = vmatpush1.bf16.msra.mxu0 %v4033_v28  ;;  %v4066_v28 = vld [vmem:[%s5246_s2 + $0xa0] sm:$0xff]  }
  0x67   : > { %833 = vmatmul.mubr.bf16.gmra.mrb[24].mxu0 %v4505_v34  ;;  %1518 = vmatmul.mubr.bf16.vlgmr.msra.gmra.mrb[24].mxu1 %v3518_v33  ;;  %v4071_v33 = vld [vmem:[%s5246_s2 + $0xa8] sm:$0xff]  }
  0x68   : > { %3477 = vmatprep.mubr.msk.bf16.mxu0 %vm679_vm0, %v4510_v35  ;;  %3577 = vmatprep.mubr.msk.bf16.mxu1 %vm679_vm0, %v3521_v36  ;;  %v4662_v36 = vcombine.low %v4621_v52, %v4624_v63 }
  0x69   : > { %1915 = vmatpush1.bf16.msra.mxu1 %v4001_v19  ;;  %2421 = vmatprep.subr.bf16.mxu0 %v4141_v1  ;;  %v3528_v19 = vcombine.low %v4461_v15, %v4493_v26  ;;  %v345_v15 = vld [vmem:[%s4211_s30 + $0xd0] sm:$0xff]  ;;  %v4682_v26 = vld [vmem:[%s4211_s30 + $0xd8] sm:$0xff] }
  0x6a   : > { %1916 = vmatprep.subr.bf16.mxu1 %v4141_v1  ;;  %2422 = vmatpush1.bf16.msra.mxu0 %v4043_v29  ;;  %v4668_v29 = vcombine.high %v4651_v0, %v4654_v14 }
  0x6b   : > { %2423 = vmatprep.subr.bf16.mxu0 %v4141_v1 }
  0x6d   : > { %1917 = vmatpush1.bf16.msra.mxu1 %v4012_v39  ;;  %v3531_v39 = vcombine.high %v4496_v27, %v4526_v37 }
  0x6e   : > { %1918 = vmatprep.subr.bf16.mxu1 %v4141_v1  ;;  %2424 = vmatpush1.bf16.msra.mxu0 %v4048_v44  ;;  %v4076_v44 = vld [vmem:[%s5246_s2 + $0xb0] sm:$0xff]  }
  0x6f   : > { %841 = vmatmul.mubr.bf16.gmra.mrb[28].mxu0 %v4541_v45  ;;  %1526 = vmatmul.mubr.bf16.gmra.mrb[28].mxu1 %v3520_v46  ;;  %v4687_v46 = vcombine.low %v4651_v0, %v4654_v14 }
  0x70   : > { %3478 = vmatprep.mubr.msk.bf16.mxu0 %vm679_vm0, %v4548_v47  ;;  %3578 = vmatprep.mubr.msk.bf16.mxu1 %vm679_vm0, %v3523_v49  ;;  %v3530_v49 = vcombine.low %v4496_v27, %v4526_v37  ;;  %v4077_v27 = vld [vmem:[%s5246_s2 + $0xb8] sm:$0xff]   ;;  %v4708_v37 = vcombine.low %v345_v15, %v4682_v26 }
  0x71   : > { %1919 = vmatpush1.bf16.msra.mxu1 %v4022_v50  ;;  %v4692_v50 = vcombine.high %v345_v15, %v4682_v26 }
  0x72   : > { %1920 = vmatprep.subr.bf16.mxu1 %v4141_v1 }
  0x75   : > { %1921 = vmatpush1.bf16.msra.mxu1 %v4032_v53  ;;  %v3533_v53 = vcombine.high %v4529_v38, %v4561_v30 }
  0x76   : > { %1922 = vmatprep.subr.bf16.mxu1 %v4141_v1 }
  0x77   : > { %849 = vmatmul.mubr.bf16.gmra.mrb[32].mxu0 %v4572_v56  ;;  %1534 = vmatmul.mubr.bf16.gmra.mrb[32].mxu1 %v3522_v58  ;;  %v347_v58 = vld [vmem:[%s4211_s30 + $0xe0] sm:$0xff] }
  0x78   : > { %3479 = vmatprep.mubr.msk.bf16.mxu0 %vm679_vm0, %v4578_v60  ;;  %3579 = vmatprep.mubr.msk.bf16.mxu1 %vm679_vm0, %v3525_v61  ;;  %v348_v61 = vld [vmem:[%s4211_s30 + $0xe8] sm:$0xff] }
  0x79   : > { %1923 = vmatpush1.bf16.msra.mxu1 %v4042_v62  ;;  %v3532_v62 = vcombine.low %v4529_v38, %v4561_v30  ;;  %v349_v38 = vld [vmem:[%s4211_s30 + $0xf0] sm:$0xff]  ;;  %v350_v30 = vld [vmem:[%s4211_s30 + $0xf8] sm:$0xff] }
  0x7a   : > { %1924 = vmatprep.subr.bf16.mxu1 %v4141_v1 }
  0x7d   : > { %1925 = vmatpush1.bf16.msra.mxu1 %v4051_v4  ;;  %v4717_v4 = vcombine.high %v347_v58, %v348_v61 }
  0x7e   : > { %1926 = vmatprep.subr.bf16.mxu1 %v4141_v1 }
  0x7f   : > { %857 = vmatmul.mubr.bf16.gmra.mrb[36].mxu0 %v4602_v8  ;;  %1542 = vmatmul.mubr.bf16.gmra.mrb[36].mxu1 %v3524_v9  ;;  %v3535_v9 = vcombine.high %v4564_v40, %v4591_v41 }
  0x80   : > { %3480 = vmatprep.mubr.msk.bf16.mxu0 %vm679_vm0, %v4608_v11  ;;  %3580 = vmatprep.mubr.msk.bf16.mxu1 %vm679_vm0, %v3527_v12  ;;  %v4728_v12 = vcombine.low %v347_v58, %v348_v61 }
  0x81   : > { %1927 = vmatpush1.bf16.msra.mxu1 %v4056_v13  ;;  %v3534_v13 = vcombine.low %v4564_v40, %v4591_v41  ;;  %v3536_v40 = vcombine.low %v4594_v51, %v4621_v52 }
  0x82   : > { %1928 = vmatprep.subr.bf16.mxu1 %v4141_v1 }
  0x85   : > { %1929 = vmatpush1.bf16.msra.mxu1 %v4061_v17  ;;  %v4732_v17 = vcombine.high %v349_v38, %v350_v30 }
  0x86   : > { %1930 = vmatprep.subr.bf16.mxu1 %v4141_v1 }
  0x87   : > { %865 = vmatmul.mubr.bf16.gmra.mrb[40].mxu0 %v4632_v18  ;;  %1550 = vmatmul.mubr.bf16.gmra.mrb[40].mxu1 %v3526_v23  ;;  %v3537_v23 = vcombine.high %v4594_v51, %v4621_v52  ;;  %v3538_v51 = vcombine.low %v4624_v63, %v4651_v0 }
  0x88   : > { %3481 = vmatprep.mubr.msk.bf16.mxu0 %vm679_vm0, %v4638_v24  ;;  %3581 = vmatprep.mubr.msk.bf16.mxu1 %vm679_vm0, %v3529_v25  ;;  %v351_v25 = vld [vmem:[%s4211_s30 + $0x100] sm:$0xff] }
  0x89   : > { %1931 = vmatpush1.bf16.msra.mxu1 %v4066_v28  ;;  %v352_v28 = vld [vmem:[%s4211_s30 + $0x108] sm:$0xff] }
  0x8a   : > { %1932 = vmatprep.subr.bf16.mxu1 %v4141_v1  ;;  %v4746_v41 = vcombine.high %v351_v25, %v352_v28 }
  0x8d   : > { %1933 = vmatpush1.bf16.msra.mxu1 %v4071_v33  ;;  %v4742_v33 = vcombine.low %v349_v38, %v350_v30 }
  0x8e   : > { %1934 = vmatprep.subr.bf16.mxu1 %v4141_v1 }
  0x8f   : > { %873 = vmatmul.mubr.bf16.gmra.mrb[44].mxu0 %v4662_v36  ;;  %1558 = vmatmul.mubr.bf16.gmra.mrb[44].mxu1 %v3528_v19  ;;  %v3539_v19 = vcombine.high %v4624_v63, %v4651_v0  ;;  %v3542_v63 = vcombine.low %v4682_v26, %v347_v58  ;;  %v3545_v0 = vcombine.high %v348_v61, %v349_v38 }
  0x90   : > { %3482 = vmatprep.mubr.msk.bf16.mxu0 %vm679_vm0, %v4668_v29  ;;  %3582 = vmatprep.mubr.msk.bf16.mxu1 %vm679_vm0, %v3531_v39  ;;  %v353_v39 = vld [vmem:[%s4211_s30 + $0x110] sm:$0xff] }
  0x91   : > { %1935 = vmatpush1.bf16.msra.mxu1 %v4076_v44  ;;  %v354_v44 = vld [vmem:[%s4211_s30 + $0x118] sm:$0xff] }
  0x92   : > { %1936 = vmatprep.subr.bf16.mxu1 %v4141_v1  ;;  %v4760_v52 = vcombine.high %v353_v39, %v354_v44 }
  0x95   : > { %1937 = vmatpush1.bf16.msra.mxu1 %v4077_v27  ;;  %v4767_v27 = vcombine.low %v353_v39, %v354_v44 }
  0x96   : > { %2830 = vmatprep.subr.bf16.mxu1 %v4141_v1 }
  0x97   : > { %881 = vmatmul.mubr.bf16.gmra.mrb[48].mxu0 %v4687_v46  ;;  %1566 = vmatmul.mubr.bf16.gmra.mrb[48].mxu1 %v3530_v49  ;;  %v4756_v49 = vcombine.low %v351_v25, %v352_v28 }
  0x98   : > { %3483 = vmatprep.mubr.msk.bf16.mxu0 %vm679_vm0, %v4692_v50  ;;  %3583 = vmatprep.mubr.msk.bf16.mxu1 %vm679_vm0, %v3533_v53  ;;  %v3541_v53 = vcombine.high %v4654_v14, %v345_v15 }
  0x9f   : > { %889 = vmatmul.mubr.bf16.gmra.mrb[52].mxu0 %v4708_v37  ;;  %1574 = vmatmul.mubr.bf16.gmra.mrb[52].mxu1 %v3532_v62  ;;  %v3540_v62 = vcombine.low %v4654_v14, %v345_v15  ;;  %v3544_v14 = vcombine.low %v348_v61, %v349_v38  ;;  %v3547_v15 = vcombine.high %v350_v30, %v351_v25 }
  0xa0   : > { %3484 = vmatprep.mubr.msk.bf16.mxu0 %vm679_vm0, %v4717_v4  ;;  %3584 = vmatprep.mubr.msk.bf16.mxu1 %vm679_vm0, %v3535_v9  ;;  %v3543_v9 = vcombine.high %v4682_v26, %v347_v58  ;;  %v3549_v26 = vcombine.high %v352_v28, %v353_v39 }
  0xa7   : > { %897 = vmatmul.mubr.bf16.gmra.mrb[56].mxu0 %v4728_v12  ;;  %1582 = vmatmul.mubr.bf16.gmra.mrb[56].mxu1 %v3534_v13  ;;  %v4860_v13 = vld [vmem:[%s4715_s20] ss:$8 sps:$4 sm:$0xff]  }
  0xa8   : > { %3485 = vmatprep.mubr.msk.bf16.mxu0 %vm679_vm0, %v4732_v17  ;;  %3585 = vmatprep.mubr.msk.bf16.mxu1 %vm679_vm0, %v3537_v23 }
  0xaf   : > { %905 = vmatmul.mubr.bf16.gmra.mrb[60].mxu0 %v4742_v33  ;;  %1590 = vmatmul.mubr.bf16.gmra.mrb[60].mxu1 %v3536_v40 }
  0xb0   : > { %3486 = vmatprep.mubr.msk.bf16.mxu0 %vm679_vm0, %v4746_v41  ;;  %3586 = vmatprep.mubr.msk.bf16.mxu1 %vm679_vm0, %v3539_v19 }
  0xb7   : > { %913 = vmatmul.mubr.bf16.gmra.mrb[64].mxu0 %v4756_v49  ;;  %1598 = vmatmul.mubr.bf16.gmra.mrb[64].mxu1 %v3538_v51 }
  0xb8   : > { %3487 = vmatprep.mubr.msk.bf16.mxu0 %vm679_vm0, %v4760_v52  ;;  %3587 = vmatprep.mubr.msk.bf16.mxu1 %vm679_vm0, %v3541_v53 }
  0xbf   : > { %921 = vmatmul.mubr.bf16.gmra.mrb[68].mxu0 %v4767_v27  ;;  %1606 = vmatmul.mubr.bf16.gmra.mrb[68].mxu1 %v3540_v62 }
  0xc0   : > { %3588 = vmatprep.mubr.msk.bf16.mxu1 %vm679_vm0, %v3543_v9  ;;  %3719 = vmatprep.mubr.msk.bf16.mxu0 %vm679_vm0, %v4358_v48  ;;  %v3546_v48 = vcombine.low %v350_v30, %v351_v25 }
  0xc7   : > { %1614 = vmatmul.mubr.bf16.gmra.mrb[72].mxu1 %v3542_v63  ;;  %2434 = vmatmul.mubr.bf16.vlgmr.msra.gmra.mrb[72].mxu0 %v4391_v57  ;;  %v3548_v57 = vcombine.low %v352_v28, %v353_v39  ;;  %v4082_v39 = vld [vmem:[%s5246_s2 + $0xc8] sm:$0xff]   ;;  %v4085_v63 = vld [vmem:[%s5246_s2 + $0xd0] sm:$0xff]  }
  0xc8   : > { %3589 = vmatprep.mubr.msk.bf16.mxu1 %vm679_vm0, %v3545_v0  ;;  %3720 = vmatprep.mubr.msk.bf16.mxu0 %vm679_vm0, %v4397_v59  ;;  %v3551_v59 = vcombine.high %v354_v44, %v4217_v6 }
  0xcf   : > { %1622 = vmatmul.mubr.bf16.gmra.mrb[76].mxu1 %v3544_v14  ;;  %2442 = vmatmul.mubr.bf16.gmra.mrb[76].mxu0 %v4431_v5  ;;  %v3550_v5 = vcombine.low %v354_v44, %v4217_v6  ;;  %v3554_v6 = vcombine.low %v4277_v22, %v4307_v31 }
  0xd0   : > { %3590 = vmatprep.mubr.msk.bf16.mxu1 %vm679_vm0, %v3547_v15  ;;  %3721 = vmatprep.mubr.msk.bf16.mxu0 %vm679_vm0, %v4441_v10  ;;  %v3553_v10 = vcombine.high %v4220_v7, %v4272_v20  ;;  %v4086_v15 = vld [vmem:[%s5246_s2 + $0xd8] sm:$0xff]  }
  0xd7   : > { %1630 = vmatmul.mubr.bf16.gmra.mrb[80].mxu1 %v3546_v48  ;;  %2450 = vmatmul.mubr.bf16.gmra.mrb[80].mxu0 %v4466_v16  ;;  %v3552_v16 = vcombine.low %v4220_v7, %v4272_v20  ;;  %v3556_v7 = vcombine.low %v4310_v32, %v4338_v42  ;;  %v3559_v20 = vcombine.high %v4341_v43, %v4378_v54 }
  0xd8   : > { %3591 = vmatprep.mubr.msk.bf16.mxu1 %vm679_vm0, %v3549_v26  ;;  %3722 = vmatprep.mubr.msk.bf16.mxu0 %vm679_vm0, %v4475_v21  ;;  %v3555_v21 = vcombine.high %v4277_v22, %v4307_v31  ;;  %v3558_v22 = vcombine.low %v4341_v43, %v4378_v54  ;;  %v3561_v31 = vcombine.high %v4381_v55, %v4421_v2 }
  0xdf   : > { %1638 = vmatmul.mubr.bf16.gmra.mrb[84].mxu1 %v3548_v57  ;;  %2458 = vmatmul.mubr.bf16.gmra.mrb[84].mxu0 %v4505_v34  ;;  %v3557_v34 = vcombine.high %v4310_v32, %v4338_v42 }
  0xe0   : > { %3592 = vmatprep.mubr.msk.bf16.mxu1 %vm679_vm0, %v3551_v59  ;;  %3723 = vmatprep.mubr.msk.bf16.mxu0 %vm679_vm0, %v4510_v35 }
  0xe7   : > { %1646 = vmatmul.mubr.bf16.gmra.mrb[88].mxu1 %v3550_v5  ;;  %2466 = vmatmul.mubr.bf16.gmra.mrb[88].mxu0 %v4541_v45  ;;  %v3560_v45 = vcombine.low %v4381_v55, %v4421_v2  ;;  %v4087_v5 = vld [vmem:[%s5246_s2 + $0xe0] sm:$0xff]  }
  0xe8   : > { %3593 = vmatprep.mubr.msk.bf16.mxu1 %vm679_vm0, %v3553_v10  ;;  %3724 = vmatprep.mubr.msk.bf16.mxu0 %vm679_vm0, %v4548_v47 }
  0xef   : > { %1654 = vmatmul.mubr.bf16.gmra.mrb[92].mxu1 %v3552_v16  ;;  %2474 = vmatmul.mubr.bf16.gmra.mrb[92].mxu0 %v4572_v56  ;;  %v3563_v56 = vcombine.high %v4424_v3, %v4424_v3 }
  0xf0   : > { %3594 = vmatprep.mubr.msk.bf16.mxu1 %vm679_vm0, %v3555_v21  ;;  %3725 = vmatprep.mubr.msk.bf16.mxu0 %vm679_vm0, %v4578_v60  ;;  %v4088_v21 = vld [vmem:[%s5246_s2 + $0xe8] sm:$0xff]  }
  0xf7   : > { %1662 = vmatmul.mubr.bf16.gmra.mrb[96].mxu1 %v3554_v6  ;;  %2482 = vmatmul.mubr.bf16.gmra.mrb[96].mxu0 %v4602_v8 }
  0xf8   : > { %3595 = vmatprep.mubr.msk.bf16.mxu1 %vm679_vm0, %v3557_v34  ;;  %3726 = vmatprep.mubr.msk.bf16.mxu0 %vm679_vm0, %v4608_v11 }
  0xff   : > { %1670 = vmatmul.mubr.bf16.gmra.mrb[100].mxu1 %v3556_v7  ;;  %2490 = vmatmul.mubr.bf16.gmra.mrb[100].mxu0 %v4632_v18  ;;  %v3562_v18 = vcombine.low %v4424_v3, %v4424_v3  ;;  %v4856_v3 = vld [vmem:[%s4715_s20 + $0x10] sm:$0xff] }
 0x100   : > { %3596 = vmatprep.mubr.msk.bf16.mxu1 %vm679_vm0, %v3559_v20  ;;  %3727 = vmatprep.mubr.msk.bf16.mxu0 %vm679_vm0, %v4638_v24 }
 0x107   : > { %1678 = vmatmul.mubr.bf16.gmra.mrb[104].mxu1 %v3558_v22  ;;  %2498 = vmatmul.mubr.bf16.gmra.mrb[104].mxu0 %v4662_v36  ;;  %v4089_v22 = vld [vmem:[%s5246_s2 + $0xf0] sm:$0xff]  }
 0x108   : > { %3597 = vmatprep.mubr.msk.bf16.mxu1 %vm679_vm0, %v3561_v31  ;;  %3728 = vmatprep.mubr.msk.bf16.mxu0 %vm679_vm0, %v4668_v29 }
 0x10a   : > { %v786_v32 = vpop.f32.mrb[0].mxu0  ;;  %v930_v42 = vpop.f32.mrb[0].mxu1 }
 0x10b   : > { %977 = vst.msk [vmem:[#allocation2] sm:$0xff] %vm679_vm0, %v786_v32  ;;  %v788_v35 = vpop.f32.mrb[1].mxu0  ;;  %1013 = vst.msk [vmem:[#allocation2 + $0x120] sm:$0xff] %vm679_vm0, %v930_v42  ;;  %v932_v43 = vpop.f32.mrb[1].mxu1  ;;  %v4091_v32 = vld [vmem:[%s4211_s30 + $0x124] ss:$8 sps:$4 sm:$0xff]  }
 0x10c   : > { %v789_v54 = vpop.f32.mrb[2].mxu0  ;;  %v933_v47 = vpop.f32.mrb[2].mxu1  ;;  %v4090_v35 = vld [vmem:[%s5246_s2 + $0xf8] sm:$0xff]  }
 0x10d   : > { %978 = vst.msk [vmem:[#allocation2 + $0x8] sm:$0xff] %vm679_vm0, %v789_v54  ;;  %v791_v60 = vpop.f32.mrb[3].mxu0  ;;  %1014 = vst.msk [vmem:[#allocation2 + $0x128] sm:$0xff] %vm679_vm0, %v933_v47  ;;  %v935_v8 = vpop.f32.mrb[3].mxu1 }
 0x10e   : > { %v4093_v8 = vld [vmem:[%s4211_s30 + $0x120] ss:$8 sps:$4 sm:$0xff]  }
 0x10f   : > { %1686 = vmatmul.mubr.bf16.gmra.mrb[108].mxu1 %v3560_v45  ;;  %2506 = vmatmul.mubr.bf16.gmra.mrb[108].mxu0 %v4687_v46  ;;  %v4080_v46 = vld [vmem:[%s4715_s20 + $0x4] ss:$8 sps:$4 sm:$0xff]  }
 0x110   : > { %3598 = vmatprep.mubr.msk.bf16.mxu1 %vm679_vm0, %v3563_v56  ;;  %3729 = vmatprep.mubr.msk.bf16.mxu0 %vm679_vm0, %v4692_v50 }
 0x112   : > { %v794_v55 = vpop.f32.mrb[4].mxu0  ;;  %v938_v2 = vpop.f32.mrb[4].mxu1  ;;  %v1025_v43 = vld [vmem:[#allocation2] sm:$0xff] }
 0x113   : > { %979 = vst.msk [vmem:[#allocation2 + $0x10] sm:$0xff] %vm679_vm0, %v794_v55  ;;  %v796_v11 = vpop.f32.mrb[5].mxu0  ;;  %1015 = vst.msk [vmem:[#allocation2 + $0x130] sm:$0xff] %vm679_vm0, %v938_v2  ;;  %v940_v24 = vpop.f32.mrb[5].mxu1 }
 0x114   : > { %v797_v36 = vpop.f32.mrb[6].mxu0  ;;  %v941_v29 = vpop.f32.mrb[6].mxu1  ;;  %v1026_v55 = vld [vmem:[#allocation2 + $0x8] sm:$0xff]  ;;  %v4094_v11 = vld [vmem:[%s5246_s2 + $0x100] sm:$0xff]  }
 0x115   : > { %980 = vst.msk [vmem:[#allocation2 + $0x18] sm:$0xff] %vm679_vm0, %v797_v36  ;;  %v799_v58 = vpop.f32.mrb[7].mxu0  ;;  %1016 = vst.msk [vmem:[#allocation2 + $0x138] sm:$0xff] %vm679_vm0, %v941_v29  ;;  %v943_v50 = vpop.f32.mrb[7].mxu1 }
 0x117   : > { %1694 = vmatmul.mubr.bf16.gmra.mrb[112].mxu1 %v3562_v18  ;;  %2514 = vmatmul.mubr.bf16.gmra.mrb[112].mxu0 %v4708_v37  ;;  %v4081_v37 = vld [vmem:[%s5246_s2 + $0xc0] sm:$0xff]   ;;  %v4096_v18 = vld [vmem:[%s4211_s30 + $0x134] ss:$8 sps:$4 sm:$0xff]  }
 0x118   : > { %3639 = vmatprep.mubr.msk.bf16.mxu1 %vm679_vm0, %v4080_v46  ;;  %3730 = vmatprep.mubr.msk.bf16.mxu0 %vm679_vm0, %v4717_v4  ;;  %v3626_v4 = vcombine.high %v4856_v3, %v4856_v3 }
 0x11a   : > { %v802_v61 = vpop.f32.mrb[8].mxu0  ;;  %v946_v38 = vpop.f32.mrb[8].mxu1  ;;  %v1027_v50 = vld [vmem:[#allocation2 + $0x10] sm:$0xff] }
 0x11b   : > { %981 = vst.msk [vmem:[#allocation2 + $0x20] sm:$0xff] %vm679_vm0, %v802_v61  ;;  %v804_v30 = vpop.f32.mrb[9].mxu0  ;;  %1017 = vst.msk [vmem:[#allocation2 + $0x140] sm:$0xff] %vm679_vm0, %v946_v38  ;;  %v948_v23 = vpop.f32.mrb[9].mxu1 }
 0x11c   : > { %v805_v25 = vpop.f32.mrb[10].mxu0  ;;  %v949_v28 = vpop.f32.mrb[10].mxu1 }
 0x11d   : > { %982 = vst.msk [vmem:[#allocation2 + $0x28] sm:$0xff] %vm679_vm0, %v805_v25  ;;  %v807_v40 = vpop.f32.mrb[11].mxu0  ;;  %1018 = vst.msk [vmem:[#allocation2 + $0x148] sm:$0xff] %vm679_vm0, %v949_v28  ;;  %v951_v19 = vpop.f32.mrb[11].mxu1  ;;  %v4098_v25 = vld [vmem:[%s4211_s30 + $0x130] ss:$8 sps:$4 sm:$0xff]  }
 0x11e   : > { %v1028_v28 = vld [vmem:[#allocation2 + $0x18] sm:$0xff]  ;;  %v4099_v40 = vld [vmem:[%s5246_s2 + $0x110] sm:$0xff]   ;;  %v4101_v19 = vld [vmem:[%s4211_s30 + $0x144] ss:$8 sps:$4 sm:$0xff]  }
 0x11f   : > { %1947 = vmatmul.mubr.bf16.vlgmr.msra.gmra.mrb[116].mxu1 %v4860_v13  ;;  %2522 = vmatmul.mubr.bf16.gmra.mrb[116].mxu0 %v4728_v12  ;;  %v3625_v12 = vcombine.low %v4856_v3, %v4856_v3 }
 0x120   : > { %2831 = vmatpush1.bf16.msra.mxu1 %v4081_v37  ;;  %3640 = vmatprep.mubr.msk.bf16.mxu1 %vm679_vm0, %v3626_v4 }
 0x121   : > { %2832 = vmatprep.subr.bf16.mxu1 %v4141_v1  ;;  %3731 = vmatprep.mubr.msk.bf16.mxu0 %vm679_vm0, %v4732_v17 }
 0x122   : > { %v810_v44 = vpop.f32.mrb[12].mxu0  ;;  %v954_v51 = vpop.f32.mrb[12].mxu1 }
 0x123   : > { %983 = vst.msk [vmem:[#allocation2 + $0x30] sm:$0xff] %vm679_vm0, %v810_v44  ;;  %v812_v53 = vpop.f32.mrb[13].mxu0  ;;  %1019 = vst.msk [vmem:[#allocation2 + $0x150] sm:$0xff] %vm679_vm0, %v954_v51  ;;  %v956_v62 = vpop.f32.mrb[13].mxu1 }
 0x124   : > { %2833 = vmatpush1.bf16.msra.mxu1 %v4082_v39  ;;  %v813_v9 = vpop.f32.mrb[14].mxu0  ;;  %v957_v0 = vpop.f32.mrb[14].mxu1  ;;  %v4100_v53 = vld [vmem:[%s5246_s2 + $0x118] sm:$0xff]  }
 0x125   : > { %984 = vst.msk [vmem:[#allocation2 + $0x38] sm:$0xff] %vm679_vm0, %v813_v9  ;;  %v815_v17 = vpop.f32.mrb[15].mxu0  ;;  %2834 = vmatprep.subr.bf16.mxu1 %v4141_v1  ;;  %1020 = vst.msk [vmem:[#allocation2 + $0x158] sm:$0xff] %vm679_vm0, %v957_v0  ;;  %v959_v14 = vpop.f32.mrb[15].mxu1  ;;  %v1029_v9 = vld [vmem:[#allocation2 + $0x20] sm:$0xff] }
 0x127   : > { %1955 = vmatmul.mubr.bf16.gmra.mrb[120].mxu1 %v3625_v12  ;;  %2530 = vmatmul.mubr.bf16.gmra.mrb[120].mxu0 %v4742_v33  ;;  %v2695_v12 = vld [vmem:[%s4715_s20 + $0x18] sm:$0xff] }
 0x128   : > { %2835 = vmatpush1.bf16.msra.mxu1 %v4085_v63  ;;  %3732 = vmatprep.mubr.msk.bf16.mxu0 %vm679_vm0, %v4746_v41 }
 0x129   : > { %2836 = vmatprep.subr.bf16.mxu1 %v4141_v1  ;;  %3782 = vmatprep.mubr.msk.bf16.mxu1 %vm679_vm0, %v4080_v46  ;;  %v4095_v46 = vld [vmem:[%s5246_s2 + $0x108] sm:$0xff]  }
 0x12a   : > { %v818_v48 = vpop.f32.mrb[16].mxu0  ;;  %v962_v26 = vpop.f32.mrb[16].mxu1 }
 0x12b   : > { %985 = vst.msk [vmem:[#allocation2 + $0x40] sm:$0xff] %vm679_vm0, %v818_v48  ;;  %v820_v57 = vpop.f32.mrb[17].mxu0  ;;  %1021 = vst.msk [vmem:[#allocation2 + $0x160] sm:$0xff] %vm679_vm0, %v962_v26  ;;  %v964_v33 = vpop.f32.mrb[17].mxu1  ;;  %v1030_v26 = vld [vmem:[#allocation2 + $0x28] sm:$0xff] }
 0x12c   : > { %2837 = vmatpush1.bf16.msra.mxu1 %v4086_v15  ;;  %v821_v59 = vpop.f32.mrb[18].mxu0  ;;  %v965_v10 = vpop.f32.mrb[18].mxu1  ;;  %v4103_v15 = vld [vmem:[%s4211_s30 + $0x140] ss:$8 sps:$4 sm:$0xff]   ;;  %v3767_v33 = vcombine.high %v4856_v3, %v2695_v12 }
 0x12d   : > { %986 = vst.msk [vmem:[#allocation2 + $0x48] sm:$0xff] %vm679_vm0, %v821_v59  ;;  %v823_v41 = vpop.f32.mrb[19].mxu0  ;;  %2838 = vmatprep.subr.bf16.mxu1 %v4141_v1  ;;  %1022 = vst.msk [vmem:[#allocation2 + $0x168] sm:$0xff] %vm679_vm0, %v965_v10  ;;  %v967_v16 = vpop.f32.mrb[19].mxu1  ;;  %v4104_v59 = vld [vmem:[%s4211_s30 + $0x154] ss:$8 sps:$4 sm:$0xff]  }
 0x12e   : > { %v1031_v16 = vld [vmem:[#allocation2 + $0x30] sm:$0xff] }
 0x12f   : > { %2538 = vmatmul.mubr.bf16.gmra.mrb[124].mxu0 %v4756_v49 }
 0x130   : > { %2839 = vmatpush1.bf16.msra.mxu1 %v4087_v5  ;;  %3733 = vmatprep.mubr.msk.bf16.mxu0 %vm679_vm0, %v4760_v52 }
 0x131   : > { %2840 = vmatprep.subr.bf16.mxu1 %v4141_v1 }
 0x132   : > { %v826_v6 = vpop.f32.mrb[20].mxu0  ;;  %v970_v34 = vpop.f32.mrb[20].mxu1 }
 0x133   : > { %987 = vst.msk [vmem:[#allocation2 + $0x50] sm:$0xff] %vm679_vm0, %v826_v6  ;;  %v828_v7 = vpop.f32.mrb[21].mxu0  ;;  %1023 = vst.msk [vmem:[#allocation2 + $0x170] sm:$0xff] %vm679_vm0, %v970_v34  ;;  %v972_v20 = vpop.f32.mrb[21].mxu1 }
 0x134   : > { %2841 = vmatpush1.bf16.msra.mxu1 %v4088_v21  ;;  %v829_v49 = vpop.f32.mrb[22].mxu0  ;;  %v973_v31 = vpop.f32.mrb[22].mxu1  ;;  %v3766_v20 = vcombine.low %v4856_v3, %v2695_v12 }
 0x135   : > { %988 = vst.msk [vmem:[#allocation2 + $0x58] sm:$0xff] %vm679_vm0, %v829_v49  ;;  %v831_v52 = vpop.f32.mrb[23].mxu0  ;;  %2842 = vmatprep.subr.bf16.mxu1 %v4141_v1  ;;  %1024 = vst.msk [vmem:[#allocation2 + $0x178] sm:$0xff] %vm679_vm0, %v973_v31  ;;  %v975_v42 = vpop.f32.mrb[23].mxu1  ;;  %v4106_v49 = vld [vmem:[%s4211_s30 + $0x150] ss:$8 sps:$4 sm:$0xff]  }
 0x136   : > { %v4109_v52 = vld [vmem:[%s4211_s30 + $0x164] ss:$8 sps:$4 sm:$0xff]  }
 0x137   : > { %2546 = vmatmul.mubr.bf16.gmra.mrb[128].mxu0 %v4767_v27 }
 0x138   : > { %2843 = vmatpush1.bf16.msra.mxu1 %v4089_v22  ;;  %3734 = vmatprep.mubr.msk.bf16.mxu0 %vm679_vm0, %v4091_v32  ;;  %v4107_v22 = vld [vmem:[%s4715_s20 + $0x24] ss:$8 sps:$4 sm:$0xff]  }
 0x139   : > { %2844 = vmatprep.subr.bf16.mxu1 %v4141_v1 }
 0x13a   : > { %v834_v45 = vpop.f32.mrb[24].mxu0  ;;  %v1519_v54 = vpop.f32.mrb[24].mxu1 }
 0x13b   : > { %989 = vst.msk [vmem:[#allocation2 + $0x60] sm:$0xff] %vm679_vm0, %v834_v45  ;;  %v1701_v47 = vadd.f32 %v1519_v54, %v1025_v43  ;;  %v836_v56 = vpop.f32.mrb[25].mxu0  ;;  %v1521_v60 = vpop.f32.mrb[25].mxu1  ;;  %v1033_v43 = vld [vmem:[#allocation2 + $0x40] sm:$0xff] }
 0x13c   : > { %2845 = vmatpush1.bf16.msra.mxu1 %v4090_v35  ;;  %v837_v27 = vpop.f32.mrb[26].mxu0  ;;  %v1522_v2 = vpop.f32.mrb[26].mxu1 }
 0x13d   : > { %1746 = vst.msk [vmem:[#allocation2] sm:$0xff] %vm679_vm0, %v1701_v47  ;;  %990 = vst.msk [vmem:[#allocation2 + $0x68] sm:$0xff] %vm679_vm0, %v837_v27  ;;  %v1702_v24 = vadd.f32 %v1522_v2, %v1026_v55  ;;  %v839_v36 = vpop.f32.mrb[27].mxu0  ;;  %2846 = vmatprep.subr.bf16.mxu1 %v4141_v1  ;;  %v1524_v29 = vpop.f32.mrb[27].mxu1  ;;  %v4112_v27 = vld [vmem:[%s4211_s30 + $0x160] ss:$8 sps:$4 sm:$0xff]  }
 0x13e   : > { %v1034_v2 = vld [vmem:[#allocation2 + $0x48] sm:$0xff] }
 0x13f   : > { %1747 = vst.msk [vmem:[#allocation2 + $0x8] sm:$0xff] %vm679_vm0, %v1702_v24  ;;  %2554 = vmatmul.mubr.bf16.gmra.mrb[132].mxu0 %v4093_v8  ;;  %v4111_v8 = vld [vmem:[%s4715_s20 + $0x20] ss:$8 sps:$4 sm:$0xff]  }
 0x140   : > { %2847 = vmatpush1.bf16.msra.mxu1 %v4094_v11  ;;  %3735 = vmatprep.mubr.msk.bf16.mxu0 %vm679_vm0, %v4096_v18  ;;  %v4113_v18 = vld [vmem:[%s4211_s30 + $0x174] ss:$8 sps:$4 sm:$0xff]  }
 0x141   : > { %2848 = vmatprep.subr.bf16.mxu1 %v4141_v1 }
 0x142   : > { %v842_v58 = vpop.f32.mrb[28].mxu0  ;;  %v1527_v61 = vpop.f32.mrb[28].mxu1 }
 0x143   : > { %991 = vst.msk [vmem:[#allocation2 + $0x70] sm:$0xff] %vm679_vm0, %v842_v58  ;;  %v1703_v38 = vadd.f32 %v1527_v61, %v1027_v50  ;;  %v844_v30 = vpop.f32.mrb[29].mxu0  ;;  %v1529_v23 = vpop.f32.mrb[29].mxu1  ;;  %v1035_v58 = vld [vmem:[#allocation2 + $0x50] sm:$0xff] }
 0x144   : > { %2849 = vmatpush1.bf16.msra.mxu1 %v4095_v46  ;;  %v845_v37 = vpop.f32.mrb[30].mxu0  ;;  %v1530_v4 = vpop.f32.mrb[30].mxu1  ;;  %v4115_v23 = vld [vmem:[%s4211_s30 + $0x170] ss:$8 sps:$4 sm:$0xff]  }
 0x145   : > { %1748 = vst.msk [vmem:[#allocation2 + $0x10] sm:$0xff] %vm679_vm0, %v1703_v38  ;;  %992 = vst.msk [vmem:[#allocation2 + $0x78] sm:$0xff] %vm679_vm0, %v845_v37  ;;  %v1704_v39 = vadd.f32 %v1530_v4, %v1028_v28  ;;  %v847_v44 = vpop.f32.mrb[31].mxu0  ;;  %2850 = vmatprep.subr.bf16.mxu1 %v4141_v1  ;;  %v1532_v51 = vpop.f32.mrb[31].mxu1  ;;  %v1036_v37 = vld [vmem:[#allocation2 + $0x58] sm:$0xff] }
 0x146   : > { %v1037_v44 = vld [vmem:[#allocation2 + $0x60] sm:$0xff] }
 0x147   : > { %1749 = vst.msk [vmem:[#allocation2 + $0x18] sm:$0xff] %vm679_vm0, %v1704_v39  ;;  %2562 = vmatmul.mubr.bf16.gmra.mrb[136].mxu0 %v4098_v25 }
 0x148   : > { %2851 = vmatpush1.bf16.msra.mxu1 %v4099_v40  ;;  %3736 = vmatprep.mubr.msk.bf16.mxu0 %vm679_vm0, %v4101_v19 }
 0x149   : > { %2852 = vmatprep.subr.bf16.mxu1 %v4141_v1 }
 0x14a   : > { %v850_v62 = vpop.f32.mrb[32].mxu0  ;;  %v1535_v63 = vpop.f32.mrb[32].mxu1 }
 0x14b   : > { %993 = vst.msk [vmem:[#allocation2 + $0x80] sm:$0xff] %vm679_vm0, %v850_v62  ;;  %v1705_v0 = vadd.f32 %v1535_v63, %v1029_v9  ;;  %v852_v17 = vpop.f32.mrb[33].mxu0  ;;  %v1537_v14 = vpop.f32.mrb[33].mxu1  ;;  %v1038_v63 = vld [vmem:[#allocation2 + $0x68] sm:$0xff] }
 0x14c   : > { %2853 = vmatpush1.bf16.msra.mxu1 %v4100_v53  ;;  %v853_v48 = vpop.f32.mrb[34].mxu0  ;;  %v1538_v57 = vpop.f32.mrb[34].mxu1 }
 0x14d   : > { %1750 = vst.msk [vmem:[#allocation2 + $0x20] sm:$0xff] %vm679_vm0, %v1705_v0  ;;  %994 = vst.msk [vmem:[#allocation2 + $0x88] sm:$0xff] %vm679_vm0, %v853_v48  ;;  %v1706_v1 = vadd.f32 %v1538_v57, %v1030_v26  ;;  %v855_v5 = vpop.f32.mrb[35].mxu0  ;;  %v1540_v10 = vpop.f32.mrb[35].mxu1  ;;  %v1039_v26 = vld [vmem:[#allocation2 + $0x70] sm:$0xff] }
 0x14e   : > { %v1040_v10 = vld [vmem:[#allocation2 + $0x78] sm:$0xff] }
 0x14f   : > { %1751 = vst.msk [vmem:[#allocation2 + $0x28] sm:$0xff] %vm679_vm0, %v1706_v1  ;;  %2863 = vmatmul.mubr.bf16.vlgmr.msra.gmra.mrb[124].mxu1 %v4860_v13  ;;  %2570 = vmatmul.mubr.bf16.gmra.mrb[140].mxu0 %v4103_v15  ;;  %v1032_v13 = vld [vmem:[#allocation2 + $0x38] sm:$0xff] }
 0x150   : > { %3783 = vmatprep.mubr.msk.bf16.mxu1 %vm679_vm0, %v3767_v33  ;;  %3737 = vmatprep.mubr.msk.bf16.mxu0 %vm679_vm0, %v4104_v59 }
 0x152   : > { %v858_v41 = vpop.f32.mrb[36].mxu0  ;;  %v1543_v21 = vpop.f32.mrb[36].mxu1 }
 0x153   : > { %995 = vst.msk [vmem:[#allocation2 + $0x90] sm:$0xff] %vm679_vm0, %v858_v41  ;;  %v1707_v6 = vadd.f32 %v1543_v21, %v1031_v16  ;;  %v860_v34 = vpop.f32.mrb[37].mxu0  ;;  %v1545_v7 = vpop.f32.mrb[37].mxu1 }
 0x154   : > { %v861_v31 = vpop.f32.mrb[38].mxu0  ;;  %v1546_v32 = vpop.f32.mrb[38].mxu1  ;;  %v1041_v7 = vld [vmem:[#allocation2 + $0x80] sm:$0xff] }
 0x155   : > { %1752 = vst.msk [vmem:[#allocation2 + $0x30] sm:$0xff] %vm679_vm0, %v1707_v6  ;;  %996 = vst.msk [vmem:[#allocation2 + $0x98] sm:$0xff] %vm679_vm0, %v861_v31  ;;  %v1708_v42 = vadd.f32 %v1546_v32, %v1032_v13  ;;  %v863_v35 = vpop.f32.mrb[39].mxu0  ;;  %v1548_v45 = vpop.f32.mrb[39].mxu1  ;;  %v1042_v32 = vld [vmem:[#allocation2 + $0x88] sm:$0xff] }
 0x157   : > { %1753 = vst.msk [vmem:[#allocation2 + $0x38] sm:$0xff] %vm679_vm0, %v1708_v42  ;;  %2871 = vmatmul.mubr.bf16.gmra.mrb[128].mxu1 %v3766_v20  ;;  %2578 = vmatmul.mubr.bf16.gmra.mrb[144].mxu0 %v4106_v49 }
 0x158   : > { %3784 = vmatprep.mubr.msk.bf16.mxu1 %vm679_vm0, %v4107_v22  ;;  %3738 = vmatprep.mubr.msk.bf16.mxu0 %vm679_vm0, %v4109_v52 }
 0x15a   : > { %v866_v3 = vpop.f32.mrb[40].mxu0  ;;  %v1551_v54 = vpop.f32.mrb[40].mxu1 }
 0x15b   : > { %997 = vst.msk [vmem:[#allocation2 + $0xa0] sm:$0xff] %vm679_vm0, %v866_v3  ;;  %v1709_v47 = vadd.f32 %v1551_v54, %v1033_v43  ;;  %v868_v56 = vpop.f32.mrb[41].mxu0  ;;  %v1553_v60 = vpop.f32.mrb[41].mxu1  ;;  %v1043_v43 = vld [vmem:[#allocation2 + $0x90] sm:$0xff] }
 0x15c   : > { %v869_v55 = vpop.f32.mrb[42].mxu0  ;;  %v1554_v11 = vpop.f32.mrb[42].mxu1 }
 0x15d   : > { %1754 = vst.msk [vmem:[#allocation2 + $0x40] sm:$0xff] %vm679_vm0, %v1709_v47  ;;  %998 = vst.msk [vmem:[#allocation2 + $0xa8] sm:$0xff] %vm679_vm0, %v869_v55  ;;  %v1710_v24 = vadd.f32 %v1554_v11, %v1034_v2  ;;  %v871_v36 = vpop.f32.mrb[43].mxu0  ;;  %v1556_v29 = vpop.f32.mrb[43].mxu1 }
 0x15f   : > { %1755 = vst.msk [vmem:[#allocation2 + $0x48] sm:$0xff] %vm679_vm0, %v1710_v24  ;;  %2879 = vmatmul.mubr.bf16.gmra.mrb[132].mxu1 %v4111_v8  ;;  %2586 = vmatmul.mubr.bf16.gmra.mrb[148].mxu0 %v4112_v27  ;;  %v1044_v27 = vld [vmem:[#allocation2 + $0x98] sm:$0xff] }
 0x160   : > { %3739 = vmatprep.mubr.msk.bf16.mxu0 %vm679_vm0, %v4113_v18 }
 0x162   : > { %v874_v46 = vpop.f32.mrb[44].mxu0  ;;  %v1559_v50 = vpop.f32.mrb[44].mxu1  ;;  %v1045_v36 = vld [vmem:[#allocation2 + $0xa0] sm:$0xff] }
 0x163   : > { %999 = vst.msk [vmem:[#allocation2 + $0xb0] sm:$0xff] %vm679_vm0, %v874_v46  ;;  %v1711_v61 = vadd.f32 %v1559_v50, %v1035_v58  ;;  %v876_v38 = vpop.f32.mrb[45].mxu0  ;;  %v1561_v30 = vpop.f32.mrb[45].mxu1 }
 0x164   : > { %v877_v25 = vpop.f32.mrb[46].mxu0  ;;  %v1562_v28 = vpop.f32.mrb[46].mxu1  ;;  %v1046_v38 = vld [vmem:[#allocation2 + $0xa8] sm:$0xff] }
 0x165   : > { %1756 = vst.msk [vmem:[#allocation2 + $0x50] sm:$0xff] %vm679_vm0, %v1711_v61  ;;  %1000 = vst.msk [vmem:[#allocation2 + $0xb8] sm:$0xff] %vm679_vm0, %v877_v25  ;;  %v1712_v4 = vadd.f32 %v1562_v28, %v1036_v37  ;;  %v879_v40 = vpop.f32.mrb[47].mxu0  ;;  %v1564_v19 = vpop.f32.mrb[47].mxu1 }
 0x167   : > { %1757 = vst.msk [vmem:[#allocation2 + $0x58] sm:$0xff] %vm679_vm0, %v1712_v4  ;;  %2594 = vmatmul.mubr.bf16.gmra.mrb[152].mxu0 %v4115_v23 }
 0x16a   : > { %v882_v39 = vpop.f32.mrb[48].mxu0  ;;  %v1567_v51 = vpop.f32.mrb[48].mxu1  ;;  %v1047_v4 = vld [vmem:[#allocation2 + $0xb0] sm:$0xff] }
 0x16b   : > { %1001 = vst.msk [vmem:[#allocation2 + $0xc0] sm:$0xff] %vm679_vm0, %v882_v39  ;;  %v1713_v53 = vadd.f32 %v1567_v51, %v1037_v44  ;;  %v884_v12 = vpop.f32.mrb[49].mxu0  ;;  %v1569_v62 = vpop.f32.mrb[49].mxu1 }
 0x16c   : > { %v885_v9 = vpop.f32.mrb[50].mxu0  ;;  %v1570_v0 = vpop.f32.mrb[50].mxu1 }
 0x16d   : > { %1758 = vst.msk [vmem:[#allocation2 + $0x60] sm:$0xff] %vm679_vm0, %v1713_v53  ;;  %1002 = vst.msk [vmem:[#allocation2 + $0xc8] sm:$0xff] %vm679_vm0, %v885_v9  ;;  %v1714_v17 = vadd.f32 %v1570_v0, %v1038_v63  ;;  %v887_v14 = vpop.f32.mrb[51].mxu0  ;;  %v1572_v15 = vpop.f32.mrb[51].mxu1  ;;  %v1048_v53 = vld [vmem:[#allocation2 + $0xb8] sm:$0xff] }
 0x16e   : > { %v1968_v14 = vld [vmem:[#allocation2] sm:$0xff] }
 0x16f   : > { %1759 = vst.msk [vmem:[#allocation2 + $0x68] sm:$0xff] %vm679_vm0, %v1714_v17 }
 0x172   : > { %v890_v48 = vpop.f32.mrb[52].mxu0  ;;  %v1575_v57 = vpop.f32.mrb[52].mxu1  ;;  %v1049_v0 = vld [vmem:[#allocation2 + $0xc0] sm:$0xff] }
 0x173   : > { %1003 = vst.msk [vmem:[#allocation2 + $0xd0] sm:$0xff] %vm679_vm0, %v890_v48  ;;  %v1715_v33 = vadd.f32 %v1575_v57, %v1039_v26  ;;  %v892_v59 = vpop.f32.mrb[53].mxu0  ;;  %v1577_v1 = vpop.f32.mrb[53].mxu1 }
 0x174   : > { %v893_v5 = vpop.f32.mrb[54].mxu0  ;;  %v1578_v41 = vpop.f32.mrb[54].mxu1  ;;  %v1050_v59 = vld [vmem:[#allocation2 + $0xc8] sm:$0xff] }
 0x175   : > { %1760 = vst.msk [vmem:[#allocation2 + $0x70] sm:$0xff] %vm679_vm0, %v1715_v33  ;;  %1004 = vst.msk [vmem:[#allocation2 + $0xd8] sm:$0xff] %vm679_vm0, %v893_v5  ;;  %v1716_v16 = vadd.f32 %v1578_v41, %v1040_v10  ;;  %v895_v21 = vpop.f32.mrb[55].mxu0  ;;  %v1580_v6 = vpop.f32.mrb[55].mxu1  ;;  %v1969_v5 = vld [vmem:[#allocation2 + $0x8] sm:$0xff] }
 0x177   : > { %1761 = vst.msk [vmem:[#allocation2 + $0x78] sm:$0xff] %vm679_vm0, %v1716_v16 }
 0x17a   : > { %v898_v34 = vpop.f32.mrb[56].mxu0  ;;  %v1583_v20 = vpop.f32.mrb[56].mxu1 }
 0x17b   : > { %1005 = vst.msk [vmem:[#allocation2 + $0xe0] sm:$0xff] %vm679_vm0, %v898_v34  ;;  %v1717_v49 = vadd.f32 %v1583_v20, %v1041_v7  ;;  %v900_v22 = vpop.f32.mrb[57].mxu0  ;;  %v1585_v31 = vpop.f32.mrb[57].mxu1  ;;  %v5022_v34 = vld [vmem:[%s5247_s3] ss:$0 sm:$0xff]  ;;  %v1051_v7 = vld [vmem:[#allocation2 + $0xd0] sm:$0xff] }
 0x17c   : > { %v901_v13 = vpop.f32.mrb[58].mxu0  ;;  %v1586_v52 = vpop.f32.mrb[58].mxu1 }
 0x17d   : > { %1762 = vst.msk [vmem:[#allocation2 + $0x80] sm:$0xff] %vm679_vm0, %v1717_v49  ;;  %1006 = vst.msk [vmem:[#allocation2 + $0xe8] sm:$0xff] %vm679_vm0, %v901_v13  ;;  %v1718_v42 = vadd.f32 %v1586_v52, %v1042_v32  ;;  %v903_v35 = vpop.f32.mrb[59].mxu0  ;;  %v1588_v45 = vpop.f32.mrb[59].mxu1  ;;  %v1970_v49 = vld [vmem:[#allocation2 + $0x10] sm:$0xff] }
 0x17e   : > { %v1052_v35 = vld [vmem:[#allocation2 + $0xd8] sm:$0xff] }
 0x17f   : > { %1763 = vst.msk [vmem:[#allocation2 + $0x88] sm:$0xff] %vm679_vm0, %v1718_v42 }
 0x182   : > { %v906_v3 = vpop.f32.mrb[60].mxu0  ;;  %v1591_v54 = vpop.f32.mrb[60].mxu1 }
 0x183   : > { %1007 = vst.msk [vmem:[#allocation2 + $0xf0] sm:$0xff] %vm679_vm0, %v906_v3  ;;  %v1719_v47 = vadd.f32 %v1591_v54, %v1043_v43  ;;  %v908_v56 = vpop.f32.mrb[61].mxu0  ;;  %v1593_v60 = vpop.f32.mrb[61].mxu1  ;;  %v1971_v3 = vld [vmem:[#allocation2 + $0x18] sm:$0xff] }
 0x184   : > { %v909_v8 = vpop.f32.mrb[62].mxu0  ;;  %v1594_v55 = vpop.f32.mrb[62].mxu1 }
 0x185   : > { %1764 = vst.msk [vmem:[#allocation2 + $0x90] sm:$0xff] %vm679_vm0, %v1719_v47  ;;  %1008 = vst.msk [vmem:[#allocation2 + $0xf8] sm:$0xff] %vm679_vm0, %v909_v8  ;;  %v1720_v2 = vadd.f32 %v1594_v55, %v1044_v27  ;;  %v911_v11 = vpop.f32.mrb[63].mxu0  ;;  %v1596_v18 = vpop.f32.mrb[63].mxu1 }
 0x187   : > { %1765 = vst.msk [vmem:[#allocation2 + $0x98] sm:$0xff] %vm679_vm0, %v1720_v2 }
 0x18a   : > { %v914_v24 = vpop.f32.mrb[64].mxu0  ;;  %v1599_v29 = vpop.f32.mrb[64].mxu1 }
 0x18b   : > { %1009 = vst.msk [vmem:[#allocation2 + $0x100] sm:$0xff] %vm679_vm0, %v914_v24  ;;  %v1721_v46 = vadd.f32 %v1599_v29, %v1045_v36  ;;  %v916_v58 = vpop.f32.mrb[65].mxu0  ;;  %v1601_v50 = vpop.f32.mrb[65].mxu1  ;;  %v1053_v24 = vld [vmem:[#allocation2 + $0xe0] sm:$0xff] }
 0x18c   : > { %v917_v61 = vpop.f32.mrb[66].mxu0  ;;  %v1602_v30 = vpop.f32.mrb[66].mxu1  ;;  %v1972_v29 = vld [vmem:[#allocation2 + $0x20] sm:$0xff] }
 0x18d   : > { %1766 = vst.msk [vmem:[#allocation2 + $0xa0] sm:$0xff] %vm679_vm0, %v1721_v46  ;;  %1010 = vst.msk [vmem:[#allocation2 + $0x108] sm:$0xff] %vm679_vm0, %v917_v61  ;;  %v1722_v23 = vadd.f32 %v1602_v30, %v1046_v38  ;;  %v919_v25 = vpop.f32.mrb[67].mxu0  ;;  %v1604_v37 = vpop.f32.mrb[67].mxu1 }
 0x18e   : > { %v1054_v25 = vld [vmem:[#allocation2 + $0xe8] sm:$0xff] }
 0x18f   : > { %1767 = vst.msk [vmem:[#allocation2 + $0xa8] sm:$0xff] %vm679_vm0, %v1722_v23 }
 0x192   : > { %v922_v28 = vpop.f32.mrb[68].mxu0  ;;  %v1607_v40 = vpop.f32.mrb[68].mxu1 }
 0x193   : > { %1011 = vst.msk [vmem:[#allocation2 + $0x110] sm:$0xff] %vm679_vm0, %v922_v28  ;;  %v1723_v19 = vadd.f32 %v1607_v40, %v1047_v4  ;;  %v924_v39 = vpop.f32.mrb[69].mxu0  ;;  %v1609_v44 = vpop.f32.mrb[69].mxu1  ;;  %v1973_v28 = vld [vmem:[#allocation2 + $0x28] sm:$0xff] }
 0x194   : > { %v925_v51 = vpop.f32.mrb[70].mxu0  ;;  %v1610_v12 = vpop.f32.mrb[70].mxu1 }
 0x195   : > { %1768 = vst.msk [vmem:[#allocation2 + $0xb0] sm:$0xff] %vm679_vm0, %v1723_v19  ;;  %1012 = vst.msk [vmem:[#allocation2 + $0x118] sm:$0xff] %vm679_vm0, %v925_v51  ;;  %v1724_v62 = vadd.f32 %v1610_v12, %v1048_v53  ;;  %v927_v9 = vpop.f32.mrb[71].mxu0  ;;  %v1612_v63 = vpop.f32.mrb[71].mxu1 }
 0x197   : > { %1769 = vst.msk [vmem:[#allocation2 + $0xb8] sm:$0xff] %vm679_vm0, %v1724_v62 }
 0x19a   : > { %v1615_v17 = vpop.f32.mrb[72].mxu1  ;;  %v2435_v15 = vpop.f32.mrb[72].mxu0 }
 0x19b   : > { %v1725_v48 = vadd.f32 %v1615_v17, %v1049_v0  ;;  %v2602_v26 = vadd.f32 %v2435_v15, %v1968_v14  ;;  %v1617_v57 = vpop.f32.mrb[73].mxu1  ;;  %v2437_v33 = vpop.f32.mrb[73].mxu0  ;;  %v1055_v0 = vld [vmem:[#allocation2 + $0xf0] sm:$0xff] }
 0x19c   : > { %v1618_v1 = vpop.f32.mrb[74].mxu1  ;;  %v2438_v10 = vpop.f32.mrb[74].mxu0  ;;  %v1974_v14 = vld [vmem:[#allocation2 + $0x30] sm:$0xff] }
 0x19d   : > { %1770 = vst.msk [vmem:[#allocation2 + $0xc0] sm:$0xff] %vm679_vm0, %v1725_v48  ;;  %2644 = vst.msk [vmem:[#allocation2] sm:$0xff] %vm679_vm0, %v2602_v26  ;;  %v1726_v41 = vadd.f32 %v1618_v1, %v1050_v59  ;;  %v2603_v16 = vadd.f32 %v2438_v10, %v1969_v5  ;;  %v2440_v21 = vpop.f32.mrb[75].mxu0  ;;  %v1620_v6 = vpop.f32.mrb[75].mxu1  ;;  %v1056_v5 = vld [vmem:[#allocation2 + $0xf8] sm:$0xff] }
 0x19f   : > { %1771 = vst.msk [vmem:[#allocation2 + $0xc8] sm:$0xff] %vm679_vm0, %v1726_v41  ;;  %2645 = vst.msk [vmem:[#allocation2 + $0x8] sm:$0xff] %vm679_vm0, %v2603_v16  ;;  %v1975_v41 = vld [vmem:[#allocation2 + $0x38] sm:$0xff] }
 0x1a2   : > { %v1623_v20 = vpop.f32.mrb[76].mxu1  ;;  %v2443_v22 = vpop.f32.mrb[76].mxu0 }
 0x1a3   : > { %v1727_v31 = vadd.f32 %v1623_v20, %v1051_v7  ;;  %v2604_v13 = vadd.f32 %v2443_v22, %v1970_v49  ;;  %v1625_v32 = vpop.f32.mrb[77].mxu1  ;;  %v2445_v52 = vpop.f32.mrb[77].mxu0 }
 0x1a4   : > { %v2899_v42 = vld [vmem:[#allocation2] sm:$0xff]  ;;  %v1626_v45 = vpop.f32.mrb[78].mxu1  ;;  %v2446_v43 = vpop.f32.mrb[78].mxu0 }
 0x1a5   : > { %v2954_v54 = vadd.f32 %v5022_v34, %v2899_v42  ;;  %1772 = vst.msk [vmem:[#allocation2 + $0xd0] sm:$0xff] %vm679_vm0, %v1727_v31  ;;  %2646 = vst.msk [vmem:[#allocation2 + $0x10] sm:$0xff] %vm679_vm0, %v2604_v13  ;;  %v1728_v47 = vadd.f32 %v1626_v45, %v1052_v35  ;;  %v2605_v56 = vadd.f32 %v2446_v43, %v1971_v3  ;;  %v2448_v60 = vpop.f32.mrb[79].mxu0  ;;  %v1628_v8 = vpop.f32.mrb[79].mxu1  ;;  %v1057_v42 = vld [vmem:[#allocation2 + $0x100] sm:$0xff] }
 0x1a6   : > { %v2900_v27 = vld [vmem:[#allocation2 + $0x8] sm:$0xff]  ;;  %v1976_v45 = vld [vmem:[#allocation2 + $0x40] sm:$0xff] }
 0x1a7   : > { %v3002_v55 = vmax.f32 %v2954_v54, 0.0  ;;  %v2955_v2 = vadd.f32 %v5022_v34, %v2900_v27  ;;  %1773 = vst.msk [vmem:[#allocation2 + $0xd8] sm:$0xff] %vm679_vm0, %v1728_v47  ;;  %2647 = vst.msk [vmem:[#allocation2 + $0x18] sm:$0xff] %vm679_vm0, %v2605_v56  ;;  %v1058_v27 = vld [vmem:[#allocation2 + $0x108] sm:$0xff] }
 0x1a9   : > { %v3838_v11 = vpack.c.bf16 %v3002_v55, %v3002_v55  ;;  %v3003_v18 = vmax.f32 %v2955_v2, 0.0  ;;  %v1977_v2 = vld [vmem:[#allocation2 + $0x48] sm:$0xff] }
 0x1aa   : > { %v1631_v36 = vpop.f32.mrb[80].mxu1  ;;  %v2451_v46 = vpop.f32.mrb[80].mxu0 }
 0x1ab   : > { %3243 = vst.msk [vmem:[%s5034_s27] sm:$0xf] %vm3242_vm1, %v3838_v11  ;;  %v3839_v58 = vpack.c.bf16 %v3003_v18, %v3003_v18  ;;  %v1729_v50 = vadd.f32 %v1631_v36, %v1053_v24  ;;  %v2606_v61 = vadd.f32 %v2451_v46, %v1972_v29  ;;  %v1633_v38 = vpop.f32.mrb[81].mxu1  ;;  %v2453_v30 = vpop.f32.mrb[81].mxu0 }
 0x1ac   : > { %v2901_v23 = vld [vmem:[#allocation2 + $0x10] sm:$0xff]  ;;  %v1634_v37 = vpop.f32.mrb[82].mxu1  ;;  %v2454_v4 = vpop.f32.mrb[82].mxu0 }
 0x1ad   : > { %3244 = vst.msk [vmem:[%s5034_s27 + $0x4] sm:$0xf] %vm3242_vm1, %v3839_v58  ;;  %v2956_v40 = vadd.f32 %v5022_v34, %v2901_v23  ;;  %v1730_v19 = vadd.f32 %v1634_v37, %v1054_v25  ;;  %v2607_v39 = vadd.f32 %v2454_v4, %v1973_v28  ;;  %v2456_v44 = vpop.f32.mrb[83].mxu0  ;;  %v1636_v51 = vpop.f32.mrb[83].mxu1  ;;  %v1059_v23 = vld [vmem:[#allocation2 + $0x110] sm:$0xff] }
 0x1ae   : > { %1774 = vst.msk [vmem:[#allocation2 + $0xe0] sm:$0xff] %vm679_vm0, %v1729_v50  ;;  %2648 = vst.msk [vmem:[#allocation2 + $0x20] sm:$0xff] %vm679_vm0, %v2606_v61  ;;  %v2902_v53 = vld [vmem:[#allocation2 + $0x18] sm:$0xff]  ;;  %v1978_v37 = vld [vmem:[#allocation2 + $0x50] sm:$0xff] }
 0x1af   : > { %v3004_v12 = vmax.f32 %v2956_v40, 0.0  ;;  %v2957_v62 = vadd.f32 %v5022_v34, %v2902_v53  ;;  %1775 = vst.msk [vmem:[#allocation2 + $0xe8] sm:$0xff] %vm679_vm0, %v1730_v19  ;;  %2649 = vst.msk [vmem:[#allocation2 + $0x28] sm:$0xff] %vm679_vm0, %v2607_v39  ;;  %v1060_v53 = vld [vmem:[#allocation2 + $0x118] sm:$0xff] }
 0x1b1   : > { %v3840_v9 = vpack.c.bf16 %v3004_v12, %v3004_v12  ;;  %v3005_v63 = vmax.f32 %v2957_v62, 0.0  ;;  %v1979_v62 = vld [vmem:[#allocation2 + $0x58] sm:$0xff] }
 0x1b2   : > { %v1639_v17 = vpop.f32.mrb[84].mxu1  ;;  %v2459_v15 = vpop.f32.mrb[84].mxu0 }
 0x1b3   : > { %3245 = vst.msk [vmem:[%s5034_s27 + $0x8] sm:$0xf] %vm3242_vm1, %v3840_v9  ;;  %v3841_v48 = vpack.c.bf16 %v3005_v63, %v3005_v63  ;;  %v1731_v26 = vadd.f32 %v1639_v17, %v1055_v0  ;;  %v2608_v57 = vadd.f32 %v2459_v15, %v1974_v14  ;;  %v1641_v33 = vpop.f32.mrb[85].mxu1  ;;  %v2461_v59 = vpop.f32.mrb[85].mxu0 }
 0x1b4   : > { %v1642_v10 = vpop.f32.mrb[86].mxu1  ;;  %v2462_v16 = vpop.f32.mrb[86].mxu0 }
 0x1b5   : > { %v2903_v1 = vld [vmem:[#allocation2 + $0x20] sm:$0xff]  ;;  %3246 = vst.msk [vmem:[%s5034_s27 + $0xc] sm:$0xf] %vm3242_vm1, %v3841_v48  ;;  %v1732_v6 = vadd.f32 %v1642_v10, %v1056_v5  ;;  %v2609_v7 = vadd.f32 %v2462_v16, %v1975_v41  ;;  %v2464_v20 = vpop.f32.mrb[87].mxu0  ;;  %v1644_v49 = vpop.f32.mrb[87].mxu1 }
 0x1b6   : > { %v2958_v21 = vadd.f32 %v5022_v34, %v2903_v1  ;;  %1776 = vst.msk [vmem:[#allocation2 + $0xf0] sm:$0xff] %vm679_vm0, %v1731_v26  ;;  %2650 = vst.msk [vmem:[#allocation2 + $0x30] sm:$0xff] %vm679_vm0, %v2608_v57  ;;  %v2904_v22 = vld [vmem:[#allocation2 + $0x28] sm:$0xff]  ;;  %v1061_v1 = vld [vmem:[#allocation2 + $0x120] sm:$0xff] }
 0x1b7   : > { %v2959_v13 = vadd.f32 %v5022_v34, %v2904_v22  ;;  %1777 = vst.msk [vmem:[#allocation2 + $0xf8] sm:$0xff] %vm679_vm0, %v1732_v6  ;;  %2651 = vst.msk [vmem:[#allocation2 + $0x38] sm:$0xff] %vm679_vm0, %v2609_v7  ;;  %v1980_v10 = vld [vmem:[#allocation2 + $0x60] sm:$0xff]  ;;  %v1062_v22 = vld [vmem:[#allocation2 + $0x128] sm:$0xff] }
 0x1b8   : > { %v3006_v31 = vmax.f32 %v2958_v21, 0.0 }
 0x1b9   : > { %v3007_v52 = vmax.f32 %v2959_v13, 0.0  ;;  %v1981_v13 = vld [vmem:[#allocation2 + $0x68] sm:$0xff] }
 0x1ba   : > { %v3842_v32 = vpack.c.bf16 %v3006_v31, %v3006_v31  ;;  %v1647_v35 = vpop.f32.mrb[88].mxu1  ;;  %v2467_v3 = vpop.f32.mrb[88].mxu0 }
 0x1bb   : > { %v3843_v43 = vpack.c.bf16 %v3007_v52, %v3007_v52  ;;  %v1733_v54 = vadd.f32 %v1647_v35, %v1057_v42  ;;  %v2610_v47 = vadd.f32 %v2467_v3, %v1976_v45  ;;  %v1649_v56 = vpop.f32.mrb[89].mxu1  ;;  %v2469_v60 = vpop.f32.mrb[89].mxu0 }
 0x1bc   : > { %3247 = vst.msk [vmem:[%s5034_s27 + $0x10] sm:$0xf] %vm3242_vm1, %v3842_v32  ;;  %v1650_v55 = vpop.f32.mrb[90].mxu1  ;;  %v2470_v11 = vpop.f32.mrb[90].mxu0 }
 0x1bd   : > { %v2905_v8 = vld [vmem:[#allocation2 + $0x30] sm:$0xff]  ;;  %3248 = vst.msk [vmem:[%s5034_s27 + $0x14] sm:$0xf] %vm3242_vm1, %v3843_v43  ;;  %v1734_v24 = vadd.f32 %v1650_v55, %v1058_v27  ;;  %v2611_v36 = vadd.f32 %v2470_v11, %v1977_v2  ;;  %v2472_v29 = vpop.f32.mrb[91].mxu0  ;;  %v1652_v46 = vpop.f32.mrb[91].mxu1 }
 0x1be   : > { %v2960_v18 = vadd.f32 %v5022_v34, %v2905_v8  ;;  %1778 = vst.msk [vmem:[#allocation2 + $0x100] sm:$0xff] %vm679_vm0, %v1733_v54  ;;  %2652 = vst.msk [vmem:[#allocation2 + $0x40] sm:$0xff] %vm679_vm0, %v2610_v47  ;;  %v2906_v58 = vld [vmem:[#allocation2 + $0x38] sm:$0xff]  ;;  %v1063_v8 = vld [vmem:[#allocation2 + $0x130] sm:$0xff] }
 0x1bf   : > { %v2961_v61 = vadd.f32 %v5022_v34, %v2906_v58  ;;  %1779 = vst.msk [vmem:[#allocation2 + $0x108] sm:$0xff] %vm679_vm0, %v1734_v24  ;;  %2653 = vst.msk [vmem:[#allocation2 + $0x48] sm:$0xff] %vm679_vm0, %v2611_v36  ;;  %v1982_v55 = vld [vmem:[#allocation2 + $0x70] sm:$0xff]  ;;  %v1064_v58 = vld [vmem:[#allocation2 + $0x138] sm:$0xff] }
 0x1c0   : > { %v3008_v50 = vmax.f32 %v2960_v18, 0.0 }
 0x1c1   : > { %v3009_v30 = vmax.f32 %v2961_v61, 0.0  ;;  %v1983_v61 = vld [vmem:[#allocation2 + $0x78] sm:$0xff] }
 0x1c2   : > { %v3844_v38 = vpack.c.bf16 %v3008_v50, %v3008_v50  ;;  %v1655_v25 = vpop.f32.mrb[92].mxu1  ;;  %v2475_v28 = vpop.f32.mrb[92].mxu0 }
 0x1c3   : > { %v3845_v4 = vpack.c.bf16 %v3009_v30, %v3009_v30  ;;  %v1735_v40 = vadd.f32 %v1655_v25, %v1059_v23  ;;  %v2612_v19 = vadd.f32 %v2475_v28, %v1978_v37  ;;  %v1657_v39 = vpop.f32.mrb[93].mxu1  ;;  %v2477_v44 = vpop.f32.mrb[93].mxu0 }
 0x1c4   : > { %3249 = vst.msk [vmem:[%s5034_s27 + $0x18] sm:$0xf] %vm3242_vm1, %v3844_v38  ;;  %v1658_v12 = vpop.f32.mrb[94].mxu1  ;;  %v2478_v9 = vpop.f32.mrb[94].mxu0 }
 0x1c5   : > { %v2907_v51 = vld [vmem:[#allocation2 + $0x40] sm:$0xff]  ;;  %3250 = vst.msk [vmem:[%s5034_s27 + $0x1c] sm:$0xf] %vm3242_vm1, %v3845_v4  ;;  %v1736_v0 = vadd.f32 %v1658_v12, %v1060_v53  ;;  %v2613_v17 = vadd.f32 %v2478_v9, %v1979_v62  ;;  %v2480_v14 = vpop.f32.mrb[95].mxu0  ;;  %v1660_v15 = vpop.f32.mrb[95].mxu1 }
 0x1c6   : > { %v2962_v63 = vadd.f32 %v5022_v34, %v2907_v51  ;;  %1780 = vst.msk [vmem:[#allocation2 + $0x110] sm:$0xff] %vm679_vm0, %v1735_v40  ;;  %2654 = vst.msk [vmem:[#allocation2 + $0x50] sm:$0xff] %vm679_vm0, %v2612_v19  ;;  %v2908_v48 = vld [vmem:[#allocation2 + $0x48] sm:$0xff]  ;;  %v1065_v51 = vld [vmem:[#allocation2 + $0x140] sm:$0xff] }
 0x1c7   : > { %v2963_v57 = vadd.f32 %v5022_v34, %v2908_v48  ;;  %1781 = vst.msk [vmem:[#allocation2 + $0x118] sm:$0xff] %vm679_vm0, %v1736_v0  ;;  %2655 = vst.msk [vmem:[#allocation2 + $0x58] sm:$0xff] %vm679_vm0, %v2613_v17  ;;  %v1984_v12 = vld [vmem:[#allocation2 + $0x80] sm:$0xff]  ;;  %v1066_v48 = vld [vmem:[#allocation2 + $0x148] sm:$0xff] }
 0x1c8   : > { %v3010_v26 = vmax.f32 %v2962_v63, 0.0 }
 0x1c9   : > { %v3011_v59 = vmax.f32 %v2963_v57, 0.0  ;;  %v1985_v57 = vld [vmem:[#allocation2 + $0x88] sm:$0xff] }
 0x1ca   : > { %v3846_v33 = vpack.c.bf16 %v3010_v26, %v3010_v26  ;;  %v1663_v5 = vpop.f32.mrb[96].mxu1  ;;  %v2483_v41 = vpop.f32.mrb[96].mxu0 }
 0x1cb   : > { %v3847_v16 = vpack.c.bf16 %v3011_v59, %v3011_v59  ;;  %v1737_v21 = vadd.f32 %v1663_v5, %v1061_v1  ;;  %v2614_v6 = vadd.f32 %v2483_v41, %v1980_v10  ;;  %v1665_v7 = vpop.f32.mrb[97].mxu1  ;;  %v2485_v20 = vpop.f32.mrb[97].mxu0 }
 0x1cc   : > { %3251 = vst.msk [vmem:[%s5034_s27 + $0x20] sm:$0xf] %vm3242_vm1, %v3846_v33  ;;  %v1666_v31 = vpop.f32.mrb[98].mxu1  ;;  %v2486_v32 = vpop.f32.mrb[98].mxu0 }
 0x1cd   : > { %v2909_v49 = vld [vmem:[#allocation2 + $0x50] sm:$0xff]  ;;  %3252 = vst.msk [vmem:[%s5034_s27 + $0x24] sm:$0xf] %vm3242_vm1, %v3847_v16  ;;  %v1738_v42 = vadd.f32 %v1666_v31, %v1062_v22  ;;  %v2615_v35 = vadd.f32 %v2486_v32, %v1981_v13  ;;  %v2488_v45 = vpop.f32.mrb[99].mxu0  ;;  %v1668_v3 = vpop.f32.mrb[99].mxu1 }
 0x1ce   : > { %v2964_v52 = vadd.f32 %v5022_v34, %v2909_v49  ;;  %1782 = vst.msk [vmem:[#allocation2 + $0x120] sm:$0xff] %vm679_vm0, %v1737_v21  ;;  %2656 = vst.msk [vmem:[#allocation2 + $0x60] sm:$0xff] %vm679_vm0, %v2614_v6  ;;  %v2910_v43 = vld [vmem:[#allocation2 + $0x58] sm:$0xff]  ;;  %v1067_v49 = vld [vmem:[#allocation2 + $0x150] sm:$0xff] }
 0x1cf   : > { %v2965_v47 = vadd.f32 %v5022_v34, %v2910_v43  ;;  %1783 = vst.msk [vmem:[#allocation2 + $0x128] sm:$0xff] %vm679_vm0, %v1738_v42  ;;  %2657 = vst.msk [vmem:[#allocation2 + $0x68] sm:$0xff] %vm679_vm0, %v2615_v35  ;;  %v1986_v31 = vld [vmem:[#allocation2 + $0x90] sm:$0xff]  ;;  %v1068_v43 = vld [vmem:[#allocation2 + $0x158] sm:$0xff] }
 0x1d0   : > { %v3012_v54 = vmax.f32 %v2964_v52, 0.0 }
 0x1d1   : > { %v3013_v60 = vmax.f32 %v2965_v47, 0.0  ;;  %v1987_v47 = vld [vmem:[#allocation2 + $0x98] sm:$0xff] }
 0x1d2   : > { %v3848_v56 = vpack.c.bf16 %v3012_v54, %v3012_v54  ;;  %v1671_v27 = vpop.f32.mrb[100].mxu1  ;;  %v2491_v2 = vpop.f32.mrb[100].mxu0 }
 0x1d3   : > { %v3849_v11 = vpack.c.bf16 %v3013_v60, %v3013_v60  ;;  %v1739_v18 = vadd.f32 %v1671_v27, %v1063_v8  ;;  %v2616_v24 = vadd.f32 %v2491_v2, %v1982_v55  ;;  %v1673_v36 = vpop.f32.mrb[101].mxu1  ;;  %v2493_v29 = vpop.f32.mrb[101].mxu0 }
 0x1d4   : > { %3253 = vst.msk [vmem:[%s5034_s27 + $0x28] sm:$0xf] %vm3242_vm1, %v3848_v56  ;;  %v1674_v50 = vpop.f32.mrb[102].mxu1  ;;  %v2494_v38 = vpop.f32.mrb[102].mxu0 }
 0x1d5   : > { %v2911_v46 = vld [vmem:[#allocation2 + $0x60] sm:$0xff]  ;;  %3254 = vst.msk [vmem:[%s5034_s27 + $0x2c] sm:$0xf] %vm3242_vm1, %v3849_v11  ;;  %v1740_v23 = vadd.f32 %v1674_v50, %v1064_v58  ;;  %v2617_v25 = vadd.f32 %v2494_v38, %v1983_v61  ;;  %v2496_v37 = vpop.f32.mrb[103].mxu0  ;;  %v1676_v28 = vpop.f32.mrb[103].mxu1 }
 0x1d6   : > { %v2966_v30 = vadd.f32 %v5022_v34, %v2911_v46  ;;  %1784 = vst.msk [vmem:[#allocation2 + $0x130] sm:$0xff] %vm679_vm0, %v1739_v18  ;;  %2658 = vst.msk [vmem:[#allocation2 + $0x70] sm:$0xff] %vm679_vm0, %v2616_v24  ;;  %v2912_v4 = vld [vmem:[#allocation2 + $0x68] sm:$0xff]  ;;  %v1069_v46 = vld [vmem:[#allocation2 + $0x160] sm:$0xff] }
 0x1d7   : > { %v2967_v19 = vadd.f32 %v5022_v34, %v2912_v4  ;;  %1785 = vst.msk [vmem:[#allocation2 + $0x138] sm:$0xff] %vm679_vm0, %v1740_v23  ;;  %2659 = vst.msk [vmem:[#allocation2 + $0x78] sm:$0xff] %vm679_vm0, %v2617_v25  ;;  %v1988_v50 = vld [vmem:[#allocation2 + $0xa0] sm:$0xff]  ;;  %v1989_v4 = vld [vmem:[#allocation2 + $0xa8] sm:$0xff] }
 0x1d8   : > { %v3014_v40 = vmax.f32 %v2966_v30, 0.0 }
 0x1d9   : > { %v3015_v44 = vmax.f32 %v2967_v19, 0.0 }
 0x1da   : > { %v3850_v39 = vpack.c.bf16 %v3014_v40, %v3014_v40  ;;  %v1679_v53 = vpop.f32.mrb[104].mxu1  ;;  %v2499_v62 = vpop.f32.mrb[104].mxu0 }
 0x1db   : > { %v3851_v9 = vpack.c.bf16 %v3015_v44, %v3015_v44  ;;  %v1741_v63 = vadd.f32 %v1679_v53, %v1065_v51  ;;  %v2618_v0 = vadd.f32 %v2499_v62, %v1984_v12  ;;  %v1681_v17 = vpop.f32.mrb[105].mxu1  ;;  %v2501_v14 = vpop.f32.mrb[105].mxu0 }
 0x1dc   : > { %3255 = vst.msk [vmem:[%s5034_s27 + $0x30] sm:$0xf] %vm3242_vm1, %v3850_v39  ;;  %v1682_v26 = vpop.f32.mrb[106].mxu1  ;;  %v2502_v33 = vpop.f32.mrb[106].mxu0  ;;  %v1791_v17 = vld [vmem:[#allocation2 + $0x168] sm:$0xff] }
 0x1dd   : > { %v2913_v15 = vld [vmem:[#allocation2 + $0x70] sm:$0xff]  ;;  %3256 = vst.msk [vmem:[%s5034_s27 + $0x34] sm:$0xf] %vm3242_vm1, %v3851_v9  ;;  %v1742_v1 = vadd.f32 %v1682_v26, %v1066_v48  ;;  %v2619_v5 = vadd.f32 %v2502_v33, %v1985_v57  ;;  %v2504_v10 = vpop.f32.mrb[107].mxu0  ;;  %v1684_v41 = vpop.f32.mrb[107].mxu1 }
 0x1de   : > { %v2968_v59 = vadd.f32 %v5022_v34, %v2913_v15  ;;  %1786 = vst.msk [vmem:[#allocation2 + $0x140] sm:$0xff] %vm679_vm0, %v1741_v63  ;;  %2660 = vst.msk [vmem:[#allocation2 + $0x80] sm:$0xff] %vm679_vm0, %v2618_v0  ;;  %v2914_v16 = vld [vmem:[#allocation2 + $0x78] sm:$0xff]  ;;  %v1990_v15 = vld [vmem:[#allocation2 + $0xb0] sm:$0xff] }
 0x1df   : > { %v2969_v6 = vadd.f32 %v5022_v34, %v2914_v16  ;;  %1787 = vst.msk [vmem:[#allocation2 + $0x148] sm:$0xff] %vm679_vm0, %v1742_v1  ;;  %2661 = vst.msk [vmem:[#allocation2 + $0x88] sm:$0xff] %vm679_vm0, %v2619_v5  ;;  %v1792_v10 = vld [vmem:[#allocation2 + $0x170] sm:$0xff]  ;;  %v1991_v16 = vld [vmem:[#allocation2 + $0xb8] sm:$0xff] }
 0x1e0   : > { %v3016_v21 = vmax.f32 %v2968_v59, 0.0 }
 0x1e1   : > { %v3017_v20 = vmax.f32 %v2969_v6, 0.0 }
 0x1e2   : > { %v3852_v7 = vpack.c.bf16 %v3016_v21, %v3016_v21  ;;  %v1687_v22 = vpop.f32.mrb[108].mxu1  ;;  %v2507_v13 = vpop.f32.mrb[108].mxu0 }
 0x1e3   : > { %v3853_v32 = vpack.c.bf16 %v3017_v20, %v3017_v20  ;;  %v1743_v52 = vadd.f32 %v1687_v22, %v1067_v49  ;;  %v2620_v42 = vadd.f32 %v2507_v13, %v1986_v31  ;;  %v1689_v35 = vpop.f32.mrb[109].mxu1  ;;  %v2509_v45 = vpop.f32.mrb[109].mxu0 }
 0x1e4   : > { %3257 = vst.msk [vmem:[%s5034_s27 + $0x38] sm:$0xf] %vm3242_vm1, %v3852_v7  ;;  %v1690_v54 = vpop.f32.mrb[110].mxu1  ;;  %v2510_v56 = vpop.f32.mrb[110].mxu0  ;;  %v1793_v35 = vld [vmem:[#allocation2 + $0x178] sm:$0xff] }
 0x1e5   : > { %v2915_v3 = vld [vmem:[#allocation2 + $0x80] sm:$0xff]  ;;  %3258 = vst.msk [vmem:[%s5034_s27 + $0x3c] sm:$0xf] %vm3242_vm1, %v3853_v32  ;;  %v1744_v8 = vadd.f32 %v1690_v54, %v1068_v43  ;;  %v2621_v27 = vadd.f32 %v2510_v56, %v1987_v47  ;;  %v2512_v55 = vpop.f32.mrb[111].mxu0  ;;  %v1692_v2 = vpop.f32.mrb[111].mxu1 }
 0x1e6   : > { %v2970_v60 = vadd.f32 %v5022_v34, %v2915_v3  ;;  %1788 = vst.msk [vmem:[#allocation2 + $0x150] sm:$0xff] %vm679_vm0, %v1743_v52  ;;  %2662 = vst.msk [vmem:[#allocation2 + $0x90] sm:$0xff] %vm679_vm0, %v2620_v42  ;;  %v2916_v11 = vld [vmem:[#allocation2 + $0x88] sm:$0xff]  ;;  %v1992_v3 = vld [vmem:[#allocation2 + $0xc0] sm:$0xff] }
 0x1e7   : > { %v2971_v24 = vadd.f32 %v5022_v34, %v2916_v11  ;;  %1789 = vst.msk [vmem:[#allocation2 + $0x158] sm:$0xff] %vm679_vm0, %v1744_v8  ;;  %2663 = vst.msk [vmem:[#allocation2 + $0x98] sm:$0xff] %vm679_vm0, %v2621_v27  ;;  %v1993_v55 = vld [vmem:[#allocation2 + $0xc8] sm:$0xff] }
 0x1e8   : > { %v3018_v18 = vmax.f32 %v2970_v60, 0.0 }
 0x1e9   : > { %v3019_v29 = vmax.f32 %v2971_v24, 0.0 }
 0x1ea   : > { %v3854_v36 = vpack.c.bf16 %v3018_v18, %v3018_v18  ;;  %v1695_v58 = vpop.f32.mrb[112].mxu1  ;;  %v2515_v61 = vpop.f32.mrb[112].mxu0 }
 0x1eb   : > { %v3855_v38 = vpack.c.bf16 %v3019_v29, %v3019_v29  ;;  %v1745_v30 = vadd.f32 %v1695_v58, %v1069_v46  ;;  %v2622_v23 = vadd.f32 %v2515_v61, %v1988_v50  ;;  %v2517_v25 = vpop.f32.mrb[113].mxu0  ;;  %v1697_v37 = vpop.f32.mrb[113].mxu1 }
 0x1ec   : > { %3259 = vst.msk [vmem:[%s5034_s27 + $0x40] sm:$0xf] %vm3242_vm1, %v3854_v36  ;;  %v2518_v40 = vpop.f32.mrb[114].mxu0  ;;  %v1698_v19 = vpop.f32.mrb[114].mxu1 }
 0x1ed   : > { %v2917_v28 = vld [vmem:[#allocation2 + $0x90] sm:$0xff]  ;;  %3260 = vst.msk [vmem:[%s5034_s27 + $0x44] sm:$0xf] %vm3242_vm1, %v3855_v38  ;;  %v2623_v44 = vadd.f32 %v2518_v40, %v1989_v4  ;;  %v2520_v51 = vpop.f32.mrb[115].mxu0  ;;  %v1699_v53 = vpop.f32.mrb[115].mxu1  ;;  %v1995_v40 = vld [vmem:[#allocation2 + $0xd8] sm:$0xff] }
 0x1ee   : > { %v2972_v39 = vadd.f32 %v5022_v34, %v2917_v28  ;;  %1790 = vst.msk [vmem:[#allocation2 + $0x160] sm:$0xff] %vm679_vm0, %v1745_v30  ;;  %2664 = vst.msk [vmem:[#allocation2 + $0xa0] sm:$0xff] %vm679_vm0, %v2622_v23  ;;  %v2918_v12 = vld [vmem:[#allocation2 + $0x98] sm:$0xff]  ;;  %v1994_v30 = vld [vmem:[#allocation2 + $0xd0] sm:$0xff] }
 0x1ef   : > { %v2973_v9 = vadd.f32 %v5022_v34, %v2918_v12  ;;  %2665 = vst.msk [vmem:[#allocation2 + $0xa8] sm:$0xff] %vm679_vm0, %v2623_v44 }
 0x1f0   : > { %v3020_v62 = vmax.f32 %v2972_v39, 0.0 }
 0x1f1   : > { %v3021_v0 = vmax.f32 %v2973_v9, 0.0 }
 0x1f2   : > { %v3856_v63 = vpack.c.bf16 %v3020_v62, %v3020_v62  ;;  %v1948_v14 = vpop.f32.mrb[116].mxu1  ;;  %v2523_v48 = vpop.f32.mrb[116].mxu0 }
 0x1f3   : > { %v3857_v26 = vpack.c.bf16 %v3021_v0, %v3021_v0  ;;  %v1962_v57 = vadd.f32 %v1948_v14, %v1791_v17  ;;  %v2624_v33 = vadd.f32 %v2523_v48, %v1990_v15  ;;  %v1950_v59 = vpop.f32.mrb[117].mxu1  ;;  %v2525_v1 = vpop.f32.mrb[117].mxu0  ;;  %v1996_v0 = vld [vmem:[#allocation2 + $0xe0] sm:$0xff] }
 0x1f4   : > { %3261 = vst.msk [vmem:[%s5034_s27 + $0x48] sm:$0xf] %vm3242_vm1, %v3856_v63  ;;  %v1951_v41 = vpop.f32.mrb[118].mxu1  ;;  %v2526_v21 = vpop.f32.mrb[118].mxu0 }
 0x1f5   : > { %v2919_v5 = vld [vmem:[#allocation2 + $0xa0] sm:$0xff]  ;;  %3262 = vst.msk [vmem:[%s5034_s27 + $0x4c] sm:$0xf] %vm3242_vm1, %v3857_v26  ;;  %v1963_v7 = vadd.f32 %v1951_v41, %v1792_v10  ;;  %v2625_v20 = vadd.f32 %v2526_v21, %v1991_v16  ;;  %v2528_v49 = vpop.f32.mrb[119].mxu0  ;;  %v1953_v22 = vpop.f32.mrb[119].mxu1 }
 0x1f6   : > { %v2974_v6 = vadd.f32 %v5022_v34, %v2919_v5  ;;  %1965 = vst.msk [vmem:[#allocation2 + $0x168] sm:$0xff] %vm679_vm0, %v1962_v57  ;;  %2666 = vst.msk [vmem:[#allocation2 + $0xb0] sm:$0xff] %vm679_vm0, %v2624_v33  ;;  %v2920_v31 = vld [vmem:[#allocation2 + $0xa8] sm:$0xff] }
 0x1f7   : > { %v2975_v32 = vadd.f32 %v5022_v34, %v2920_v31  ;;  %1966 = vst.msk [vmem:[#allocation2 + $0x170] sm:$0xff] %vm679_vm0, %v1963_v7  ;;  %2667 = vst.msk [vmem:[#allocation2 + $0xb8] sm:$0xff] %vm679_vm0, %v2625_v20  ;;  %v1997_v57 = vld [vmem:[#allocation2 + $0xe8] sm:$0xff]  ;;  %v1998_v7 = vld [vmem:[#allocation2 + $0xf0] sm:$0xff] }
 0x1f8   : > { %v3022_v13 = vmax.f32 %v2974_v6, 0.0 }
 0x1f9   : > { %v3023_v42 = vmax.f32 %v2975_v32, 0.0  ;;  %v1999_v32 = vld [vmem:[#allocation2 + $0xf8] sm:$0xff] }
 0x1fa   : > { %v3858_v52 = vpack.c.bf16 %v3022_v13, %v3022_v13  ;;  %v1956_v45 = vpop.f32.mrb[120].mxu1  ;;  %v2531_v43 = vpop.f32.mrb[120].mxu0 }
 0x1fb   : > { %v3859_v54 = vpack.c.bf16 %v3023_v42, %v3023_v42  ;;  %v1964_v47 = vadd.f32 %v1956_v45, %v1793_v35  ;;  %v2626_v56 = vadd.f32 %v2531_v43, %v1992_v3  ;;  %v2533_v60 = vpop.f32.mrb[121].mxu0  ;;  %v1958_v8 = vpop.f32.mrb[121].mxu1 }
 0x1fc   : > { %3263 = vst.msk [vmem:[%s5034_s27 + $0x50] sm:$0xf] %vm3242_vm1, %v3858_v52  ;;  %v2534_v2 = vpop.f32.mrb[122].mxu0  ;;  %v1959_v11 = vpop.f32.mrb[122].mxu1  ;;  %v2000_v60 = vld [vmem:[#allocation2 + $0x100] sm:$0xff] }
 0x1fd   : > { %v2921_v27 = vld [vmem:[#allocation2 + $0xb0] sm:$0xff]  ;;  %3264 = vst.msk [vmem:[%s5034_s27 + $0x54] sm:$0xf] %vm3242_vm1, %v3859_v54  ;;  %v2627_v24 = vadd.f32 %v2534_v2, %v1993_v55  ;;  %v2536_v36 = vpop.f32.mrb[123].mxu0  ;;  %v1960_v29 = vpop.f32.mrb[123].mxu1 }
 0x1fe   : > { %v2976_v18 = vadd.f32 %v5022_v34, %v2921_v27  ;;  %1967 = vst.msk [vmem:[#allocation2 + $0x178] sm:$0xff] %vm679_vm0, %v1964_v47  ;;  %2668 = vst.msk [vmem:[#allocation2 + $0xc0] sm:$0xff] %vm679_vm0, %v2626_v56  ;;  %v2922_v46 = vld [vmem:[#allocation2 + $0xb8] sm:$0xff] }
 0x1ff   : > { %v2977_v50 = vadd.f32 %v5022_v34, %v2922_v46  ;;  %2669 = vst.msk [vmem:[#allocation2 + $0xc8] sm:$0xff] %vm679_vm0, %v2627_v24 }
 0x200   : > { %v3024_v58 = vmax.f32 %v2976_v18, 0.0  ;;  %v2001_v18 = vld [vmem:[#allocation2 + $0x108] sm:$0xff] }
 0x201   : > { %v3025_v38 = vmax.f32 %v2977_v50, 0.0 }
 0x202   : > { %v3860_v61 = vpack.c.bf16 %v3024_v58, %v3024_v58  ;;  %v2539_v23 = vpop.f32.mrb[124].mxu0 }
 0x203   : > { %v3861_v25 = vpack.c.bf16 %v3025_v38, %v3025_v38  ;;  %v2628_v37 = vadd.f32 %v2539_v23, %v1994_v30  ;;  %v2541_v28 = vpop.f32.mrb[125].mxu0  ;;  %v2686_v23 = vld [vmem:[#allocation2 + $0x150] sm:$0xff] }
 0x204   : > { %3265 = vst.msk [vmem:[%s5034_s27 + $0x58] sm:$0xf] %vm3242_vm1, %v3860_v61  ;;  %v2542_v19 = vpop.f32.mrb[126].mxu0 }
 0x205   : > { %v2923_v4 = vld [vmem:[#allocation2 + $0xc0] sm:$0xff]  ;;  %3266 = vst.msk [vmem:[%s5034_s27 + $0x5c] sm:$0xf] %vm3242_vm1, %v3861_v25  ;;  %v2629_v44 = vadd.f32 %v2542_v19, %v1995_v40  ;;  %v2544_v51 = vpop.f32.mrb[127].mxu0 }
 0x206   : > { %v2978_v39 = vadd.f32 %v5022_v34, %v2923_v4  ;;  %2670 = vst.msk [vmem:[#allocation2 + $0xd0] sm:$0xff] %vm679_vm0, %v2628_v37  ;;  %v2924_v53 = vld [vmem:[#allocation2 + $0xc8] sm:$0xff]  ;;  %v2002_v37 = vld [vmem:[#allocation2 + $0x110] sm:$0xff] }
 0x207   : > { %v2979_v62 = vadd.f32 %v5022_v34, %v2924_v53  ;;  %2671 = vst.msk [vmem:[#allocation2 + $0xd8] sm:$0xff] %vm679_vm0, %v2629_v44  ;;  %v2687_v53 = vld [vmem:[#allocation2 + $0x158] sm:$0xff] }
 0x208   : > { %v3026_v12 = vmax.f32 %v2978_v39, 0.0 }
 0x209   : > { %v3027_v63 = vmax.f32 %v2979_v62, 0.0  ;;  %v2003_v62 = vld [vmem:[#allocation2 + $0x118] sm:$0xff] }
 0x20a   : > { %v3862_v9 = vpack.c.bf16 %v3026_v12, %v3026_v12  ;;  %v2547_v17 = vpop.f32.mrb[128].mxu0 }
 0x20b   : > { %v3863_v14 = vpack.c.bf16 %v3027_v63, %v3027_v63  ;;  %v2630_v15 = vadd.f32 %v2547_v17, %v1996_v0  ;;  %v2549_v48 = vpop.f32.mrb[129].mxu0 }
 0x20c   : > { %3267 = vst.msk [vmem:[%s5034_s27 + $0x60] sm:$0xf] %vm3242_vm1, %v3862_v9  ;;  %v2550_v33 = vpop.f32.mrb[130].mxu0 }
 0x20d   : > { %v2925_v26 = vld [vmem:[#allocation2 + $0xd0] sm:$0xff]  ;;  %3268 = vst.msk [vmem:[%s5034_s27 + $0x64] sm:$0xf] %vm3242_vm1, %v3863_v14  ;;  %v2631_v1 = vadd.f32 %v2550_v33, %v1997_v57  ;;  %v2552_v5 = vpop.f32.mrb[131].mxu0 }
 0x20e   : > { %v2980_v59 = vadd.f32 %v5022_v34, %v2925_v26  ;;  %2672 = vst.msk [vmem:[#allocation2 + $0xe0] sm:$0xff] %vm679_vm0, %v2630_v15  ;;  %v2926_v10 = vld [vmem:[#allocation2 + $0xd8] sm:$0xff] }
 0x20f   : > { %v2981_v16 = vadd.f32 %v5022_v34, %v2926_v10  ;;  %2673 = vst.msk [vmem:[#allocation2 + $0xe8] sm:$0xff] %vm679_vm0, %v2631_v1  ;;  %v2688_v1 = vld [vmem:[#allocation2 + $0x160] sm:$0xff] }
 0x210   : > { %v3028_v41 = vmax.f32 %v2980_v59, 0.0  ;;  %v2004_v10 = vld [vmem:[#allocation2 + $0x120] sm:$0xff] }
 0x211   : > { %v3029_v6 = vmax.f32 %v2981_v16, 0.0 }
 0x212   : > { %v3864_v21 = vpack.c.bf16 %v3028_v41, %v3028_v41  ;;  %v2555_v20 = vpop.f32.mrb[132].mxu0 }
 0x213   : > { %v3865_v49 = vpack.c.bf16 %v3029_v6, %v3029_v6  ;;  %v2632_v22 = vadd.f32 %v2555_v20, %v1998_v7  ;;  %v2557_v31 = vpop.f32.mrb[133].mxu0 }
 0x214   : > { %3269 = vst.msk [vmem:[%s5034_s27 + $0x68] sm:$0xf] %vm3242_vm1, %v3864_v21  ;;  %v2558_v52 = vpop.f32.mrb[134].mxu0 }
 0x215   : > { %v2927_v13 = vld [vmem:[#allocation2 + $0xe0] sm:$0xff]  ;;  %3270 = vst.msk [vmem:[%s5034_s27 + $0x6c] sm:$0xf] %vm3242_vm1, %v3865_v49  ;;  %v2633_v35 = vadd.f32 %v2558_v52, %v1999_v32  ;;  %v2560_v45 = vpop.f32.mrb[135].mxu0  ;;  %v2005_v49 = vld [vmem:[#allocation2 + $0x128] sm:$0xff] }
 0x216   : > { %v2982_v42 = vadd.f32 %v5022_v34, %v2927_v13  ;;  %2674 = vst.msk [vmem:[#allocation2 + $0xf0] sm:$0xff] %vm679_vm0, %v2632_v22  ;;  %v2928_v3 = vld [vmem:[#allocation2 + $0xe8] sm:$0xff] }
 0x217   : > { %v2983_v54 = vadd.f32 %v5022_v34, %v2928_v3  ;;  %2675 = vst.msk [vmem:[#allocation2 + $0xf8] sm:$0xff] %vm679_vm0, %v2633_v35  ;;  %v2689_v13 = vld [vmem:[#allocation2 + $0x168] sm:$0xff] }
 0x218   : > { %v3030_v43 = vmax.f32 %v2982_v42, 0.0 }
 0x219   : > { %v3031_v56 = vmax.f32 %v2983_v54, 0.0 }
 0x21a   : > { %v3866_v47 = vpack.c.bf16 %v3030_v43, %v3030_v43  ;;  %v2563_v8 = vpop.f32.mrb[136].mxu0 }
 0x21b   : > { %v3867_v27 = vpack.c.bf16 %v3031_v56, %v3031_v56  ;;  %v2634_v55 = vadd.f32 %v2563_v8, %v2000_v60  ;;  %v2565_v2 = vpop.f32.mrb[137].mxu0 }
 0x21c   : > { %3271 = vst.msk [vmem:[%s5034_s27 + $0x70] sm:$0xf] %vm3242_vm1, %v3866_v47  ;;  %v2566_v24 = vpop.f32.mrb[138].mxu0 }
 0x21d   : > { %v2929_v11 = vld [vmem:[#allocation2 + $0xf0] sm:$0xff]  ;;  %3272 = vst.msk [vmem:[%s5034_s27 + $0x74] sm:$0xf] %vm3242_vm1, %v3867_v27  ;;  %v2635_v29 = vadd.f32 %v2566_v24, %v2001_v18  ;;  %v2568_v46 = vpop.f32.mrb[139].mxu0 }
 0x21e   : > { %v2984_v36 = vadd.f32 %v5022_v34, %v2929_v11  ;;  %2676 = vst.msk [vmem:[#allocation2 + $0x100] sm:$0xff] %vm679_vm0, %v2634_v55  ;;  %v2930_v58 = vld [vmem:[#allocation2 + $0xf8] sm:$0xff]  ;;  %v2006_v46 = vld [vmem:[#allocation2 + $0x130] sm:$0xff] }
 0x21f   : > { %v2985_v61 = vadd.f32 %v5022_v34, %v2930_v58  ;;  %2677 = vst.msk [vmem:[#allocation2 + $0x108] sm:$0xff] %vm679_vm0, %v2635_v29 }
 0x220   : > { %v3032_v50 = vmax.f32 %v2984_v36, 0.0  ;;  %v2690_v36 = vld [vmem:[#allocation2 + $0x170] sm:$0xff] }
 0x221   : > { %v3033_v30 = vmax.f32 %v2985_v61, 0.0 }
 0x222   : > { %v3868_v38 = vpack.c.bf16 %v3032_v50, %v3032_v50  ;;  %v2864_v25 = vpop.f32.mrb[124].mxu1  ;;  %v2571_v28 = vpop.f32.mrb[140].mxu0 }
 0x223   : > { %v3869_v4 = vpack.c.bf16 %v3033_v30, %v3033_v30  ;;  %v2887_v40 = vadd.f32 %v2864_v25, %v2686_v23  ;;  %v2636_v19 = vadd.f32 %v2571_v28, %v2002_v37  ;;  %v2866_v39 = vpop.f32.mrb[125].mxu1  ;;  %v2573_v44 = vpop.f32.mrb[141].mxu0  ;;  %v2007_v25 = vld [vmem:[#allocation2 + $0x138] sm:$0xff] }
 0x224   : > { %3273 = vst.msk [vmem:[%s5034_s27 + $0x78] sm:$0xf] %vm3242_vm1, %v3868_v38  ;;  %v2867_v12 = vpop.f32.mrb[126].mxu1  ;;  %v2574_v9 = vpop.f32.mrb[142].mxu0  ;;  %v4116_v39 = vld [vmem:[%s5247_s3] ss:$0 sm:$0xff] }
 0x225   : > { %v2931_v51 = vld [vmem:[#allocation2 + $0x100] sm:$0xff]  ;;  %3274 = vst.msk [vmem:[%s5034_s27 + $0x7c] sm:$0xf] %vm3242_vm1, %v3869_v4  ;;  %v2888_v0 = vadd.f32 %v2867_v12, %v2687_v53  ;;  %v2637_v17 = vadd.f32 %v2574_v9, %v2003_v62  ;;  %v2576_v14 = vpop.f32.mrb[143].mxu0  ;;  %v2869_v15 = vpop.f32.mrb[127].mxu1  ;;  %v2691_v4 = vld [vmem:[#allocation2 + $0x178] sm:$0xff] }
 0x226   : > { %v2986_v63 = vadd.f32 %v5022_v34, %v2931_v51  ;;  %2893 = vst.msk [vmem:[#allocation2 + $0x150] sm:$0xff] %vm679_vm0, %v2887_v40  ;;  %2678 = vst.msk [vmem:[#allocation2 + $0x110] sm:$0xff] %vm679_vm0, %v2636_v19  ;;  %v2932_v48 = vld [vmem:[#allocation2 + $0x108] sm:$0xff] }
 0x227   : > { %v2987_v57 = vadd.f32 %v5022_v34, %v2932_v48  ;;  %2894 = vst.msk [vmem:[#allocation2 + $0x158] sm:$0xff] %vm679_vm0, %v2888_v0  ;;  %2679 = vst.msk [vmem:[#allocation2 + $0x118] sm:$0xff] %vm679_vm0, %v2637_v17 }
 0x228   : > { %v3034_v26 = vmax.f32 %v2986_v63, 0.0 }
 0x229   : > { %v3035_v59 = vmax.f32 %v2987_v57, 0.0 }
 0x22a   : > { %v3870_v33 = vpack.c.bf16 %v3034_v26, %v3034_v26  ;;  %v2872_v5 = vpop.f32.mrb[128].mxu1  ;;  %v2579_v41 = vpop.f32.mrb[144].mxu0 }
 0x22b   : > { %v3871_v16 = vpack.c.bf16 %v3035_v59, %v3035_v59  ;;  %v2889_v21 = vadd.f32 %v2872_v5, %v2688_v1  ;;  %v2638_v6 = vadd.f32 %v2579_v41, %v2004_v10  ;;  %v2874_v7 = vpop.f32.mrb[129].mxu1  ;;  %v2581_v20 = vpop.f32.mrb[145].mxu0  ;;  %v2008_v1 = vld [vmem:[#allocation2 + $0x140] sm:$0xff] }
 0x22c   : > { %3275 = vst.msk [vmem:[%s5034_s27 + $0x80] sm:$0xf] %vm3242_vm1, %v3870_v33  ;;  %v2875_v32 = vpop.f32.mrb[130].mxu1  ;;  %v2582_v52 = vpop.f32.mrb[146].mxu0  ;;  %v2009_v20 = vld [vmem:[#allocation2 + $0x148] sm:$0xff] }
 0x22d   : > { %v2941_v22 = vld [vmem:[#allocation2 + $0x150] sm:$0xff]  ;;  %3276 = vst.msk [vmem:[%s5034_s27 + $0x84] sm:$0xf] %vm3242_vm1, %v3871_v16  ;;  %v2890_v45 = vadd.f32 %v2875_v32, %v2689_v13  ;;  %v2639_v3 = vadd.f32 %v2582_v52, %v2005_v49  ;;  %v2584_v43 = vpop.f32.mrb[147].mxu0  ;;  %v2877_v54 = vpop.f32.mrb[131].mxu1 }
 0x22e   : > { %v2933_v31 = vld [vmem:[#allocation2 + $0x110] sm:$0xff]  ;;  %v2996_v42 = vadd.f32 %v5022_v34, %v2941_v22  ;;  %2895 = vst.msk [vmem:[#allocation2 + $0x160] sm:$0xff] %vm679_vm0, %v2889_v21  ;;  %2680 = vst.msk [vmem:[#allocation2 + $0x120] sm:$0xff] %vm679_vm0, %v2638_v6  ;;  %v2942_v47 = vld [vmem:[#allocation2 + $0x158] sm:$0xff] }
 0x22f   : > { %v2988_v35 = vadd.f32 %v5022_v34, %v2933_v31  ;;  %v2934_v56 = vld [vmem:[#allocation2 + $0x118] sm:$0xff]  ;;  %v2997_v27 = vadd.f32 %v5022_v34, %v2942_v47  ;;  %2896 = vst.msk [vmem:[#allocation2 + $0x168] sm:$0xff] %vm679_vm0, %v2890_v45  ;;  %2681 = vst.msk [vmem:[#allocation2 + $0x128] sm:$0xff] %vm679_vm0, %v2639_v3 }
 0x230   : > { %v3044_v60 = vmax.f32 %v2996_v42, 0.0  ;;  %v2989_v55 = vadd.f32 %v5022_v34, %v2934_v56 }
 0x231   : > { %v3036_v8 = vmax.f32 %v2988_v35, 0.0  ;;  %v3045_v18 = vmax.f32 %v2997_v27, 0.0 }
 0x232   : > { %v3880_v2 = vpack.c.bf16 %v3044_v60, %v3044_v60  ;;  %v3037_v24 = vmax.f32 %v2989_v55, 0.0  ;;  %v2880_v29 = vpop.f32.mrb[132].mxu1  ;;  %v2587_v58 = vpop.f32.mrb[148].mxu0 }
 0x233   : > { %v3872_v11 = vpack.c.bf16 %v3036_v8, %v3036_v8  ;;  %v3881_v50 = vpack.c.bf16 %v3045_v18, %v3045_v18  ;;  %v2891_v61 = vadd.f32 %v2880_v29, %v2690_v36  ;;  %v2640_v38 = vadd.f32 %v2587_v58, %v2006_v46  ;;  %v2882_v30 = vpop.f32.mrb[133].mxu1  ;;  %v2589_v23 = vpop.f32.mrb[149].mxu0 }
 0x234   : > { %3285 = vst.msk [vmem:[%s5034_s27 + $0xa8] sm:$0xf] %vm3242_vm1, %v3880_v2  ;;  %v3873_v34 = vpack.c.bf16 %v3037_v24, %v3037_v24  ;;  %v2883_v40 = vpop.f32.mrb[134].mxu1  ;;  %v2590_v19 = vpop.f32.mrb[150].mxu0 }
 0x235   : > { %3277 = vst.msk [vmem:[%s5034_s27 + $0x88] sm:$0xf] %vm3242_vm1, %v3872_v11  ;;  %v2943_v37 = vld [vmem:[#allocation2 + $0x160] sm:$0xff]  ;;  %3286 = vst.msk [vmem:[%s5034_s27 + $0xac] sm:$0xf] %vm3242_vm1, %v3881_v50  ;;  %v2892_v53 = vadd.f32 %v2883_v40, %v2691_v4  ;;  %v2641_v12 = vadd.f32 %v2590_v19, %v2007_v25  ;;  %v2592_v62 = vpop.f32.mrb[151].mxu0 }
 0x236   : > { %v2935_v28 = vld [vmem:[#allocation2 + $0x120] sm:$0xff]  ;;  %3278 = vst.msk [vmem:[%s5034_s27 + $0x8c] sm:$0xf] %vm3242_vm1, %v3873_v34  ;;  %v2998_v44 = vadd.f32 %v4116_v39, %v2943_v37  ;;  %v2885_v9 = vpop.f32.mrb[135].mxu1  ;;  %v2944_v63 = vld [vmem:[#allocation2 + $0x168] sm:$0xff] }
 0x237   : > { %v2990_v51 = vadd.f32 %v4116_v39, %v2935_v28  ;;  %2897 = vst.msk [vmem:[#allocation2 + $0x170] sm:$0xff] %vm679_vm0, %v2891_v61  ;;  %2682 = vst.msk [vmem:[#allocation2 + $0x130] sm:$0xff] %vm679_vm0, %v2640_v38  ;;  %v2936_v0 = vld [vmem:[#allocation2 + $0x128] sm:$0xff]  ;;  %v2999_v15 = vadd.f32 %v4116_v39, %v2944_v63 }
 0x238   : > { %v3046_v17 = vmax.f32 %v2998_v44, 0.0  ;;  %v2991_v48 = vadd.f32 %v4116_v39, %v2936_v0  ;;  %2898 = vst.msk [vmem:[#allocation2 + $0x178] sm:$0xff] %vm679_vm0, %v2892_v53  ;;  %2683 = vst.msk [vmem:[#allocation2 + $0x138] sm:$0xff] %vm679_vm0, %v2641_v12 }
 0x239   : > { %v3038_v14 = vmax.f32 %v2990_v51, 0.0  ;;  %v3047_v33 = vmax.f32 %v2999_v15, 0.0 }
 0x23a   : > { %v3882_v26 = vpack.c.bf16 %v3046_v17, %v3046_v17  ;;  %v3039_v59 = vmax.f32 %v2991_v48, 0.0  ;;  %v2595_v5 = vpop.f32.mrb[152].mxu0 }
 0x23b   : > { %v3874_v57 = vpack.c.bf16 %v3038_v14, %v3038_v14  ;;  %v3883_v10 = vpack.c.bf16 %v3047_v33, %v3047_v33  ;;  %v2642_v16 = vadd.f32 %v2595_v5, %v2008_v1  ;;  %v2597_v21 = vpop.f32.mrb[153].mxu0 }
 0x23c   : > { %3287 = vst.msk [vmem:[%s5034_s27 + $0xb0] sm:$0xf] %vm3242_vm1, %v3882_v26  ;;  %v3875_v41 = vpack.c.bf16 %v3039_v59, %v3039_v59  ;;  %v2598_v49 = vpop.f32.mrb[154].mxu0 }
 0x23d   : > { %3279 = vst.msk [vmem:[%s5034_s27 + $0x90] sm:$0xf] %vm3242_vm1, %v3874_v57  ;;  %3288 = vst.msk [vmem:[%s5034_s27 + $0xb4] sm:$0xf] %vm3242_vm1, %v3883_v10  ;;  %v2643_v13 = vadd.f32 %v2598_v49, %v2009_v20  ;;  %v2600_v32 = vpop.f32.mrb[155].mxu0 }
 0x23e   : > { %v2945_v6 = vld [vmem:[#allocation2 + $0x170] sm:$0xff]  ;;  %3280 = vst.msk [vmem:[%s5034_s27 + $0x94] sm:$0xf] %vm3242_vm1, %v3875_v41 }
 0x23f   : > { %v2937_v7 = vld [vmem:[#allocation2 + $0x130] sm:$0xff]  ;;  %v3000_v22 = vadd.f32 %v4116_v39, %v2945_v6  ;;  %2684 = vst.msk [vmem:[#allocation2 + $0x140] sm:$0xff] %vm679_vm0, %v2642_v16  ;;  %v2946_v52 = vld [vmem:[#allocation2 + $0x178] sm:$0xff]  ;;  %2685 = vst.msk [vmem:[#allocation2 + $0x148] sm:$0xff] %vm679_vm0, %v2643_v13 }
 0x240   : > { %v2992_v31 = vadd.f32 %v4116_v39, %v2937_v7  ;;  %v2938_v42 = vld [vmem:[#allocation2 + $0x138] sm:$0xff]  ;;  %v3001_v3 = vadd.f32 %v4116_v39, %v2946_v52 }
 0x241   : > { %v3048_v35 = vmax.f32 %v3000_v22, 0.0  ;;  %v2993_v43 = vadd.f32 %v4116_v39, %v2938_v42 }
 0x242   : > { %v3040_v45 = vmax.f32 %v2992_v31, 0.0  ;;  %v3049_v56 = vmax.f32 %v3001_v3, 0.0 }
 0x243   : > { %v3884_v54 = vpack.c.bf16 %v3048_v35, %v3048_v35  ;;  %v3041_v60 = vmax.f32 %v2993_v43, 0.0 }
 0x244   : > { %v3876_v47 = vpack.c.bf16 %v3040_v45, %v3040_v45  ;;  %v3885_v8 = vpack.c.bf16 %v3049_v56, %v3049_v56 }
 0x245   : > { %3289 = vst.msk [vmem:[%s5034_s27 + $0xb8] sm:$0xf] %vm3242_vm1, %v3884_v54  ;;  %v3877_v27 = vpack.c.bf16 %v3041_v60, %v3041_v60 }
 0x246   : > { %3281 = vst.msk [vmem:[%s5034_s27 + $0x98] sm:$0xf] %vm3242_vm1, %v3876_v47  ;;  %v2939_v55 = vld [vmem:[#allocation2 + $0x140] sm:$0xff]  ;;  %3290 = vst.msk [vmem:[%s5034_s27 + $0xbc] sm:$0xf] %vm3242_vm1, %v3885_v8  ;;  %v2940_v11 = vld [vmem:[#allocation2 + $0x148] sm:$0xff] }
 0x247   : > { %3282 = vst.msk [vmem:[%s5034_s27 + $0x9c] sm:$0xf] %vm3242_vm1, %v3877_v27  ;;  %v2994_v2 = vadd.f32 %v4116_v39, %v2939_v55  ;;  %v2995_v24 = vadd.f32 %v4116_v39, %v2940_v11 }
 0x249   : > { %v3042_v18 = vmax.f32 %v2994_v2, 0.0  ;;  %v3043_v29 = vmax.f32 %v2995_v24, 0.0 }
 0x24b   : > { %v3878_v36 = vpack.c.bf16 %v3042_v18, %v3042_v18  ;;  %v3879_v46 = vpack.c.bf16 %v3043_v29, %v3043_v29 }
 0x24d   : > { %3283 = vst.msk [vmem:[%s5034_s27 + $0xa0] sm:$0xf] %vm3242_vm1, %v3878_v36  ;;  %3284 = vst.msk [vmem:[%s5034_s27 + $0xa4] sm:$0xf] %vm3242_vm1, %v3879_v46 }
 0x24e PF: > { %s14_s17 = sadd.s32 1, %s4139_s17   ;;  %s5249_s15 = smov %s4135_s16 }
 0x24f   : > { %p11_p5 = scmp.ge.s32.totalorder %s14_s17, 4   ;;  %s5250_s16 = smov %s5252_s18 }
 0x251   :  { %13 = sbr.rel (!%p11_p5) target bundleno = 2 (0x2), region = 71 }

// kernel: feature_extractor.14
= control target key start
LH: loop header
LB: loop body
LE: loop exit
PB: predicated region body
PF: predicated region fallthrough
CT: control target
= control target key end

     0   :  { %s357_s6 = smov 0   ;;  %s359_s7 = smov 0   ;;  %s390_s0 = inlined_call_operand.vmem [shape: bf16[2,4,2,4,256], index: 0, kind: input, shape index: {}]   ;;  %s391_s1 = inlined_call_operand.vmem [shape: bf16[2,4,4,128], index: 1, kind: output, shape index: {}]  }
   0x1   :  { %s361_s8 = smov 0  }
   0x2 LB: > { %s23_s9 = sadd.s32 1, %s341_s7  ;;  %p286_p0 = scmp.ge.s32.totalorder %s345_s8, 1  ;;  %s345_s8 = sphi %s361_s8, %s11_s8   ;;  %s341_s7 = sphi %s359_s7, %s393_s7   ;;  %s337_s6 = sphi %s357_s6, %s392_s6  }
   0x3   : > { %p25_p1 = scmp.ge.s32.totalorder %s23_s9, 2  ;;  %p109_p2 = scmp.lt.s32.totalorder %s345_s8, 3 }
   0x5   : > { %s395_s9 = smov (%p25_p1, %s23_s9), 0  ;;  %p110_p3 = pnand %p286_p0, %p109_p2 }
   0x6   : > { %p139_p4 = scmp.lt.s32.totalorder (!%p110_p3), %s337_s6, 1 }
   0x7   : > { %113 = sbr.rel (%p110_p3) target bundleno = 27 (0x1b), region = 24 }
   0xe   : > { %s397_s6 = smov (!%p139_p4, %s337_s6), 1 }
   0xf   : > { %s297_s10 = sshll.u32 %s397_s6, 5  ;;  %s298_s14 = sshll.u32 %s397_s6, 3 }
  0x10   : > { %s147_s13 = scalar_lea.vmem %s390_s0, %s297_s10  ;;  %s157_s17 = scalar_lea.vmem %s391_s1, %s298_s14 }
  0x11   : > { %v159_v0 = vld [vmem:[%s147_s13] sm:$0xf]  ;;  %v291_v1 = vld [vmem:[%s147_s13 + $0x4] sm:$0xf]  ;;  %v160_v2 = vld [vmem:[%s147_s13 + $0x8] sm:$0xf] }
  0x12   : > { %v168_v3 = vmax.bf16 %v291_v1, %v159_v0  ;;  %v292_v4 = vld [vmem:[%s147_s13 + $0xc] sm:$0xf]  ;;  %v161_v5 = vld [vmem:[%s147_s13 + $0x10] sm:$0xf]  ;;  %v293_v6 = vld [vmem:[%s147_s13 + $0x14] sm:$0xf] }
  0x13   : > { %v169_v7 = vmax.bf16 %v292_v4, %v160_v2  ;;  %v170_v8 = vmax.bf16 %v293_v6, %v161_v5  ;;  %v162_v9 = vld [vmem:[%s147_s13 + $0x18] sm:$0xf]  ;;  %v294_v10 = vld [vmem:[%s147_s13 + $0x1c] sm:$0xf] }
  0x14   : > { %v176_v11 = vrot.slane %v168_v3, 2  ;;  %v171_v12 = vmax.bf16 %v294_v10, %v162_v9 }
  0x15   : > { %v177_v13 = vrot.slane %v169_v7, 2  ;;  %v178_v14 = vrot.slane %v170_v8, 2 }
  0x16   : > { %v184_v15 = vmax.bf16 %v176_v11, %v168_v3  ;;  %v179_v16 = vrot.slane %v171_v12, 2 }
  0x17   : > { %v185_v17 = vmax.bf16 %v177_v13, %v169_v7  ;;  %v186_v18 = vmax.bf16 %v178_v14, %v170_v8 }
  0x18   : > { %188 = vst [vmem:[%s157_s17] sm:$0x3] %v184_v15  ;;  %v187_v19 = vmax.bf16 %v179_v16, %v171_v12 }
  0x19   : > { %189 = vst [vmem:[%s157_s17 + $0x2] sm:$0x3] %v185_v17  ;;  %190 = vst [vmem:[%s157_s17 + $0x4] sm:$0x3] %v186_v18 }
  0x1a   : > { %191 = vst [vmem:[%s157_s17 + $0x6] sm:$0x3] %v187_v19 }
  0x1b PF: > { %s11_s8 = sadd.s32 1, %s345_s8   ;;  %s392_s6 = smov %s341_s7 }
  0x1c   : > { %p8_p5 = scmp.ge.s32.totalorder %s11_s8, 4   ;;  %s393_s7 = smov %s395_s9 }
  0x1e   :  { %10 = sbr.rel (!%p8_p5) target bundleno = 2 (0x2), region = 55 }

// kernel: feature_extractor.12
= control target key start
LH: loop header
LB: loop body
LE: loop exit
PB: predicated region body
PF: predicated region fallthrough
CT: control target
= control target key end

     0   :  { %s2343_s15 = smov 0   ;;  %s2345_s16 = smov 0   ;;  %s2809_s0 = inlined_call_operand.vmem [shape: bf16[2,160,192], index: 0, kind: input, shape index: {}, may-alias: {0,1}]   ;;  %s2810_s1 = inlined_call_operand.vmem [shape: bf16[2,160,192], index: 1, kind: input, shape index: {}, may-alias: {0,1}]   ;;  %s2811_s2 = inlined_call_operand.vmem [shape: bf16[3,192,128], index: 2, kind: input, shape index: {}]   ;;  %s2812_s3 = inlined_call_operand.vmem [shape: f32[1,128], index: 3, kind: input, shape index: {}]   ;;  %s2813_s4 = inlined_call_operand.vmem [shape: bf16[2,128,128], index: 4, kind: output, shape index: {}]  }
   0x1   :  { %s2347_s17 = smov 0  }
   0x2 LB: > { %s26_s18 = sadd.s32 1, %s2311_s16  ;;  %p1857_p0 = scmp.ge.s32.totalorder %s2315_s17, 1  ;;  %s2315_s17 = sphi %s2347_s17, %s14_s17   ;;  %s2311_s16 = sphi %s2345_s16, %s2815_s16   ;;  %s2307_s15 = sphi %s2343_s15, %s2814_s15  }
   0x3   : > { %p28_p1 = scmp.ge.s32.totalorder %s26_s18, 2  ;;  %p220_p2 = scmp.lt.s32.totalorder %s2315_s17, 3 }
   0x5   : > { %s2817_s18 = smov (%p28_p1, %s26_s18), 0  ;;  %p221_p3 = pnand %p1857_p0, %p220_p2 }
   0x6   : > { %v2203_v0 = vld [vmem:[%s2811_s2] sm:$0xff] (!%p221_p3)   ;;  %v2317_v1 = vmov (!%p221_p3), 0   ;;  %p278_p4 = scmp.lt.s32.totalorder (!%p221_p3), %s2307_s15, 1  ;;  %v2205_v3 = vld [vmem:[%s2811_s2 + $0x8] sm:$0xff] (!%p221_p3)   ;;  %v2207_v5 = vld [vmem:[%s2811_s2 + $0x10] sm:$0xff] (!%p221_p3)   ;;  %vm503_vm0 = vcmask (!%p221_p3), 523264  }
   0x7   : > { %224 = sbr.rel (%p221_p3) target bundleno = 391 (0x187), region = 36  ;;  %528 = vmatprep.subr.bf16.mxu0 (!%p221_p3), %v2317_v1  ;;  %850 = vmatprep.subr.bf16.mxu1 (!%p221_p3), %v2317_v1  ;;  %v2204_v2 = vld [vmem:[%s2811_s2 + $0x60] sm:$0xff] (!%p221_p3)   ;;  %v2206_v4 = vld [vmem:[%s2811_s2 + $0x68] sm:$0xff] (!%p221_p3)   ;;  %v2208_v6 = vld [vmem:[%s2811_s2 + $0x70] sm:$0xff] (!%p221_p3)  }
   0x8   : > { %529 = vmatpush1.bf16.msra.mxu0 (!%p221_p3), %v2203_v0  ;;  %851 = vmatpush1.bf16.msra.mxu1 (!%p221_p3), %v2204_v2  ;;  %v2209_v7 = vld [vmem:[%s2811_s2 + $0x18] sm:$0xff] (!%p221_p3)   ;;  %v2211_v9 = vld [vmem:[%s2811_s2 + $0x20] sm:$0xff] (!%p221_p3)   ;;  %v2213_v11 = vld [vmem:[%s2811_s2 + $0x28] sm:$0xff] (!%p221_p3)  }
   0x9   : > { %530 = vmatprep.subr.bf16.mxu0 (!%p221_p3), %v2317_v1  ;;  %852 = vmatprep.subr.bf16.mxu1 (!%p221_p3), %v2317_v1  ;;  %v2210_v8 = vld [vmem:[%s2811_s2 + $0x78] sm:$0xff] (!%p221_p3)   ;;  %v2212_v10 = vld [vmem:[%s2811_s2 + $0x80] sm:$0xff] (!%p221_p3)   ;;  %v2214_v12 = vld [vmem:[%s2811_s2 + $0x88] sm:$0xff] (!%p221_p3)  }
   0xa   : > { %v2215_v13 = vld [vmem:[%s2811_s2 + $0x30] sm:$0xff] (!%p221_p3)   ;;  %v2217_v16 = vld [vmem:[%s2811_s2 + $0x38] sm:$0xff] (!%p221_p3)   ;;  %v2219_v19 = vld [vmem:[%s2811_s2 + $0x40] sm:$0xff] (!%p221_p3)  }
   0xb   : > { %v2216_v14 = vld [vmem:[%s2811_s2 + $0x90] sm:$0xff] (!%p221_p3)   ;;  %v2218_v18 = vld [vmem:[%s2811_s2 + $0x98] sm:$0xff] (!%p221_p3)   ;;  %v2220_v20 = vld [vmem:[%s2811_s2 + $0xa0] sm:$0xff] (!%p221_p3)  }
   0xc   : > { %531 = vmatpush1.bf16.msra.mxu0 (!%p221_p3), %v2205_v3  ;;  %853 = vmatpush1.bf16.msra.mxu1 (!%p221_p3), %v2206_v4  ;;  %v2221_v21 = vld [vmem:[%s2811_s2 + $0x48] sm:$0xff] (!%p221_p3)   ;;  %v2223_v23 = vld [vmem:[%s2811_s2 + $0x50] sm:$0xff] (!%p221_p3)   ;;  %v2225_v25 = vld [vmem:[%s2811_s2 + $0x58] sm:$0xff] (!%p221_p3)  }
   0xd   : > { %532 = vmatprep.subr.bf16.mxu0 (!%p221_p3), %v2317_v1  ;;  %854 = vmatprep.subr.bf16.mxu1 (!%p221_p3), %v2317_v1  ;;  %v2222_v22 = vld [vmem:[%s2811_s2 + $0xa8] sm:$0xff] (!%p221_p3)   ;;  %v2224_v24 = vld [vmem:[%s2811_s2 + $0xb0] sm:$0xff] (!%p221_p3)   ;;  %v2226_v26 = vld [vmem:[%s2811_s2 + $0xb8] sm:$0xff] (!%p221_p3)  }
   0xe   : > { %s2819_s15 = smov (!%p278_p4, %s2307_s15), 1  ;;  %v2233_v29 = vld [vmem:[%s2811_s2 + $0x60] sm:$0xff]   ;;  %v2234_v32 = vld [vmem:[%s2811_s2 + $0x68] sm:$0xff]   ;;  %v2239_v35 = vld [vmem:[%s2811_s2 + $0x70] sm:$0xff]  }
   0xf   : > { %s2175_s19 = smul.u32 160, %s2819_s15  ;;  %v2238_v31 = vld [vmem:[%s2811_s2 + $0xc0] sm:$0xff]   ;;  %v2240_v33 = vld [vmem:[%s2811_s2 + $0xc8] sm:$0xff]   ;;  %v2245_v37 = vld [vmem:[%s2811_s2 + $0xd0] sm:$0xff]   ;;  %s2111_s22 = sshll.u32 %s2819_s15, 6 }
  0x10   : > { %533 = vmatpush1.bf16.msra.mxu0 %v2207_v5  ;;  %855 = vmatpush1.bf16.msra.mxu1 %v2208_v6  ;;  %v2243_v38 = vld [vmem:[%s2811_s2 + $0x78] sm:$0xff]   ;;  %v2246_v41 = vld [vmem:[%s2811_s2 + $0x80] sm:$0xff]   ;;  %v2251_v44 = vld [vmem:[%s2811_s2 + $0x88] sm:$0xff]   ;;  %s2762_s25 = scalar_lea.vmem %s2813_s4, %s2111_s22 }
  0x11   : > { %534 = vmatprep.subr.bf16.mxu0 %v2317_v1  ;;  %856 = vmatprep.subr.bf16.mxu1 %v2317_v1  ;;  %s2420_s26 = scalar_lea.vmem %s2809_s0, %s2175_s19  ;;  %s2110_s11 = sadd.s32 128, %s2175_s19  ;;  %v2250_v39 = vld [vmem:[%s2811_s2 + $0xd8] sm:$0xff]   ;;  %v2253_v43 = vld [vmem:[%s2811_s2 + $0xe0] sm:$0xff]   ;;  %v2258_v45 = vld [vmem:[%s2811_s2 + $0xe8] sm:$0xff]  }
  0x12   : > { %v2229_v15 = vld [vmem:[%s2420_s26 + $0x4] ss:$8 sps:$4 sm:$0xff]   ;;  %v2232_v17 = vld [vmem:[%s2420_s26 + $0x14] ss:$8 sps:$4 sm:$0xff]   ;;  %v2227_v27 = vld [vmem:[%s2420_s26] ss:$8 sps:$4 sm:$0xff]   ;;  %s2509_s21 = scalar_lea.vmem %s2810_s1, %s2110_s11 }
  0x13   : > { %1890 = vmatprep.mubr.msk.bf16.mxu0 %vm503_vm0, %v2229_v15  ;;  %1948 = vmatprep.mubr.msk.bf16.mxu1 %vm503_vm0, %v2232_v17  ;;  %v2230_v28 = vld [vmem:[%s2420_s26 + $0x10] ss:$8 sps:$4 sm:$0xff]   ;;  %v2477_v30 = vld [vmem:[%s2420_s26 + $0x24] ss:$8 sps:$4 sm:$0xff]   ;;  %v2497_v34 = vld [vmem:[%s2420_s26 + $0x20] ss:$8 sps:$4 sm:$0xff]  }
  0x14   : > { %535 = vmatpush1.bf16.msra.mxu0 %v2209_v7  ;;  %857 = vmatpush1.bf16.msra.mxu1 %v2210_v8  ;;  %v2504_v36 = vld [vmem:[%s2420_s26 + $0x34] ss:$8 sps:$4 sm:$0xff]   ;;  %v2529_v40 = vld [vmem:[%s2420_s26 + $0x30] ss:$8 sps:$4 sm:$0xff]   ;;  %v2536_v42 = vld [vmem:[%s2420_s26 + $0x44] ss:$8 sps:$4 sm:$0xff]  }
  0x15   : > { %536 = vmatprep.subr.bf16.mxu0 %v2317_v1  ;;  %858 = vmatprep.subr.bf16.mxu1 %v2317_v1  ;;  %v2557_v46 = vld [vmem:[%s2420_s26 + $0x40] ss:$8 sps:$4 sm:$0xff]   ;;  %v2252_v47 = vld [vmem:[%s2811_s2 + $0x90] sm:$0xff]   ;;  %v2257_v50 = vld [vmem:[%s2811_s2 + $0x98] sm:$0xff]  }
  0x16   : > { %v2564_v48 = vld [vmem:[%s2420_s26 + $0x54] ss:$8 sps:$4 sm:$0xff]   ;;  %v2586_v52 = vld [vmem:[%s2420_s26 + $0x50] ss:$8 sps:$4 sm:$0xff]   ;;  %v2589_v53 = vld [vmem:[%s2420_s26 + $0x64] ss:$8 sps:$4 sm:$0xff]  }
  0x17   : > { %v2263_v49 = vld [vmem:[%s2811_s2 + $0xf0] sm:$0xff]   ;;  %v2265_v51 = vld [vmem:[%s2811_s2 + $0xf8] sm:$0xff]   ;;  %v2261_v54 = vld [vmem:[%s2811_s2 + $0xa0] sm:$0xff]  }
  0x18   : > { %537 = vmatpush1.bf16.msra.mxu0 %v2211_v9  ;;  %859 = vmatpush1.bf16.msra.mxu1 %v2212_v10  ;;  %v2270_v55 = vld [vmem:[%s2811_s2 + $0x100] sm:$0xff]   ;;  %v2264_v56 = vld [vmem:[%s2811_s2 + $0xa8] sm:$0xff]   ;;  %v2617_v59 = vld [vmem:[%s2420_s26 + $0x74] ss:$8 sps:$4 sm:$0xff]  }
  0x19   : > { %538 = vmatprep.subr.bf16.mxu0 %v2317_v1  ;;  %860 = vmatprep.subr.bf16.mxu1 %v2317_v1  ;;  %v2272_v57 = vld [vmem:[%s2811_s2 + $0x108] sm:$0xff]   ;;  %v2269_v60 = vld [vmem:[%s2811_s2 + $0xb0] sm:$0xff]   ;;  %v2271_v62 = vld [vmem:[%s2811_s2 + $0xb8] sm:$0xff]  }
  0x1a   : > { %v2614_v58 = vld [vmem:[%s2420_s26 + $0x60] ss:$8 sps:$4 sm:$0xff]   ;;  %v2277_v61 = vld [vmem:[%s2811_s2 + $0x110] sm:$0xff]   ;;  %v2279_v63 = vld [vmem:[%s2811_s2 + $0x118] sm:$0xff]  }
  0x1b   : > { %v2268_v0 = vld [vmem:[%s2420_s26 + $0x70] ss:$8 sps:$4 sm:$0xff]   ;;  %v2275_v2 = vld [vmem:[%s2509_s21 + $0x4] ss:$8 sps:$4 sm:$0xff]   ;;  %v2273_v3 = vld [vmem:[%s2509_s21] ss:$8 sps:$4 sm:$0xff]  }
  0x1c   : > { %539 = vmatpush1.bf16.msra.mxu0 %v2213_v11  ;;  %861 = vmatpush1.bf16.msra.mxu1 %v2214_v12  ;;  %v2276_v4 = vld [vmem:[%s2811_s2 + $0xc0] sm:$0xff]   ;;  %v2278_v5 = vld [vmem:[%s2811_s2 + $0xc8] sm:$0xff]   ;;  %v2280_v6 = vld [vmem:[%s2811_s2 + $0xd0] sm:$0xff]  }
  0x1d   : > { %540 = vmatprep.subr.bf16.mxu0 %v2317_v1  ;;  %862 = vmatprep.subr.bf16.mxu1 %v2317_v1  ;;  %v2281_v7 = vld [vmem:[%s2811_s2 + $0xd8] sm:$0xff]   ;;  %v2282_v8 = vld [vmem:[%s2811_s2 + $0xe0] sm:$0xff]   ;;  %v2283_v9 = vld [vmem:[%s2811_s2 + $0xe8] sm:$0xff]  }
  0x1e   : > { %v2284_v10 = vld [vmem:[%s2811_s2 + $0xf0] sm:$0xff]   ;;  %v2285_v11 = vld [vmem:[%s2811_s2 + $0xf8] sm:$0xff]   ;;  %v2286_v12 = vld [vmem:[%s2811_s2 + $0x100] sm:$0xff]  }
  0x1f   : > { %v2289_v15 = vld [vmem:[%s2811_s2 + $0x118] sm:$0xff]  }
  0x20   : > { %541 = vmatpush1.bf16.msra.mxu0 %v2215_v13  ;;  %863 = vmatpush1.bf16.msra.mxu1 %v2216_v14  ;;  %v2287_v13 = vld [vmem:[%s2811_s2 + $0x108] sm:$0xff]   ;;  %v2288_v14 = vld [vmem:[%s2811_s2 + $0x110] sm:$0xff]  }
  0x21   : > { %542 = vmatprep.subr.bf16.mxu0 %v2317_v1  ;;  %864 = vmatprep.subr.bf16.mxu1 %v2317_v1 }
  0x24   : > { %543 = vmatpush1.bf16.msra.mxu0 %v2217_v16  ;;  %865 = vmatpush1.bf16.msra.mxu1 %v2218_v18  ;;  %v2290_v16 = vld [vmem:[%s2509_s21 + $0x14] ss:$8 sps:$4 sm:$0xff]  }
  0x25   : > { %544 = vmatprep.subr.bf16.mxu0 %v2317_v1  ;;  %866 = vmatprep.subr.bf16.mxu1 %v2317_v1 }
  0x28   : > { %545 = vmatpush1.bf16.msra.mxu0 %v2219_v19  ;;  %867 = vmatpush1.bf16.msra.mxu1 %v2220_v20 }
  0x29   : > { %546 = vmatprep.subr.bf16.mxu0 %v2317_v1  ;;  %868 = vmatprep.subr.bf16.mxu1 %v2317_v1 }
  0x2c   : > { %547 = vmatpush1.bf16.msra.mxu0 %v2221_v21  ;;  %869 = vmatpush1.bf16.msra.mxu1 %v2222_v22 }
  0x2d   : > { %548 = vmatprep.subr.bf16.mxu0 %v2317_v1  ;;  %870 = vmatprep.subr.bf16.mxu1 %v2317_v1 }
  0x30   : > { %549 = vmatpush1.bf16.msra.mxu0 %v2223_v23  ;;  %871 = vmatpush1.bf16.msra.mxu1 %v2224_v24 }
  0x31   : > { %550 = vmatprep.subr.bf16.mxu0 %v2317_v1  ;;  %872 = vmatprep.subr.bf16.mxu1 %v2317_v1 }
  0x34   : > { %551 = vmatpush1.bf16.msra.mxu0 %v2225_v25  ;;  %873 = vmatpush1.bf16.msra.mxu1 %v2226_v26 }
  0x35   : > { %1317 = vmatprep.subr.bf16.mxu0 %v2317_v1  ;;  %1079 = vmatprep.subr.bf16.mxu1 %v2317_v1 }
  0x37   : > { %561 = vmatmul.mubr.bf16.vlgmr.msra.gmra.mrb[0].mxu0 %v2227_v27  ;;  %883 = vmatmul.mubr.bf16.vlgmr.msra.gmra.mrb[0].mxu1 %v2230_v28 }
  0x38   : > { %1891 = vmatprep.mubr.msk.bf16.mxu0 %vm503_vm0, %v2232_v17  ;;  %1080 = vmatpush1.bf16.msra.mxu1 %v2233_v29  ;;  %v2292_v17 = vld [vmem:[%s2509_s21 + $0x10] ss:$8 sps:$4 sm:$0xff]  }
  0x39   : > { %1949 = vmatprep.mubr.msk.bf16.mxu1 %vm503_vm0, %v2477_v30  ;;  %1081 = vmatprep.subr.bf16.mxu1 %v2317_v1 }
  0x3a   : > { %1318 = vmatpush1.bf16.msra.mxu0 %v2238_v31 }
  0x3b   : > { %1319 = vmatprep.subr.bf16.mxu0 %v2317_v1 }
  0x3c   : > { %1082 = vmatpush1.bf16.msra.mxu1 %v2234_v32 }
  0x3d   : > { %1083 = vmatprep.subr.bf16.mxu1 %v2317_v1 }
  0x3e   : > { %1320 = vmatpush1.bf16.msra.mxu0 %v2240_v33 }
  0x3f   : > { %569 = vmatmul.mubr.bf16.gmra.mrb[4].mxu0 %v2230_v28  ;;  %1321 = vmatprep.subr.bf16.mxu0 %v2317_v1 }
  0x40   : > { %891 = vmatmul.mubr.bf16.gmra.mrb[4].mxu1 %v2497_v34  ;;  %1892 = vmatprep.mubr.msk.bf16.mxu0 %vm503_vm0, %v2477_v30 }
  0x41   : > { %1084 = vmatpush1.bf16.msra.mxu1 %v2239_v35  ;;  %1950 = vmatprep.mubr.msk.bf16.mxu1 %vm503_vm0, %v2504_v36 }
  0x42   : > { %1085 = vmatprep.subr.bf16.mxu1 %v2317_v1  ;;  %1322 = vmatpush1.bf16.msra.mxu0 %v2245_v37 }
  0x43   : > { %1323 = vmatprep.subr.bf16.mxu0 %v2317_v1 }
  0x45   : > { %1086 = vmatpush1.bf16.msra.mxu1 %v2243_v38 }
  0x46   : > { %1087 = vmatprep.subr.bf16.mxu1 %v2317_v1  ;;  %1324 = vmatpush1.bf16.msra.mxu0 %v2250_v39 }
  0x47   : > { %577 = vmatmul.mubr.bf16.gmra.mrb[8].mxu0 %v2497_v34  ;;  %1325 = vmatprep.subr.bf16.mxu0 %v2317_v1 }
  0x48   : > { %899 = vmatmul.mubr.bf16.gmra.mrb[8].mxu1 %v2529_v40  ;;  %1893 = vmatprep.mubr.msk.bf16.mxu0 %vm503_vm0, %v2504_v36 }
  0x49   : > { %1088 = vmatpush1.bf16.msra.mxu1 %v2246_v41  ;;  %1951 = vmatprep.mubr.msk.bf16.mxu1 %vm503_vm0, %v2536_v42 }
  0x4a   : > { %1089 = vmatprep.subr.bf16.mxu1 %v2317_v1  ;;  %1326 = vmatpush1.bf16.msra.mxu0 %v2253_v43 }
  0x4b   : > { %1327 = vmatprep.subr.bf16.mxu0 %v2317_v1 }
  0x4d   : > { %1090 = vmatpush1.bf16.msra.mxu1 %v2251_v44 }
  0x4e   : > { %1091 = vmatprep.subr.bf16.mxu1 %v2317_v1  ;;  %1328 = vmatpush1.bf16.msra.mxu0 %v2258_v45 }
  0x4f   : > { %585 = vmatmul.mubr.bf16.gmra.mrb[12].mxu0 %v2529_v40  ;;  %1329 = vmatprep.subr.bf16.mxu0 %v2317_v1 }
  0x50   : > { %907 = vmatmul.mubr.bf16.gmra.mrb[12].mxu1 %v2557_v46  ;;  %1894 = vmatprep.mubr.msk.bf16.mxu0 %vm503_vm0, %v2536_v42 }
  0x51   : > { %1092 = vmatpush1.bf16.msra.mxu1 %v2252_v47  ;;  %1952 = vmatprep.mubr.msk.bf16.mxu1 %vm503_vm0, %v2564_v48 }
  0x52   : > { %1093 = vmatprep.subr.bf16.mxu1 %v2317_v1  ;;  %1330 = vmatpush1.bf16.msra.mxu0 %v2263_v49 }
  0x53   : > { %1331 = vmatprep.subr.bf16.mxu0 %v2317_v1 }
  0x55   : > { %1094 = vmatpush1.bf16.msra.mxu1 %v2257_v50 }
  0x56   : > { %1095 = vmatprep.subr.bf16.mxu1 %v2317_v1  ;;  %1332 = vmatpush1.bf16.msra.mxu0 %v2265_v51 }
  0x57   : > { %593 = vmatmul.mubr.bf16.gmra.mrb[16].mxu0 %v2557_v46  ;;  %1333 = vmatprep.subr.bf16.mxu0 %v2317_v1 }
  0x58   : > { %915 = vmatmul.mubr.bf16.gmra.mrb[16].mxu1 %v2586_v52  ;;  %1895 = vmatprep.mubr.msk.bf16.mxu0 %vm503_vm0, %v2564_v48 }
  0x59   : > { %1953 = vmatprep.mubr.msk.bf16.mxu1 %vm503_vm0, %v2589_v53  ;;  %1096 = vmatpush1.bf16.msra.mxu1 %v2261_v54 }
  0x5a   : > { %1097 = vmatprep.subr.bf16.mxu1 %v2317_v1  ;;  %1334 = vmatpush1.bf16.msra.mxu0 %v2270_v55 }
  0x5b   : > { %1335 = vmatprep.subr.bf16.mxu0 %v2317_v1 }
  0x5d   : > { %1098 = vmatpush1.bf16.msra.mxu1 %v2264_v56 }
  0x5e   : > { %1099 = vmatprep.subr.bf16.mxu1 %v2317_v1  ;;  %1336 = vmatpush1.bf16.msra.mxu0 %v2272_v57 }
  0x5f   : > { %601 = vmatmul.mubr.bf16.gmra.mrb[20].mxu0 %v2586_v52  ;;  %1337 = vmatprep.subr.bf16.mxu0 %v2317_v1 }
  0x60   : > { %923 = vmatmul.mubr.bf16.gmra.mrb[20].mxu1 %v2614_v58  ;;  %1896 = vmatprep.mubr.msk.bf16.mxu0 %vm503_vm0, %v2589_v53 }
  0x61   : > { %1954 = vmatprep.mubr.msk.bf16.mxu1 %vm503_vm0, %v2617_v59  ;;  %1100 = vmatpush1.bf16.msra.mxu1 %v2269_v60 }
  0x62   : > { %1101 = vmatprep.subr.bf16.mxu1 %v2317_v1  ;;  %1338 = vmatpush1.bf16.msra.mxu0 %v2277_v61 }
  0x63   : > { %1339 = vmatprep.subr.bf16.mxu0 %v2317_v1 }
  0x65   : > { %1102 = vmatpush1.bf16.msra.mxu1 %v2271_v62 }
  0x66   : > { %1550 = vmatprep.subr.bf16.mxu1 %v2317_v1  ;;  %1340 = vmatpush1.bf16.msra.mxu0 %v2279_v63 }
  0x67   : > { %609 = vmatmul.mubr.bf16.gmra.mrb[24].mxu0 %v2614_v58 }
  0x68   : > { %931 = vmatmul.mubr.bf16.gmra.mrb[24].mxu1 %v2268_v0  ;;  %1897 = vmatprep.mubr.msk.bf16.mxu0 %vm503_vm0, %v2617_v59 }
  0x69   : > { %1993 = vmatprep.mubr.msk.bf16.mxu1 %vm503_vm0, %v2275_v2 }
  0x6f   : > { %617 = vmatmul.mubr.bf16.gmra.mrb[28].mxu0 %v2268_v0 }
  0x70   : > { %1112 = vmatmul.mubr.bf16.vlgmr.msra.gmra.mrb[28].mxu1 %v2273_v3  ;;  %2042 = vmatprep.mubr.msk.bf16.mxu0 %vm503_vm0, %v2477_v30 }
  0x71   : > { %1551 = vmatpush1.bf16.msra.mxu1 %v2276_v4  ;;  %2088 = vmatprep.mubr.msk.bf16.mxu1 %vm503_vm0, %v2275_v2 }
  0x72   : > { %1552 = vmatprep.subr.bf16.mxu1 %v2317_v1 }
  0x75   : > { %1553 = vmatpush1.bf16.msra.mxu1 %v2278_v5 }
  0x76   : > { %1554 = vmatprep.subr.bf16.mxu1 %v2317_v1 }
  0x77   : > { %1350 = vmatmul.mubr.bf16.vlgmr.msra.gmra.mrb[32].mxu0 %v2497_v34 }
  0x78   : > { %2043 = vmatprep.mubr.msk.bf16.mxu0 %vm503_vm0, %v2504_v36 }
  0x79   : > { %1555 = vmatpush1.bf16.msra.mxu1 %v2280_v6 }
  0x7a   : > { %1556 = vmatprep.subr.bf16.mxu1 %v2317_v1 }
  0x7d   : > { %1557 = vmatpush1.bf16.msra.mxu1 %v2281_v7 }
  0x7e   : > { %1558 = vmatprep.subr.bf16.mxu1 %v2317_v1 }
  0x7f   : > { %1358 = vmatmul.mubr.bf16.gmra.mrb[36].mxu0 %v2529_v40 }
  0x80   : > { %2044 = vmatprep.mubr.msk.bf16.mxu0 %vm503_vm0, %v2536_v42 }
  0x81   : > { %1559 = vmatpush1.bf16.msra.mxu1 %v2282_v8 }
  0x82   : > { %1560 = vmatprep.subr.bf16.mxu1 %v2317_v1 }
  0x85   : > { %1561 = vmatpush1.bf16.msra.mxu1 %v2283_v9 }
  0x86   : > { %1562 = vmatprep.subr.bf16.mxu1 %v2317_v1 }
  0x87   : > { %1366 = vmatmul.mubr.bf16.gmra.mrb[40].mxu0 %v2557_v46 }
  0x88   : > { %2045 = vmatprep.mubr.msk.bf16.mxu0 %vm503_vm0, %v2564_v48 }
  0x89   : > { %1563 = vmatpush1.bf16.msra.mxu1 %v2284_v10 }
  0x8a   : > { %1564 = vmatprep.subr.bf16.mxu1 %v2317_v1 }
  0x8d   : > { %1565 = vmatpush1.bf16.msra.mxu1 %v2285_v11 }
  0x8e   : > { %1566 = vmatprep.subr.bf16.mxu1 %v2317_v1 }
  0x8f   : > { %1374 = vmatmul.mubr.bf16.gmra.mrb[44].mxu0 %v2586_v52 }
  0x90   : > { %2046 = vmatprep.mubr.msk.bf16.mxu0 %vm503_vm0, %v2589_v53 }
  0x91   : > { %1567 = vmatpush1.bf16.msra.mxu1 %v2286_v12 }
  0x92   : > { %1568 = vmatprep.subr.bf16.mxu1 %v2317_v1 }
  0x95   : > { %1569 = vmatpush1.bf16.msra.mxu1 %v2287_v13 }
  0x96   : > { %1570 = vmatprep.subr.bf16.mxu1 %v2317_v1 }
  0x97   : > { %1382 = vmatmul.mubr.bf16.gmra.mrb[48].mxu0 %v2614_v58 }
  0x98   : > { %2047 = vmatprep.mubr.msk.bf16.mxu0 %vm503_vm0, %v2617_v59 }
  0x99   : > { %1571 = vmatpush1.bf16.msra.mxu1 %v2288_v14 }
  0x9a   : > { %1572 = vmatprep.subr.bf16.mxu1 %v2317_v1 }
  0x9d   : > { %1573 = vmatpush1.bf16.msra.mxu1 %v2289_v15 }
  0x9f   : > { %1390 = vmatmul.mubr.bf16.gmra.mrb[52].mxu0 %v2268_v0 }
  0xa0   : > { %1583 = vmatmul.mubr.bf16.vlgmr.msra.gmra.mrb[32].mxu1 %v2273_v3 }
  0xa1   : > { %2089 = vmatprep.mubr.msk.bf16.mxu1 %vm503_vm0, %v2290_v16 }
  0xa8   : > { %1591 = vmatmul.mubr.bf16.gmra.mrb[36].mxu1 %v2292_v17 }
 0x10a   : > { %v562_v18 = vpop.f32.mrb[0].mxu0  ;;  %v884_v19 = vpop.f32.mrb[0].mxu1 }
 0x10b   : > { %v564_v20 = vpop.f32.mrb[1].mxu0  ;;  %v2717_v21 = vadd.f32 %v884_v19, %v562_v18  ;;  %v886_v22 = vpop.f32.mrb[1].mxu1 }
 0x10c   : > { %v565_v23 = vpop.f32.mrb[2].mxu0  ;;  %v887_v24 = vpop.f32.mrb[2].mxu1 }
 0x10d   : > { %v567_v25 = vpop.f32.mrb[3].mxu0  ;;  %v2719_v26 = vadd.f32 %v887_v24, %v565_v23  ;;  %v889_v1 = vpop.f32.mrb[3].mxu1 }
 0x112   : > { %v570_v27 = vpop.f32.mrb[4].mxu0 }
 0x113   : > { %v892_v28 = vpop.f32.mrb[4].mxu1  ;;  %v572_v29 = vpop.f32.mrb[5].mxu0 }
 0x114   : > { %v2721_v30 = vadd.f32 %v892_v28, %v570_v27  ;;  %v894_v31 = vpop.f32.mrb[5].mxu1  ;;  %v573_v32 = vpop.f32.mrb[6].mxu0 }
 0x115   : > { %v895_v33 = vpop.f32.mrb[6].mxu1  ;;  %v575_v34 = vpop.f32.mrb[7].mxu0 }
 0x116   : > { %v2723_v35 = vadd.f32 %v895_v33, %v573_v32  ;;  %v897_v36 = vpop.f32.mrb[7].mxu1 }
 0x11a   : > { %v578_v37 = vpop.f32.mrb[8].mxu0 }
 0x11b   : > { %v900_v38 = vpop.f32.mrb[8].mxu1  ;;  %v580_v39 = vpop.f32.mrb[9].mxu0 }
 0x11c   : > { %v2725_v40 = vadd.f32 %v900_v38, %v578_v37  ;;  %v902_v41 = vpop.f32.mrb[9].mxu1  ;;  %v581_v42 = vpop.f32.mrb[10].mxu0  ;;  %v2752_v38 = vld [vmem:[%s2812_s3] ss:$0 sm:$0xff] }
 0x11d   : > { %v903_v43 = vpop.f32.mrb[10].mxu1  ;;  %v583_v44 = vpop.f32.mrb[11].mxu0 }
 0x11e   : > { %v2727_v45 = vadd.f32 %v903_v43, %v581_v42  ;;  %v905_v46 = vpop.f32.mrb[11].mxu1 }
 0x122   : > { %v586_v47 = vpop.f32.mrb[12].mxu0 }
 0x123   : > { %v908_v48 = vpop.f32.mrb[12].mxu1  ;;  %v588_v49 = vpop.f32.mrb[13].mxu0 }
 0x124   : > { %v2729_v50 = vadd.f32 %v908_v48, %v586_v47  ;;  %v910_v51 = vpop.f32.mrb[13].mxu1  ;;  %v589_v52 = vpop.f32.mrb[14].mxu0 }
 0x125   : > { %v911_v53 = vpop.f32.mrb[14].mxu1  ;;  %v591_v54 = vpop.f32.mrb[15].mxu0 }
 0x126   : > { %v2731_v55 = vadd.f32 %v911_v53, %v589_v52  ;;  %v913_v56 = vpop.f32.mrb[15].mxu1 }
 0x12a   : > { %v594_v57 = vpop.f32.mrb[16].mxu0 }
 0x12b   : > { %v916_v58 = vpop.f32.mrb[16].mxu1  ;;  %v596_v59 = vpop.f32.mrb[17].mxu0 }
 0x12c   : > { %v2733_v60 = vadd.f32 %v916_v58, %v594_v57  ;;  %v918_v61 = vpop.f32.mrb[17].mxu1  ;;  %v597_v62 = vpop.f32.mrb[18].mxu0 }
 0x12d   : > { %v919_v63 = vpop.f32.mrb[18].mxu1  ;;  %v599_v0 = vpop.f32.mrb[19].mxu0 }
 0x12e   : > { %v2735_v2 = vadd.f32 %v919_v63, %v597_v62  ;;  %v921_v3 = vpop.f32.mrb[19].mxu1 }
 0x132   : > { %v602_v4 = vpop.f32.mrb[20].mxu0 }
 0x133   : > { %v924_v5 = vpop.f32.mrb[20].mxu1  ;;  %v604_v6 = vpop.f32.mrb[21].mxu0 }
 0x134   : > { %v2737_v7 = vadd.f32 %v924_v5, %v602_v4  ;;  %v926_v8 = vpop.f32.mrb[21].mxu1  ;;  %v605_v9 = vpop.f32.mrb[22].mxu0 }
 0x135   : > { %v927_v10 = vpop.f32.mrb[22].mxu1  ;;  %v607_v11 = vpop.f32.mrb[23].mxu0 }
 0x136   : > { %v2739_v12 = vadd.f32 %v927_v10, %v605_v9  ;;  %v929_v13 = vpop.f32.mrb[23].mxu1 }
 0x13a   : > { %v610_v14 = vpop.f32.mrb[24].mxu0 }
 0x13b   : > { %v932_v15 = vpop.f32.mrb[24].mxu1  ;;  %v612_v16 = vpop.f32.mrb[25].mxu0 }
 0x13c   : > { %v2741_v17 = vadd.f32 %v932_v15, %v610_v14  ;;  %v934_v18 = vpop.f32.mrb[25].mxu1  ;;  %v613_v19 = vpop.f32.mrb[26].mxu0 }
 0x13d   : > { %v935_v20 = vpop.f32.mrb[26].mxu1  ;;  %v615_v22 = vpop.f32.mrb[27].mxu0 }
 0x13e   : > { %v2743_v23 = vadd.f32 %v935_v20, %v613_v19  ;;  %v937_v24 = vpop.f32.mrb[27].mxu1 }
 0x142   : > { %v618_v25 = vpop.f32.mrb[28].mxu0 }
 0x143   : > { %v1113_v1 = vpop.f32.mrb[28].mxu1  ;;  %v620_v27 = vpop.f32.mrb[29].mxu0 }
 0x144   : > { %v2745_v28 = vadd.f32 %v1113_v1, %v618_v25  ;;  %v1115_v29 = vpop.f32.mrb[29].mxu1  ;;  %v621_v31 = vpop.f32.mrb[30].mxu0 }
 0x145   : > { %v1116_v32 = vpop.f32.mrb[30].mxu1  ;;  %v623_v33 = vpop.f32.mrb[31].mxu0 }
 0x146   : > { %v2747_v34 = vadd.f32 %v1116_v32, %v621_v31  ;;  %v1118_v36 = vpop.f32.mrb[31].mxu1 }
 0x14a   : > { %v1351_v37 = vpop.f32.mrb[32].mxu0 }
 0x14b   : > { %v1398_v39 = vadd.f32 %v1351_v37, %v2717_v21  ;;  %v1353_v41 = vpop.f32.mrb[33].mxu0 }
 0x14c   : > { %v1354_v42 = vpop.f32.mrb[34].mxu0 }
 0x14d   : > { %v1630_v43 = vadd.f32 %v2752_v38, %v1398_v39  ;;  %v1399_v44 = vadd.f32 %v1354_v42, %v2719_v26  ;;  %v1356_v46 = vpop.f32.mrb[35].mxu0 }
 0x14f   : > { %v1631_v47 = vadd.f32 %v2752_v38, %v1399_v44  ;;  %v1646_v48 = vmax.f32 %v1630_v43, 0.0 }
 0x151   : > { %v1647_v49 = vmax.f32 %v1631_v47, 0.0 }
 0x152   : > { %v1359_v51 = vpop.f32.mrb[36].mxu0 }
 0x153   : > { %v2131_v21 = vpack.c.bf16 %v1647_v49, %v1646_v48  ;;  %v1400_v52 = vadd.f32 %v1359_v51, %v2721_v30  ;;  %v1361_v53 = vpop.f32.mrb[37].mxu0 }
 0x154   : > { %v1362_v54 = vpop.f32.mrb[38].mxu0 }
 0x155   : > { %2132 = vst [vmem:[%s2762_s25] sm:$0xff] %v2131_v21   ;;  %v1632_v26 = vadd.f32 %v2752_v38, %v1400_v52  ;;  %v1401_v56 = vadd.f32 %v1362_v54, %v2723_v35  ;;  %v1364_v57 = vpop.f32.mrb[39].mxu0 }
 0x157   : > { %v1633_v58 = vadd.f32 %v2752_v38, %v1401_v56  ;;  %v1648_v59 = vmax.f32 %v1632_v26, 0.0 }
 0x159   : > { %v1649_v61 = vmax.f32 %v1633_v58, 0.0 }
 0x15a   : > { %v1367_v62 = vpop.f32.mrb[40].mxu0 }
 0x15b   : > { %v2136_v63 = vpack.c.bf16 %v1649_v61, %v1648_v59  ;;  %v1402_v0 = vadd.f32 %v1367_v62, %v2725_v40  ;;  %v1369_v3 = vpop.f32.mrb[41].mxu0 }
 0x15c   : > { %v1370_v4 = vpop.f32.mrb[42].mxu0 }
 0x15d   : > { %2168 = vst [vmem:[%s2762_s25 + $0x8] sm:$0xff] %v2136_v63   ;;  %v1634_v30 = vadd.f32 %v2752_v38, %v1402_v0  ;;  %v1403_v5 = vadd.f32 %v1370_v4, %v2727_v45  ;;  %v1372_v6 = vpop.f32.mrb[43].mxu0 }
 0x15f   : > { %v1635_v35 = vadd.f32 %v2752_v38, %v1403_v5  ;;  %v1650_v8 = vmax.f32 %v1634_v30, 0.0 }
 0x161   : > { %v1651_v9 = vmax.f32 %v1635_v35, 0.0 }
 0x162   : > { %v1375_v10 = vpop.f32.mrb[44].mxu0 }
 0x163   : > { %v2141_v11 = vpack.c.bf16 %v1651_v9, %v1650_v8  ;;  %v1404_v13 = vadd.f32 %v1375_v10, %v2729_v50  ;;  %v1377_v14 = vpop.f32.mrb[45].mxu0 }
 0x164   : > { %v1378_v15 = vpop.f32.mrb[46].mxu0 }
 0x165   : > { %2169 = vst [vmem:[%s2762_s25 + $0x10] sm:$0xff] %v2141_v11   ;;  %v1636_v40 = vadd.f32 %v2752_v38, %v1404_v13  ;;  %v1405_v16 = vadd.f32 %v1378_v15, %v2731_v55  ;;  %v1380_v18 = vpop.f32.mrb[47].mxu0 }
 0x167   : > { %v1637_v45 = vadd.f32 %v2752_v38, %v1405_v16  ;;  %v1652_v19 = vmax.f32 %v1636_v40, 0.0 }
 0x169   : > { %v1653_v20 = vmax.f32 %v1637_v45, 0.0 }
 0x16a   : > { %v1383_v22 = vpop.f32.mrb[48].mxu0 }
 0x16b   : > { %v2146_v24 = vpack.c.bf16 %v1653_v20, %v1652_v19  ;;  %v1406_v25 = vadd.f32 %v1383_v22, %v2733_v60  ;;  %v1385_v1 = vpop.f32.mrb[49].mxu0 }
 0x16c   : > { %v1386_v27 = vpop.f32.mrb[50].mxu0 }
 0x16d   : > { %2170 = vst [vmem:[%s2762_s25 + $0x18] sm:$0xff] %v2146_v24   ;;  %v1638_v50 = vadd.f32 %v2752_v38, %v1406_v25  ;;  %v1407_v29 = vadd.f32 %v1386_v27, %v2735_v2  ;;  %v1388_v31 = vpop.f32.mrb[51].mxu0 }
 0x16f   : > { %v1639_v55 = vadd.f32 %v2752_v38, %v1407_v29  ;;  %v1654_v32 = vmax.f32 %v1638_v50, 0.0 }
 0x171   : > { %v1655_v33 = vmax.f32 %v1639_v55, 0.0 }
 0x172   : > { %v1391_v36 = vpop.f32.mrb[52].mxu0 }
 0x173   : > { %v2151_v37 = vpack.c.bf16 %v1655_v33, %v1654_v32  ;;  %v1584_v39 = vpop.f32.mrb[32].mxu1  ;;  %v1408_v41 = vadd.f32 %v1391_v36, %v2737_v7  ;;  %v1393_v42 = vpop.f32.mrb[53].mxu0 }
 0x174   : > { %v1599_v60 = vadd.f32 %v1584_v39, %v2741_v17  ;;  %v1586_v43 = vpop.f32.mrb[33].mxu1  ;;  %v1394_v44 = vpop.f32.mrb[54].mxu0 }
 0x175   : > { %2171 = vst [vmem:[%s2762_s25 + $0x20] sm:$0xff] %v2151_v37   ;;  %v1640_v46 = vadd.f32 %v2752_v38, %v1408_v41  ;;  %v1587_v47 = vpop.f32.mrb[34].mxu1  ;;  %v1409_v2 = vadd.f32 %v1394_v44, %v2739_v12  ;;  %v1396_v48 = vpop.f32.mrb[55].mxu0 }
 0x176   : > { %v1642_v49 = vadd.f32 %v2752_v38, %v1599_v60  ;;  %v1600_v51 = vadd.f32 %v1587_v47, %v2743_v23  ;;  %v1589_v21 = vpop.f32.mrb[35].mxu1 }
 0x177   : > { %v1641_v7 = vadd.f32 %v2752_v38, %v1409_v2  ;;  %v1656_v52 = vmax.f32 %v1640_v46, 0.0 }
 0x178   : > { %v1643_v17 = vadd.f32 %v2752_v38, %v1600_v51  ;;  %v1658_v54 = vmax.f32 %v1642_v49, 0.0 }
 0x179   : > { %v1657_v53 = vmax.f32 %v1641_v7, 0.0 }
 0x17a   : > { %v1659_v26 = vmax.f32 %v1643_v17, 0.0 }
 0x17b   : > { %v2156_v56 = vpack.c.bf16 %v1657_v53, %v1656_v52  ;;  %v1592_v57 = vpop.f32.mrb[36].mxu1 }
 0x17c   : > { %v2161_v12 = vpack.c.bf16 %v1659_v26, %v1658_v54  ;;  %v1601_v58 = vadd.f32 %v1592_v57, %v2745_v28  ;;  %v1594_v59 = vpop.f32.mrb[37].mxu1 }
 0x17d   : > { %2172 = vst [vmem:[%s2762_s25 + $0x28] sm:$0xff] %v2156_v56   ;;  %v1595_v61 = vpop.f32.mrb[38].mxu1 }
 0x17e   : > { %2173 = vst [vmem:[%s2762_s25 + $0x30] sm:$0xff] %v2161_v12   ;;  %v1644_v23 = vadd.f32 %v2752_v38, %v1601_v58  ;;  %v1602_v62 = vadd.f32 %v1595_v61, %v2747_v34  ;;  %v1597_v63 = vpop.f32.mrb[39].mxu1 }
 0x180   : > { %v1645_v0 = vadd.f32 %v2752_v38, %v1602_v62  ;;  %v1660_v3 = vmax.f32 %v1644_v23, 0.0 }
 0x182   : > { %v1661_v4 = vmax.f32 %v1645_v0, 0.0 }
 0x184   : > { %v2166_v30 = vpack.c.bf16 %v1661_v4, %v1660_v3 }
 0x186   : > { %2174 = vst [vmem:[%s2762_s25 + $0x38] sm:$0xff] %v2166_v30  }
 0x187 PF: > { %s14_s17 = sadd.s32 1, %s2315_s17   ;;  %s2814_s15 = smov %s2311_s16 }
 0x188   : > { %p11_p5 = scmp.ge.s32.totalorder %s14_s17, 4   ;;  %s2815_s16 = smov %s2817_s18 }
 0x18a   :  { %13 = sbr.rel (!%p11_p5) target bundleno = 2 (0x2), region = 71 }

// kernel: feature_extractor.13
= control target key start
LH: loop header
LB: loop body
LE: loop exit
PB: predicated region body
PF: predicated region fallthrough
CT: control target
= control target key end

     0   :  { %s3997_s15 = smov 0   ;;  %s3999_s16 = smov 0   ;;  %s4684_s0 = inlined_call_operand.vmem [shape: bf16[2,160,384], index: 0, kind: input, shape index: {}, may-alias: {0,1}]   ;;  %s4685_s1 = inlined_call_operand.vmem [shape: bf16[2,160,384], index: 1, kind: input, shape index: {}, may-alias: {0,1}]   ;;  %s4686_s2 = inlined_call_operand.vmem [shape: bf16[3,384,128], index: 2, kind: input, shape index: {}]   ;;  %s4687_s3 = inlined_call_operand.vmem [shape: f32[1,128], index: 3, kind: input, shape index: {}]   ;;  %s4688_s4 = inlined_call_operand.vmem [shape: bf16[2,128,128], index: 4, kind: output, shape index: {}]  }
   0x1   :  { %s4001_s17 = smov 0  }
   0x2 LB: > { %s26_s18 = sadd.s32 1, %s3964_s16  ;;  %p2837_p0 = scmp.ge.s32.totalorder %s3968_s17, 1  ;;  %s3968_s17 = sphi %s4001_s17, %s14_s17   ;;  %s3964_s16 = sphi %s3999_s16, %s4690_s16   ;;  %s3960_s15 = sphi %s3997_s15, %s4689_s15  }
   0x3   : > { %p28_p1 = scmp.ge.s32.totalorder %s26_s18, 2  ;;  %p220_p2 = scmp.lt.s32.totalorder %s3968_s17, 3 }
   0x5   : > { %s4692_s18 = smov (%p28_p1, %s26_s18), 0  ;;  %p221_p3 = pnand %p2837_p0, %p220_p2 }
   0x6   : > { %v3772_v0 = vld [vmem:[%s4686_s2 + $0x40] sm:$0xff] (!%p221_p3)   ;;  %p278_p4 = scmp.lt.s32.totalorder (!%p221_p3), %s3960_s15, 1  ;;  %v3775_v3 = vld [vmem:[%s4686_s2 + $0x48] sm:$0xff] (!%p221_p3)   ;;  %v3778_v6 = vld [vmem:[%s4686_s2 + $0x50] sm:$0xff] (!%p221_p3)   ;;  %v3970_v30 = vmov (!%p221_p3), 0.0   ;;  %vm3971_vm0 = vmmov (!%p221_p3), 0  }
   0x7   : > { %224 = sbr.rel (%p221_p3) target bundleno = 449 (0x1c1), region = 36  ;;  %v3773_v1 = vld [vmem:[%s4686_s2] sm:$0xff] (!%p221_p3)   ;;  %3311 = vmatprep.subr.bf16.mxu0 (!%p221_p3), %v3772_v0  ;;  %v3776_v4 = vld [vmem:[%s4686_s2 + $0x8] sm:$0xff] (!%p221_p3)   ;;  %v3779_v7 = vld [vmem:[%s4686_s2 + $0x10] sm:$0xff] (!%p221_p3)  }
   0x8   : > { %v3774_v2 = vld [vmem:[%s4686_s2 + $0x80] sm:$0xff] (!%p221_p3)   ;;  %3312 = vmatpush3.bf16.msra.mxu0 (!%p221_p3), %v3773_v1  ;;  %v3777_v5 = vld [vmem:[%s4686_s2 + $0x88] sm:$0xff] (!%p221_p3)   ;;  %v3780_v8 = vld [vmem:[%s4686_s2 + $0x90] sm:$0xff] (!%p221_p3)  }
   0x9   : > { %3599 = vmatprep.subr.bf16.mxu1 (!%p221_p3), %v3774_v2  ;;  %3313 = vmatprep.subr.bf16.mxu0 (!%p221_p3), %v3775_v3  ;;  %v3781_v9 = vld [vmem:[%s4686_s2 + $0x58] sm:$0xff] (!%p221_p3)   ;;  %v3784_v12 = vld [vmem:[%s4686_s2 + $0x60] sm:$0xff] (!%p221_p3)   ;;  %v3787_v15 = vld [vmem:[%s4686_s2 + $0x68] sm:$0xff] (!%p221_p3)  }
   0xa   : > { %3600 = vmatpush3.bf16.msra.mxu1 (!%p221_p3), %v3774_v2  ;;  %v3782_v10 = vld [vmem:[%s4686_s2 + $0x18] sm:$0xff] (!%p221_p3)   ;;  %v3786_v13 = vld [vmem:[%s4686_s2 + $0xa0] sm:$0xff] (!%p221_p3)   ;;  %v3789_v16 = vld [vmem:[%s4686_s2 + $0xa8] sm:$0xff] (!%p221_p3)  }
   0xb   : > { %3601 = vmatprep.subr.bf16.mxu1 (!%p221_p3), %v3777_v5  ;;  %v3783_v11 = vld [vmem:[%s4686_s2 + $0x98] sm:$0xff] (!%p221_p3)   ;;  %v3785_v14 = vld [vmem:[%s4686_s2 + $0x20] sm:$0xff] (!%p221_p3)   ;;  %v3788_v17 = vld [vmem:[%s4686_s2 + $0x28] sm:$0xff] (!%p221_p3)  }
   0xc   : > { %3314 = vmatpush3.bf16.msra.mxu0 (!%p221_p3), %v3776_v4  ;;  %v3790_v18 = vld [vmem:[%s4686_s2 + $0x70] sm:$0xff] (!%p221_p3)   ;;  %v3793_v21 = vld [vmem:[%s4686_s2 + $0x78] sm:$0xff] (!%p221_p3)   ;;  %v3800_v27 = vld [vmem:[%s4686_s2 + $0x140] sm:$0xff] (!%p221_p3)  }
   0xd   : > { %3315 = vmatprep.subr.bf16.mxu0 (!%p221_p3), %v3778_v6  ;;  %v3791_v19 = vld [vmem:[%s4686_s2 + $0x30] sm:$0xff] (!%p221_p3)   ;;  %v3795_v22 = vld [vmem:[%s4686_s2 + $0xb8] sm:$0xff] (!%p221_p3)   ;;  %v3802_v28 = vld [vmem:[%s4686_s2 + $0x100] sm:$0xff] (!%p221_p3)  }
   0xe   : > { %s4694_s15 = smov (!%p278_p4, %s3960_s15), 1  ;;  %3602 = vmatpush3.bf16.msra.mxu1 %v3777_v5  ;;  %v3792_v20 = vld [vmem:[%s4686_s2 + $0xb0] sm:$0xff]   ;;  %v3794_v25 = vld [vmem:[%s4686_s2 + $0x38] sm:$0xff]   ;;  %v3803_v32 = vld [vmem:[%s4686_s2 + $0xc0] sm:$0xff]  }
   0xf   : > { %3603 = vmatprep.subr.bf16.mxu1 %v3780_v8  ;;  %s3743_s5 = smul.u32 240, %s4694_s15  ;;  %v3806_v33 = vld [vmem:[%s4686_s2 + $0x108] sm:$0xff]   ;;  %v3812_v38 = vld [vmem:[%s4686_s2 + $0x110] sm:$0xff]   ;;  %v3816_v42 = vld [vmem:[%s4686_s2 + $0x118] sm:$0xff]   ;;  %s3247_s22 = sshll.u32 %s4694_s15, 6 }
  0x10   : > { %3316 = vmatpush3.bf16.msra.mxu0 %v3779_v7  ;;  %v3809_v34 = vld [vmem:[%s4686_s2 + $0x148] sm:$0xff]   ;;  %v3813_v41 = vld [vmem:[%s4686_s2 + $0xd0] sm:$0xff]   ;;  %v3818_v46 = vld [vmem:[%s4686_s2 + $0xd8] sm:$0xff]   ;;  %s4641_s25 = scalar_lea.vmem %s4688_s4, %s3247_s22 }
  0x11   : > { %3317 = vmatprep.subr.bf16.mxu0 %v3781_v9  ;;  %s4086_s20 = scalar_lea.vmem %s4684_s0, %s3743_s5  ;;  %v3808_v37 = vld [vmem:[%s4686_s2 + $0xc8] sm:$0xff]   ;;  %v3819_v43 = vld [vmem:[%s4686_s2 + $0x150] sm:$0xff]   ;;  %v3822_v47 = vld [vmem:[%s4686_s2 + $0x120] sm:$0xff]   ;;  %s3246_s21 = sadd.s32 192, %s3743_s5 }
  0x12   : > { %3604 = vmatpush3.bf16.msra.mxu1 %v3780_v8  ;;  %v3798_v23 = vld [vmem:[%s4086_s20 + $0x4] ss:$12 sps:$4 sm:$0xff]   ;;  %v3799_v24 = vld [vmem:[%s4086_s20 + $0x8] ss:$12 sps:$4 sm:$0xff]   ;;  %v3796_v26 = vld [vmem:[%s4086_s20] ss:$12 sps:$4 sm:$0xff]   ;;  %s4297_s26 = scalar_lea.vmem %s4685_s1, %s3246_s21 }
  0x13   : > { %3605 = vmatprep.subr.bf16.mxu1 %v3783_v11  ;;  %703 = vmatprep.mubr.bf16.mxu0 %v3798_v23  ;;  %v4107_v29 = vld [vmem:[%s4086_s20 + $0x1c] ss:$12 sps:$4 sm:$0xff]   ;;  %v3801_v31 = vld [vmem:[%s4086_s20 + $0x20] ss:$12 sps:$4 sm:$0xff]   ;;  %v3810_v35 = vld [vmem:[%s4086_s20 + $0x38] ss:$12 sps:$4 sm:$0xff]  }
  0x14   : > { %3318 = vmatpush3.bf16.msra.mxu0 %v3782_v10  ;;  %3615 = vmatprep.mubr.bf16.mxu1 %v3799_v24  ;;  %v4123_v36 = vld [vmem:[%s4086_s20 + $0x18] ss:$12 sps:$4 sm:$0xff]   ;;  %v4133_v39 = vld [vmem:[%s4086_s20 + $0x34] ss:$12 sps:$4 sm:$0xff]   ;;  %v3811_v40 = vld [vmem:[%s4086_s20 + $0x50] ss:$12 sps:$4 sm:$0xff]  }
  0x15   : > { %3319 = vmatprep.subr.bf16.mxu0 %v3784_v12  ;;  %v3820_v44 = vld [vmem:[%s4086_s20 + $0x68] ss:$12 sps:$4 sm:$0xff]   ;;  %v4150_v45 = vld [vmem:[%s4086_s20 + $0x30] ss:$12 sps:$4 sm:$0xff]   ;;  %v4160_v48 = vld [vmem:[%s4086_s20 + $0x4c] ss:$12 sps:$4 sm:$0xff]  }
  0x16   : > { %3606 = vmatpush3.bf16.msra.mxu1 %v3783_v11  ;;  %v3821_v49 = vld [vmem:[%s4086_s20 + $0x80] ss:$12 sps:$4 sm:$0xff]   ;;  %v3829_v52 = vld [vmem:[%s4686_s2 + $0x158] sm:$0xff]   ;;  %v4175_v53 = vld [vmem:[%s4086_s20 + $0x48] ss:$12 sps:$4 sm:$0xff]  }
  0x17   : > { %3607 = vmatprep.subr.bf16.mxu1 %v3786_v13  ;;  %v3823_v50 = vld [vmem:[%s4686_s2 + $0xe0] sm:$0xff]   ;;  %v3826_v51 = vld [vmem:[%s4686_s2 + $0x128] sm:$0xff]   ;;  %v3832_v56 = vld [vmem:[%s4686_s2 + $0x130] sm:$0xff]  }
  0x18   : > { %3320 = vmatpush3.bf16.msra.mxu0 %v3785_v14  ;;  %v3830_v54 = vld [vmem:[%s4086_s20 + $0x98] ss:$12 sps:$4 sm:$0xff]   ;;  %v3828_v55 = vld [vmem:[%s4686_s2 + $0xe8] sm:$0xff]   ;;  %v3831_v57 = vld [vmem:[%s4086_s20 + $0xb0] ss:$12 sps:$4 sm:$0xff]  }
  0x19   : > { %3321 = vmatprep.subr.bf16.mxu0 %v3787_v15  ;;  %v4187_v58 = vld [vmem:[%s4086_s20 + $0x64] ss:$12 sps:$4 sm:$0xff]   ;;  %v3836_v60 = vld [vmem:[%s4686_s2 + $0x138] sm:$0xff]   ;;  %v4201_v62 = vld [vmem:[%s4086_s20 + $0x60] ss:$12 sps:$4 sm:$0xff]  }
  0x1a   : > { %3608 = vmatpush3.bf16.msra.mxu1 %v3786_v13  ;;  %v3833_v59 = vld [vmem:[%s4686_s2 + $0xf0] sm:$0xff]   ;;  %v3839_v61 = vld [vmem:[%s4686_s2 + $0x160] sm:$0xff]   ;;  %v3838_v63 = vld [vmem:[%s4686_s2 + $0xf8] sm:$0xff]  }
  0x1b   : > { %3609 = vmatprep.subr.bf16.mxu1 %v3789_v16  ;;  %v3840_v0 = vld [vmem:[%s4686_s2 + $0x100] sm:$0xff]   ;;  %v4211_v1 = vld [vmem:[%s4086_s20 + $0x7c] ss:$12 sps:$4 sm:$0xff]   ;;  %v3851_v6 = vld [vmem:[%s4686_s2 + $0x170] sm:$0xff]  }
  0x1c   : > { %3322 = vmatpush3.bf16.msra.mxu0 %v3788_v17  ;;  %v3845_v2 = vld [vmem:[%s4686_s2 + $0x168] sm:$0xff]   ;;  %v3843_v3 = vld [vmem:[%s4686_s2 + $0xc0] sm:$0xff]   ;;  %v3852_v8 = vld [vmem:[%s4686_s2 + $0x110] sm:$0xff]  }
  0x1d   : > { %3323 = vmatprep.subr.bf16.mxu0 %v3790_v18  ;;  %v3846_v4 = vld [vmem:[%s4686_s2 + $0x108] sm:$0xff]   ;;  %v4228_v5 = vld [vmem:[%s4086_s20 + $0x78] ss:$12 sps:$4 sm:$0xff]   ;;  %v4241_v9 = vld [vmem:[%s4086_s20 + $0x94] ss:$12 sps:$4 sm:$0xff]  }
  0x1e   : > { %3610 = vmatpush3.bf16.msra.mxu1 %v3789_v16  ;;  %v3847_v7 = vld [vmem:[%s4686_s2 + $0xc8] sm:$0xff]   ;;  %v3857_v10 = vld [vmem:[%s4686_s2 + $0x178] sm:$0xff]   ;;  %v3853_v11 = vld [vmem:[%s4686_s2 + $0xd0] sm:$0xff]  }
  0x1f   : > { %3611 = vmatprep.subr.bf16.mxu1 %v3792_v20  ;;  %v3858_v12 = vld [vmem:[%s4686_s2 + $0x118] sm:$0xff]   ;;  %v3862_v15 = vld [vmem:[%s4686_s2 + $0x120] sm:$0xff]   ;;  %v3866_v18 = vld [vmem:[%s4686_s2 + $0x128] sm:$0xff]  }
  0x20   : > { %3324 = vmatpush3.bf16.msra.mxu0 %v3791_v19  ;;  %v4257_v13 = vld [vmem:[%s4086_s20 + $0x90] ss:$12 sps:$4 sm:$0xff]   ;;  %v4268_v16 = vld [vmem:[%s4086_s20 + $0xac] ss:$12 sps:$4 sm:$0xff]   ;;  %v3863_v17 = vld [vmem:[%s4686_s2 + $0xe0] sm:$0xff]  }
  0x21   : > { %3325 = vmatprep.subr.bf16.mxu0 %v3793_v21  ;;  %v3859_v14 = vld [vmem:[%s4686_s2 + $0xd8] sm:$0xff]   ;;  %v4280_v19 = vld [vmem:[%s4086_s20 + $0xa8] ss:$12 sps:$4 sm:$0xff]   ;;  %v3860_v24 = vld [vmem:[%s4086_s20 + $0x20] ss:$12 sps:$4 sm:$0xff]  }
  0x22   : > { %3612 = vmatpush3.bf16.msra.mxu1 %v3792_v20  ;;  %v3867_v20 = vld [vmem:[%s4686_s2 + $0xe8] sm:$0xff]   ;;  %v3870_v21 = vld [vmem:[%s4686_s2 + $0x130] sm:$0xff]   ;;  %v3873_v23 = vld [vmem:[%s4686_s2 + $0x138] sm:$0xff]  }
  0x23   : > { %3613 = vmatprep.subr.bf16.mxu1 %v3795_v22 }
  0x24   : > { %3326 = vmatpush3.bf16.msra.mxu0 %v3794_v25  ;;  %v3875_v25 = vld [vmem:[%s4686_s2 + $0xf8] sm:$0xff]  }
  0x25   : > { %3631 = vmatprep.subr.bf16.mxu0 %v3970_v30 }
  0x26   : > { %3614 = vmatpush3.bf16.msra.mxu1 %v3795_v22  ;;  %v3871_v22 = vld [vmem:[%s4686_s2 + $0xf0] sm:$0xff]  }
  0x27   : > { %704 = vmatmul.mubr.bf16.vlgmr.msra.gmra.mrb[0].mxu0 %v3796_v26  ;;  %3391 = vmatprep.subr.bf16.mxu1 %v3802_v28  ;;  %v3879_v26 = vld [vmem:[%s4686_s2 + $0x1c0] sm:$0xff]   ;;  %v3865_v28 = vld [vmem:[%s4686_s2 + $0x148] sm:$0xff]  }
  0x28   : > { %3632 = vmatpush3.bf16.msra.mxu0 %v3800_v27  ;;  %711 = vmatprep.mubr.bf16.mxu0 %v4107_v29  ;;  %v3861_v27 = vld [vmem:[%s4686_s2 + $0x140] sm:$0xff]  }
  0x29   : > { %3616 = vmatmul.mubr.bf16.vlgmr.msra.gmra.mrb[0].mxu1 %v3801_v31  ;;  %3633 = vmatprep.subr.bf16.mxu0 %v3970_v30  ;;  %v3868_v31 = vld [vmem:[%s4686_s2 + $0x150] sm:$0xff]  }
  0x2a   : > { %3392 = vmatpush3.bf16.msra.mxu1 %v3803_v32  ;;  %3619 = vmatprep.mubr.bf16.mxu1 %v3810_v35  ;;  %v3872_v32 = vld [vmem:[%s4686_s2 + $0x158] sm:$0xff]   ;;  %v4344_v35 = vld [vmem:[%s4297_s26 + $0x4] ss:$12 sps:$4 sm:$0xff]  }
  0x2b   : > { %3393 = vmatprep.subr.bf16.mxu1 %v3806_v33  ;;  %v3869_v33 = vld [vmem:[%s4086_s20 + $0x50] ss:$12 sps:$4 sm:$0xff]  }
  0x2c   : > { %3634 = vmatpush3.bf16.msra.mxu0 %v3809_v34  ;;  %v3881_v34 = vld [vmem:[%s4686_s2 + $0x160] sm:$0xff]  }
  0x2d   : > { %3635 = vmatprep.subr.bf16.mxu0 %v3970_v30 }
  0x2e   : > { %3394 = vmatpush3.bf16.msra.mxu1 %v3808_v37  ;;  %v3874_v37 = vld [vmem:[%s4086_s20 + $0x68] ss:$12 sps:$4 sm:$0xff]  }
  0x2f   : > { %712 = vmatmul.mubr.bf16.gmra.mrb[4].mxu0 %v4123_v36  ;;  %3395 = vmatprep.subr.bf16.mxu1 %v3812_v38  ;;  %v3891_v38 = vld [vmem:[%s4686_s2 + $0x170] sm:$0xff]  }
  0x30   : > { %719 = vmatprep.mubr.bf16.mxu0 %v4133_v39  ;;  %3636 = vmatpush3.bf16.msra.mxu0 %v3819_v43  ;;  %v3897_v43 = vld [vmem:[%s4686_s2 + $0x178] sm:$0xff]  }
  0x31   : > { %3620 = vmatmul.mubr.bf16.gmra.mrb[4].mxu1 %v3811_v40  ;;  %3637 = vmatprep.subr.bf16.mxu0 %v3970_v30  ;;  %v4359_v40 = vld [vmem:[%s4297_s26] ss:$12 sps:$4 sm:$0xff]  }
  0x32   : > { %3396 = vmatpush3.bf16.msra.mxu1 %v3813_v41  ;;  %3623 = vmatprep.mubr.bf16.mxu1 %v3820_v44  ;;  %v3880_v41 = vld [vmem:[%s4686_s2 + $0x180] sm:$0xff]  }
  0x33   : > { %3397 = vmatprep.subr.bf16.mxu1 %v3816_v42  ;;  %v3882_v42 = vld [vmem:[%s4686_s2 + $0x1c8] sm:$0xff]  }
  0x34   : > { %3638 = vmatpush3.bf16.msra.mxu0 %v3829_v52  ;;  %v3883_v44 = vld [vmem:[%s4086_s20 + $0x80] ss:$12 sps:$4 sm:$0xff]   ;;  %v3890_v52 = vld [vmem:[%s4686_s2 + $0x198] sm:$0xff]  }
  0x35   : > { %3639 = vmatprep.subr.bf16.mxu0 %v3970_v30 }
  0x36   : > { %3398 = vmatpush3.bf16.msra.mxu1 %v3818_v46  ;;  %v3901_v46 = vld [vmem:[%s4686_s2 + $0x200] sm:$0xff]  }
  0x37   : > { %720 = vmatmul.mubr.bf16.gmra.mrb[8].mxu0 %v4150_v45  ;;  %3399 = vmatprep.subr.bf16.mxu1 %v3822_v47  ;;  %v3884_v47 = vld [vmem:[%s4686_s2 + $0x188] sm:$0xff]  }
  0x38   : > { %727 = vmatprep.mubr.bf16.mxu0 %v4160_v48  ;;  %3640 = vmatpush3.bf16.msra.mxu0 %v3839_v61  ;;  %v3899_v61 = vld [vmem:[%s4686_s2 + $0x1b0] sm:$0xff]  }
  0x39   : > { %3624 = vmatmul.mubr.bf16.gmra.mrb[8].mxu1 %v3821_v49  ;;  %3641 = vmatprep.subr.bf16.mxu0 %v3970_v30  ;;  %v3885_v49 = vld [vmem:[%s4686_s2 + $0x1d0] sm:$0xff]  }
  0x3a   : > { %3400 = vmatpush3.bf16.msra.mxu1 %v3823_v50  ;;  %3627 = vmatprep.mubr.bf16.mxu1 %v3830_v54  ;;  %v3887_v50 = vld [vmem:[%s4686_s2 + $0x190] sm:$0xff]   ;;  %v3892_v54 = vld [vmem:[%s4686_s2 + $0x1e0] sm:$0xff]  }
  0x3b   : > { %3401 = vmatprep.subr.bf16.mxu1 %v3826_v51  ;;  %v3888_v51 = vld [vmem:[%s4686_s2 + $0x1d8] sm:$0xff]  }
  0x3c   : > { %3642 = vmatpush3.bf16.msra.mxu0 %v3845_v2  ;;  %v3903_v2 = vld [vmem:[%s4686_s2 + $0x1b8] sm:$0xff]  }
  0x3d   : > { %3643 = vmatprep.subr.bf16.mxu0 %v3970_v30 }
  0x3e   : > { %3402 = vmatpush3.bf16.msra.mxu1 %v3828_v55  ;;  %v3893_v55 = vld [vmem:[%s4686_s2 + $0x1a0] sm:$0xff]  }
  0x3f   : > { %728 = vmatmul.mubr.bf16.gmra.mrb[12].mxu0 %v4175_v53  ;;  %3403 = vmatprep.subr.bf16.mxu1 %v3832_v56  ;;  %v3894_v56 = vld [vmem:[%s4686_s2 + $0x1e8] sm:$0xff]  }
  0x40   : > { %735 = vmatprep.mubr.bf16.mxu0 %v4187_v58  ;;  %3644 = vmatpush3.bf16.msra.mxu0 %v3851_v6  ;;  %v3904_v6 = vld [vmem:[%s4686_s2 + $0x208] sm:$0xff]  }
  0x41   : > { %3628 = vmatmul.mubr.bf16.gmra.mrb[12].mxu1 %v3831_v57  ;;  %3645 = vmatprep.subr.bf16.mxu0 %v3970_v30  ;;  %v3895_v57 = vld [vmem:[%s4086_s20 + $0xb0] ss:$12 sps:$4 sm:$0xff]  }
  0x42   : > { %3404 = vmatpush3.bf16.msra.mxu1 %v3833_v59  ;;  %1260 = vmatprep.mubr.bf16.mxu1 %v4107_v29  ;;  %v3864_v29 = vld [vmem:[%s4086_s20 + $0x38] ss:$12 sps:$4 sm:$0xff]   ;;  %v3896_v59 = vld [vmem:[%s4686_s2 + $0x1a8] sm:$0xff]  }
  0x43   : > { %3405 = vmatprep.subr.bf16.mxu1 %v3836_v60  ;;  %v3898_v60 = vld [vmem:[%s4686_s2 + $0x1f0] sm:$0xff]  }
  0x44   : > { %3646 = vmatpush3.bf16.msra.mxu0 %v3857_v10  ;;  %v3910_v10 = vld [vmem:[%s4686_s2 + $0x188] sm:$0xff]  }
  0x45   : > { %3675 = vmatprep.subr.bf16.mxu0 %v3970_v30 }
  0x46   : > { %3406 = vmatpush3.bf16.msra.mxu1 %v3838_v63  ;;  %v3900_v63 = vld [vmem:[%s4686_s2 + $0x1f8] sm:$0xff]  }
  0x47   : > { %736 = vmatmul.mubr.bf16.gmra.mrb[16].mxu0 %v4201_v62  ;;  %3464 = vmatprep.subr.bf16.mxu1 %v3840_v0  ;;  %v3902_v0 = vld [vmem:[%s4297_s26 + $0x8] ss:$12 sps:$4 sm:$0xff]  }
  0x48   : > { %743 = vmatprep.mubr.bf16.mxu0 %v4211_v1 }
  0x49   : > { %1261 = vmatmul.mubr.bf16.vlgmr.msra.gmra.mrb[16].mxu1 %v4123_v36  ;;  %v3886_v36 = vld [vmem:[%s4686_s2 + $0x168] sm:$0xff]  }
  0x4a   : > { %3465 = vmatpush3.bf16.msra.mxu1 %v3843_v3  ;;  %1268 = vmatprep.mubr.bf16.mxu1 %v4133_v39  ;;  %v3905_v3 = vld [vmem:[%s4686_s2 + $0x1c0] sm:$0xff]  }
  0x4b   : > { %3466 = vmatprep.subr.bf16.mxu1 %v3846_v4  ;;  %v3920_v4 = vld [vmem:[%s4086_s20 + $0x38] ss:$12 sps:$4 sm:$0xff]  }
  0x4e   : > { %3467 = vmatpush3.bf16.msra.mxu1 %v3847_v7  ;;  %v3909_v7 = vld [vmem:[%s4686_s2 + $0x1c8] sm:$0xff]  }
  0x4f   : > { %744 = vmatmul.mubr.bf16.gmra.mrb[20].mxu0 %v4228_v5  ;;  %3468 = vmatprep.subr.bf16.mxu1 %v3852_v8  ;;  %v3907_v8 = vld [vmem:[%s4686_s2 + $0x210] sm:$0xff]  }
  0x50   : > { %751 = vmatprep.mubr.bf16.mxu0 %v4241_v9 }
  0x51   : > { %1269 = vmatmul.mubr.bf16.gmra.mrb[20].mxu1 %v4150_v45 }
  0x52   : > { %1276 = vmatprep.mubr.bf16.mxu1 %v4160_v48  ;;  %3469 = vmatpush3.bf16.msra.mxu1 %v3853_v11  ;;  %v3912_v11 = vld [vmem:[%s4686_s2 + $0x1d0] sm:$0xff]  }
  0x53   : > { %3470 = vmatprep.subr.bf16.mxu1 %v3858_v12  ;;  %v3916_v12 = vld [vmem:[%s4686_s2 + $0x1d8] sm:$0xff]  }
  0x56   : > { %3471 = vmatpush3.bf16.msra.mxu1 %v3859_v14  ;;  %v3911_v14 = vld [vmem:[%s4686_s2 + $0x220] sm:$0xff]  }
  0x57   : > { %752 = vmatmul.mubr.bf16.gmra.mrb[24].mxu0 %v4257_v13  ;;  %3472 = vmatprep.subr.bf16.mxu1 %v3862_v15  ;;  %v3917_v15 = vld [vmem:[%s4686_s2 + $0x198] sm:$0xff]  }
  0x58   : > { %759 = vmatprep.mubr.bf16.mxu0 %v4268_v16 }
  0x59   : > { %1277 = vmatmul.mubr.bf16.gmra.mrb[24].mxu1 %v4175_v53 }
  0x5a   : > { %1284 = vmatprep.mubr.bf16.mxu1 %v4187_v58  ;;  %3473 = vmatpush3.bf16.msra.mxu1 %v3863_v17  ;;  %v3919_v17 = vld [vmem:[%s4686_s2 + $0x1e0] sm:$0xff]  }
  0x5b   : > { %3474 = vmatprep.subr.bf16.mxu1 %v3866_v18  ;;  %v3924_v18 = vld [vmem:[%s4686_s2 + $0x1e8] sm:$0xff]  }
  0x5e   : > { %3475 = vmatpush3.bf16.msra.mxu1 %v3867_v20  ;;  %v3915_v20 = vld [vmem:[%s4686_s2 + $0x230] sm:$0xff]  }
  0x5f   : > { %760 = vmatmul.mubr.bf16.gmra.mrb[28].mxu0 %v4280_v19  ;;  %3476 = vmatprep.subr.bf16.mxu1 %v3870_v21  ;;  %v3926_v21 = vld [vmem:[%s4686_s2 + $0x1a8] sm:$0xff]  }
  0x60   : > { %3647 = vmatprep.mubr.msk.bf16.mxu0 %vm3971_vm0, %v3970_v30 }
  0x61   : > { %1285 = vmatmul.mubr.bf16.gmra.mrb[28].mxu1 %v4201_v62 }
  0x62   : > { %1292 = vmatprep.mubr.bf16.mxu1 %v4211_v1  ;;  %3477 = vmatpush3.bf16.msra.mxu1 %v3871_v22  ;;  %v3930_v22 = vld [vmem:[%s4686_s2 + $0x1f0] sm:$0xff]  }
  0x63   : > { %3478 = vmatprep.subr.bf16.mxu1 %v3873_v23  ;;  %v3935_v23 = vld [vmem:[%s4686_s2 + $0x1f8] sm:$0xff]  }
  0x66   : > { %3479 = vmatpush3.bf16.msra.mxu1 %v3875_v25  ;;  %v3937_v25 = vld [vmem:[%s4686_s2 + $0x1b8] sm:$0xff]  }
  0x67   : > { %3648 = vmatmul.mubr.bf16.vlgmr.msra.gmra.mrb[32].mxu0 %v3860_v24  ;;  %3495 = vmatprep.subr.bf16.mxu1 %v3879_v26  ;;  %v3923_v24 = vld [vmem:[%s4686_s2 + $0x200] sm:$0xff]   ;;  %v3922_v26 = vld [vmem:[%s4086_s20 + $0x50] ss:$12 sps:$4 sm:$0xff]  }
  0x68   : > { %3676 = vmatpush3.bf16.msra.mxu0 %v3861_v27  ;;  %3651 = vmatprep.mubr.msk.bf16.mxu0 %vm3971_vm0, %v3970_v30  ;;  %v3927_v27 = vld [vmem:[%s4086_s20 + $0x68] ss:$12 sps:$4 sm:$0xff]  }
  0x69   : > { %1293 = vmatmul.mubr.bf16.gmra.mrb[32].mxu1 %v4228_v5  ;;  %3677 = vmatprep.subr.bf16.mxu0 %v3970_v30 }
  0x6a   : > { %1300 = vmatprep.mubr.bf16.mxu1 %v4241_v9 }
  0x6c   : > { %3678 = vmatpush3.bf16.msra.mxu0 %v3865_v28  ;;  %v3928_v28 = vld [vmem:[%s4086_s20 + $0x80] ss:$12 sps:$4 sm:$0xff]  }
  0x6d   : > { %3679 = vmatprep.subr.bf16.mxu0 %v3970_v30 }
  0x6f   : > { %3652 = vmatmul.mubr.bf16.gmra.mrb[36].mxu0 %v3864_v29  ;;  %v3933_v29 = vld [vmem:[%s4086_s20 + $0x98] ss:$12 sps:$4 sm:$0xff]  }
  0x70   : > { %3655 = vmatprep.mubr.msk.bf16.mxu0 %vm3971_vm0, %v3970_v30  ;;  %3680 = vmatpush3.bf16.msra.mxu0 %v3868_v31  ;;  %v3932_v31 = vld [vmem:[%s4686_s2 + $0x218] sm:$0xff]  }
  0x71   : > { %1301 = vmatmul.mubr.bf16.gmra.mrb[36].mxu1 %v4257_v13  ;;  %3681 = vmatprep.subr.bf16.mxu0 %v3970_v30 }
  0x72   : > { %1308 = vmatprep.mubr.bf16.mxu1 %v4268_v16 }
  0x74   : > { %3682 = vmatpush3.bf16.msra.mxu0 %v3872_v32  ;;  %v3944_v32 = vld [vmem:[%s4297_s26 + $0x8] ss:$12 sps:$4 sm:$0xff]  }
  0x75   : > { %3683 = vmatprep.subr.bf16.mxu0 %v3970_v30 }
  0x77   : > { %3656 = vmatmul.mubr.bf16.gmra.mrb[40].mxu0 %v3869_v33  ;;  %v3938_v33 = vld [vmem:[%s4686_s2 + $0x228] sm:$0xff]  }
  0x78   : > { %3659 = vmatprep.mubr.msk.bf16.mxu0 %vm3971_vm0, %v3970_v30  ;;  %3684 = vmatpush3.bf16.msra.mxu0 %v3881_v34  ;;  %v3940_v34 = vld [vmem:[%s4297_s26 + $0x1c] ss:$12 sps:$4 sm:$0xff]  }
  0x79   : > { %1309 = vmatmul.mubr.bf16.gmra.mrb[40].mxu1 %v4280_v19  ;;  %3685 = vmatprep.subr.bf16.mxu0 %v3970_v30 }
  0x7a   : > { %1680 = vmatprep.mubr.bf16.mxu1 %v4344_v35 }
  0x7c   : > { %3686 = vmatpush3.bf16.msra.mxu0 %v3886_v36  ;;  %v3943_v36 = vld [vmem:[%s4686_s2 + $0x238] sm:$0xff]  }
  0x7d   : > { %3687 = vmatprep.subr.bf16.mxu0 %v3970_v30 }
  0x7f   : > { %3660 = vmatmul.mubr.bf16.gmra.mrb[44].mxu0 %v3874_v37  ;;  %v3945_v37 = vld [vmem:[%s4297_s26 + $0x20] ss:$12 sps:$4 sm:$0xff]  }
  0x80   : > { %3663 = vmatprep.mubr.msk.bf16.mxu0 %vm3971_vm0, %v3970_v30  ;;  %3688 = vmatpush3.bf16.msra.mxu0 %v3891_v38 }
  0x81   : > { %1681 = vmatmul.mubr.bf16.vlgmr.msra.gmra.mrb[44].mxu1 %v4359_v40  ;;  %3689 = vmatprep.subr.bf16.mxu0 %v3970_v30 }
  0x82   : > { %3496 = vmatpush3.bf16.msra.mxu1 %v3880_v41  ;;  %2091 = vmatprep.mubr.bf16.mxu1 %v4133_v39  ;;  %v3889_v39 = vld [vmem:[%s4086_s20 + $0x98] ss:$12 sps:$4 sm:$0xff]  }
  0x83   : > { %3497 = vmatprep.subr.bf16.mxu1 %v3882_v42 }
  0x84   : > { %3690 = vmatpush3.bf16.msra.mxu0 %v3897_v43 }
  0x85   : > { %3695 = vmatprep.subr.bf16.mxu0 %v3901_v46 }
  0x86   : > { %3498 = vmatpush3.bf16.msra.mxu1 %v3884_v47 }
  0x87   : > { %3664 = vmatmul.mubr.bf16.gmra.mrb[48].mxu0 %v3883_v44  ;;  %3499 = vmatprep.subr.bf16.mxu1 %v3885_v49 }
  0x88   : > { %3667 = vmatprep.mubr.msk.bf16.mxu0 %vm3971_vm0, %v3970_v30 }
  0x8a   : > { %3500 = vmatpush3.bf16.msra.mxu1 %v3887_v50 }
  0x8b   : > { %3501 = vmatprep.subr.bf16.mxu1 %v3888_v51 }
  0x8e   : > { %3502 = vmatpush3.bf16.msra.mxu1 %v3890_v52 }
  0x8f   : > { %3668 = vmatmul.mubr.bf16.gmra.mrb[52].mxu0 %v3889_v39  ;;  %3503 = vmatprep.subr.bf16.mxu1 %v3892_v54 }
  0x90   : > { %3671 = vmatprep.mubr.msk.bf16.mxu0 %vm3971_vm0, %v3970_v30 }
  0x92   : > { %3504 = vmatpush3.bf16.msra.mxu1 %v3893_v55 }
  0x93   : > { %3505 = vmatprep.subr.bf16.mxu1 %v3894_v56 }
  0x96   : > { %3506 = vmatpush3.bf16.msra.mxu1 %v3896_v59 }
  0x97   : > { %3672 = vmatmul.mubr.bf16.gmra.mrb[56].mxu0 %v3895_v57  ;;  %3507 = vmatprep.subr.bf16.mxu1 %v3898_v60 }
  0x98   : > { %3691 = vmatprep.mubr.msk.bf16.mxu0 %vm3971_vm0, %v3970_v30  ;;  %v3906_v30 = vld [vmem:[%s4686_s2 + $0x180] sm:$0xff]  }
  0x9a   : > { %3508 = vmatpush3.bf16.msra.mxu1 %v3899_v61 }
  0x9b   : > { %3509 = vmatprep.subr.bf16.mxu1 %v3900_v63 }
  0x9e   : > { %3510 = vmatpush3.bf16.msra.mxu1 %v3903_v2 }
  0x9f   : > { %3692 = vmatmul.mubr.bf16.vlgmr.msra.gmra.mrb[60].mxu0 %v3902_v0  ;;  %3561 = vmatprep.subr.bf16.mxu1 %v3905_v3 }
  0xa0   : > { %3696 = vmatpush3.bf16.msra.mxu0 %v3901_v46  ;;  %3711 = vmatprep.mubr.bf16.mxu0 %v3920_v4 }
  0xa1   : > { %2092 = vmatmul.mubr.bf16.vlgmr.msra.gmra.mrb[48].mxu1 %v4150_v45  ;;  %3697 = vmatprep.subr.bf16.mxu0 %v3904_v6  ;;  %v3908_v45 = vld [vmem:[%s4686_s2 + $0x218] sm:$0xff]  }
  0xa2   : > { %3562 = vmatpush3.bf16.msra.mxu1 %v3906_v30  ;;  %2099 = vmatprep.mubr.bf16.mxu1 %v4160_v48  ;;  %v3913_v48 = vld [vmem:[%s4686_s2 + $0x190] sm:$0xff]  }
  0xa3   : > { %3563 = vmatprep.subr.bf16.mxu1 %v3909_v7 }
  0xa4   : > { %3698 = vmatpush3.bf16.msra.mxu0 %v3904_v6 }
  0xa5   : > { %3699 = vmatprep.subr.bf16.mxu0 %v3907_v8 }
  0xa6   : > { %3564 = vmatpush3.bf16.msra.mxu1 %v3910_v10 }
  0xa7   : > { %3565 = vmatprep.subr.bf16.mxu1 %v3912_v11 }
  0xa8   : > { %3700 = vmatpush3.bf16.msra.mxu0 %v3907_v8 }
  0xa9   : > { %2100 = vmatmul.mubr.bf16.gmra.mrb[52].mxu1 %v4175_v53  ;;  %3701 = vmatprep.subr.bf16.mxu0 %v3908_v45  ;;  %v3914_v53 = vld [vmem:[%s4686_s2 + $0x228] sm:$0xff]  }
  0xaa   : > { %2107 = vmatprep.mubr.bf16.mxu1 %v4187_v58  ;;  %3566 = vmatpush3.bf16.msra.mxu1 %v3913_v48  ;;  %v3921_v58 = vld [vmem:[%s4686_s2 + $0x1a0] sm:$0xff]  }
  0xab   : > { %3567 = vmatprep.subr.bf16.mxu1 %v3916_v12 }
  0xac   : > { %3702 = vmatpush3.bf16.msra.mxu0 %v3908_v45 }
  0xad   : > { %3703 = vmatprep.subr.bf16.mxu0 %v3911_v14 }
  0xae   : > { %3568 = vmatpush3.bf16.msra.mxu1 %v3917_v15 }
  0xaf   : > { %3569 = vmatprep.subr.bf16.mxu1 %v3919_v17 }
  0xb0   : > { %3704 = vmatpush3.bf16.msra.mxu0 %v3911_v14 }
  0xb1   : > { %2108 = vmatmul.mubr.bf16.gmra.mrb[56].mxu1 %v4201_v62  ;;  %3705 = vmatprep.subr.bf16.mxu0 %v3914_v53  ;;  %v3918_v62 = vld [vmem:[%s4686_s2 + $0x238] sm:$0xff]  }
  0xb2   : > { %2115 = vmatprep.mubr.bf16.mxu1 %v4211_v1  ;;  %3570 = vmatpush3.bf16.msra.mxu1 %v3921_v58  ;;  %v3931_v1 = vld [vmem:[%s4686_s2 + $0x1b0] sm:$0xff]  }
  0xb3   : > { %3571 = vmatprep.subr.bf16.mxu1 %v3924_v18 }
  0xb4   : > { %3706 = vmatpush3.bf16.msra.mxu0 %v3914_v53 }
  0xb5   : > { %3707 = vmatprep.subr.bf16.mxu0 %v3915_v20 }
  0xb6   : > { %3572 = vmatpush3.bf16.msra.mxu1 %v3926_v21 }
  0xb7   : > { %3573 = vmatprep.subr.bf16.mxu1 %v3930_v22 }
  0xb8   : > { %3708 = vmatpush3.bf16.msra.mxu0 %v3915_v20 }
  0xb9   : > { %2116 = vmatmul.mubr.bf16.gmra.mrb[60].mxu1 %v4228_v5  ;;  %3709 = vmatprep.subr.bf16.mxu0 %v3918_v62  ;;  %v3925_v5 = vld [vmem:[%s4686_s2 + $0x208] sm:$0xff]  }
  0xba   : > { %2123 = vmatprep.mubr.bf16.mxu1 %v4241_v9  ;;  %3574 = vmatpush3.bf16.msra.mxu1 %v3931_v1  ;;  %v3929_v9 = vld [vmem:[%s4686_s2 + $0x210] sm:$0xff]  }
  0xbb   : > { %3575 = vmatprep.subr.bf16.mxu1 %v3935_v23 }
  0xbc   : > { %3710 = vmatpush3.bf16.msra.mxu0 %v3918_v62 }
  0xbd   : > { %3723 = vmatprep.subr.bf16.mxu0 %v3923_v24 }
  0xbe   : > { %3576 = vmatpush3.bf16.msra.mxu1 %v3937_v25 }
  0xbf   : > { %3712 = vmatmul.mubr.bf16.vlgmr.msra.gmra.mrb[64].mxu0 %v3922_v26 }
  0xc0   : > { %3724 = vmatpush3.bf16.msra.mxu0 %v3923_v24  ;;  %3715 = vmatprep.mubr.bf16.mxu0 %v3927_v27 }
  0xc1   : > { %2124 = vmatmul.mubr.bf16.gmra.mrb[64].mxu1 %v4257_v13  ;;  %3725 = vmatprep.subr.bf16.mxu0 %v3925_v5  ;;  %v3936_v13 = vld [vmem:[%s4686_s2 + $0x220] sm:$0xff]  }
  0xc2   : > { %2131 = vmatprep.mubr.bf16.mxu1 %v4268_v16  ;;  %v3934_v16 = vld [vmem:[%s4086_s20 + $0xb0] ss:$12 sps:$4 sm:$0xff]  }
  0xc4   : > { %3726 = vmatpush3.bf16.msra.mxu0 %v3925_v5 }
  0xc5   : > { %3727 = vmatprep.subr.bf16.mxu0 %v3929_v9 }
  0xc7   : > { %3716 = vmatmul.mubr.bf16.gmra.mrb[68].mxu0 %v3928_v28 }
  0xc8   : > { %3728 = vmatpush3.bf16.msra.mxu0 %v3929_v9  ;;  %3719 = vmatprep.mubr.bf16.mxu0 %v3933_v29 }
  0xc9   : > { %2132 = vmatmul.mubr.bf16.gmra.mrb[68].mxu1 %v4280_v19  ;;  %3729 = vmatprep.subr.bf16.mxu0 %v3932_v31  ;;  %v3939_v19 = vld [vmem:[%s4686_s2 + $0x230] sm:$0xff]  }
  0xca   : > { %2513 = vmatprep.mubr.bf16.mxu1 %v4344_v35  ;;  %v3942_v35 = vld [vmem:[%s4297_s26 + $0x18] ss:$12 sps:$4 sm:$0xff]  }
  0xcc   : > { %3730 = vmatpush3.bf16.msra.mxu0 %v3932_v31 }
  0xcd   : > { %3731 = vmatprep.subr.bf16.mxu0 %v3936_v13 }
  0xcf   : > { %3720 = vmatmul.mubr.bf16.gmra.mrb[72].mxu0 %v3934_v16 }
  0xd0   : > { %3732 = vmatpush3.bf16.msra.mxu0 %v3936_v13  ;;  %3739 = vmatprep.mubr.bf16.mxu0 %v3944_v32 }
  0xd1   : > { %2514 = vmatmul.mubr.bf16.vlgmr.msra.gmra.mrb[72].mxu1 %v4359_v40  ;;  %3733 = vmatprep.subr.bf16.mxu0 %v3938_v33 }
  0xd2   : > { %2521 = vmatprep.mubr.bf16.mxu1 %v3940_v34 }
  0xd4   : > { %3734 = vmatpush3.bf16.msra.mxu0 %v3938_v33 }
  0xd5   : > { %3735 = vmatprep.subr.bf16.mxu0 %v3939_v19 }
  0xd8   : > { %3736 = vmatpush3.bf16.msra.mxu0 %v3939_v19 }
  0xd9   : > { %2522 = vmatmul.mubr.bf16.gmra.mrb[76].mxu1 %v3942_v35  ;;  %3737 = vmatprep.subr.bf16.mxu0 %v3943_v36 }
  0xdc   : > { %3738 = vmatpush3.bf16.msra.mxu0 %v3943_v36 }
  0xdf   : > { %3740 = vmatmul.mubr.bf16.vlgmr.msra.gmra.mrb[76].mxu0 %v3945_v37 }
  0xfa   : > { %v3327_v38 = vpop.f32.mrb[0].mxu0 }
  0xfb   : > { %v3328_v40 = vpop.f32.mrb[1].mxu0 }
  0xfc   : > { %v3329_v41 = vadd.f32 %v3328_v40, %v3327_v38  ;;  %v3330_v42 = vpop.f32.mrb[2].mxu0  ;;  %v3617_v43 = vpop.f32.mrb[0].mxu1 }
  0xfd   : > { %v3331_v44 = vpop.f32.mrb[3].mxu0  ;;  %v802_v46 = vpop.f32.mrb[1].mxu1 }
  0xfe   : > { %v3332_v47 = vadd.f32 %v3331_v44, %v3330_v42  ;;  %v4544_v49 = vadd.f32 %v3329_v41, %v802_v46  ;;  %v3618_v50 = vpop.f32.mrb[2].mxu1 }
  0xff   : > { %v805_v51 = vpop.f32.mrb[3].mxu1 }
 0x100   : > { %v4546_v39 = vadd.f32 %v3332_v47, %v805_v51 }
 0x102   : > { %v3333_v52 = vpop.f32.mrb[4].mxu0 }
 0x103   : > { %v3334_v54 = vpop.f32.mrb[5].mxu0 }
 0x104   : > { %v3335_v55 = vadd.f32 %v3334_v54, %v3333_v52  ;;  %v3336_v56 = vpop.f32.mrb[6].mxu0  ;;  %v3621_v57 = vpop.f32.mrb[4].mxu1 }
 0x105   : > { %v3337_v59 = vpop.f32.mrb[7].mxu0  ;;  %v818_v60 = vpop.f32.mrb[5].mxu1 }
 0x106   : > { %v4548_v61 = vadd.f32 %v3617_v43, %v3335_v55  ;;  %v3338_v63 = vadd.f32 %v3337_v59, %v3336_v56  ;;  %v3622_v0 = vpop.f32.mrb[6].mxu1 }
 0x107   : > { %v821_v2 = vpop.f32.mrb[7].mxu1 }
 0x108   : > { %v4550_v3 = vadd.f32 %v3618_v50, %v3338_v63 }
 0x10a   : > { %v3339_v4 = vpop.f32.mrb[8].mxu0 }
 0x10b   : > { %v3340_v6 = vpop.f32.mrb[9].mxu0 }
 0x10c   : > { %v3341_v30 = vadd.f32 %v3340_v6, %v3339_v4  ;;  %v3342_v7 = vpop.f32.mrb[10].mxu0  ;;  %v3625_v8 = vpop.f32.mrb[8].mxu1 }
 0x10d   : > { %v3343_v10 = vpop.f32.mrb[11].mxu0  ;;  %v834_v11 = vpop.f32.mrb[9].mxu1 }
 0x10e   : > { %v4552_v45 = vadd.f32 %v3341_v30, %v818_v60  ;;  %v3344_v48 = vadd.f32 %v3343_v10, %v3342_v7  ;;  %v3626_v12 = vpop.f32.mrb[10].mxu1 }
 0x10f   : > { %v837_v14 = vpop.f32.mrb[11].mxu1 }
 0x110   : > { %v4554_v15 = vadd.f32 %v3344_v48, %v821_v2 }
 0x112   : > { %v3345_v17 = vpop.f32.mrb[12].mxu0 }
 0x113   : > { %v3346_v53 = vpop.f32.mrb[13].mxu0 }
 0x114   : > { %v3347_v58 = vadd.f32 %v3346_v53, %v3345_v17  ;;  %v3348_v18 = vpop.f32.mrb[14].mxu0  ;;  %v3629_v20 = vpop.f32.mrb[12].mxu1 }
 0x115   : > { %v3349_v21 = vpop.f32.mrb[15].mxu0  ;;  %v850_v22 = vpop.f32.mrb[13].mxu1 }
 0x116   : > { %v4556_v62 = vadd.f32 %v3621_v57, %v3347_v58  ;;  %v3350_v1 = vadd.f32 %v3349_v21, %v3348_v18  ;;  %v3630_v23 = vpop.f32.mrb[14].mxu1 }
 0x117   : > { %v853_v24 = vpop.f32.mrb[15].mxu1 }
 0x118   : > { %v4558_v25 = vadd.f32 %v3622_v0, %v3350_v1 }
 0x11a   : > { %v3351_v26 = vpop.f32.mrb[16].mxu0 }
 0x11b   : > { %v3352_v27 = vpop.f32.mrb[17].mxu0 }
 0x11c   : > { %v3353_v5 = vadd.f32 %v3352_v27, %v3351_v26  ;;  %v3354_v9 = vpop.f32.mrb[18].mxu0  ;;  %v3407_v28 = vpop.f32.mrb[16].mxu1 }
 0x11d   : > { %v3355_v29 = vpop.f32.mrb[19].mxu0  ;;  %v3408_v31 = vpop.f32.mrb[17].mxu1 }
 0x11e   : > { %v4560_v13 = vadd.f32 %v3353_v5, %v834_v11  ;;  %v3356_v16 = vadd.f32 %v3355_v29, %v3354_v9  ;;  %v3409_v32 = vadd.f32 %v3408_v31, %v3407_v28  ;;  %v3410_v33 = vpop.f32.mrb[18].mxu1 }
 0x11f   : > { %v3411_v34 = vpop.f32.mrb[19].mxu1 }
 0x120   : > { %v4562_v19 = vadd.f32 %v3356_v16, %v837_v14  ;;  %v3412_v35 = vadd.f32 %v3411_v34, %v3410_v33 }
 0x122   : > { %v3357_v36 = vpop.f32.mrb[20].mxu0 }
 0x123   : > { %v3358_v37 = vpop.f32.mrb[21].mxu0 }
 0x124   : > { %v3359_v38 = vadd.f32 %v3358_v37, %v3357_v36  ;;  %v3360_v40 = vpop.f32.mrb[22].mxu0  ;;  %v3413_v41 = vpop.f32.mrb[20].mxu1 }
 0x125   : > { %v3361_v42 = vpop.f32.mrb[23].mxu0  ;;  %v3414_v43 = vpop.f32.mrb[21].mxu1 }
 0x126   : > { %v4564_v44 = vadd.f32 %v3625_v8, %v3359_v38  ;;  %v3362_v46 = vadd.f32 %v3361_v42, %v3360_v40  ;;  %v3415_v47 = vadd.f32 %v3414_v43, %v3413_v41  ;;  %v3416_v50 = vpop.f32.mrb[22].mxu1 }
 0x127   : > { %v3417_v51 = vpop.f32.mrb[23].mxu1 }
 0x128   : > { %v4566_v52 = vadd.f32 %v3626_v12, %v3362_v46  ;;  %v3418_v54 = vadd.f32 %v3417_v51, %v3416_v50 }
 0x12a   : > { %v3363_v55 = vpop.f32.mrb[24].mxu0 }
 0x12b   : > { %v3364_v56 = vpop.f32.mrb[25].mxu0 }
 0x12c   : > { %v3365_v57 = vadd.f32 %v3364_v56, %v3363_v55  ;;  %v3366_v59 = vpop.f32.mrb[26].mxu0  ;;  %v3419_v60 = vpop.f32.mrb[24].mxu1 }
 0x12d   : > { %v3367_v63 = vpop.f32.mrb[27].mxu0  ;;  %v3420_v0 = vpop.f32.mrb[25].mxu1 }
 0x12e   : > { %v4568_v2 = vadd.f32 %v3365_v57, %v850_v22  ;;  %v3368_v4 = vadd.f32 %v3367_v63, %v3366_v59  ;;  %v3421_v6 = vadd.f32 %v3420_v0, %v3419_v60  ;;  %v3422_v30 = vpop.f32.mrb[26].mxu1 }
 0x12f   : > { %v3423_v7 = vpop.f32.mrb[27].mxu1 }
 0x130   : > { %v4570_v8 = vadd.f32 %v3368_v4, %v853_v24  ;;  %v3424_v10 = vadd.f32 %v3423_v7, %v3422_v30 }
 0x132   : > { %v3369_v11 = vpop.f32.mrb[28].mxu0 }
 0x133   : > { %v3370_v48 = vpop.f32.mrb[29].mxu0 }
 0x134   : > { %v3371_v12 = vadd.f32 %v3370_v48, %v3369_v11  ;;  %v3372_v14 = vpop.f32.mrb[30].mxu0  ;;  %v3425_v17 = vpop.f32.mrb[28].mxu1 }
 0x135   : > { %v3373_v53 = vpop.f32.mrb[31].mxu0  ;;  %v3426_v58 = vpop.f32.mrb[29].mxu1 }
 0x136   : > { %v4572_v18 = vadd.f32 %v3629_v20, %v3371_v12  ;;  %v3374_v21 = vadd.f32 %v3373_v53, %v3372_v14  ;;  %v3427_v1 = vadd.f32 %v3426_v58, %v3425_v17  ;;  %v3428_v22 = vpop.f32.mrb[30].mxu1 }
 0x137   : > { %v3429_v26 = vpop.f32.mrb[31].mxu1 }
 0x138   : > { %v4574_v27 = vadd.f32 %v3630_v23, %v3374_v21  ;;  %v3430_v5 = vadd.f32 %v3429_v26, %v3428_v22 }
 0x13a   : > { %v1351_v9 = vpop.f32.mrb[32].mxu0 }
 0x13b   : > { %v1352_v24 = vadd.f32 %v3409_v32, %v1351_v9  ;;  %v3649_v28 = vpop.f32.mrb[33].mxu0 }
 0x13c   : > { %v1354_v29 = vpop.f32.mrb[34].mxu0  ;;  %v3431_v31 = vpop.f32.mrb[32].mxu1 }
 0x13d   : > { %v4577_v16 = vadd.f32 %v1352_v24, %v4544_v49  ;;  %v1355_v33 = vadd.f32 %v3412_v35, %v1354_v29  ;;  %v3650_v34 = vpop.f32.mrb[35].mxu0  ;;  %v3432_v36 = vpop.f32.mrb[33].mxu1 }
 0x13e   : > { %v3433_v20 = vadd.f32 %v3432_v36, %v3431_v31  ;;  %v3434_v37 = vpop.f32.mrb[34].mxu1 }
 0x13f   : > { %v4580_v38 = vadd.f32 %v1355_v33, %v4546_v39  ;;  %v3435_v40 = vpop.f32.mrb[35].mxu1 }
 0x140   : > { %v3436_v23 = vadd.f32 %v3435_v40, %v3434_v37 }
 0x142   : > { %v1359_v41 = vpop.f32.mrb[36].mxu0 }
 0x143   : > { %v1360_v42 = vadd.f32 %v3415_v47, %v1359_v41  ;;  %v3653_v43 = vpop.f32.mrb[37].mxu0 }
 0x144   : > { %v1362_v32 = vpop.f32.mrb[38].mxu0  ;;  %v3437_v46 = vpop.f32.mrb[36].mxu1 }
 0x145   : > { %v4583_v50 = vadd.f32 %v1360_v42, %v4548_v61  ;;  %v1363_v49 = vadd.f32 %v3418_v54, %v1362_v32  ;;  %v3654_v51 = vpop.f32.mrb[39].mxu0  ;;  %v3438_v35 = vpop.f32.mrb[37].mxu1 }
 0x146   : > { %v3439_v55 = vadd.f32 %v3438_v35, %v3437_v46  ;;  %v3440_v56 = vpop.f32.mrb[38].mxu1 }
 0x147   : > { %v4586_v57 = vadd.f32 %v1363_v49, %v4550_v3  ;;  %v3441_v39 = vpop.f32.mrb[39].mxu1 }
 0x148   : > { %v3442_v59 = vadd.f32 %v3441_v39, %v3440_v56 }
 0x14a   : > { %v1367_v60 = vpop.f32.mrb[40].mxu0 }
 0x14b   : > { %v1368_v63 = vadd.f32 %v3421_v6, %v1367_v60  ;;  %v3657_v0 = vpop.f32.mrb[41].mxu0 }
 0x14c   : > { %v1370_v47 = vpop.f32.mrb[42].mxu0  ;;  %v3443_v4 = vpop.f32.mrb[40].mxu1 }
 0x14d   : > { %v4589_v30 = vadd.f32 %v1368_v63, %v4552_v45  ;;  %v1371_v61 = vadd.f32 %v3424_v10, %v1370_v47  ;;  %v3658_v7 = vpop.f32.mrb[43].mxu0  ;;  %v3444_v54 = vpop.f32.mrb[41].mxu1 }
 0x14e   : > { %v3445_v11 = vadd.f32 %v3444_v54, %v3443_v4  ;;  %v3446_v48 = vpop.f32.mrb[42].mxu1 }
 0x14f   : > { %v4592_v12 = vadd.f32 %v1371_v61, %v4554_v15  ;;  %v3447_v3 = vpop.f32.mrb[43].mxu1 }
 0x150   : > { %v3448_v14 = vadd.f32 %v3447_v3, %v3446_v48 }
 0x152   : > { %v1375_v17 = vpop.f32.mrb[44].mxu0 }
 0x153   : > { %v1376_v53 = vadd.f32 %v3427_v1, %v1375_v17  ;;  %v3661_v58 = vpop.f32.mrb[45].mxu0 }
 0x154   : > { %v1378_v6 = vpop.f32.mrb[46].mxu0  ;;  %v3480_v21 = vpop.f32.mrb[44].mxu1 }
 0x155   : > { %v4595_v22 = vadd.f32 %v1376_v53, %v4556_v62  ;;  %v1379_v45 = vadd.f32 %v3430_v5, %v1378_v6  ;;  %v3662_v26 = vpop.f32.mrb[47].mxu0  ;;  %v3481_v10 = vpop.f32.mrb[45].mxu1 }
 0x156   : > { %v3482_v9 = vadd.f32 %v3481_v10, %v3480_v21  ;;  %v3483_v24 = vpop.f32.mrb[46].mxu1 }
 0x157   : > { %v4598_v28 = vadd.f32 %v1379_v45, %v4558_v25  ;;  %v3484_v15 = vpop.f32.mrb[47].mxu1 }
 0x158   : > { %v3485_v29 = vadd.f32 %v3484_v15, %v3483_v24 }
 0x15a   : > { %v1383_v31 = vpop.f32.mrb[48].mxu0 }
 0x15b   : > { %v1384_v33 = vadd.f32 %v3433_v20, %v1383_v31  ;;  %v3665_v34 = vpop.f32.mrb[49].mxu0 }
 0x15c   : > { %v1386_v1 = vpop.f32.mrb[50].mxu0 }
 0x15d   : > { %v4601_v36 = vadd.f32 %v1384_v33, %v4560_v13  ;;  %v1387_v37 = vadd.f32 %v3436_v23, %v1386_v1  ;;  %v3666_v62 = vpop.f32.mrb[51].mxu0  ;;  %v4627_v1 = vld [vmem:[%s4687_s3] ss:$0 sm:$0xff] }
 0x15f   : > { %v4604_v5 = vadd.f32 %v1387_v37, %v4562_v19 }
 0x162   : > { %v1391_v40 = vpop.f32.mrb[52].mxu0 }
 0x163   : > { %v1392_v41 = vadd.f32 %v3439_v55, %v1391_v40  ;;  %v3669_v42 = vpop.f32.mrb[53].mxu0 }
 0x164   : > { %v1394_v43 = vpop.f32.mrb[54].mxu0 }
 0x165   : > { %v4607_v25 = vadd.f32 %v1392_v41, %v4564_v44  ;;  %v1395_v32 = vadd.f32 %v3442_v59, %v1394_v43  ;;  %v3670_v46 = vpop.f32.mrb[55].mxu0 }
 0x167   : > { %v4610_v20 = vadd.f32 %v1395_v32, %v4566_v52 }
 0x16a   : > { %v1399_v49 = vpop.f32.mrb[56].mxu0 }
 0x16b   : > { %v1400_v13 = vadd.f32 %v3445_v11, %v1399_v49  ;;  %v3673_v51 = vpop.f32.mrb[57].mxu0 }
 0x16c   : > { %v1402_v23 = vpop.f32.mrb[58].mxu0 }
 0x16d   : > { %v4613_v35 = vadd.f32 %v1400_v13, %v4568_v2  ;;  %v1403_v19 = vadd.f32 %v3448_v14, %v1402_v23  ;;  %v3674_v56 = vpop.f32.mrb[59].mxu0 }
 0x16f   : > { %v4616_v55 = vadd.f32 %v1403_v19, %v4570_v8 }
 0x172   : > { %v1723_v39 = vpop.f32.mrb[60].mxu0 }
 0x173   : > { %v1724_v44 = vadd.f32 %v3482_v9, %v1723_v39  ;;  %v3693_v60 = vpop.f32.mrb[61].mxu0 }
 0x174   : > { %v1726_v59 = vpop.f32.mrb[62].mxu0  ;;  %v3511_v63 = vpop.f32.mrb[48].mxu1 }
 0x175   : > { %v4619_v52 = vadd.f32 %v1724_v44, %v4572_v18  ;;  %v1727_v0 = vadd.f32 %v3485_v29, %v1726_v59  ;;  %v3694_v47 = vpop.f32.mrb[63].mxu0  ;;  %v3512_v4 = vpop.f32.mrb[49].mxu1 }
 0x176   : > { %v3513_v61 = vadd.f32 %v3512_v4, %v3511_v63  ;;  %v3514_v7 = vpop.f32.mrb[50].mxu1 }
 0x177   : > { %v4622_v2 = vadd.f32 %v1727_v0, %v4574_v27  ;;  %v3515_v54 = vpop.f32.mrb[51].mxu1 }
 0x178   : > { %v3516_v11 = vadd.f32 %v3515_v54, %v3514_v7 }
 0x17c   : > { %v3517_v8 = vpop.f32.mrb[52].mxu1 }
 0x17d   : > { %v3518_v48 = vpop.f32.mrb[53].mxu1 }
 0x17e   : > { %v3519_v3 = vadd.f32 %v3518_v48, %v3517_v8  ;;  %v3520_v14 = vpop.f32.mrb[54].mxu1 }
 0x17f   : > { %v3521_v17 = vpop.f32.mrb[55].mxu1 }
 0x180   : > { %v3522_v53 = vadd.f32 %v3521_v17, %v3520_v14 }
 0x184   : > { %v3523_v58 = vpop.f32.mrb[56].mxu1 }
 0x185   : > { %v3524_v6 = vpop.f32.mrb[57].mxu1 }
 0x186   : > { %v3525_v18 = vadd.f32 %v3524_v6, %v3523_v58  ;;  %v3526_v21 = vpop.f32.mrb[58].mxu1 }
 0x187   : > { %v3527_v45 = vpop.f32.mrb[59].mxu1 }
 0x188   : > { %v3528_v26 = vadd.f32 %v3527_v45, %v3526_v21 }
 0x18c   : > { %v3529_v10 = vpop.f32.mrb[60].mxu1 }
 0x18d   : > { %v3530_v9 = vpop.f32.mrb[61].mxu1 }
 0x18e   : > { %v3531_v24 = vadd.f32 %v3530_v9, %v3529_v10  ;;  %v3532_v15 = vpop.f32.mrb[62].mxu1 }
 0x18f   : > { %v3533_v27 = vpop.f32.mrb[63].mxu1 }
 0x190   : > { %v3534_v29 = vadd.f32 %v3533_v27, %v3532_v15 }
 0x192   : > { %v3713_v31 = vpop.f32.mrb[64].mxu0 }
 0x193   : > { %v2183_v33 = vadd.f32 %v3713_v31, %v3519_v3  ;;  %v2174_v34 = vpop.f32.mrb[65].mxu0 }
 0x194   : > { %v2175_v37 = vadd.f32 %v3513_v61, %v2174_v34  ;;  %v3714_v62 = vpop.f32.mrb[66].mxu0  ;;  %v3535_v40 = vpop.f32.mrb[64].mxu1 }
 0x195   : > { %v2223_v41 = vadd.f32 %v2183_v33, %v4583_v50  ;;  %v2186_v42 = vadd.f32 %v3714_v62, %v3522_v53  ;;  %v2177_v43 = vpop.f32.mrb[67].mxu0  ;;  %v3536_v32 = vpop.f32.mrb[65].mxu1 }
 0x196   : > { %v2221_v46 = vadd.f32 %v2175_v37, %v4577_v16  ;;  %v2178_v49 = vadd.f32 %v3516_v11, %v2177_v43  ;;  %v3537_v13 = vadd.f32 %v3536_v32, %v3535_v40  ;;  %v3538_v51 = vpop.f32.mrb[66].mxu1 }
 0x197   : > { %v2612_v23 = vadd.f32 %v4627_v1, %v2223_v41  ;;  %v2224_v19 = vadd.f32 %v2186_v42, %v4586_v57  ;;  %v3539_v56 = vpop.f32.mrb[67].mxu1 }
 0x198   : > { %v2610_v39 = vadd.f32 %v4627_v1, %v2221_v46  ;;  %v2222_v44 = vadd.f32 %v2178_v49, %v4580_v38  ;;  %v3540_v60 = vadd.f32 %v3539_v56, %v3538_v51 }
 0x199   : > { %v2613_v50 = vadd.f32 %v4627_v1, %v2224_v19  ;;  %v2628_v16 = vmax.f32 %v2612_v23, 0.0 }
 0x19a   : > { %v2611_v59 = vadd.f32 %v4627_v1, %v2222_v44  ;;  %v3717_v63 = vpop.f32.mrb[68].mxu0  ;;  %v2626_v61 = vmax.f32 %v2610_v39, 0.0 }
 0x19b   : > { %v2629_v0 = vmax.f32 %v2613_v50, 0.0  ;;  %v2199_v47 = vadd.f32 %v3717_v63, %v3531_v24  ;;  %v2190_v4 = vpop.f32.mrb[69].mxu0 }
 0x19c   : > { %v2627_v57 = vmax.f32 %v2611_v59, 0.0  ;;  %v2191_v38 = vadd.f32 %v3525_v18, %v2190_v4  ;;  %v3718_v7 = vpop.f32.mrb[70].mxu0  ;;  %v3541_v54 = vpop.f32.mrb[68].mxu1 }
 0x19d   : > { %v3272_v11 = vpack.c.bf16 %v2629_v0, %v2628_v16  ;;  %v2227_v8 = vadd.f32 %v2199_v47, %v4595_v22  ;;  %v2202_v48 = vadd.f32 %v3718_v7, %v3534_v29  ;;  %v2193_v3 = vpop.f32.mrb[71].mxu0  ;;  %v3542_v14 = vpop.f32.mrb[69].mxu1 }
 0x19e   : > { %v3267_v17 = vpack.c.bf16 %v2627_v57, %v2626_v61  ;;  %v2225_v53 = vadd.f32 %v2191_v38, %v4589_v30  ;;  %v2194_v58 = vadd.f32 %v3528_v26, %v2193_v3  ;;  %v3543_v6 = vadd.f32 %v3542_v14, %v3541_v54  ;;  %v3544_v21 = vpop.f32.mrb[70].mxu1 }
 0x19f   : > { %3304 = vst [vmem:[%s4641_s25 + $0x8] sm:$0xff] %v3272_v11   ;;  %v2616_v45 = vadd.f32 %v4627_v1, %v2227_v8  ;;  %v2228_v18 = vadd.f32 %v2202_v48, %v4598_v28  ;;  %v3545_v10 = vpop.f32.mrb[71].mxu1 }
 0x1a0   : > { %3268 = vst [vmem:[%s4641_s25] sm:$0xff] %v3267_v17   ;;  %v2614_v9 = vadd.f32 %v4627_v1, %v2225_v53  ;;  %v2226_v22 = vadd.f32 %v2194_v58, %v4592_v12  ;;  %v3546_v24 = vadd.f32 %v3545_v10, %v3544_v21 }
 0x1a1   : > { %v2617_v15 = vadd.f32 %v4627_v1, %v2228_v18  ;;  %v2632_v26 = vmax.f32 %v2616_v45, 0.0 }
 0x1a2   : > { %v2615_v27 = vadd.f32 %v4627_v1, %v2226_v22  ;;  %v3721_v30 = vpop.f32.mrb[72].mxu0  ;;  %v2630_v34 = vmax.f32 %v2614_v9, 0.0 }
 0x1a3   : > { %v2633_v29 = vmax.f32 %v2617_v15, 0.0  ;;  %v2215_v31 = vadd.f32 %v3721_v30, %v3543_v6  ;;  %v2206_v33 = vpop.f32.mrb[73].mxu0 }
 0x1a4   : > { %v2631_v37 = vmax.f32 %v2615_v27, 0.0  ;;  %v2207_v28 = vadd.f32 %v3537_v13, %v2206_v33  ;;  %v3722_v62 = vpop.f32.mrb[74].mxu0  ;;  %v3577_v40 = vpop.f32.mrb[72].mxu1 }
 0x1a5   : > { %v3282_v41 = vpack.c.bf16 %v2633_v29, %v2632_v26  ;;  %v2231_v12 = vadd.f32 %v2215_v31, %v4607_v25  ;;  %v2218_v42 = vadd.f32 %v3722_v62, %v3546_v24  ;;  %v2209_v43 = vpop.f32.mrb[75].mxu0  ;;  %v3578_v32 = vpop.f32.mrb[73].mxu1 }
 0x1a6   : > { %v3277_v46 = vpack.c.bf16 %v2631_v37, %v2630_v34  ;;  %v2229_v49 = vadd.f32 %v2207_v28, %v4601_v36  ;;  %v2210_v51 = vadd.f32 %v3540_v60, %v2209_v43  ;;  %v3579_v23 = vadd.f32 %v3578_v32, %v3577_v40  ;;  %v3580_v19 = vpop.f32.mrb[74].mxu1 }
 0x1a7   : > { %3306 = vst [vmem:[%s4641_s25 + $0x18] sm:$0xff] %v3282_v41   ;;  %v2620_v56 = vadd.f32 %v4627_v1, %v2231_v12  ;;  %v2232_v13 = vadd.f32 %v2218_v42, %v4610_v20  ;;  %v3581_v39 = vpop.f32.mrb[75].mxu1 }
 0x1a8   : > { %3305 = vst [vmem:[%s4641_s25 + $0x10] sm:$0xff] %v3277_v46   ;;  %v2618_v44 = vadd.f32 %v4627_v1, %v2229_v49  ;;  %v2230_v25 = vadd.f32 %v2210_v51, %v4604_v5  ;;  %v3582_v50 = vadd.f32 %v3581_v39, %v3580_v19 }
 0x1a9   : > { %v2621_v59 = vadd.f32 %v4627_v1, %v2232_v13  ;;  %v2636_v60 = vmax.f32 %v2620_v56, 0.0 }
 0x1aa   : > { %v2619_v36 = vadd.f32 %v4627_v1, %v2230_v25  ;;  %v2634_v16 = vmax.f32 %v2618_v44, 0.0 }
 0x1ab   : > { %v2637_v63 = vmax.f32 %v2621_v59, 0.0 }
 0x1ac   : > { %v2635_v0 = vmax.f32 %v2619_v36, 0.0  ;;  %v3583_v47 = vpop.f32.mrb[76].mxu1 }
 0x1ad   : > { %v3292_v4 = vpack.c.bf16 %v2637_v63, %v2636_v60  ;;  %v3584_v20 = vpop.f32.mrb[77].mxu1 }
 0x1ae   : > { %v3287_v61 = vpack.c.bf16 %v2635_v0, %v2634_v16  ;;  %v3585_v57 = vadd.f32 %v3584_v20, %v3583_v47  ;;  %v3586_v38 = vpop.f32.mrb[78].mxu1 }
 0x1af   : > { %3308 = vst [vmem:[%s4641_s25 + $0x28] sm:$0xff] %v3292_v4   ;;  %v3587_v7 = vpop.f32.mrb[79].mxu1 }
 0x1b0   : > { %3307 = vst [vmem:[%s4641_s25 + $0x20] sm:$0xff] %v3287_v61   ;;  %v3588_v5 = vadd.f32 %v3587_v7, %v3586_v38 }
 0x1b2   : > { %v3741_v54 = vpop.f32.mrb[76].mxu0 }
 0x1b3   : > { %v2573_v11 = vadd.f32 %v3741_v54, %v3585_v57  ;;  %v2564_v8 = vpop.f32.mrb[77].mxu0 }
 0x1b4   : > { %v2565_v48 = vadd.f32 %v3579_v23, %v2564_v8  ;;  %v3742_v3 = vpop.f32.mrb[78].mxu0 }
 0x1b5   : > { %v2581_v14 = vadd.f32 %v2573_v11, %v4619_v52  ;;  %v2576_v17 = vadd.f32 %v3742_v3, %v3588_v5  ;;  %v2567_v53 = vpop.f32.mrb[79].mxu0 }
 0x1b6   : > { %v2579_v58 = vadd.f32 %v2565_v48, %v4613_v35  ;;  %v2568_v6 = vadd.f32 %v3582_v50, %v2567_v53 }
 0x1b7   : > { %v2624_v21 = vadd.f32 %v4627_v1, %v2581_v14  ;;  %v2582_v45 = vadd.f32 %v2576_v17, %v4622_v2 }
 0x1b8   : > { %v2622_v18 = vadd.f32 %v4627_v1, %v2579_v58  ;;  %v2580_v10 = vadd.f32 %v2568_v6, %v4616_v55 }
 0x1b9   : > { %v2625_v9 = vadd.f32 %v4627_v1, %v2582_v45  ;;  %v2640_v52 = vmax.f32 %v2624_v21, 0.0 }
 0x1ba   : > { %v2623_v22 = vadd.f32 %v4627_v1, %v2580_v10  ;;  %v2638_v15 = vmax.f32 %v2622_v18, 0.0 }
 0x1bb   : > { %v2641_v24 = vmax.f32 %v2625_v9, 0.0 }
 0x1bc   : > { %v2639_v27 = vmax.f32 %v2623_v22, 0.0 }
 0x1bd   : > { %v3302_v30 = vpack.c.bf16 %v2641_v24, %v2640_v52 }
 0x1be   : > { %v3297_v26 = vpack.c.bf16 %v2639_v27, %v2638_v15 }
 0x1bf   : > { %3310 = vst [vmem:[%s4641_s25 + $0x38] sm:$0xff] %v3302_v30  }
 0x1c0   : > { %3309 = vst [vmem:[%s4641_s25 + $0x30] sm:$0xff] %v3297_v26  }
 0x1c1 PF: > { %s14_s17 = sadd.s32 1, %s3968_s17   ;;  %s4689_s15 = smov %s3964_s16 }
 0x1c2   : > { %p11_p5 = scmp.ge.s32.totalorder %s14_s17, 4   ;;  %s4690_s16 = smov %s4692_s18 }
 0x1c4   :  { %13 = sbr.rel (!%p11_p5) target bundleno = 2 (0x2), region = 71 }

// kernel: feature_extractor.15
= control target key start
LH: loop header
LB: loop body
LE: loop exit
PB: predicated region body
PF: predicated region fallthrough
CT: control target
= control target key end

     0   :  { %s3412_s15 = smov 0   ;;  %s3414_s16 = smov 0   ;;  %s4089_s0 = inlined_call_operand.vmem [shape: bf16[2,48,384], index: 0, kind: input, shape index: {}, may-alias: {0,1}]   ;;  %s4090_s1 = inlined_call_operand.vmem [shape: bf16[2,48,384], index: 1, kind: input, shape index: {}, may-alias: {0,1}]   ;;  %s4091_s2 = inlined_call_operand.vmem [shape: bf16[3,384,256], index: 2, kind: input, shape index: {}]   ;;  %s4092_s3 = inlined_call_operand.vmem [shape: f32[1,256], index: 3, kind: input, shape index: {}]   ;;  %s4093_s4 = inlined_call_operand.vmem [shape: bf16[2,32,256], index: 4, kind: output, shape index: {}]  }
   0x1   :  { %s3416_s17 = smov 0  }
   0x2 LB: > { %s26_s18 = sadd.s32 1, %s3380_s16  ;;  %p2592_p0 = scmp.ge.s32.totalorder %s3384_s17, 1  ;;  %s3384_s17 = sphi %s3416_s17, %s14_s17   ;;  %s3380_s16 = sphi %s3414_s16, %s4095_s16   ;;  %s3376_s15 = sphi %s3412_s15, %s4094_s15  }
   0x3   : > { %p28_p1 = scmp.ge.s32.totalorder %s26_s18, 2  ;;  %p220_p2 = scmp.lt.s32.totalorder %s3384_s17, 3 }
   0x5   : > { %s4097_s18 = smov (%p28_p1, %s26_s18), 0  ;;  %p221_p3 = pnand %p2592_p0, %p220_p2 }
   0x6   : > { %v3127_v0 = vld [vmem:[%s4091_s2 + $0x4] ss:$8 sps:$4 sm:$0xff] (!%p221_p3)   ;;  %p279_p4 = scmp.lt.s32.totalorder (!%p221_p3), %s3376_s15, 1  ;;  %v3386_v2 = vmov (!%p221_p3), 0   ;;  %v3131_v3 = vld [vmem:[%s4091_s2] ss:$8 sps:$4 sm:$0xff] (!%p221_p3)  }
   0x7   : > { %224 = sbr.rel (%p221_p3) target bundleno = 487 (0x1e7), region = 36  ;;  %v3129_v1 = vld [vmem:[%s4091_s2 + $0x104] ss:$8 sps:$4 sm:$0xff] (!%p221_p3)   ;;  %734 = vmatprep.mubr.bf16.mxu0 (!%p221_p3), %v3386_v2  ;;  %649 = vmatprep.subr.bf16.mxu1 (!%p221_p3), %v3127_v0  ;;  %v3132_v4 = vld [vmem:[%s4091_s2 + $0x100] ss:$8 sps:$4 sm:$0xff] (!%p221_p3)  }
   0x8   : > { %702 = vmatprep.subr.bf16.mxu0 (!%p221_p3), %v3129_v1  ;;  %v3133_v5 = vld [vmem:[%s4091_s2 + $0x14] ss:$8 sps:$4 sm:$0xff] (!%p221_p3)   ;;  %650 = vmatpush1.bf16.msra.mxu1 (!%p221_p3), %v3131_v3  ;;  %v3137_v7 = vld [vmem:[%s4091_s2 + $0x10] ss:$8 sps:$4 sm:$0xff] (!%p221_p3)   ;;  %v3139_v9 = vld [vmem:[%s4091_s2 + $0x24] ss:$8 sps:$4 sm:$0xff] (!%p221_p3)  }
   0x9   : > { %703 = vmatpush1.bf16.msra.mxu0 (!%p221_p3), %v3132_v4  ;;  %v3135_v6 = vld [vmem:[%s4091_s2 + $0x114] ss:$8 sps:$4 sm:$0xff] (!%p221_p3)   ;;  %651 = vmatprep.subr.bf16.mxu1 (!%p221_p3), %v3133_v5  ;;  %v3138_v8 = vld [vmem:[%s4091_s2 + $0x110] ss:$8 sps:$4 sm:$0xff] (!%p221_p3)   ;;  %v3141_v10 = vld [vmem:[%s4091_s2 + $0x124] ss:$8 sps:$4 sm:$0xff] (!%p221_p3)  }
   0xa   : > { %704 = vmatprep.subr.bf16.mxu0 (!%p221_p3), %v3135_v6  ;;  %v3143_v11 = vld [vmem:[%s4091_s2 + $0x20] ss:$8 sps:$4 sm:$0xff] (!%p221_p3)   ;;  %v3145_v13 = vld [vmem:[%s4091_s2 + $0x34] ss:$8 sps:$4 sm:$0xff] (!%p221_p3)   ;;  %v3149_v15 = vld [vmem:[%s4091_s2 + $0x30] ss:$8 sps:$4 sm:$0xff] (!%p221_p3)  }
   0xb   : > { %v3144_v12 = vld [vmem:[%s4091_s2 + $0x120] ss:$8 sps:$4 sm:$0xff] (!%p221_p3)   ;;  %v3147_v14 = vld [vmem:[%s4091_s2 + $0x134] ss:$8 sps:$4 sm:$0xff] (!%p221_p3)   ;;  %v3150_v16 = vld [vmem:[%s4091_s2 + $0x130] ss:$8 sps:$4 sm:$0xff] (!%p221_p3)  }
   0xc   : > { %652 = vmatpush1.bf16.msra.mxu1 (!%p221_p3), %v3137_v7  ;;  %v3151_v17 = vld [vmem:[%s4091_s2 + $0x44] ss:$8 sps:$4 sm:$0xff] (!%p221_p3)   ;;  %v3155_v19 = vld [vmem:[%s4091_s2 + $0x40] ss:$8 sps:$4 sm:$0xff] (!%p221_p3)   ;;  %v3157_v21 = vld [vmem:[%s4091_s2 + $0x54] ss:$8 sps:$4 sm:$0xff] (!%p221_p3)  }
   0xd   : > { %705 = vmatpush1.bf16.msra.mxu0 (!%p221_p3), %v3138_v8  ;;  %653 = vmatprep.subr.bf16.mxu1 (!%p221_p3), %v3139_v9  ;;  %v3153_v18 = vld [vmem:[%s4091_s2 + $0x144] ss:$8 sps:$4 sm:$0xff] (!%p221_p3)   ;;  %v3156_v20 = vld [vmem:[%s4091_s2 + $0x140] ss:$8 sps:$4 sm:$0xff] (!%p221_p3)   ;;  %v3159_v22 = vld [vmem:[%s4091_s2 + $0x154] ss:$8 sps:$4 sm:$0xff] (!%p221_p3)  }
   0xe   : > { %s4099_s15 = smov (!%p279_p4, %s3376_s15), 1  ;;  %706 = vmatprep.subr.bf16.mxu0 %v3141_v10  ;;  %v3161_v23 = vld [vmem:[%s4091_s2 + $0x50] ss:$8 sps:$4 sm:$0xff]   ;;  %v3163_v25 = vld [vmem:[%s4091_s2 + $0x64] ss:$8 sps:$4 sm:$0xff]  }
   0xf   : > { %s3099_s21 = smul.u32 72, %s4099_s15  ;;  %v3162_v24 = vld [vmem:[%s4091_s2 + $0x150] ss:$8 sps:$4 sm:$0xff]   ;;  %v3165_v26 = vld [vmem:[%s4091_s2 + $0x164] ss:$8 sps:$4 sm:$0xff]   ;;  %s3058_s29 = sshll.u32 %s4099_s15, 5 }
  0x10   : > { %654 = vmatpush1.bf16.msra.mxu1 %v3143_v11  ;;  %v3167_v27 = vld [vmem:[%s4091_s2 + $0x60] ss:$8 sps:$4 sm:$0xff]   ;;  %v3169_v29 = vld [vmem:[%s4091_s2 + $0x74] ss:$8 sps:$4 sm:$0xff]   ;;  %v3173_v31 = vld [vmem:[%s4091_s2 + $0x70] ss:$8 sps:$4 sm:$0xff]  }
  0x11   : > { %707 = vmatpush1.bf16.msra.mxu0 %v3144_v12  ;;  %655 = vmatprep.subr.bf16.mxu1 %v3145_v13  ;;  %v3168_v28 = vld [vmem:[%s4091_s2 + $0x160] ss:$8 sps:$4 sm:$0xff]   ;;  %s3523_s8 = scalar_lea.vmem %s4089_s0, %s3099_s21  ;;  %v3171_v30 = vld [vmem:[%s4091_s2 + $0x174] ss:$8 sps:$4 sm:$0xff]   ;;  %v3174_v32 = vld [vmem:[%s4091_s2 + $0x170] ss:$8 sps:$4 sm:$0xff]  }
  0x12   : > { %708 = vmatprep.subr.bf16.mxu0 %v3147_v14  ;;  %v3175_v33 = vld [vmem:[%s4091_s2 + $0x84] ss:$8 sps:$4 sm:$0xff]   ;;  %v3181_v35 = vld [vmem:[%s3523_s8 + $0x8] ss:$12 sps:$4 sm:$0xff]   ;;  %v3566_v40 = vld [vmem:[%s4091_s2 + $0x190] ss:$8 sps:$4 sm:$0xff]  }
  0x13   : > { %v3543_v34 = vld [vmem:[%s4091_s2 + $0x184] ss:$8 sps:$4 sm:$0xff]   ;;  %v3549_v36 = vld [vmem:[%s4091_s2 + $0x180] ss:$8 sps:$4 sm:$0xff]   ;;  %v3182_v38 = vld [vmem:[%s4091_s2 + $0x94] ss:$8 sps:$4 sm:$0xff]  }
  0x14   : > { %656 = vmatpush1.bf16.msra.mxu1 %v3149_v15  ;;  %v3180_v37 = vld [vmem:[%s4091_s2 + $0x80] ss:$8 sps:$4 sm:$0xff]   ;;  %v3561_v39 = vld [vmem:[%s4091_s2 + $0x194] ss:$8 sps:$4 sm:$0xff]   ;;  %v3187_v41 = vld [vmem:[%s4091_s2 + $0x90] ss:$8 sps:$4 sm:$0xff]  }
  0x15   : > { %709 = vmatpush1.bf16.msra.mxu0 %v3150_v16  ;;  %657 = vmatprep.subr.bf16.mxu1 %v3151_v17  ;;  %v3188_v42 = vld [vmem:[%s4091_s2 + $0xa4] ss:$8 sps:$4 sm:$0xff]   ;;  %v3586_v44 = vld [vmem:[%s4091_s2 + $0x1a0] ss:$8 sps:$4 sm:$0xff]   ;;  %v3194_v46 = vld [vmem:[%s4091_s2 + $0xb4] ss:$8 sps:$4 sm:$0xff]  }
  0x16   : > { %710 = vmatprep.subr.bf16.mxu0 %v3153_v18  ;;  %v3579_v43 = vld [vmem:[%s4091_s2 + $0x1a4] ss:$8 sps:$4 sm:$0xff]   ;;  %v3193_v45 = vld [vmem:[%s4091_s2 + $0xa0] ss:$8 sps:$4 sm:$0xff]   ;;  %v3598_v47 = vld [vmem:[%s4091_s2 + $0x1b4] ss:$8 sps:$4 sm:$0xff]  }
  0x17   : > { %v3603_v48 = vld [vmem:[%s4091_s2 + $0x1b0] ss:$8 sps:$4 sm:$0xff]   ;;  %v321_v50 = vld [vmem:[%s3523_s8] sm:$0xff]  ;;  %v3206_v57 = vld [vmem:[%s4091_s2 + $0xd4] ss:$8 sps:$4 sm:$0xff]   ;;  %s3057_s6 = sadd.s32 48, %s3099_s21 }
  0x18   : > { %658 = vmatpush1.bf16.msra.mxu1 %v3155_v19  ;;  %v3199_v49 = vld [vmem:[%s4091_s2 + $0xb0] ss:$8 sps:$4 sm:$0xff]   ;;  %v3200_v52 = vld [vmem:[%s4091_s2 + $0xc4] ss:$8 sps:$4 sm:$0xff]   ;;  %v3626_v55 = vld [vmem:[%s4091_s2 + $0x1c0] ss:$8 sps:$4 sm:$0xff]   ;;  %s3731_s12 = scalar_lea.vmem %s4090_s1, %s3057_s6  ;;  %s318_s6 = scalar_lea.vmem %s4093_s4, %s3058_s29 }
  0x19   : > { %711 = vmatpush1.bf16.msra.mxu0 %v3156_v20  ;;  %659 = vmatprep.subr.bf16.mxu1 %v3157_v21  ;;  %v3611_v51 = vld [vmem:[%s3523_s8 + $0xc] sm:$0xff]  ;;  %v3205_v56 = vld [vmem:[%s4091_s2 + $0xc0] ss:$8 sps:$4 sm:$0xff]   ;;  %v3639_v58 = vld [vmem:[%s4091_s2 + $0x1d4] ss:$8 sps:$4 sm:$0xff]  }
  0x1a   : > { %712 = vmatprep.subr.bf16.mxu0 %v3159_v22  ;;  %v3620_v53 = vld [vmem:[%s4091_s2 + $0x1c4] ss:$8 sps:$4 sm:$0xff]   ;;  %v2598_v54 = vcombine.high %v321_v50, %v3611_v51  ;;  %v3644_v59 = vld [vmem:[%s4091_s2 + $0x1d0] ss:$8 sps:$4 sm:$0xff]   ;;  %v3663_v0 = vld [vmem:[%s4091_s2 + $0x1e0] ss:$8 sps:$4 sm:$0xff]   ;;  %v2597_v10 = vcombine.low %v321_v50, %v3611_v51 }
  0x1b   : > { %v3211_v60 = vld [vmem:[%s4091_s2 + $0xd0] ss:$8 sps:$4 sm:$0xff]   ;;  %v3212_v61 = vld [vmem:[%s4091_s2 + $0xe4] ss:$8 sps:$4 sm:$0xff]   ;;  %v3217_v1 = vld [vmem:[%s4091_s2 + $0xe0] ss:$8 sps:$4 sm:$0xff]  }
  0x1c   : > { %660 = vmatpush1.bf16.msra.mxu1 %v3161_v23  ;;  %681 = vmatprep.mubr.bf16.mxu1 %v2598_v54  ;;  %v3657_v62 = vld [vmem:[%s4091_s2 + $0x1e4] ss:$8 sps:$4 sm:$0xff]   ;;  %v3670_v3 = vld [vmem:[%s3523_s8 + $0x18] sm:$0xff]  ;;  %v3703_v11 = vld [vmem:[%s4091_s2 + $0x200] ss:$8 sps:$4 sm:$0xff]  }
  0x1d   : > { %713 = vmatpush1.bf16.msra.mxu0 %v3162_v24  ;;  %661 = vmatprep.subr.bf16.mxu1 %v3163_v25  ;;  %v3247_v63 = vld [vmem:[%s3523_s8 + $0x20] ss:$12 sps:$4 sm:$0xff]   ;;  %v3218_v4 = vld [vmem:[%s4091_s2 + $0xf4] ss:$8 sps:$4 sm:$0xff]   ;;  %v2700_v6 = vcombine.high %v3611_v51, %v3670_v3  ;;  %v3686_v7 = vld [vmem:[%s4091_s2 + $0x1f0] ss:$8 sps:$4 sm:$0xff]  }
  0x1e   : > { %714 = vmatprep.subr.bf16.mxu0 %v3165_v26  ;;  %v3679_v5 = vld [vmem:[%s4091_s2 + $0x1f4] ss:$8 sps:$4 sm:$0xff]   ;;  %v3223_v8 = vld [vmem:[%s4091_s2 + $0xf0] ss:$8 sps:$4 sm:$0xff]   ;;  %v3696_v9 = vld [vmem:[%s4091_s2 + $0x204] ss:$8 sps:$4 sm:$0xff]  }
  0x1f   : > { %v3706_v12 = vld [vmem:[%s3523_s8 + $0x24] sm:$0xff]  ;;  %v3713_v13 = vld [vmem:[%s4091_s2 + $0x214] ss:$8 sps:$4 sm:$0xff]   ;;  %v3726_v15 = vld [vmem:[%s4091_s2 + $0x210] ss:$8 sps:$4 sm:$0xff]  }
  0x20   : > { %662 = vmatpush1.bf16.msra.mxu1 %v3167_v27  ;;  %v3719_v14 = vcombine.high %v3670_v3, %v3706_v12  ;;  %v3738_v16 = vld [vmem:[%s4091_s2 + $0x224] ss:$8 sps:$4 sm:$0xff]   ;;  %v3743_v17 = vcombine.low %v3670_v3, %v3706_v12  ;;  %v3753_v19 = vld [vmem:[%s4091_s2 + $0x220] ss:$8 sps:$4 sm:$0xff]   ;;  %v3760_v20 = vld [vmem:[%s4091_s2 + $0x234] ss:$8 sps:$4 sm:$0xff]  }
  0x21   : > { %715 = vmatpush1.bf16.msra.mxu0 %v3168_v28  ;;  %663 = vmatprep.subr.bf16.mxu1 %v3169_v29  ;;  %v3746_v18 = vld [vmem:[%s3731_s12] sm:$0xff]  ;;  %v3770_v22 = vld [vmem:[%s4091_s2 + $0x230] ss:$8 sps:$4 sm:$0xff]   ;;  %v3243_v25 = vld [vmem:[%s4091_s2 + $0x254] ss:$8 sps:$4 sm:$0xff]  }
  0x22   : > { %716 = vmatprep.subr.bf16.mxu0 %v3171_v30  ;;  %v2802_v21 = vcombine.high %v3746_v18, %v3746_v18  ;;  %v3777_v23 = vld [vmem:[%s4091_s2 + $0x244] ss:$8 sps:$4 sm:$0xff]   ;;  %v3238_v24 = vld [vmem:[%s4091_s2 + $0x240] ss:$8 sps:$4 sm:$0xff]   ;;  %v3241_v26 = vld [vmem:[%s4091_s2 + $0x250] ss:$8 sps:$4 sm:$0xff]  }
  0x23   : > { %v3246_v27 = vld [vmem:[%s4091_s2 + $0x264] ss:$8 sps:$4 sm:$0xff]   ;;  %v3244_v28 = vld [vmem:[%s4091_s2 + $0x260] ss:$8 sps:$4 sm:$0xff]   ;;  %v3250_v29 = vld [vmem:[%s4091_s2 + $0x274] ss:$8 sps:$4 sm:$0xff]  }
  0x24   : > { %664 = vmatpush1.bf16.msra.mxu1 %v3173_v31  ;;  %v3809_v30 = vld [vmem:[%s4091_s2 + $0x270] ss:$8 sps:$4 sm:$0xff]   ;;  %v3815_v31 = vld [vmem:[%s4091_s2 + $0x284] ss:$8 sps:$4 sm:$0xff]   ;;  %v3275_v50 = vld [vmem:[%s4091_s2 + $0x2e0] ss:$8 sps:$4 sm:$0xff]  }
  0x25   : > { %717 = vmatpush1.bf16.msra.mxu0 %v3174_v32  ;;  %665 = vmatprep.subr.bf16.mxu1 %v3175_v33  ;;  %v2699_v32 = vcombine.low %v3611_v51, %v3670_v3  ;;  %v3824_v33 = vld [vmem:[%s4091_s2 + $0x280] ss:$8 sps:$4 sm:$0xff]   ;;  %v3280_v51 = vld [vmem:[%s4091_s2 + $0x2f4] ss:$8 sps:$4 sm:$0xff]  }
  0x26   : > { %1091 = vmatprep.subr.bf16.mxu0 %v3543_v34  ;;  %v3281_v54 = vld [vmem:[%s3523_s8 + $0x14] ss:$12 sps:$4 sm:$0xff]  }
  0x27   : > { %v3302_v3 = vld [vmem:[%s4091_s2 + $0x354] ss:$8 sps:$4 sm:$0xff]  }
  0x28   : > { %735 = vmatmul.mubr.bf16.vlgmr.msra.gmra.mrb[0].mxu0 %v3181_v35  ;;  %666 = vmatpush1.bf16.msra.mxu1 %v3180_v37  ;;  %v2703_v35 = vcombine.high %v3706_v12, %v3706_v12  ;;  %v3847_v37 = vld [vmem:[%s4091_s2 + $0x2a4] ss:$8 sps:$4 sm:$0xff]  }
  0x29   : > { %1092 = vmatpush1.bf16.msra.mxu0 %v3549_v36  ;;  %667 = vmatprep.subr.bf16.mxu1 %v3182_v38  ;;  %v2702_v38 = vcombine.low %v3706_v12, %v3706_v12  ;;  %v3315_v12 = vld [vmem:[%s4091_s2 + $0x394] ss:$8 sps:$4 sm:$0xff]  }
  0x2a   : > { %1093 = vmatprep.subr.bf16.mxu0 %v3561_v39  ;;  %744 = vmatprep.mubr.bf16.mxu0 %v3386_v2 }
  0x2c   : > { %668 = vmatpush1.bf16.msra.mxu1 %v3187_v41 }
  0x2d   : > { %1094 = vmatpush1.bf16.msra.mxu0 %v3566_v40  ;;  %669 = vmatprep.subr.bf16.mxu1 %v3188_v42 }
  0x2e   : > { %1095 = vmatprep.subr.bf16.mxu0 %v3579_v43 }
  0x30   : > { %670 = vmatpush1.bf16.msra.mxu1 %v3193_v45  ;;  %745 = vmatmul.mubr.bf16.gmra.mrb[4].mxu0 %v3247_v63  ;;  %v3267_v45 = vld [vmem:[%s4091_s2 + $0x2c4] ss:$8 sps:$4 sm:$0xff]   ;;  %v3294_v63 = vld [vmem:[%s4091_s2 + $0x330] ss:$8 sps:$4 sm:$0xff]  }
  0x31   : > { %1096 = vmatpush1.bf16.msra.mxu0 %v3586_v44  ;;  %671 = vmatprep.subr.bf16.mxu1 %v3194_v46  ;;  %v3265_v46 = vld [vmem:[%s4091_s2 + $0x2c0] ss:$8 sps:$4 sm:$0xff]  }
  0x32   : > { %1097 = vmatprep.subr.bf16.mxu0 %v3598_v47  ;;  %1123 = vmatprep.mubr.bf16.mxu0 %v2700_v6  ;;  %v3303_v6 = vld [vmem:[%s4091_s2 + $0x360] ss:$8 sps:$4 sm:$0xff]  }
  0x34   : > { %672 = vmatpush1.bf16.msra.mxu1 %v3199_v49  ;;  %v3277_v49 = vld [vmem:[%s4091_s2 + $0x2e4] ss:$8 sps:$4 sm:$0xff]  }
  0x35   : > { %1098 = vmatpush1.bf16.msra.mxu0 %v3603_v48  ;;  %673 = vmatprep.subr.bf16.mxu1 %v3200_v52  ;;  %v3278_v52 = vld [vmem:[%s4091_s2 + $0x2f0] ss:$8 sps:$4 sm:$0xff]  }
  0x36   : > { %1099 = vmatprep.subr.bf16.mxu0 %v3620_v53 }
  0x38   : > { %674 = vmatpush1.bf16.msra.mxu1 %v3205_v56  ;;  %v3284_v56 = vld [vmem:[%s4091_s2 + $0x300] ss:$8 sps:$4 sm:$0xff]  }
  0x39   : > { %1100 = vmatpush1.bf16.msra.mxu0 %v3626_v55  ;;  %675 = vmatprep.subr.bf16.mxu1 %v3206_v57  ;;  %v3289_v57 = vld [vmem:[%s4091_s2 + $0x314] ss:$8 sps:$4 sm:$0xff]  }
  0x3a   : > { %1101 = vmatprep.subr.bf16.mxu0 %v3639_v58 }
  0x3c   : > { %676 = vmatpush1.bf16.msra.mxu1 %v3211_v60  ;;  %v3290_v60 = vld [vmem:[%s3523_s8 + $0x2c] ss:$0 sps:$4 sm:$0xff]  }
  0x3d   : > { %1102 = vmatpush1.bf16.msra.mxu0 %v3644_v59  ;;  %677 = vmatprep.subr.bf16.mxu1 %v3212_v61  ;;  %v3291_v61 = vld [vmem:[%s4091_s2 + $0x320] ss:$8 sps:$4 sm:$0xff]  }
  0x3e   : > { %1103 = vmatprep.subr.bf16.mxu0 %v3657_v62 }
  0x40   : > { %678 = vmatpush1.bf16.msra.mxu1 %v3217_v1  ;;  %v3297_v1 = vld [vmem:[%s4091_s2 + $0x340] ss:$8 sps:$4 sm:$0xff]  }
  0x41   : > { %1104 = vmatpush1.bf16.msra.mxu0 %v3663_v0  ;;  %679 = vmatprep.subr.bf16.mxu1 %v3218_v4  ;;  %v3300_v4 = vld [vmem:[%s4091_s2 + $0x350] ss:$8 sps:$4 sm:$0xff]  }
  0x42   : > { %1105 = vmatprep.subr.bf16.mxu0 %v3679_v5 }
  0x44   : > { %680 = vmatpush1.bf16.msra.mxu1 %v3223_v8  ;;  %v3306_v8 = vld [vmem:[%s4091_s2 + $0x370] ss:$8 sps:$4 sm:$0xff]  }
  0x45   : > { %1106 = vmatpush1.bf16.msra.mxu0 %v3686_v7  ;;  %1508 = vmatprep.subr.bf16.mxu1 %v3543_v34  ;;  %v3831_v34 = vld [vmem:[%s4091_s2 + $0x294] ss:$8 sps:$4 sm:$0xff]  }
  0x46   : > { %1107 = vmatprep.subr.bf16.mxu0 %v3696_v9 }
  0x47   : > { %682 = vmatmul.mubr.bf16.vlgmr.msra.gmra.mrb[0].mxu1 %v2597_v10  ;;  %v3309_v10 = vld [vmem:[%s3731_s12 + $0x8] ss:$0 sps:$4 sm:$0xff]  }
  0x48   : > { %1509 = vmatpush1.bf16.msra.mxu1 %v3549_v36  ;;  %691 = vmatprep.mubr.bf16.mxu1 %v3719_v14  ;;  %v3840_v36 = vld [vmem:[%s4091_s2 + $0x290] ss:$8 sps:$4 sm:$0xff]  }
  0x49   : > { %1108 = vmatpush1.bf16.msra.mxu0 %v3703_v11  ;;  %1510 = vmatprep.subr.bf16.mxu1 %v3561_v39  ;;  %v3852_v39 = vld [vmem:[%s3731_s12 + $0xc] sm:$0xff] }
  0x4a   : > { %1109 = vmatprep.subr.bf16.mxu0 %v3713_v13  ;;  %v2999_v41 = vcombine.low %v3746_v18, %v3852_v39  ;;  %v3000_v42 = vcombine.high %v3746_v18, %v3852_v39 }
  0x4c   : > { %1511 = vmatpush1.bf16.msra.mxu1 %v3566_v40  ;;  %v3859_v40 = vld [vmem:[%s4091_s2 + $0x2a0] ss:$8 sps:$4 sm:$0xff]  }
  0x4d   : > { %1110 = vmatpush1.bf16.msra.mxu0 %v3726_v15  ;;  %1512 = vmatprep.subr.bf16.mxu1 %v3579_v43  ;;  %v3264_v43 = vld [vmem:[%s4091_s2 + $0x2b4] ss:$8 sps:$4 sm:$0xff]  }
  0x4e   : > { %1111 = vmatprep.subr.bf16.mxu0 %v3738_v16 }
  0x4f   : > { %692 = vmatmul.mubr.bf16.gmra.mrb[4].mxu1 %v3743_v17 }
  0x50   : > { %1513 = vmatpush1.bf16.msra.mxu1 %v3586_v44  ;;  %1540 = vmatprep.mubr.bf16.mxu1 %v2802_v21  ;;  %v3262_v44 = vld [vmem:[%s4091_s2 + $0x2b0] ss:$8 sps:$4 sm:$0xff]   ;;  %v3322_v21 = vld [vmem:[%s4091_s2 + $0x3c0] ss:$8 sps:$4 sm:$0xff]  }
  0x51   : > { %1112 = vmatpush1.bf16.msra.mxu0 %v3753_v19  ;;  %1514 = vmatprep.subr.bf16.mxu1 %v3598_v47  ;;  %v3270_v47 = vld [vmem:[%s4091_s2 + $0x2d4] ss:$8 sps:$4 sm:$0xff]  }
  0x52   : > { %1113 = vmatprep.subr.bf16.mxu0 %v3760_v20 }
  0x54   : > { %1515 = vmatpush1.bf16.msra.mxu1 %v3603_v48  ;;  %v3268_v48 = vld [vmem:[%s4091_s2 + $0x2d0] ss:$8 sps:$4 sm:$0xff]  }
  0x55   : > { %1114 = vmatpush1.bf16.msra.mxu0 %v3770_v22  ;;  %1516 = vmatprep.subr.bf16.mxu1 %v3620_v53  ;;  %v3286_v53 = vld [vmem:[%s4091_s2 + $0x304] ss:$8 sps:$4 sm:$0xff]  }
  0x56   : > { %1115 = vmatprep.subr.bf16.mxu0 %v3777_v23 }
  0x58   : > { %1517 = vmatpush1.bf16.msra.mxu1 %v3626_v55  ;;  %v2801_v55 = vcombine.low %v3746_v18, %v3746_v18 }
  0x59   : > { %1116 = vmatpush1.bf16.msra.mxu0 %v3238_v24  ;;  %1518 = vmatprep.subr.bf16.mxu1 %v3639_v58  ;;  %v3287_v58 = vld [vmem:[%s4091_s2 + $0x310] ss:$8 sps:$4 sm:$0xff]  }
  0x5a   : > { %1117 = vmatprep.subr.bf16.mxu0 %v3243_v25 }
  0x5c   : > { %1519 = vmatpush1.bf16.msra.mxu1 %v3644_v59  ;;  %v3293_v59 = vld [vmem:[%s4091_s2 + $0x324] ss:$8 sps:$4 sm:$0xff]  }
  0x5d   : > { %1118 = vmatpush1.bf16.msra.mxu0 %v3241_v26  ;;  %1520 = vmatprep.subr.bf16.mxu1 %v3657_v62  ;;  %v3296_v62 = vld [vmem:[%s4091_s2 + $0x334] ss:$8 sps:$4 sm:$0xff]  }
  0x5e   : > { %1119 = vmatprep.subr.bf16.mxu0 %v3246_v27 }
  0x60   : > { %1521 = vmatpush1.bf16.msra.mxu1 %v3663_v0  ;;  %v3299_v0 = vld [vmem:[%s4091_s2 + $0x344] ss:$8 sps:$4 sm:$0xff]  }
  0x61   : > { %1120 = vmatpush1.bf16.msra.mxu0 %v3244_v28  ;;  %1522 = vmatprep.subr.bf16.mxu1 %v3679_v5  ;;  %v3305_v5 = vld [vmem:[%s4091_s2 + $0x364] ss:$8 sps:$4 sm:$0xff]  }
  0x62   : > { %1121 = vmatprep.subr.bf16.mxu0 %v3250_v29 }
  0x64   : > { %1523 = vmatpush1.bf16.msra.mxu1 %v3686_v7  ;;  %v3308_v7 = vld [vmem:[%s4091_s2 + $0x374] ss:$8 sps:$4 sm:$0xff]  }
  0x65   : > { %1122 = vmatpush1.bf16.msra.mxu0 %v3809_v30  ;;  %1524 = vmatprep.subr.bf16.mxu1 %v3696_v9  ;;  %v3312_v9 = vld [vmem:[%s4091_s2 + $0x384] ss:$8 sps:$4 sm:$0xff]  }
  0x66   : > { %1142 = vmatprep.subr.bf16.mxu0 %v3815_v31 }
  0x68   : > { %1124 = vmatmul.mubr.bf16.vlgmr.msra.gmra.mrb[0].mxu0 %v2699_v32  ;;  %1525 = vmatpush1.bf16.msra.mxu1 %v3703_v11  ;;  %v3310_v11 = vld [vmem:[%s4091_s2 + $0x380] ss:$8 sps:$4 sm:$0xff]   ;;  %v3342_v32 = vld [vmem:[%s4091_s2 + $0x424] ss:$8 sps:$4 sm:$0xff]  }
  0x69   : > { %1143 = vmatpush1.bf16.msra.mxu0 %v3824_v33  ;;  %1526 = vmatprep.subr.bf16.mxu1 %v3713_v13  ;;  %v3313_v13 = vld [vmem:[%s4091_s2 + $0x390] ss:$8 sps:$4 sm:$0xff]  }
  0x6a   : > { %1144 = vmatprep.subr.bf16.mxu0 %v3831_v34  ;;  %1133 = vmatprep.mubr.bf16.mxu0 %v2703_v35  ;;  %v3348_v35 = vld [vmem:[%s4091_s2 + $0x444] ss:$8 sps:$4 sm:$0xff]  }
  0x6c   : > { %1527 = vmatpush1.bf16.msra.mxu1 %v3726_v15  ;;  %v3316_v15 = vld [vmem:[%s4091_s2 + $0x3a0] ss:$8 sps:$4 sm:$0xff]  }
  0x6d   : > { %1145 = vmatpush1.bf16.msra.mxu0 %v3840_v36  ;;  %1528 = vmatprep.subr.bf16.mxu1 %v3738_v16  ;;  %v3321_v16 = vld [vmem:[%s4091_s2 + $0x3b4] ss:$8 sps:$4 sm:$0xff]  }
  0x6e   : > { %1146 = vmatprep.subr.bf16.mxu0 %v3847_v37 }
  0x70   : > { %1134 = vmatmul.mubr.bf16.gmra.mrb[8].mxu0 %v2702_v38  ;;  %1529 = vmatpush1.bf16.msra.mxu1 %v3753_v19  ;;  %v3319_v19 = vld [vmem:[%s4091_s2 + $0x3b0] ss:$8 sps:$4 sm:$0xff]  }
  0x71   : > { %1147 = vmatpush1.bf16.msra.mxu0 %v3859_v40  ;;  %1530 = vmatprep.subr.bf16.mxu1 %v3760_v20  ;;  %v3324_v20 = vld [vmem:[%s4091_s2 + $0x3c4] ss:$8 sps:$4 sm:$0xff]   ;;  %v3349_v38 = vld [vmem:[%s4091_s2 + $0x450] ss:$8 sps:$4 sm:$0xff]  }
  0x72   : > { %1148 = vmatprep.subr.bf16.mxu0 %v3264_v43  ;;  %1174 = vmatprep.mubr.bf16.mxu0 %v3386_v2 }
  0x74   : > { %1531 = vmatpush1.bf16.msra.mxu1 %v3770_v22  ;;  %v3327_v22 = vld [vmem:[%s4091_s2 + $0x3d4] ss:$8 sps:$4 sm:$0xff]  }
  0x75   : > { %1149 = vmatpush1.bf16.msra.mxu0 %v3262_v44  ;;  %1532 = vmatprep.subr.bf16.mxu1 %v3777_v23  ;;  %v3325_v23 = vld [vmem:[%s4091_s2 + $0x3d0] ss:$8 sps:$4 sm:$0xff]  }
  0x76   : > { %1150 = vmatprep.subr.bf16.mxu0 %v3267_v45 }
  0x78   : > { %1533 = vmatpush1.bf16.msra.mxu1 %v3238_v24  ;;  %v3330_v24 = vld [vmem:[%s4091_s2 + $0x3e4] ss:$8 sps:$4 sm:$0xff]  }
  0x79   : > { %1151 = vmatpush1.bf16.msra.mxu0 %v3265_v46  ;;  %1534 = vmatprep.subr.bf16.mxu1 %v3243_v25  ;;  %v3328_v25 = vld [vmem:[%s4091_s2 + $0x3e0] ss:$8 sps:$4 sm:$0xff]  }
  0x7a   : > { %1152 = vmatprep.subr.bf16.mxu0 %v3270_v47 }
  0x7c   : > { %1535 = vmatpush1.bf16.msra.mxu1 %v3241_v26  ;;  %v3333_v26 = vld [vmem:[%s4091_s2 + $0x3f4] ss:$8 sps:$4 sm:$0xff]  }
  0x7d   : > { %1153 = vmatpush1.bf16.msra.mxu0 %v3268_v48  ;;  %1536 = vmatprep.subr.bf16.mxu1 %v3246_v27  ;;  %v3331_v27 = vld [vmem:[%s4091_s2 + $0x3f0] ss:$8 sps:$4 sm:$0xff]  }
  0x7e   : > { %1154 = vmatprep.subr.bf16.mxu0 %v3277_v49 }
  0x80   : > { %1537 = vmatpush1.bf16.msra.mxu1 %v3244_v28  ;;  %v3336_v28 = vld [vmem:[%s4091_s2 + $0x404] ss:$8 sps:$4 sm:$0xff]  }
  0x81   : > { %1155 = vmatpush1.bf16.msra.mxu0 %v3275_v50  ;;  %1538 = vmatprep.subr.bf16.mxu1 %v3250_v29  ;;  %v3334_v29 = vld [vmem:[%s4091_s2 + $0x400] ss:$8 sps:$4 sm:$0xff]  }
  0x82   : > { %1156 = vmatprep.subr.bf16.mxu0 %v3280_v51 }
  0x84   : > { %1539 = vmatpush1.bf16.msra.mxu1 %v3809_v30  ;;  %v3339_v30 = vld [vmem:[%s4091_s2 + $0x414] ss:$8 sps:$4 sm:$0xff]  }
  0x85   : > { %1157 = vmatpush1.bf16.msra.mxu0 %v3278_v52  ;;  %1549 = vmatprep.subr.bf16.mxu1 %v3815_v31  ;;  %v3337_v31 = vld [vmem:[%s4091_s2 + $0x410] ss:$8 sps:$4 sm:$0xff]  }
  0x86   : > { %1907 = vmatprep.subr.bf16.mxu0 %v3286_v53 }
  0x87   : > { %1541 = vmatmul.mubr.bf16.vlgmr.msra.gmra.mrb[8].mxu1 %v2801_v55 }
  0x88   : > { %1175 = vmatmul.mubr.bf16.vlgmr.msra.gmra.mrb[0].mxu0 %v3281_v54  ;;  %1550 = vmatpush1.bf16.msra.mxu1 %v3824_v33  ;;  %v3345_v33 = vld [vmem:[%s4091_s2 + $0x434] ss:$8 sps:$4 sm:$0xff]  }
  0x89   : > { %1908 = vmatpush1.bf16.msra.mxu0 %v3284_v56  ;;  %1551 = vmatprep.subr.bf16.mxu1 %v3831_v34  ;;  %v3343_v34 = vld [vmem:[%s4091_s2 + $0x430] ss:$8 sps:$4 sm:$0xff]  }
  0x8a   : > { %1909 = vmatprep.subr.bf16.mxu0 %v3289_v57  ;;  %1184 = vmatprep.mubr.bf16.mxu0 %v3386_v2 }
  0x8b   : > { %1581 = vmatprep.mubr.bf16.mxu1 %v3386_v2 }
  0x8c   : > { %1552 = vmatpush1.bf16.msra.mxu1 %v3840_v36  ;;  %v3346_v36 = vld [vmem:[%s4091_s2 + $0x440] ss:$8 sps:$4 sm:$0xff]  }
  0x8d   : > { %1910 = vmatpush1.bf16.msra.mxu0 %v3287_v58  ;;  %1553 = vmatprep.subr.bf16.mxu1 %v3847_v37  ;;  %v3351_v37 = vld [vmem:[%s4091_s2 + $0x454] ss:$8 sps:$4 sm:$0xff]  }
  0x8e   : > { %1911 = vmatprep.subr.bf16.mxu0 %v3293_v59 }
  0x90   : > { %1185 = vmatmul.mubr.bf16.gmra.mrb[8].mxu0 %v3290_v60  ;;  %1554 = vmatpush1.bf16.msra.mxu1 %v3859_v40  ;;  %v3354_v40 = vld [vmem:[%s4091_s2 + $0x464] ss:$8 sps:$4 sm:$0xff]  }
  0x91   : > { %1912 = vmatpush1.bf16.msra.mxu0 %v3291_v61  ;;  %1555 = vmatprep.subr.bf16.mxu1 %v3264_v43  ;;  %v3357_v43 = vld [vmem:[%s4091_s2 + $0x474] ss:$8 sps:$4 sm:$0xff]  }
  0x92   : > { %1913 = vmatprep.subr.bf16.mxu0 %v3296_v62  ;;  %1939 = vmatprep.mubr.bf16.mxu0 %v3719_v14  ;;  %v3318_v14 = vld [vmem:[%s4091_s2 + $0x3a4] ss:$8 sps:$4 sm:$0xff]  }
  0x94   : > { %1556 = vmatpush1.bf16.msra.mxu1 %v3262_v44  ;;  %v3355_v44 = vld [vmem:[%s4091_s2 + $0x470] ss:$8 sps:$4 sm:$0xff]  }
  0x95   : > { %1914 = vmatpush1.bf16.msra.mxu0 %v3294_v63  ;;  %1557 = vmatprep.subr.bf16.mxu1 %v3267_v45  ;;  %v3358_v45 = vld [vmem:[%s3523_s8 + $0x20] ss:$12 sps:$4 sm:$0xff]  }
  0x96   : > { %1915 = vmatprep.subr.bf16.mxu0 %v3299_v0 }
  0x98   : > { %1558 = vmatpush1.bf16.msra.mxu1 %v3265_v46  ;;  %v3361_v46 = vld [vmem:[%s3731_s12 + $0x8] ss:$12 sps:$4 sm:$0xff]  }
  0x99   : > { %1916 = vmatpush1.bf16.msra.mxu0 %v3297_v1  ;;  %1559 = vmatprep.subr.bf16.mxu1 %v3270_v47 }
  0x9a   : > { %1917 = vmatprep.subr.bf16.mxu0 %v3302_v3 }
  0x9c   : > { %1560 = vmatpush1.bf16.msra.mxu1 %v3268_v48 }
  0x9d   : > { %1918 = vmatpush1.bf16.msra.mxu0 %v3300_v4  ;;  %1561 = vmatprep.subr.bf16.mxu1 %v3277_v49 }
  0x9e   : > { %1919 = vmatprep.subr.bf16.mxu0 %v3305_v5 }
  0xa0   : > { %1562 = vmatpush1.bf16.msra.mxu1 %v3275_v50 }
  0xa1   : > { %1920 = vmatpush1.bf16.msra.mxu0 %v3303_v6  ;;  %1563 = vmatprep.subr.bf16.mxu1 %v3280_v51 }
  0xa2   : > { %1921 = vmatprep.subr.bf16.mxu0 %v3308_v7 }
  0xa4   : > { %1564 = vmatpush1.bf16.msra.mxu1 %v3278_v52 }
  0xa5   : > { %1922 = vmatpush1.bf16.msra.mxu0 %v3306_v8  ;;  %2313 = vmatprep.subr.bf16.mxu1 %v3286_v53 }
  0xa6   : > { %1923 = vmatprep.subr.bf16.mxu0 %v3312_v9 }
  0xa7   : > { %1582 = vmatmul.mubr.bf16.vlgmr.msra.gmra.mrb[8].mxu1 %v3309_v10 }
  0xa8   : > { %2314 = vmatpush1.bf16.msra.mxu1 %v3284_v56  ;;  %2345 = vmatprep.mubr.bf16.mxu1 %v3000_v42  ;;  %v3352_v42 = vld [vmem:[%s4091_s2 + $0x460] ss:$8 sps:$4 sm:$0xff]  }
  0xa9   : > { %1924 = vmatpush1.bf16.msra.mxu0 %v3310_v11  ;;  %2315 = vmatprep.subr.bf16.mxu1 %v3289_v57 }
  0xaa   : > { %1925 = vmatprep.subr.bf16.mxu0 %v3315_v12 }
  0xac   : > { %2316 = vmatpush1.bf16.msra.mxu1 %v3287_v58 }
  0xad   : > { %1926 = vmatpush1.bf16.msra.mxu0 %v3313_v13  ;;  %2317 = vmatprep.subr.bf16.mxu1 %v3293_v59 }
  0xae   : > { %1927 = vmatprep.subr.bf16.mxu0 %v3318_v14 }
  0xb0   : > { %2318 = vmatpush1.bf16.msra.mxu1 %v3291_v61 }
  0xb1   : > { %1928 = vmatpush1.bf16.msra.mxu0 %v3316_v15  ;;  %2319 = vmatprep.subr.bf16.mxu1 %v3296_v62 }
  0xb2   : > { %1929 = vmatprep.subr.bf16.mxu0 %v3321_v16 }
  0xb4   : > { %2320 = vmatpush1.bf16.msra.mxu1 %v3294_v63 }
  0xb5   : > { %1930 = vmatpush1.bf16.msra.mxu0 %v3319_v19  ;;  %2321 = vmatprep.subr.bf16.mxu1 %v3299_v0 }
  0xb6   : > { %1931 = vmatprep.subr.bf16.mxu0 %v3324_v20 }
  0xb8   : > { %2322 = vmatpush1.bf16.msra.mxu1 %v3297_v1 }
  0xb9   : > { %1932 = vmatpush1.bf16.msra.mxu0 %v3322_v21  ;;  %2323 = vmatprep.subr.bf16.mxu1 %v3302_v3 }
  0xba   : > { %1933 = vmatprep.subr.bf16.mxu0 %v3327_v22 }
  0xbc   : > { %2324 = vmatpush1.bf16.msra.mxu1 %v3300_v4 }
  0xbd   : > { %1934 = vmatpush1.bf16.msra.mxu0 %v3325_v23  ;;  %2325 = vmatprep.subr.bf16.mxu1 %v3305_v5 }
  0xbe   : > { %1935 = vmatprep.subr.bf16.mxu0 %v3330_v24 }
  0xc0   : > { %2326 = vmatpush1.bf16.msra.mxu1 %v3303_v6 }
  0xc1   : > { %1936 = vmatpush1.bf16.msra.mxu0 %v3328_v25  ;;  %2327 = vmatprep.subr.bf16.mxu1 %v3308_v7 }
  0xc2   : > { %1937 = vmatprep.subr.bf16.mxu0 %v3333_v26 }
  0xc4   : > { %2328 = vmatpush1.bf16.msra.mxu1 %v3306_v8  ;;  %v2417_v8 = vlaneseq }
  0xc5   : > { %1938 = vmatpush1.bf16.msra.mxu0 %v3331_v27  ;;  %2329 = vmatprep.subr.bf16.mxu1 %v3312_v9 }
  0xc6   : > { %1950 = vmatprep.subr.bf16.mxu0 %v3336_v28  ;;  %v2418_v9 = vshrl.u32 %v2417_v8, 7 }
  0xc8   : > { %1940 = vmatmul.mubr.bf16.vlgmr.msra.gmra.mrb[0].mxu0 %v3743_v17  ;;  %2330 = vmatpush1.bf16.msra.mxu1 %v3310_v11  ;;  %v3340_v17 = vld [vmem:[%s4091_s2 + $0x420] ss:$8 sps:$4 sm:$0xff]   ;;  %v2419_v10 = vsub.s32 0, %v2418_v9 }
  0xc9   : > { %1951 = vmatpush1.bf16.msra.mxu0 %v3334_v29  ;;  %2331 = vmatprep.subr.bf16.mxu1 %v3315_v12  ;;  %v2415_v11 = vld [vmem:[%s4092_s3] sm:$0x3]  ;;  %v2423_v12 = vsub.s32 1, %v2418_v9 }
  0xca   : > { %1952 = vmatprep.subr.bf16.mxu0 %v3339_v30  ;;  %1982 = vmatprep.mubr.bf16.mxu0 %v3386_v2 }
  0xcc   : > { %2332 = vmatpush1.bf16.msra.mxu1 %v3313_v13  ;;  %v2420_v13 = vrot.slane %v2415_v11, %v2419_v10 }
  0xcd   : > { %1953 = vmatpush1.bf16.msra.mxu0 %v3337_v31  ;;  %2333 = vmatprep.subr.bf16.mxu1 %v3318_v14 }
  0xce   : > { %1954 = vmatprep.subr.bf16.mxu0 %v3342_v32 }
  0xd0   : > { %2334 = vmatpush1.bf16.msra.mxu1 %v3316_v15  ;;  %v2424_v15 = vrot.slane %v2415_v11, %v2423_v12 }
  0xd1   : > { %1955 = vmatpush1.bf16.msra.mxu0 %v3340_v17  ;;  %2335 = vmatprep.subr.bf16.mxu1 %v3321_v16 }
  0xd2   : > { %1956 = vmatprep.subr.bf16.mxu0 %v3345_v33 }
  0xd4   : > { %2336 = vmatpush1.bf16.msra.mxu1 %v3319_v19 }
  0xd5   : > { %1957 = vmatpush1.bf16.msra.mxu0 %v3343_v34  ;;  %2337 = vmatprep.subr.bf16.mxu1 %v3324_v20 }
  0xd6   : > { %1958 = vmatprep.subr.bf16.mxu0 %v3348_v35 }
  0xd8   : > { %2338 = vmatpush1.bf16.msra.mxu1 %v3322_v21 }
  0xd9   : > { %1959 = vmatpush1.bf16.msra.mxu0 %v3346_v36  ;;  %2339 = vmatprep.subr.bf16.mxu1 %v3327_v22 }
  0xda   : > { %1960 = vmatprep.subr.bf16.mxu0 %v3351_v37 }
  0xdc   : > { %2340 = vmatpush1.bf16.msra.mxu1 %v3325_v23 }
  0xdd   : > { %1961 = vmatpush1.bf16.msra.mxu0 %v3349_v38  ;;  %2341 = vmatprep.subr.bf16.mxu1 %v3330_v24 }
  0xde   : > { %1962 = vmatprep.subr.bf16.mxu0 %v3354_v40 }
  0xe0   : > { %2342 = vmatpush1.bf16.msra.mxu1 %v3328_v25 }
  0xe1   : > { %1963 = vmatpush1.bf16.msra.mxu0 %v3352_v42  ;;  %2343 = vmatprep.subr.bf16.mxu1 %v3333_v26 }
  0xe2   : > { %1964 = vmatprep.subr.bf16.mxu0 %v3357_v43 }
  0xe4   : > { %2344 = vmatpush1.bf16.msra.mxu1 %v3331_v27 }
  0xe5   : > { %1965 = vmatpush1.bf16.msra.mxu0 %v3355_v44  ;;  %2356 = vmatprep.subr.bf16.mxu1 %v3336_v28 }
  0xe7   : > { %2346 = vmatmul.mubr.bf16.vlgmr.msra.gmra.mrb[12].mxu1 %v2999_v41 }
  0xe8   : > { %1983 = vmatmul.mubr.bf16.vlgmr.msra.gmra.mrb[0].mxu0 %v3358_v45  ;;  %2357 = vmatpush1.bf16.msra.mxu1 %v3334_v29 }
  0xe9   : > { %2388 = vmatprep.mubr.bf16.mxu1 %v3386_v2  ;;  %2358 = vmatprep.subr.bf16.mxu1 %v3339_v30 }
  0xec   : > { %2359 = vmatpush1.bf16.msra.mxu1 %v3337_v31 }
  0xed   : > { %2360 = vmatprep.subr.bf16.mxu1 %v3342_v32 }
  0xf0   : > { %2361 = vmatpush1.bf16.msra.mxu1 %v3340_v17 }
  0xf1   : > { %2362 = vmatprep.subr.bf16.mxu1 %v3345_v33 }
  0xf4   : > { %2363 = vmatpush1.bf16.msra.mxu1 %v3343_v34 }
  0xf5   : > { %2364 = vmatprep.subr.bf16.mxu1 %v3348_v35 }
  0xf8   : > { %2365 = vmatpush1.bf16.msra.mxu1 %v3346_v36 }
  0xf9   : > { %2366 = vmatprep.subr.bf16.mxu1 %v3351_v37 }
  0xfc   : > { %2367 = vmatpush1.bf16.msra.mxu1 %v3349_v38 }
  0xfd   : > { %2368 = vmatprep.subr.bf16.mxu1 %v3354_v40 }
 0x100   : > { %2369 = vmatpush1.bf16.msra.mxu1 %v3352_v42 }
 0x101   : > { %2370 = vmatprep.subr.bf16.mxu1 %v3357_v43 }
 0x103   : > { %v746_v18 = vpop.f32.mrb[4].mxu0 }
 0x104   : > { %2371 = vmatpush1.bf16.msra.mxu1 %v3355_v44  ;;  %v748_v39 = vpop.f32.mrb[5].mxu0 }
 0x105   : > { %v750_v41 = vpop.f32.mrb[6].mxu0 }
 0x106   : > { %v752_v2 = vpop.f32.mrb[7].mxu0 }
 0x107   : > { %2389 = vmatmul.mubr.bf16.vlgmr.msra.gmra.mrb[12].mxu1 %v3361_v46 }
 0x11a   : > { %v683_v47 = vpop.f32.mrb[0].mxu1 }
 0x11b   : > { %v685_v48 = vpop.f32.mrb[1].mxu1 }
 0x11c   : > { %v687_v49 = vpop.f32.mrb[2].mxu1 }
 0x11d   : > { %v689_v50 = vpop.f32.mrb[3].mxu1 }
 0x122   : > { %v693_v51 = vpop.f32.mrb[4].mxu1 }
 0x123   : > { %v747_v52 = vadd.f32 %v746_v18, %v693_v51  ;;  %v695_v53 = vpop.f32.mrb[5].mxu1 }
 0x124   : > { %v749_v54 = vadd.f32 %v748_v39, %v695_v53  ;;  %v697_v55 = vpop.f32.mrb[6].mxu1 }
 0x125   : > { %v751_v56 = vadd.f32 %v750_v41, %v697_v55  ;;  %v699_v57 = vpop.f32.mrb[7].mxu1 }
 0x126   : > { %v753_v58 = vadd.f32 %v752_v2, %v699_v57 }
 0x163   : > { %v1186_v59 = vpop.f32.mrb[8].mxu0 }
 0x164   : > { %v1197_v60 = vadd.f32 %v1186_v59, %v747_v52  ;;  %v1188_v61 = vpop.f32.mrb[9].mxu0 }
 0x165   : > { %v1198_v62 = vadd.f32 %v1188_v61, %v749_v54  ;;  %v1190_v63 = vpop.f32.mrb[10].mxu0 }
 0x166   : > { %v1191_v0 = vpop.f32.mrb[11].mxu0 }
 0x17a   : > { %v1583_v1 = vpop.f32.mrb[8].mxu1 }
 0x17b   : > { %v1590_v3 = vadd.f32 %v1583_v1, %v751_v56  ;;  %v1585_v4 = vpop.f32.mrb[9].mxu1 }
 0x17c   : > { %v1591_v5 = vadd.f32 %v1585_v4, %v753_v58  ;;  %v1587_v6 = vpop.f32.mrb[10].mxu1 }
 0x17d   : > { %v1588_v7 = vpop.f32.mrb[11].mxu1 }
 0x1bb   : > { %v1984_v14 = vpop.f32.mrb[0].mxu0 }
 0x1bc   : > { %v3063_v16 = vadd.f32 %v1984_v14, %v683_v47  ;;  %v1986_v19 = vpop.f32.mrb[1].mxu0 }
 0x1bd   : > { %v3064_v20 = vadd.f32 %v1986_v19, %v685_v48  ;;  %v1988_v21 = vpop.f32.mrb[2].mxu0 }
 0x1be   : > { %v2427_v22 = vadd.f32 %v3063_v16, %v2420_v13  ;;  %v3065_v23 = vadd.f32 %v1988_v21, %v687_v49  ;;  %v1990_v24 = vpop.f32.mrb[3].mxu0 }
 0x1bf   : > { %v2428_v25 = vadd.f32 %v3064_v20, %v2424_v15  ;;  %v3066_v26 = vadd.f32 %v1990_v24, %v689_v50 }
 0x1c0   : > { %v2435_v27 = vmax.f32 %v2427_v22, 0.0  ;;  %v2429_v28 = vadd.f32 %v3065_v23, %v2420_v13 }
 0x1c1   : > { %v2436_v29 = vmax.f32 %v2428_v25, 0.0  ;;  %v2430_v30 = vadd.f32 %v3066_v26, %v2424_v15 }
 0x1c2   : > { %v2437_v31 = vmax.f32 %v2429_v28, 0.0 }
 0x1c3   : > { %v3059_v32 = vpack.c.bf16 %v2436_v29, %v2435_v27  ;;  %v2438_v17 = vmax.f32 %v2430_v30, 0.0 }
 0x1c5   : > { %2467 = vst [vmem:[%s318_s6] sm:$0xff] %v3059_v32  ;;  %v3060_v33 = vpack.c.bf16 %v2438_v17, %v2437_v31 }
 0x1c7   : > { %2468 = vst [vmem:[%s318_s6 + $0x8] sm:$0xff] %v3060_v33 }
 0x1da   : > { %v2390_v34 = vpop.f32.mrb[12].mxu1 }
 0x1db   : > { %v2399_v35 = vadd.f32 %v2390_v34, %v1197_v60  ;;  %v2392_v36 = vpop.f32.mrb[13].mxu1 }
 0x1dc   : > { %v2400_v37 = vadd.f32 %v2392_v36, %v1198_v62  ;;  %v2394_v38 = vpop.f32.mrb[14].mxu1 }
 0x1dd   : > { %v2431_v40 = vadd.f32 %v2420_v13, %v2399_v35  ;;  %v2401_v42 = vadd.f32 %v2394_v38, %v1590_v3  ;;  %v2396_v43 = vpop.f32.mrb[15].mxu1 }
 0x1de   : > { %v2432_v44 = vadd.f32 %v2424_v15, %v2400_v37  ;;  %v2402_v45 = vadd.f32 %v2396_v43, %v1591_v5 }
 0x1df   : > { %v2439_v46 = vmax.f32 %v2431_v40, 0.0  ;;  %v2433_v18 = vadd.f32 %v2420_v13, %v2401_v42 }
 0x1e0   : > { %v2440_v39 = vmax.f32 %v2432_v44, 0.0  ;;  %v2434_v41 = vadd.f32 %v2424_v15, %v2402_v45 }
 0x1e1   : > { %v2441_v2 = vmax.f32 %v2433_v18, 0.0 }
 0x1e2   : > { %v3061_v47 = vpack.c.bf16 %v2440_v39, %v2439_v46  ;;  %v2442_v48 = vmax.f32 %v2434_v41, 0.0 }
 0x1e4   : > { %2469 = vst [vmem:[%s318_s6 + $0x10] sm:$0xff] %v3061_v47  ;;  %v3062_v49 = vpack.c.bf16 %v2442_v48, %v2441_v2 }
 0x1e6   : > { %2470 = vst [vmem:[%s318_s6 + $0x18] sm:$0xff] %v3062_v49 }
 0x1e7 PF: > { %s14_s17 = sadd.s32 1, %s3384_s17   ;;  %s4094_s15 = smov %s3380_s16 }
 0x1e8   : > { %p11_p5 = scmp.ge.s32.totalorder %s14_s17, 4   ;;  %s4095_s16 = smov %s4097_s18 }
 0x1ea   :  { %13 = sbr.rel (!%p11_p5) target bundleno = 2 (0x2), region = 71 }

// kernel: feature_extractor.16
= control target key start
LH: loop header
LB: loop body
LE: loop exit
PB: predicated region body
PF: predicated region fallthrough
CT: control target
= control target key end

     0   :  { %s5910_s15 = smov 0   ;;  %s5912_s16 = smov 0   ;;  %s7698_s0 = inlined_call_operand.vmem [shape: bf16[2,48,768], index: 0, kind: input, shape index: {}, may-alias: {0,1}]   ;;  %s7699_s1 = inlined_call_operand.vmem [shape: bf16[2,48,768], index: 1, kind: input, shape index: {}, may-alias: {0,1}]   ;;  %s7700_s2 = inlined_call_operand.vmem [shape: bf16[3,768,256], index: 2, kind: input, shape index: {}]   ;;  %s7701_s3 = inlined_call_operand.vmem [shape: f32[1,256], index: 3, kind: input, shape index: {}]   ;;  %s7702_s4 = inlined_call_operand.vmem [shape: bf16[2,32,256], index: 4, kind: output, shape index: {}]  }
   0x1   :  { %s5914_s17 = smov 0  }
   0x2 LB: > { %s26_s18 = sadd.s32 1, %s5879_s16  ;;  %p4364_p0 = scmp.ge.s32.totalorder %s5883_s17, 1  ;;  %s5883_s17 = sphi %s5914_s17, %s14_s17   ;;  %s5879_s16 = sphi %s5912_s16, %s7704_s16   ;;  %s5875_s15 = sphi %s5910_s15, %s7703_s15  }
   0x3   : > { %p28_p1 = scmp.ge.s32.totalorder %s26_s18, 2  ;;  %p220_p2 = scmp.lt.s32.totalorder %s5883_s17, 3 }
   0x5   : > { %s7706_s18 = smov (%p28_p1, %s26_s18), 0  ;;  %p221_p3 = pnand %p4364_p0, %p220_p2 }
   0x6   : > { %v5379_v0 = vld [vmem:[%s7700_s2 + $0x4] ss:$8 sps:$4 sm:$0xff] (!%p221_p3)   ;;  %p279_p4 = scmp.lt.s32.totalorder (!%p221_p3), %s5875_s15, 1  ;;  %v5383_v2 = vld [vmem:[%s7700_s2] ss:$8 sps:$4 sm:$0xff] (!%p221_p3)  }
   0x7   : > { %224 = sbr.rel (%p221_p3) target bundleno = 744 (0x2e8), region = 36  ;;  %v5381_v1 = vld [vmem:[%s7700_s2 + $0x104] ss:$8 sps:$4 sm:$0xff] (!%p221_p3)   ;;  %968 = vmatprep.subr.bf16.mxu1 (!%p221_p3), %v5379_v0  ;;  %v5384_v3 = vld [vmem:[%s7700_s2 + $0x100] ss:$8 sps:$4 sm:$0xff] (!%p221_p3)  }
   0x8   : > { %1021 = vmatprep.subr.bf16.mxu0 (!%p221_p3), %v5381_v1  ;;  %v5385_v4 = vld [vmem:[%s7700_s2 + $0x14] ss:$8 sps:$4 sm:$0xff] (!%p221_p3)   ;;  %969 = vmatpush1.bf16.msra.mxu1 (!%p221_p3), %v5383_v2  ;;  %v5389_v6 = vld [vmem:[%s7700_s2 + $0x10] ss:$8 sps:$4 sm:$0xff] (!%p221_p3)   ;;  %v5391_v8 = vld [vmem:[%s7700_s2 + $0x24] ss:$8 sps:$4 sm:$0xff] (!%p221_p3)  }
   0x9   : > { %1022 = vmatpush1.bf16.msra.mxu0 (!%p221_p3), %v5384_v3  ;;  %v5387_v5 = vld [vmem:[%s7700_s2 + $0x114] ss:$8 sps:$4 sm:$0xff] (!%p221_p3)   ;;  %970 = vmatprep.subr.bf16.mxu1 (!%p221_p3), %v5385_v4  ;;  %v5390_v7 = vld [vmem:[%s7700_s2 + $0x110] ss:$8 sps:$4 sm:$0xff] (!%p221_p3)   ;;  %v5393_v9 = vld [vmem:[%s7700_s2 + $0x124] ss:$8 sps:$4 sm:$0xff] (!%p221_p3)  }
   0xa   : > { %1023 = vmatprep.subr.bf16.mxu0 (!%p221_p3), %v5387_v5  ;;  %v5395_v10 = vld [vmem:[%s7700_s2 + $0x20] ss:$8 sps:$4 sm:$0xff] (!%p221_p3)   ;;  %v5397_v12 = vld [vmem:[%s7700_s2 + $0x34] ss:$8 sps:$4 sm:$0xff] (!%p221_p3)   ;;  %v5401_v14 = vld [vmem:[%s7700_s2 + $0x30] ss:$8 sps:$4 sm:$0xff] (!%p221_p3)  }
   0xb   : > { %v5396_v11 = vld [vmem:[%s7700_s2 + $0x120] ss:$8 sps:$4 sm:$0xff] (!%p221_p3)   ;;  %v5399_v13 = vld [vmem:[%s7700_s2 + $0x134] ss:$8 sps:$4 sm:$0xff] (!%p221_p3)   ;;  %v5402_v15 = vld [vmem:[%s7700_s2 + $0x130] ss:$8 sps:$4 sm:$0xff] (!%p221_p3)  }
   0xc   : > { %971 = vmatpush1.bf16.msra.mxu1 (!%p221_p3), %v5389_v6  ;;  %v5403_v16 = vld [vmem:[%s7700_s2 + $0x44] ss:$8 sps:$4 sm:$0xff] (!%p221_p3)   ;;  %v5407_v18 = vld [vmem:[%s7700_s2 + $0x40] ss:$8 sps:$4 sm:$0xff] (!%p221_p3)   ;;  %v5409_v20 = vld [vmem:[%s7700_s2 + $0x54] ss:$8 sps:$4 sm:$0xff] (!%p221_p3)  }
   0xd   : > { %1024 = vmatpush1.bf16.msra.mxu0 (!%p221_p3), %v5390_v7  ;;  %972 = vmatprep.subr.bf16.mxu1 (!%p221_p3), %v5391_v8  ;;  %v5405_v17 = vld [vmem:[%s7700_s2 + $0x144] ss:$8 sps:$4 sm:$0xff] (!%p221_p3)   ;;  %v5408_v19 = vld [vmem:[%s7700_s2 + $0x140] ss:$8 sps:$4 sm:$0xff] (!%p221_p3)   ;;  %v5411_v21 = vld [vmem:[%s7700_s2 + $0x154] ss:$8 sps:$4 sm:$0xff] (!%p221_p3)  }
   0xe   : > { %s7708_s15 = smov (!%p279_p4, %s5875_s15), 1  ;;  %1025 = vmatprep.subr.bf16.mxu0 %v5393_v9  ;;  %v5413_v22 = vld [vmem:[%s7700_s2 + $0x50] ss:$8 sps:$4 sm:$0xff]   ;;  %v5415_v24 = vld [vmem:[%s7700_s2 + $0x64] ss:$8 sps:$4 sm:$0xff]  }
   0xf   : > { %v5414_v23 = vld [vmem:[%s7700_s2 + $0x150] ss:$8 sps:$4 sm:$0xff]   ;;  %v5417_v25 = vld [vmem:[%s7700_s2 + $0x164] ss:$8 sps:$4 sm:$0xff]   ;;  %v5419_v26 = vld [vmem:[%s7700_s2 + $0x60] ss:$8 sps:$4 sm:$0xff]  }
  0x10   : > { %973 = vmatpush1.bf16.msra.mxu1 %v5395_v10  ;;  %v5420_v27 = vld [vmem:[%s7700_s2 + $0x160] ss:$8 sps:$4 sm:$0xff]   ;;  %v5421_v28 = vld [vmem:[%s7700_s2 + $0x74] ss:$8 sps:$4 sm:$0xff]   ;;  %v5425_v30 = vld [vmem:[%s7700_s2 + $0x70] ss:$8 sps:$4 sm:$0xff]  }
  0x11   : > { %1026 = vmatpush1.bf16.msra.mxu0 %v5396_v11  ;;  %974 = vmatprep.subr.bf16.mxu1 %v5397_v12  ;;  %v5423_v29 = vld [vmem:[%s7700_s2 + $0x174] ss:$8 sps:$4 sm:$0xff]   ;;  %v5426_v31 = vld [vmem:[%s7700_s2 + $0x170] ss:$8 sps:$4 sm:$0xff]   ;;  %v5427_v32 = vld [vmem:[%s7700_s2 + $0x84] ss:$8 sps:$4 sm:$0xff]  }
  0x12   : > { %1027 = vmatprep.subr.bf16.mxu0 %v5399_v13  ;;  %v5429_v33 = vld [vmem:[%s7700_s2 + $0x184] ss:$8 sps:$4 sm:$0xff]   ;;  %v5431_v34 = vld [vmem:[%s7700_s2 + $0x80] ss:$8 sps:$4 sm:$0xff]   ;;  %v5433_v36 = vld [vmem:[%s7700_s2 + $0x94] ss:$8 sps:$4 sm:$0xff]  }
  0x13   : > { %v5432_v35 = vld [vmem:[%s7700_s2 + $0x180] ss:$8 sps:$4 sm:$0xff]   ;;  %v5435_v37 = vld [vmem:[%s7700_s2 + $0x194] ss:$8 sps:$4 sm:$0xff]   ;;  %v5437_v38 = vld [vmem:[%s7700_s2 + $0x90] ss:$8 sps:$4 sm:$0xff]  }
  0x14   : > { %975 = vmatpush1.bf16.msra.mxu1 %v5401_v14  ;;  %s5352_s5 = smul.u32 144, %s7708_s15  ;;  %v5438_v39 = vld [vmem:[%s7700_s2 + $0x190] ss:$8 sps:$4 sm:$0xff]   ;;  %v5439_v40 = vld [vmem:[%s7700_s2 + $0xa4] ss:$8 sps:$4 sm:$0xff]   ;;  %s5283_s9 = sshll.u32 %s7708_s15, 5 }
  0x15   : > { %1028 = vmatpush1.bf16.msra.mxu0 %v5402_v15  ;;  %976 = vmatprep.subr.bf16.mxu1 %v5403_v16  ;;  %v5441_v41 = vld [vmem:[%s7700_s2 + $0x1a4] ss:$8 sps:$4 sm:$0xff]   ;;  %v5443_v42 = vld [vmem:[%s7700_s2 + $0xa0] ss:$8 sps:$4 sm:$0xff]   ;;  %v5445_v44 = vld [vmem:[%s7700_s2 + $0xb4] ss:$8 sps:$4 sm:$0xff]   ;;  %s318_s12 = scalar_lea.vmem %s7702_s4, %s5283_s9 }
  0x16   : > { %1029 = vmatprep.subr.bf16.mxu0 %v5405_v17  ;;  %v5444_v43 = vld [vmem:[%s7700_s2 + $0x1a0] ss:$8 sps:$4 sm:$0xff]   ;;  %s6068_s22 = scalar_lea.vmem %s7698_s0, %s5352_s5  ;;  %v5447_v45 = vld [vmem:[%s7700_s2 + $0x1b4] ss:$8 sps:$4 sm:$0xff]   ;;  %v5449_v46 = vld [vmem:[%s7700_s2 + $0xb0] ss:$8 sps:$4 sm:$0xff]  }
  0x17   : > { %v320_v47 = vld [vmem:[%s6068_s22] sm:$0xff]  ;;  %v6081_v48 = vld [vmem:[%s6068_s22 + $0x18] sm:$0xff]  ;;  %s5282_s6 = sadd.s32 96, %s5352_s5 }
  0x18   : > { %977 = vmatpush1.bf16.msra.mxu1 %v5407_v18  ;;  %v5450_v49 = vld [vmem:[%s7700_s2 + $0x1b0] ss:$8 sps:$4 sm:$0xff]   ;;  %v4370_v50 = vcombine.high %v320_v47, %v6081_v48  ;;  %v5479_v51 = vld [vmem:[%s6068_s22 + $0xc] ss:$24 sps:$4 sm:$0xff]   ;;  %v5455_v54 = vld [vmem:[%s7700_s2 + $0xc0] ss:$8 sps:$4 sm:$0xff]   ;;  %v4369_v6 = vcombine.low %v320_v47, %v6081_v48  ;;  %s6279_s14 = scalar_lea.vmem %s7699_s1, %s5282_s6 }
  0x19   : > { %1030 = vmatpush1.bf16.msra.mxu0 %v5408_v19  ;;  %978 = vmatprep.subr.bf16.mxu1 %v5409_v20  ;;  %v5451_v52 = vld [vmem:[%s7700_s2 + $0xc4] ss:$8 sps:$4 sm:$0xff]   ;;  %v5456_v55 = vld [vmem:[%s7700_s2 + $0x1c0] ss:$8 sps:$4 sm:$0xff]   ;;  %v5457_v56 = vld [vmem:[%s7700_s2 + $0xd4] ss:$8 sps:$4 sm:$0xff]  }
  0x1a   : > { %1031 = vmatprep.subr.bf16.mxu0 %v5411_v21  ;;  %v5453_v53 = vld [vmem:[%s7700_s2 + $0x1c4] ss:$8 sps:$4 sm:$0xff]   ;;  %1000 = vmatprep.mubr.bf16.mxu1 %v4370_v50  ;;  %v5459_v57 = vld [vmem:[%s7700_s2 + $0x1d4] ss:$8 sps:$4 sm:$0xff]   ;;  %v5461_v58 = vld [vmem:[%s7700_s2 + $0xd0] ss:$8 sps:$4 sm:$0xff]  }
  0x1b   : > { %1053 = vmatprep.mubr.bf16.mxu0 %v5479_v51  ;;  %v5462_v59 = vld [vmem:[%s7700_s2 + $0x1d0] ss:$8 sps:$4 sm:$0xff]   ;;  %v5463_v60 = vld [vmem:[%s7700_s2 + $0xe4] ss:$8 sps:$4 sm:$0xff]   ;;  %v5467_v62 = vld [vmem:[%s7700_s2 + $0xe0] ss:$8 sps:$4 sm:$0xff]  }
  0x1c   : > { %979 = vmatpush1.bf16.msra.mxu1 %v5413_v22  ;;  %v5465_v61 = vld [vmem:[%s7700_s2 + $0x1e4] ss:$8 sps:$4 sm:$0xff]   ;;  %v5468_v63 = vld [vmem:[%s7700_s2 + $0x1e0] ss:$8 sps:$4 sm:$0xff]   ;;  %v5469_v0 = vld [vmem:[%s7700_s2 + $0xf4] ss:$8 sps:$4 sm:$0xff]  }
  0x1d   : > { %1032 = vmatpush1.bf16.msra.mxu0 %v5414_v23  ;;  %980 = vmatprep.subr.bf16.mxu1 %v5415_v24  ;;  %v5471_v1 = vld [vmem:[%s7700_s2 + $0x1f4] ss:$8 sps:$4 sm:$0xff]   ;;  %v5473_v2 = vld [vmem:[%s7700_s2 + $0xf0] ss:$8 sps:$4 sm:$0xff]   ;;  %v5482_v4 = vld [vmem:[%s7700_s2 + $0x204] ss:$8 sps:$4 sm:$0xff]  }
  0x1e   : > { %1033 = vmatprep.subr.bf16.mxu0 %v5417_v25  ;;  %v5474_v3 = vld [vmem:[%s7700_s2 + $0x1f0] ss:$8 sps:$4 sm:$0xff]   ;;  %v6142_v5 = vld [vmem:[%s7700_s2 + $0x304] ss:$8 sps:$4 sm:$0xff]   ;;  %v5477_v7 = vld [vmem:[%s6068_s22 + $0x8] ss:$24 sps:$4 sm:$0xff]  }
  0x1f   : > { %v5480_v8 = vld [vmem:[%s7700_s2 + $0x200] ss:$8 sps:$4 sm:$0xff]   ;;  %v5488_v10 = vld [vmem:[%s7700_s2 + $0x214] ss:$8 sps:$4 sm:$0xff]   ;;  %v5486_v12 = vld [vmem:[%s7700_s2 + $0x210] ss:$8 sps:$4 sm:$0xff]  }
  0x20   : > { %981 = vmatpush1.bf16.msra.mxu1 %v5419_v26  ;;  %v6152_v9 = vld [vmem:[%s7700_s2 + $0x300] ss:$8 sps:$4 sm:$0xff]   ;;  %v6161_v11 = vld [vmem:[%s7700_s2 + $0x314] ss:$8 sps:$4 sm:$0xff]   ;;  %v6170_v13 = vld [vmem:[%s7700_s2 + $0x310] ss:$8 sps:$4 sm:$0xff]  }
  0x21   : > { %1034 = vmatpush1.bf16.msra.mxu0 %v5420_v27  ;;  %982 = vmatprep.subr.bf16.mxu1 %v5421_v28  ;;  %v5494_v14 = vld [vmem:[%s7700_s2 + $0x224] ss:$8 sps:$4 sm:$0xff]   ;;  %v5492_v16 = vld [vmem:[%s7700_s2 + $0x220] ss:$8 sps:$4 sm:$0xff]   ;;  %v5500_v18 = vld [vmem:[%s7700_s2 + $0x234] ss:$8 sps:$4 sm:$0xff]  }
  0x22   : > { %1035 = vmatprep.subr.bf16.mxu0 %v5423_v29  ;;  %v6179_v15 = vld [vmem:[%s7700_s2 + $0x324] ss:$8 sps:$4 sm:$0xff]   ;;  %v6188_v17 = vld [vmem:[%s7700_s2 + $0x320] ss:$8 sps:$4 sm:$0xff]   ;;  %v6197_v19 = vld [vmem:[%s7700_s2 + $0x334] ss:$8 sps:$4 sm:$0xff]  }
  0x23   : > { %v5498_v20 = vld [vmem:[%s7700_s2 + $0x230] ss:$8 sps:$4 sm:$0xff]   ;;  %v5506_v22 = vld [vmem:[%s7700_s2 + $0x244] ss:$8 sps:$4 sm:$0xff]   ;;  %v5504_v24 = vld [vmem:[%s7700_s2 + $0x240] ss:$8 sps:$4 sm:$0xff]  }
  0x24   : > { %983 = vmatpush1.bf16.msra.mxu1 %v5425_v30  ;;  %v6206_v21 = vld [vmem:[%s7700_s2 + $0x330] ss:$8 sps:$4 sm:$0xff]   ;;  %v6215_v23 = vld [vmem:[%s7700_s2 + $0x344] ss:$8 sps:$4 sm:$0xff]   ;;  %v6224_v25 = vld [vmem:[%s7700_s2 + $0x340] ss:$8 sps:$4 sm:$0xff]  }
  0x25   : > { %1036 = vmatpush1.bf16.msra.mxu0 %v5426_v31  ;;  %984 = vmatprep.subr.bf16.mxu1 %v5427_v32  ;;  %v5512_v26 = vld [vmem:[%s7700_s2 + $0x254] ss:$8 sps:$4 sm:$0xff]   ;;  %v6244_v32 = vld [vmem:[%s6068_s22 + $0x48] sm:$0xff]  ;;  %v5522_v47 = vld [vmem:[%s7700_s2 + $0x270] ss:$8 sps:$4 sm:$0xff]  }
  0x26   : > { %1037 = vmatprep.subr.bf16.mxu0 %v5429_v33  ;;  %v6233_v27 = vld [vmem:[%s7700_s2 + $0x354] ss:$8 sps:$4 sm:$0xff]   ;;  %v6309_v50 = vld [vmem:[%s7700_s2 + $0x370] ss:$8 sps:$4 sm:$0xff]   ;;  %v5530_v51 = vld [vmem:[%s7700_s2 + $0x284] ss:$8 sps:$4 sm:$0xff]  }
  0x27   : > { %v6236_v28 = vld [vmem:[%s6068_s22 + $0x38] sm:$0xff]  ;;  %v330_v29 = vld [vmem:[%s6068_s22 + $0x50] sm:$0xff] }
  0x28   : > { %985 = vmatpush1.bf16.msra.mxu1 %v5431_v34  ;;  %v6240_v30 = vld [vmem:[%s6068_s22 + $0x30] sm:$0xff]  ;;  %v4378_v31 = vcombine.high %v6236_v28, %v330_v29  ;;  %v4377_v33 = vcombine.low %v6236_v28, %v330_v29 }
  0x29   : > { %1038 = vmatpush1.bf16.msra.mxu0 %v5432_v35  ;;  %986 = vmatprep.subr.bf16.mxu1 %v5433_v36  ;;  %v4573_v34 = vcombine.low %v6081_v48, %v6240_v30  ;;  %v5510_v35 = vld [vmem:[%s7700_s2 + $0x250] ss:$8 sps:$4 sm:$0xff]  }
  0x2a   : > { %1039 = vmatprep.subr.bf16.mxu0 %v5435_v37  ;;  %v6256_v36 = vld [vmem:[%s7700_s2 + $0x350] ss:$8 sps:$4 sm:$0xff]   ;;  %v4376_v37 = vcombine.high %v6240_v30, %v6244_v32 }
  0x2b   : > { %v5574_v29 = vld [vmem:[%s7700_s2 + $0x2f0] ss:$8 sps:$4 sm:$0xff]  }
  0x2c   : > { %987 = vmatpush1.bf16.msra.mxu1 %v5437_v38  ;;  %v4375_v38 = vcombine.low %v6240_v30, %v6244_v32 }
  0x2d   : > { %1040 = vmatpush1.bf16.msra.mxu0 %v5438_v39  ;;  %988 = vmatprep.subr.bf16.mxu1 %v5439_v40  ;;  %v5518_v39 = vld [vmem:[%s7700_s2 + $0x264] ss:$8 sps:$4 sm:$0xff]  }
  0x2e   : > { %1041 = vmatprep.subr.bf16.mxu0 %v5441_v41  ;;  %v6271_v40 = vld [vmem:[%s7700_s2 + $0x364] ss:$8 sps:$4 sm:$0xff]   ;;  %v5516_v41 = vld [vmem:[%s7700_s2 + $0x260] ss:$8 sps:$4 sm:$0xff]  }
  0x30   : > { %989 = vmatpush1.bf16.msra.mxu1 %v5443_v42  ;;  %v6285_v42 = vld [vmem:[%s7700_s2 + $0x360] ss:$8 sps:$4 sm:$0xff]  }
  0x31   : > { %1042 = vmatpush1.bf16.msra.mxu0 %v5444_v43  ;;  %990 = vmatprep.subr.bf16.mxu1 %v5445_v44  ;;  %v5524_v43 = vld [vmem:[%s7700_s2 + $0x274] ss:$8 sps:$4 sm:$0xff]  }
  0x32   : > { %1043 = vmatprep.subr.bf16.mxu0 %v5447_v45  ;;  %v6294_v44 = vld [vmem:[%s7700_s2 + $0x374] ss:$8 sps:$4 sm:$0xff]  }
  0x33   : > { %v5582_v45 = vld [vmem:[%s6068_s22 + $0x14] ss:$24 sps:$4 sm:$0xff]  }
  0x34   : > { %991 = vmatpush1.bf16.msra.mxu1 %v5449_v46  ;;  %v6298_v46 = vld [vmem:[%s6279_s14] sm:$0xff] }
  0x35   : > { %1044 = vmatpush1.bf16.msra.mxu0 %v5450_v49  ;;  %992 = vmatprep.subr.bf16.mxu1 %v5451_v52  ;;  %v4778_v49 = vcombine.high %v6298_v46, %v6298_v46  ;;  %v6318_v52 = vld [vmem:[%s7700_s2 + $0x384] ss:$8 sps:$4 sm:$0xff]  }
  0x36   : > { %1045 = vmatprep.subr.bf16.mxu0 %v5453_v53  ;;  %v5528_v53 = vld [vmem:[%s7700_s2 + $0x280] ss:$8 sps:$4 sm:$0xff]  }
  0x38   : > { %993 = vmatpush1.bf16.msra.mxu1 %v5455_v54  ;;  %v6327_v54 = vld [vmem:[%s7700_s2 + $0x380] ss:$8 sps:$4 sm:$0xff]  }
  0x39   : > { %1046 = vmatpush1.bf16.msra.mxu0 %v5456_v55  ;;  %994 = vmatprep.subr.bf16.mxu1 %v5457_v56  ;;  %v5536_v55 = vld [vmem:[%s7700_s2 + $0x294] ss:$8 sps:$4 sm:$0xff]  }
  0x3a   : > { %1047 = vmatprep.subr.bf16.mxu0 %v5459_v57  ;;  %v6336_v56 = vld [vmem:[%s7700_s2 + $0x394] ss:$8 sps:$4 sm:$0xff]   ;;  %v5534_v57 = vld [vmem:[%s7700_s2 + $0x290] ss:$8 sps:$4 sm:$0xff]  }
  0x3c   : > { %995 = vmatpush1.bf16.msra.mxu1 %v5461_v58  ;;  %v6345_v58 = vld [vmem:[%s7700_s2 + $0x390] ss:$8 sps:$4 sm:$0xff]  }
  0x3d   : > { %1048 = vmatpush1.bf16.msra.mxu0 %v5462_v59  ;;  %996 = vmatprep.subr.bf16.mxu1 %v5463_v60  ;;  %v5542_v59 = vld [vmem:[%s7700_s2 + $0x2a4] ss:$8 sps:$4 sm:$0xff]  }
  0x3e   : > { %1049 = vmatprep.subr.bf16.mxu0 %v5465_v61  ;;  %v6354_v60 = vld [vmem:[%s7700_s2 + $0x3a4] ss:$8 sps:$4 sm:$0xff]   ;;  %v5540_v61 = vld [vmem:[%s7700_s2 + $0x2a0] ss:$8 sps:$4 sm:$0xff]  }
  0x40   : > { %997 = vmatpush1.bf16.msra.mxu1 %v5467_v62  ;;  %v6363_v62 = vld [vmem:[%s7700_s2 + $0x3a0] ss:$8 sps:$4 sm:$0xff]  }
  0x41   : > { %1050 = vmatpush1.bf16.msra.mxu0 %v5468_v63  ;;  %998 = vmatprep.subr.bf16.mxu1 %v5469_v0  ;;  %v5548_v63 = vld [vmem:[%s7700_s2 + $0x2b4] ss:$8 sps:$4 sm:$0xff]  }
  0x42   : > { %1051 = vmatprep.subr.bf16.mxu0 %v5471_v1  ;;  %v6372_v0 = vld [vmem:[%s7700_s2 + $0x3b4] ss:$8 sps:$4 sm:$0xff]   ;;  %v5546_v1 = vld [vmem:[%s7700_s2 + $0x2b0] ss:$8 sps:$4 sm:$0xff]  }
  0x44   : > { %999 = vmatpush1.bf16.msra.mxu1 %v5473_v2  ;;  %v6381_v2 = vld [vmem:[%s7700_s2 + $0x3b0] ss:$8 sps:$4 sm:$0xff]  }
  0x45   : > { %1052 = vmatpush1.bf16.msra.mxu0 %v5474_v3  ;;  %2545 = vmatprep.subr.bf16.mxu1 %v6142_v5  ;;  %v5554_v3 = vld [vmem:[%s7700_s2 + $0x2c4] ss:$8 sps:$4 sm:$0xff]  }
  0x46   : > { %1074 = vmatprep.subr.bf16.mxu0 %v5482_v4  ;;  %v6390_v4 = vld [vmem:[%s7700_s2 + $0x3c4] ss:$8 sps:$4 sm:$0xff]  }
  0x47   : > { %1001 = vmatmul.mubr.bf16.vlgmr.msra.gmra.mrb[0].mxu1 %v4369_v6  ;;  %v5552_v6 = vld [vmem:[%s7700_s2 + $0x2c0] ss:$8 sps:$4 sm:$0xff]  }
  0x48   : > { %1054 = vmatmul.mubr.bf16.vlgmr.msra.gmra.mrb[0].mxu0 %v5477_v7  ;;  %2546 = vmatpush1.bf16.msra.mxu1 %v6152_v9  ;;  %v6399_v7 = vld [vmem:[%s7700_s2 + $0x3c0] ss:$8 sps:$4 sm:$0xff]  }
  0x49   : > { %1075 = vmatpush1.bf16.msra.mxu0 %v5480_v8  ;;  %2547 = vmatprep.subr.bf16.mxu1 %v6161_v11  ;;  %v5560_v8 = vld [vmem:[%s7700_s2 + $0x2d4] ss:$8 sps:$4 sm:$0xff]  }
  0x4a   : > { %1076 = vmatprep.subr.bf16.mxu0 %v5488_v10  ;;  %1063 = vmatprep.mubr.bf16.mxu0 %v4378_v31  ;;  %v6408_v10 = vld [vmem:[%s7700_s2 + $0x3d4] ss:$8 sps:$4 sm:$0xff]   ;;  %v6453_v31 = vld [vmem:[%s7700_s2 + $0x3f0] ss:$8 sps:$4 sm:$0xff]  }
  0x4b   : > { %1010 = vmatprep.mubr.bf16.mxu1 %v4376_v37  ;;  %v4777_v37 = vcombine.low %v6298_v46, %v6298_v46  ;;  %v6495_v46 = vld [vmem:[%s7700_s2 + $0x424] ss:$8 sps:$4 sm:$0xff]  }
  0x4c   : > { %2548 = vmatpush1.bf16.msra.mxu1 %v6170_v13 }
  0x4d   : > { %1077 = vmatpush1.bf16.msra.mxu0 %v5486_v12  ;;  %2549 = vmatprep.subr.bf16.mxu1 %v6179_v15  ;;  %v5558_v12 = vld [vmem:[%s7700_s2 + $0x2d0] ss:$8 sps:$4 sm:$0xff]  }
  0x4e   : > { %1078 = vmatprep.subr.bf16.mxu0 %v5494_v14  ;;  %v6416_v14 = vld [vmem:[%s7700_s2 + $0x3d0] ss:$8 sps:$4 sm:$0xff]  }
  0x4f   : > { %1011 = vmatmul.mubr.bf16.gmra.mrb[4].mxu1 %v4375_v38  ;;  %v6465_v38 = vld [vmem:[%s6279_s14 + $0x8] sm:$0xff] }
  0x50   : > { %2550 = vmatpush1.bf16.msra.mxu1 %v6188_v17  ;;  %1064 = vmatmul.mubr.bf16.gmra.mrb[4].mxu0 %v4377_v33  ;;  %v6459_v33 = vld [vmem:[%s7700_s2 + $0x404] ss:$8 sps:$4 sm:$0xff]  }
  0x51   : > { %1079 = vmatpush1.bf16.msra.mxu0 %v5492_v16  ;;  %2551 = vmatprep.subr.bf16.mxu1 %v6197_v19  ;;  %v5569_v16 = vld [vmem:[%s7700_s2 + $0x2e4] ss:$8 sps:$4 sm:$0xff]  }
  0x52   : > { %1080 = vmatprep.subr.bf16.mxu0 %v5500_v18  ;;  %1106 = vmatprep.mubr.bf16.mxu0 %v5582_v45  ;;  %v6426_v18 = vld [vmem:[%s7700_s2 + $0x3e4] ss:$8 sps:$4 sm:$0xff]   ;;  %v4780_v45 = vcombine.high %v6465_v38, %v6465_v38 }
  0x53   : > { %2577 = vmatprep.mubr.bf16.mxu1 %v4778_v49  ;;  %v4574_v49 = vcombine.high %v6081_v48, %v6240_v30  ;;  %v4579_v48 = vcombine.low %v6244_v32, %v6244_v32  ;;  %v6739_v30 = vld [vmem:[%s6068_s22 + $0x20] sm:$0xff] }
  0x54   : > { %2552 = vmatpush1.bf16.msra.mxu1 %v6206_v21 }
  0x55   : > { %1081 = vmatpush1.bf16.msra.mxu0 %v5498_v20  ;;  %2553 = vmatprep.subr.bf16.mxu1 %v6215_v23  ;;  %v5567_v20 = vld [vmem:[%s7700_s2 + $0x2e0] ss:$8 sps:$4 sm:$0xff]  }
  0x56   : > { %1082 = vmatprep.subr.bf16.mxu0 %v5506_v22  ;;  %v6434_v22 = vld [vmem:[%s7700_s2 + $0x3e0] ss:$8 sps:$4 sm:$0xff]  }
  0x58   : > { %2554 = vmatpush1.bf16.msra.mxu1 %v6224_v25 }
  0x59   : > { %1083 = vmatpush1.bf16.msra.mxu0 %v5504_v24  ;;  %2555 = vmatprep.subr.bf16.mxu1 %v6233_v27  ;;  %v5576_v24 = vld [vmem:[%s7700_s2 + $0x2f4] ss:$8 sps:$4 sm:$0xff]  }
  0x5a   : > { %1084 = vmatprep.subr.bf16.mxu0 %v5512_v26  ;;  %v6444_v26 = vld [vmem:[%s7700_s2 + $0x3f4] ss:$8 sps:$4 sm:$0xff]  }
  0x5c   : > { %2556 = vmatpush1.bf16.msra.mxu1 %v6256_v36 }
  0x5d   : > { %1085 = vmatpush1.bf16.msra.mxu0 %v5510_v35  ;;  %2557 = vmatprep.subr.bf16.mxu1 %v6271_v40  ;;  %v5580_v35 = vld [vmem:[%s6068_s22 + $0x10] ss:$24 sps:$4 sm:$0xff]  }
  0x5e   : > { %1086 = vmatprep.subr.bf16.mxu0 %v5518_v39  ;;  %v6471_v39 = vld [vmem:[%s7700_s2 + $0x400] ss:$8 sps:$4 sm:$0xff]  }
  0x60   : > { %2558 = vmatpush1.bf16.msra.mxu1 %v6285_v42 }
  0x61   : > { %1087 = vmatpush1.bf16.msra.mxu0 %v5516_v41  ;;  %2559 = vmatprep.subr.bf16.mxu1 %v6294_v44  ;;  %v6478_v41 = vld [vmem:[%s7700_s2 + $0x414] ss:$8 sps:$4 sm:$0xff]  }
  0x62   : > { %1088 = vmatprep.subr.bf16.mxu0 %v5524_v43  ;;  %v5591_v43 = vld [vmem:[%s6068_s22 + $0x44] ss:$24 sps:$4 sm:$0xff]  }
  0x64   : > { %2560 = vmatpush1.bf16.msra.mxu1 %v6309_v50 }
  0x65   : > { %1089 = vmatpush1.bf16.msra.mxu0 %v5522_v47  ;;  %2561 = vmatprep.subr.bf16.mxu1 %v6318_v52  ;;  %v5593_v47 = vld [vmem:[%s6068_s22 + $0x40] ss:$24 sps:$4 sm:$0xff]  }
  0x66   : > { %1090 = vmatprep.subr.bf16.mxu0 %v5530_v51  ;;  %v6531_v51 = vld [vmem:[%s7700_s2 + $0x440] ss:$8 sps:$4 sm:$0xff]  }
  0x68   : > { %2562 = vmatpush1.bf16.msra.mxu1 %v6327_v54 }
  0x69   : > { %1091 = vmatpush1.bf16.msra.mxu0 %v5528_v53  ;;  %2563 = vmatprep.subr.bf16.mxu1 %v6336_v56  ;;  %v6624_v53 = vld [vmem:[%s7700_s2 + $0x4b4] ss:$8 sps:$4 sm:$0xff]  }
  0x6a   : > { %1092 = vmatprep.subr.bf16.mxu0 %v5536_v55  ;;  %v6638_v55 = vld [vmem:[%s7700_s2 + $0x4c4] ss:$8 sps:$4 sm:$0xff]  }
  0x6c   : > { %2564 = vmatpush1.bf16.msra.mxu1 %v6345_v58 }
  0x6d   : > { %1093 = vmatpush1.bf16.msra.mxu0 %v5534_v57  ;;  %2565 = vmatprep.subr.bf16.mxu1 %v6354_v60  ;;  %v6652_v57 = vld [vmem:[%s7700_s2 + $0x4d4] ss:$8 sps:$4 sm:$0xff]  }
  0x6e   : > { %1094 = vmatprep.subr.bf16.mxu0 %v5542_v59  ;;  %v6666_v59 = vld [vmem:[%s7700_s2 + $0x4e4] ss:$8 sps:$4 sm:$0xff]  }
  0x70   : > { %2566 = vmatpush1.bf16.msra.mxu1 %v6363_v62 }
  0x71   : > { %1095 = vmatpush1.bf16.msra.mxu0 %v5540_v61  ;;  %2567 = vmatprep.subr.bf16.mxu1 %v6372_v0  ;;  %v6680_v61 = vld [vmem:[%s7700_s2 + $0x4f4] ss:$8 sps:$4 sm:$0xff]  }
  0x72   : > { %1096 = vmatprep.subr.bf16.mxu0 %v5548_v63  ;;  %v6694_v63 = vld [vmem:[%s7700_s2 + $0x504] ss:$8 sps:$4 sm:$0xff]  }
  0x74   : > { %2568 = vmatpush1.bf16.msra.mxu1 %v6381_v2 }
  0x75   : > { %1097 = vmatpush1.bf16.msra.mxu0 %v5546_v1  ;;  %2569 = vmatprep.subr.bf16.mxu1 %v6390_v4  ;;  %v6699_v1 = vld [vmem:[%s6279_s14 + $0x10] sm:$0xff] }
  0x76   : > { %1098 = vmatprep.subr.bf16.mxu0 %v5554_v3  ;;  %v6713_v3 = vld [vmem:[%s7700_s2 + $0x514] ss:$8 sps:$4 sm:$0xff]  }
  0x78   : > { %2570 = vmatpush1.bf16.msra.mxu1 %v6399_v7 }
  0x79   : > { %1099 = vmatpush1.bf16.msra.mxu0 %v5552_v6  ;;  %2571 = vmatprep.subr.bf16.mxu1 %v6408_v10  ;;  %v4782_v6 = vcombine.high %v6699_v1, %v6699_v1 }
  0x7a   : > { %1100 = vmatprep.subr.bf16.mxu0 %v5560_v8  ;;  %v6734_v8 = vld [vmem:[%s7700_s2 + $0x524] ss:$8 sps:$4 sm:$0xff]  }
  0x7c   : > { %2572 = vmatpush1.bf16.msra.mxu1 %v6416_v14 }
  0x7d   : > { %1101 = vmatpush1.bf16.msra.mxu0 %v5558_v12  ;;  %2573 = vmatprep.subr.bf16.mxu1 %v6426_v18  ;;  %v6762_v12 = vld [vmem:[%s7700_s2 + $0x530] ss:$8 sps:$4 sm:$0xff]  }
  0x7e   : > { %1102 = vmatprep.subr.bf16.mxu0 %v5569_v16  ;;  %v6776_v16 = vld [vmem:[%s7700_s2 + $0x540] ss:$8 sps:$4 sm:$0xff]  }
  0x80   : > { %2574 = vmatpush1.bf16.msra.mxu1 %v6434_v22 }
  0x81   : > { %1103 = vmatpush1.bf16.msra.mxu0 %v5567_v20  ;;  %2575 = vmatprep.subr.bf16.mxu1 %v6444_v26  ;;  %v6790_v20 = vld [vmem:[%s7700_s2 + $0x550] ss:$8 sps:$4 sm:$0xff]  }
  0x82   : > { %1104 = vmatprep.subr.bf16.mxu0 %v5576_v24  ;;  %v6804_v24 = vld [vmem:[%s7700_s2 + $0x560] ss:$8 sps:$4 sm:$0xff]  }
  0x84   : > { %2576 = vmatpush1.bf16.msra.mxu1 %v6453_v31 }
  0x85   : > { %1105 = vmatpush1.bf16.msra.mxu0 %v5574_v29  ;;  %2586 = vmatprep.subr.bf16.mxu1 %v6459_v33  ;;  %v6818_v29 = vld [vmem:[%s7700_s2 + $0x570] ss:$8 sps:$4 sm:$0xff]  }
  0x86   : > { %1778 = vmatprep.subr.bf16.mxu0 %v6142_v5  ;;  %v6488_v5 = vld [vmem:[%s7700_s2 + $0x410] ss:$8 sps:$4 sm:$0xff]  }
  0x87   : > { %2578 = vmatmul.mubr.bf16.vlgmr.msra.gmra.mrb[8].mxu1 %v4777_v37  ;;  %v6846_v37 = vld [vmem:[%s7700_s2 + $0x590] ss:$8 sps:$4 sm:$0xff]  }
  0x88   : > { %1107 = vmatmul.mubr.bf16.vlgmr.msra.gmra.mrb[0].mxu0 %v5580_v35  ;;  %2587 = vmatpush1.bf16.msra.mxu1 %v6471_v39  ;;  %v6839_v35 = vld [vmem:[%s7700_s2 + $0x594] ss:$8 sps:$4 sm:$0xff]  }
  0x89   : > { %1779 = vmatpush1.bf16.msra.mxu0 %v6152_v9  ;;  %2588 = vmatprep.subr.bf16.mxu1 %v6478_v41  ;;  %v6503_v9 = vld [vmem:[%s7700_s2 + $0x420] ss:$8 sps:$4 sm:$0xff]  }
  0x8a   : > { %1780 = vmatprep.subr.bf16.mxu0 %v6161_v11  ;;  %1116 = vmatprep.mubr.bf16.mxu0 %v5591_v43  ;;  %v6510_v11 = vld [vmem:[%s7700_s2 + $0x434] ss:$8 sps:$4 sm:$0xff]   ;;  %v6874_v43 = vld [vmem:[%s7700_s2 + $0x5b0] ss:$8 sps:$4 sm:$0xff]  }
  0x8b   : > { %2618 = vmatprep.mubr.bf16.mxu1 %v4780_v45  ;;  %v6881_v45 = vld [vmem:[%s7700_s2 + $0x5c4] ss:$8 sps:$4 sm:$0xff]  }
  0x8c   : > { %2589 = vmatpush1.bf16.msra.mxu1 %v6488_v5 }
  0x8d   : > { %1781 = vmatpush1.bf16.msra.mxu0 %v6170_v13  ;;  %2590 = vmatprep.subr.bf16.mxu1 %v6495_v46  ;;  %v6517_v13 = vld [vmem:[%s7700_s2 + $0x430] ss:$8 sps:$4 sm:$0xff]  }
  0x8e   : > { %1782 = vmatprep.subr.bf16.mxu0 %v6179_v15  ;;  %v6526_v15 = vld [vmem:[%s7700_s2 + $0x444] ss:$8 sps:$4 sm:$0xff]  }
  0x90   : > { %1117 = vmatmul.mubr.bf16.gmra.mrb[4].mxu0 %v5593_v47  ;;  %2591 = vmatpush1.bf16.msra.mxu1 %v6503_v9  ;;  %v6902_v47 = vld [vmem:[%s7700_s2 + $0x5d0] ss:$8 sps:$4 sm:$0xff]  }
  0x91   : > { %1783 = vmatpush1.bf16.msra.mxu0 %v6188_v17  ;;  %2592 = vmatprep.subr.bf16.mxu1 %v6510_v11  ;;  %v6540_v17 = vld [vmem:[%s7700_s2 + $0x454] ss:$8 sps:$4 sm:$0xff]  }
  0x92   : > { %1784 = vmatprep.subr.bf16.mxu0 %v6197_v19  ;;  %1810 = vmatprep.mubr.bf16.mxu0 %v4574_v49  ;;  %v6545_v19 = vld [vmem:[%s7700_s2 + $0x450] ss:$8 sps:$4 sm:$0xff]   ;;  %v6923_v49 = vld [vmem:[%s7700_s2 + $0x5f4] ss:$8 sps:$4 sm:$0xff]  }
  0x94   : > { %2593 = vmatpush1.bf16.msra.mxu1 %v6517_v13 }
  0x95   : > { %1785 = vmatpush1.bf16.msra.mxu0 %v6206_v21  ;;  %2594 = vmatprep.subr.bf16.mxu1 %v6526_v15  ;;  %v6554_v21 = vld [vmem:[%s7700_s2 + $0x464] ss:$8 sps:$4 sm:$0xff]  }
  0x96   : > { %1786 = vmatprep.subr.bf16.mxu0 %v6215_v23  ;;  %v6559_v23 = vld [vmem:[%s7700_s2 + $0x460] ss:$8 sps:$4 sm:$0xff]  }
  0x98   : > { %2595 = vmatpush1.bf16.msra.mxu1 %v6531_v51 }
  0x99   : > { %1787 = vmatpush1.bf16.msra.mxu0 %v6224_v25  ;;  %2596 = vmatprep.subr.bf16.mxu1 %v6540_v17  ;;  %v6568_v25 = vld [vmem:[%s7700_s2 + $0x474] ss:$8 sps:$4 sm:$0xff]  }
  0x9a   : > { %1788 = vmatprep.subr.bf16.mxu0 %v6233_v27  ;;  %v6573_v27 = vld [vmem:[%s7700_s2 + $0x470] ss:$8 sps:$4 sm:$0xff]  }
  0x9c   : > { %2597 = vmatpush1.bf16.msra.mxu1 %v6545_v19 }
  0x9d   : > { %1789 = vmatpush1.bf16.msra.mxu0 %v6256_v36  ;;  %2598 = vmatprep.subr.bf16.mxu1 %v6554_v21  ;;  %v6582_v36 = vld [vmem:[%s7700_s2 + $0x484] ss:$8 sps:$4 sm:$0xff]  }
  0x9e   : > { %1790 = vmatprep.subr.bf16.mxu0 %v6271_v40  ;;  %v6587_v40 = vld [vmem:[%s7700_s2 + $0x480] ss:$8 sps:$4 sm:$0xff]  }
  0xa0   : > { %2599 = vmatpush1.bf16.msra.mxu1 %v6559_v23 }
  0xa1   : > { %1791 = vmatpush1.bf16.msra.mxu0 %v6285_v42  ;;  %2600 = vmatprep.subr.bf16.mxu1 %v6568_v25  ;;  %v6596_v42 = vld [vmem:[%s7700_s2 + $0x494] ss:$8 sps:$4 sm:$0xff]  }
  0xa2   : > { %1792 = vmatprep.subr.bf16.mxu0 %v6294_v44  ;;  %v6601_v44 = vld [vmem:[%s7700_s2 + $0x490] ss:$8 sps:$4 sm:$0xff]  }
  0xa4   : > { %2601 = vmatpush1.bf16.msra.mxu1 %v6573_v27 }
  0xa5   : > { %1793 = vmatpush1.bf16.msra.mxu0 %v6309_v50  ;;  %2602 = vmatprep.subr.bf16.mxu1 %v6582_v36  ;;  %v6610_v50 = vld [vmem:[%s7700_s2 + $0x4a4] ss:$8 sps:$4 sm:$0xff]  }
  0xa6   : > { %1794 = vmatprep.subr.bf16.mxu0 %v6318_v52  ;;  %v6615_v52 = vld [vmem:[%s7700_s2 + $0x4a0] ss:$8 sps:$4 sm:$0xff]  }
  0xa8   : > { %2603 = vmatpush1.bf16.msra.mxu1 %v6587_v40 }
  0xa9   : > { %1795 = vmatpush1.bf16.msra.mxu0 %v6327_v54  ;;  %2604 = vmatprep.subr.bf16.mxu1 %v6596_v42  ;;  %v6629_v54 = vld [vmem:[%s7700_s2 + $0x4b0] ss:$8 sps:$4 sm:$0xff]  }
  0xaa   : > { %1796 = vmatprep.subr.bf16.mxu0 %v6336_v56  ;;  %v6643_v56 = vld [vmem:[%s7700_s2 + $0x4c0] ss:$8 sps:$4 sm:$0xff]  }
  0xac   : > { %2605 = vmatpush1.bf16.msra.mxu1 %v6601_v44 }
  0xad   : > { %1797 = vmatpush1.bf16.msra.mxu0 %v6345_v58  ;;  %2606 = vmatprep.subr.bf16.mxu1 %v6610_v50  ;;  %v6659_v58 = vld [vmem:[%s7700_s2 + $0x4d0] ss:$8 sps:$4 sm:$0xff]  }
  0xae   : > { %1798 = vmatprep.subr.bf16.mxu0 %v6354_v60  ;;  %v6673_v60 = vld [vmem:[%s7700_s2 + $0x4e0] ss:$8 sps:$4 sm:$0xff]  }
  0xb0   : > { %2607 = vmatpush1.bf16.msra.mxu1 %v6615_v52 }
  0xb1   : > { %1799 = vmatpush1.bf16.msra.mxu0 %v6363_v62  ;;  %2608 = vmatprep.subr.bf16.mxu1 %v6624_v53  ;;  %v6687_v62 = vld [vmem:[%s7700_s2 + $0x4f0] ss:$8 sps:$4 sm:$0xff]  }
  0xb2   : > { %1800 = vmatprep.subr.bf16.mxu0 %v6372_v0  ;;  %v4779_v0 = vcombine.low %v6465_v38, %v6465_v38  ;;  %v6853_v38 = vld [vmem:[%s7700_s2 + $0x5a4] ss:$8 sps:$4 sm:$0xff]  }
  0xb4   : > { %2609 = vmatpush1.bf16.msra.mxu1 %v6629_v54 }
  0xb5   : > { %1801 = vmatpush1.bf16.msra.mxu0 %v6381_v2  ;;  %2610 = vmatprep.subr.bf16.mxu1 %v6638_v55  ;;  %v6706_v2 = vld [vmem:[%s7700_s2 + $0x500] ss:$8 sps:$4 sm:$0xff]  }
  0xb6   : > { %1802 = vmatprep.subr.bf16.mxu0 %v6390_v4  ;;  %v4580_v4 = vcombine.high %v6244_v32, %v6244_v32  ;;  %v4576_v32 = vcombine.high %v6739_v30, %v6236_v28 }
  0xb8   : > { %2611 = vmatpush1.bf16.msra.mxu1 %v6643_v56 }
  0xb9   : > { %1803 = vmatpush1.bf16.msra.mxu0 %v6399_v7  ;;  %2612 = vmatprep.subr.bf16.mxu1 %v6652_v57  ;;  %v6727_v7 = vld [vmem:[%s7700_s2 + $0x510] ss:$8 sps:$4 sm:$0xff]  }
  0xba   : > { %1804 = vmatprep.subr.bf16.mxu0 %v6408_v10  ;;  %v6753_v10 = vld [vmem:[%s7700_s2 + $0x534] ss:$8 sps:$4 sm:$0xff]  }
  0xbc   : > { %2613 = vmatpush1.bf16.msra.mxu1 %v6659_v58 }
  0xbd   : > { %1805 = vmatpush1.bf16.msra.mxu0 %v6416_v14  ;;  %2614 = vmatprep.subr.bf16.mxu1 %v6666_v59  ;;  %v6769_v14 = vld [vmem:[%s7700_s2 + $0x544] ss:$8 sps:$4 sm:$0xff]  }
  0xbe   : > { %1806 = vmatprep.subr.bf16.mxu0 %v6426_v18  ;;  %v6783_v18 = vld [vmem:[%s7700_s2 + $0x554] ss:$8 sps:$4 sm:$0xff]  }
  0xc0   : > { %2615 = vmatpush1.bf16.msra.mxu1 %v6673_v60 }
  0xc1   : > { %1807 = vmatpush1.bf16.msra.mxu0 %v6434_v22  ;;  %2616 = vmatprep.subr.bf16.mxu1 %v6680_v61  ;;  %v6797_v22 = vld [vmem:[%s7700_s2 + $0x564] ss:$8 sps:$4 sm:$0xff]  }
  0xc2   : > { %1808 = vmatprep.subr.bf16.mxu0 %v6444_v26  ;;  %v6811_v26 = vld [vmem:[%s7700_s2 + $0x574] ss:$8 sps:$4 sm:$0xff]  }
  0xc4   : > { %2617 = vmatpush1.bf16.msra.mxu1 %v6687_v62 }
  0xc5   : > { %1809 = vmatpush1.bf16.msra.mxu0 %v6453_v31  ;;  %2627 = vmatprep.subr.bf16.mxu1 %v6694_v63  ;;  %v6825_v31 = vld [vmem:[%s7700_s2 + $0x584] ss:$8 sps:$4 sm:$0xff]  }
  0xc6   : > { %1829 = vmatprep.subr.bf16.mxu0 %v6459_v33  ;;  %v6832_v33 = vld [vmem:[%s7700_s2 + $0x580] ss:$8 sps:$4 sm:$0xff]  }
  0xc7   : > { %2619 = vmatmul.mubr.bf16.vlgmr.msra.gmra.mrb[8].mxu1 %v4779_v0  ;;  %v7063_v0 = vld [vmem:[%s7700_s2 + $0x670] ss:$8 sps:$4 sm:$0xff]  }
  0xc8   : > { %1811 = vmatmul.mubr.bf16.vlgmr.msra.gmra.mrb[0].mxu0 %v4573_v34  ;;  %2628 = vmatpush1.bf16.msra.mxu1 %v6706_v2  ;;  %v6746_v34 = vld [vmem:[%s7700_s2 + $0x520] ss:$8 sps:$4 sm:$0xff]  }
  0xc9   : > { %1830 = vmatpush1.bf16.msra.mxu0 %v6471_v39  ;;  %2629 = vmatprep.subr.bf16.mxu1 %v6713_v3  ;;  %v6860_v39 = vld [vmem:[%s7700_s2 + $0x5a0] ss:$8 sps:$4 sm:$0xff]  }
  0xca   : > { %1831 = vmatprep.subr.bf16.mxu0 %v6478_v41  ;;  %1820 = vmatprep.mubr.bf16.mxu0 %v4580_v4  ;;  %v6867_v41 = vld [vmem:[%s7700_s2 + $0x5b4] ss:$8 sps:$4 sm:$0xff]   ;;  %v7091_v4 = vld [vmem:[%s7700_s2 + $0x690] ss:$8 sps:$4 sm:$0xff]  }
  0xcb   : > { %2659 = vmatprep.mubr.bf16.mxu1 %v4782_v6  ;;  %v7098_v6 = vld [vmem:[%s7700_s2 + $0x6a4] ss:$8 sps:$4 sm:$0xff]  }
  0xcc   : > { %2630 = vmatpush1.bf16.msra.mxu1 %v6727_v7 }
  0xcd   : > { %1832 = vmatpush1.bf16.msra.mxu0 %v6488_v5  ;;  %2631 = vmatprep.subr.bf16.mxu1 %v6734_v8  ;;  %v6888_v5 = vld [vmem:[%s7700_s2 + $0x5c0] ss:$8 sps:$4 sm:$0xff]  }
  0xce   : > { %1833 = vmatprep.subr.bf16.mxu0 %v6495_v46  ;;  %v6895_v46 = vld [vmem:[%s7700_s2 + $0x5d4] ss:$8 sps:$4 sm:$0xff]  }
  0xd0   : > { %1821 = vmatmul.mubr.bf16.gmra.mrb[8].mxu0 %v4579_v48  ;;  %2632 = vmatpush1.bf16.msra.mxu1 %v6746_v34 }
  0xd1   : > { %1834 = vmatpush1.bf16.msra.mxu0 %v6503_v9  ;;  %2633 = vmatprep.subr.bf16.mxu1 %v6753_v10  ;;  %v6909_v9 = vld [vmem:[%s7700_s2 + $0x5e4] ss:$8 sps:$4 sm:$0xff]  }
  0xd2   : > { %1835 = vmatprep.subr.bf16.mxu0 %v6510_v11  ;;  %1861 = vmatprep.mubr.bf16.mxu0 %v4576_v32  ;;  %v6916_v11 = vld [vmem:[%s7700_s2 + $0x5e0] ss:$8 sps:$4 sm:$0xff]   ;;  %v7132_v32 = vld [vmem:[%s7700_s2 + $0x6c4] ss:$8 sps:$4 sm:$0xff]  }
  0xd4   : > { %2634 = vmatpush1.bf16.msra.mxu1 %v6762_v12 }
  0xd5   : > { %1836 = vmatpush1.bf16.msra.mxu0 %v6517_v13  ;;  %2635 = vmatprep.subr.bf16.mxu1 %v6769_v14  ;;  %v6930_v13 = vld [vmem:[%s7700_s2 + $0x5f0] ss:$8 sps:$4 sm:$0xff]  }
  0xd6   : > { %1837 = vmatprep.subr.bf16.mxu0 %v6526_v15  ;;  %v6937_v15 = vld [vmem:[%s7700_s2 + $0x604] ss:$8 sps:$4 sm:$0xff]  }
  0xd8   : > { %2636 = vmatpush1.bf16.msra.mxu1 %v6776_v16 }
  0xd9   : > { %1838 = vmatpush1.bf16.msra.mxu0 %v6531_v51  ;;  %2637 = vmatprep.subr.bf16.mxu1 %v6783_v18  ;;  %v4781_v51 = vcombine.low %v6699_v1, %v6699_v1  ;;  %v7070_v1 = vld [vmem:[%s7700_s2 + $0x684] ss:$8 sps:$4 sm:$0xff]  }
  0xda   : > { %1839 = vmatprep.subr.bf16.mxu0 %v6540_v17  ;;  %v4575_v17 = vcombine.low %v6739_v30, %v6236_v28 }
  0xdc   : > { %2638 = vmatpush1.bf16.msra.mxu1 %v6790_v20 }
  0xdd   : > { %1840 = vmatpush1.bf16.msra.mxu0 %v6545_v19  ;;  %2639 = vmatprep.subr.bf16.mxu1 %v6797_v22  ;;  %v6944_v19 = vld [vmem:[%s6068_s22 + $0x50] sm:$0xff] }
  0xde   : > { %1841 = vmatprep.subr.bf16.mxu0 %v6554_v21  ;;  %v6951_v21 = vld [vmem:[%s7700_s2 + $0x600] ss:$8 sps:$4 sm:$0xff]   ;;  %v4582_v28 = vcombine.high %v6944_v19, %v6944_v19 }
  0xe0   : > { %2640 = vmatpush1.bf16.msra.mxu1 %v6804_v24 }
  0xe1   : > { %1842 = vmatpush1.bf16.msra.mxu0 %v6559_v23  ;;  %2641 = vmatprep.subr.bf16.mxu1 %v6811_v26  ;;  %v6958_v23 = vld [vmem:[%s7700_s2 + $0x614] ss:$8 sps:$4 sm:$0xff]  }
  0xe2   : > { %1843 = vmatprep.subr.bf16.mxu0 %v6568_v25  ;;  %v5749_v25 = vld [vmem:[%s6279_s14 + $0x4] ss:$24 sps:$4 sm:$0xff]  }
  0xe4   : > { %2642 = vmatpush1.bf16.msra.mxu1 %v6818_v29 }
  0xe5   : > { %1844 = vmatpush1.bf16.msra.mxu0 %v6573_v27  ;;  %2643 = vmatprep.subr.bf16.mxu1 %v6825_v31  ;;  %v6968_v27 = vld [vmem:[%s7700_s2 + $0x610] ss:$8 sps:$4 sm:$0xff]  }
  0xe6   : > { %1845 = vmatprep.subr.bf16.mxu0 %v6582_v36  ;;  %v6975_v36 = vld [vmem:[%s7700_s2 + $0x624] ss:$8 sps:$4 sm:$0xff]  }
  0xe8   : > { %2644 = vmatpush1.bf16.msra.mxu1 %v6832_v33 }
  0xe9   : > { %1846 = vmatpush1.bf16.msra.mxu0 %v6587_v40  ;;  %2645 = vmatprep.subr.bf16.mxu1 %v6839_v35  ;;  %v4581_v40 = vcombine.low %v6944_v19, %v6944_v19 }
  0xea   : > { %1847 = vmatprep.subr.bf16.mxu0 %v6596_v42  ;;  %v6984_v42 = vld [vmem:[%s7700_s2 + $0x620] ss:$8 sps:$4 sm:$0xff]  }
  0xec   : > { %2646 = vmatpush1.bf16.msra.mxu1 %v6846_v37 }
  0xed   : > { %1848 = vmatpush1.bf16.msra.mxu0 %v6601_v44  ;;  %2647 = vmatprep.subr.bf16.mxu1 %v6853_v38  ;;  %v6991_v44 = vld [vmem:[%s7700_s2 + $0x634] ss:$8 sps:$4 sm:$0xff]  }
  0xee   : > { %1849 = vmatprep.subr.bf16.mxu0 %v6610_v50  ;;  %v5746_v50 = vld [vmem:[%s6068_s22 + $0x2c] ss:$24 sps:$4 sm:$0xff]  }
  0xf0   : > { %2648 = vmatpush1.bf16.msra.mxu1 %v6860_v39 }
  0xf1   : > { %1850 = vmatpush1.bf16.msra.mxu0 %v6615_v52  ;;  %2649 = vmatprep.subr.bf16.mxu1 %v6867_v41  ;;  %v6999_v52 = vld [vmem:[%s7700_s2 + $0x630] ss:$8 sps:$4 sm:$0xff]  }
  0xf2   : > { %1851 = vmatprep.subr.bf16.mxu0 %v6624_v53  ;;  %v7006_v53 = vld [vmem:[%s7700_s2 + $0x644] ss:$8 sps:$4 sm:$0xff]  }
  0xf4   : > { %2650 = vmatpush1.bf16.msra.mxu1 %v6874_v43 }
  0xf5   : > { %1852 = vmatpush1.bf16.msra.mxu0 %v6629_v54  ;;  %2651 = vmatprep.subr.bf16.mxu1 %v6881_v45  ;;  %v7013_v54 = vld [vmem:[%s7700_s2 + $0x640] ss:$8 sps:$4 sm:$0xff]  }
  0xf6   : > { %1853 = vmatprep.subr.bf16.mxu0 %v6638_v55  ;;  %v7020_v55 = vld [vmem:[%s7700_s2 + $0x654] ss:$8 sps:$4 sm:$0xff]  }
  0xf8   : > { %2652 = vmatpush1.bf16.msra.mxu1 %v6888_v5 }
  0xf9   : > { %1854 = vmatpush1.bf16.msra.mxu0 %v6643_v56  ;;  %2653 = vmatprep.subr.bf16.mxu1 %v6895_v46  ;;  %v7027_v56 = vld [vmem:[%s7700_s2 + $0x650] ss:$8 sps:$4 sm:$0xff]  }
  0xfa   : > { %1855 = vmatprep.subr.bf16.mxu0 %v6652_v57  ;;  %v7034_v57 = vld [vmem:[%s7700_s2 + $0x664] ss:$8 sps:$4 sm:$0xff]  }
  0xfc   : > { %2654 = vmatpush1.bf16.msra.mxu1 %v6902_v47 }
  0xfd   : > { %1856 = vmatpush1.bf16.msra.mxu0 %v6659_v58  ;;  %2655 = vmatprep.subr.bf16.mxu1 %v6909_v9 }
  0xfe   : > { %1857 = vmatprep.subr.bf16.mxu0 %v6666_v59 }
 0x100   : > { %2656 = vmatpush1.bf16.msra.mxu1 %v6916_v11 }
 0x101   : > { %1858 = vmatpush1.bf16.msra.mxu0 %v6673_v60  ;;  %2657 = vmatprep.subr.bf16.mxu1 %v6923_v49  ;;  %v7045_v60 = vld [vmem:[%s7700_s2 + $0x660] ss:$8 sps:$4 sm:$0xff]  }
 0x102   : > { %1859 = vmatprep.subr.bf16.mxu0 %v6680_v61 }
 0x104   : > { %2658 = vmatpush1.bf16.msra.mxu1 %v6930_v13 }
 0x105   : > { %1860 = vmatpush1.bf16.msra.mxu0 %v6687_v62  ;;  %4042 = vmatprep.subr.bf16.mxu1 %v6937_v15  ;;  %v7054_v62 = vld [vmem:[%s7700_s2 + $0x674] ss:$8 sps:$4 sm:$0xff]  }
 0x106   : > { %1880 = vmatprep.subr.bf16.mxu0 %v6694_v63 }
 0x107   : > { %2660 = vmatmul.mubr.bf16.vlgmr.msra.gmra.mrb[8].mxu1 %v4781_v51  ;;  %v7278_v51 = vld [vmem:[%s7700_s2 + $0x750] ss:$8 sps:$4 sm:$0xff]  }
 0x108   : > { %1862 = vmatmul.mubr.bf16.vlgmr.msra.gmra.mrb[0].mxu0 %v4575_v17  ;;  %4043 = vmatpush1.bf16.msra.mxu1 %v6951_v21  ;;  %v7285_v17 = vld [vmem:[%s7700_s2 + $0x764] ss:$8 sps:$4 sm:$0xff]  }
 0x109   : > { %1881 = vmatpush1.bf16.msra.mxu0 %v6706_v2  ;;  %4044 = vmatprep.subr.bf16.mxu1 %v6958_v23  ;;  %v7077_v2 = vld [vmem:[%s7700_s2 + $0x680] ss:$8 sps:$4 sm:$0xff]  }
 0x10a   : > { %1882 = vmatprep.subr.bf16.mxu0 %v6713_v3  ;;  %1871 = vmatprep.mubr.bf16.mxu0 %v4582_v28  ;;  %v7084_v3 = vld [vmem:[%s7700_s2 + $0x694] ss:$8 sps:$4 sm:$0xff]   ;;  %v7306_v28 = vld [vmem:[%s7700_s2 + $0x770] ss:$8 sps:$4 sm:$0xff]  }
 0x10b   : > { %4074 = vmatprep.mubr.bf16.mxu1 %v5749_v25  ;;  %v7313_v25 = vld [vmem:[%s7700_s2 + $0x784] ss:$8 sps:$4 sm:$0xff]  }
 0x10c   : > { %4045 = vmatpush1.bf16.msra.mxu1 %v6968_v27 }
 0x10d   : > { %1883 = vmatpush1.bf16.msra.mxu0 %v6727_v7  ;;  %4046 = vmatprep.subr.bf16.mxu1 %v6975_v36  ;;  %v7105_v7 = vld [vmem:[%s7700_s2 + $0x6a0] ss:$8 sps:$4 sm:$0xff]  }
 0x10e   : > { %1884 = vmatprep.subr.bf16.mxu0 %v6734_v8  ;;  %v7112_v8 = vld [vmem:[%s7700_s2 + $0x6b4] ss:$8 sps:$4 sm:$0xff]  }
 0x110   : > { %1872 = vmatmul.mubr.bf16.gmra.mrb[8].mxu0 %v4581_v40  ;;  %4047 = vmatpush1.bf16.msra.mxu1 %v6984_v42 }
 0x111   : > { %1885 = vmatpush1.bf16.msra.mxu0 %v6746_v34  ;;  %4048 = vmatprep.subr.bf16.mxu1 %v6991_v44  ;;  %v7123_v34 = vld [vmem:[%s7700_s2 + $0x6b0] ss:$8 sps:$4 sm:$0xff]  }
 0x112   : > { %1886 = vmatprep.subr.bf16.mxu0 %v6753_v10  ;;  %1912 = vmatprep.mubr.bf16.mxu0 %v5746_v50  ;;  %v7326_v50 = vld [vmem:[%s7700_s2 + $0x780] ss:$8 sps:$4 sm:$0xff]  }
 0x114   : > { %4049 = vmatpush1.bf16.msra.mxu1 %v6999_v52 }
 0x115   : > { %1887 = vmatpush1.bf16.msra.mxu0 %v6762_v12  ;;  %4050 = vmatprep.subr.bf16.mxu1 %v7006_v53 }
 0x116   : > { %1888 = vmatprep.subr.bf16.mxu0 %v6769_v14  ;;  %v7141_v14 = vld [vmem:[%s7700_s2 + $0x6c0] ss:$8 sps:$4 sm:$0xff]  }
 0x118   : > { %4051 = vmatpush1.bf16.msra.mxu1 %v7013_v54 }
 0x119   : > { %1889 = vmatpush1.bf16.msra.mxu0 %v6776_v16  ;;  %4052 = vmatprep.subr.bf16.mxu1 %v7020_v55  ;;  %v7148_v16 = vld [vmem:[%s7700_s2 + $0x6d4] ss:$8 sps:$4 sm:$0xff]  }
 0x11a   : > { %1890 = vmatprep.subr.bf16.mxu0 %v6783_v18  ;;  %v7036_v58 = vpop.f32.mrb[0].mxu1  ;;  %v7155_v18 = vld [vmem:[%s7700_s2 + $0x6d0] ss:$8 sps:$4 sm:$0xff]  }
 0x11b   : > { %v7038_v59 = vpop.f32.mrb[1].mxu1 }
 0x11c   : > { %4053 = vmatpush1.bf16.msra.mxu1 %v7027_v56  ;;  %v7047_v61 = vpop.f32.mrb[2].mxu1 }
 0x11d   : > { %1891 = vmatpush1.bf16.msra.mxu0 %v6790_v20  ;;  %4054 = vmatprep.subr.bf16.mxu1 %v7034_v57  ;;  %v7056_v63 = vpop.f32.mrb[3].mxu1  ;;  %v7162_v20 = vld [vmem:[%s7700_s2 + $0x6e4] ss:$8 sps:$4 sm:$0xff]  }
 0x11e   : > { %1892 = vmatprep.subr.bf16.mxu0 %v6797_v22  ;;  %v7169_v22 = vld [vmem:[%s7700_s2 + $0x6e0] ss:$8 sps:$4 sm:$0xff]  }
 0x120   : > { %4055 = vmatpush1.bf16.msra.mxu1 %v7045_v60 }
 0x121   : > { %1893 = vmatpush1.bf16.msra.mxu0 %v6804_v24  ;;  %4056 = vmatprep.subr.bf16.mxu1 %v7054_v62  ;;  %v7176_v24 = vld [vmem:[%s7700_s2 + $0x6f4] ss:$8 sps:$4 sm:$0xff]  }
 0x122   : > { %1894 = vmatprep.subr.bf16.mxu0 %v6811_v26  ;;  %v7114_v48 = vpop.f32.mrb[4].mxu1  ;;  %v7183_v26 = vld [vmem:[%s7700_s2 + $0x6f0] ss:$8 sps:$4 sm:$0xff]  }
 0x123   : > { %v7116_v30 = vpop.f32.mrb[5].mxu1 }
 0x124   : > { %4057 = vmatpush1.bf16.msra.mxu1 %v7063_v0  ;;  %v7125_v10 = vpop.f32.mrb[6].mxu1 }
 0x125   : > { %1895 = vmatpush1.bf16.msra.mxu0 %v6818_v29  ;;  %4058 = vmatprep.subr.bf16.mxu1 %v7070_v1  ;;  %v7134_v12 = vpop.f32.mrb[7].mxu1  ;;  %v7190_v29 = vld [vmem:[%s7700_s2 + $0x704] ss:$8 sps:$4 sm:$0xff]  }
 0x126   : > { %1896 = vmatprep.subr.bf16.mxu0 %v6825_v31  ;;  %v5744_v31 = vld [vmem:[%s6068_s22 + $0x28] ss:$24 sps:$4 sm:$0xff]  }
 0x128   : > { %4059 = vmatpush1.bf16.msra.mxu1 %v7077_v2 }
 0x129   : > { %1897 = vmatpush1.bf16.msra.mxu0 %v6832_v33  ;;  %4060 = vmatprep.subr.bf16.mxu1 %v7084_v3  ;;  %v5747_v33 = vld [vmem:[%s6279_s14] ss:$24 sps:$4 sm:$0xff]  }
 0x12a   : > { %1898 = vmatprep.subr.bf16.mxu0 %v6839_v35  ;;  %v7195_v35 = vld [vmem:[%s6068_s22 + $0x58] sm:$0xff] }
 0x12c   : > { %4061 = vmatpush1.bf16.msra.mxu1 %v7091_v4 }
 0x12d   : > { %1899 = vmatpush1.bf16.msra.mxu0 %v6846_v37  ;;  %4062 = vmatprep.subr.bf16.mxu1 %v7098_v6  ;;  %v7202_v37 = vld [vmem:[%s7700_s2 + $0x700] ss:$8 sps:$4 sm:$0xff]  }
 0x12e   : > { %1900 = vmatprep.subr.bf16.mxu0 %v6853_v38  ;;  %v7209_v38 = vld [vmem:[%s7700_s2 + $0x714] ss:$8 sps:$4 sm:$0xff]  }
 0x130   : > { %4063 = vmatpush1.bf16.msra.mxu1 %v7105_v7 }
 0x131   : > { %1901 = vmatpush1.bf16.msra.mxu0 %v6860_v39  ;;  %4064 = vmatprep.subr.bf16.mxu1 %v7112_v8  ;;  %v4584_v39 = vcombine.high %v7195_v35, %v7195_v35 }
 0x132   : > { %1902 = vmatprep.subr.bf16.mxu0 %v6867_v41  ;;  %v5805_v41 = vld [vmem:[%s6279_s14 + $0xc] ss:$24 sps:$4 sm:$0xff]  }
 0x134   : > { %4065 = vmatpush1.bf16.msra.mxu1 %v7123_v34 }
 0x135   : > { %1903 = vmatpush1.bf16.msra.mxu0 %v6874_v43  ;;  %4066 = vmatprep.subr.bf16.mxu1 %v7132_v32  ;;  %v7219_v43 = vld [vmem:[%s7700_s2 + $0x710] ss:$8 sps:$4 sm:$0xff]  }
 0x136   : > { %1904 = vmatprep.subr.bf16.mxu0 %v6881_v45  ;;  %v7226_v45 = vld [vmem:[%s7700_s2 + $0x724] ss:$8 sps:$4 sm:$0xff]  }
 0x138   : > { %4067 = vmatpush1.bf16.msra.mxu1 %v7141_v14 }
 0x139   : > { %1905 = vmatpush1.bf16.msra.mxu0 %v6888_v5  ;;  %4068 = vmatprep.subr.bf16.mxu1 %v7148_v16  ;;  %v4583_v5 = vcombine.low %v7195_v35, %v7195_v35 }
 0x13a   : > { %1906 = vmatprep.subr.bf16.mxu0 %v6895_v46  ;;  %v7235_v46 = vld [vmem:[%s7700_s2 + $0x720] ss:$8 sps:$4 sm:$0xff]  }
 0x13c   : > { %4069 = vmatpush1.bf16.msra.mxu1 %v7155_v18 }
 0x13d   : > { %1907 = vmatpush1.bf16.msra.mxu0 %v6902_v47  ;;  %4070 = vmatprep.subr.bf16.mxu1 %v7162_v20  ;;  %v7242_v47 = vld [vmem:[%s7700_s2 + $0x734] ss:$8 sps:$4 sm:$0xff]  }
 0x13e   : > { %1908 = vmatprep.subr.bf16.mxu0 %v6909_v9  ;;  %v5802_v9 = vld [vmem:[%s6068_s22 + $0x34] ss:$24 sps:$4 sm:$0xff]  }
 0x140   : > { %4071 = vmatpush1.bf16.msra.mxu1 %v7169_v22 }
 0x141   : > { %1909 = vmatpush1.bf16.msra.mxu0 %v6916_v11  ;;  %4072 = vmatprep.subr.bf16.mxu1 %v7176_v24  ;;  %v7250_v11 = vld [vmem:[%s7700_s2 + $0x730] ss:$8 sps:$4 sm:$0xff]  }
 0x142   : > { %1910 = vmatprep.subr.bf16.mxu0 %v6923_v49  ;;  %v7257_v49 = vld [vmem:[%s7700_s2 + $0x744] ss:$8 sps:$4 sm:$0xff]  }
 0x144   : > { %4073 = vmatpush1.bf16.msra.mxu1 %v7183_v26 }
 0x145   : > { %1911 = vmatpush1.bf16.msra.mxu0 %v6930_v13  ;;  %4085 = vmatprep.subr.bf16.mxu1 %v7190_v29  ;;  %v7264_v13 = vld [vmem:[%s7700_s2 + $0x740] ss:$8 sps:$4 sm:$0xff]  }
 0x146   : > { %3289 = vmatprep.subr.bf16.mxu0 %v6937_v15  ;;  %v7271_v15 = vld [vmem:[%s7700_s2 + $0x754] ss:$8 sps:$4 sm:$0xff]  }
 0x147   : > { %4075 = vmatmul.mubr.bf16.vlgmr.msra.gmra.mrb[12].mxu1 %v5747_v33  ;;  %v7508_v33 = vld [vmem:[%s7700_s2 + $0x840] ss:$8 sps:$4 sm:$0xff]  }
 0x148   : > { %1913 = vmatmul.mubr.bf16.vlgmr.msra.gmra.mrb[0].mxu0 %v5744_v31  ;;  %4086 = vmatpush1.bf16.msra.mxu1 %v7202_v37  ;;  %v7501_v31 = vld [vmem:[%s7700_s2 + $0x844] ss:$8 sps:$4 sm:$0xff]  }
 0x149   : > { %3290 = vmatpush1.bf16.msra.mxu0 %v6951_v21  ;;  %4087 = vmatprep.subr.bf16.mxu1 %v7209_v38  ;;  %v7292_v21 = vld [vmem:[%s7700_s2 + $0x760] ss:$8 sps:$4 sm:$0xff]  }
 0x14a   : > { %3291 = vmatprep.subr.bf16.mxu0 %v6958_v23  ;;  %1922 = vmatprep.mubr.bf16.mxu0 %v4584_v39  ;;  %v7299_v23 = vld [vmem:[%s7700_s2 + $0x774] ss:$8 sps:$4 sm:$0xff]   ;;  %v7529_v39 = vld [vmem:[%s7700_s2 + $0x864] ss:$8 sps:$4 sm:$0xff]  }
 0x14b   : > { %4117 = vmatprep.mubr.bf16.mxu1 %v5805_v41  ;;  %v7536_v41 = vld [vmem:[%s7700_s2 + $0x860] ss:$8 sps:$4 sm:$0xff]  }
 0x14c   : > { %4088 = vmatpush1.bf16.msra.mxu1 %v7219_v43 }
 0x14d   : > { %3292 = vmatpush1.bf16.msra.mxu0 %v6968_v27  ;;  %4089 = vmatprep.subr.bf16.mxu1 %v7226_v45 }
 0x14e   : > { %3293 = vmatprep.subr.bf16.mxu0 %v6975_v36 }
 0x150   : > { %1923 = vmatmul.mubr.bf16.gmra.mrb[8].mxu0 %v4583_v5  ;;  %4090 = vmatpush1.bf16.msra.mxu1 %v7235_v46  ;;  %v7557_v5 = vld [vmem:[%s7700_s2 + $0x884] ss:$8 sps:$4 sm:$0xff]  }
 0x151   : > { %3294 = vmatpush1.bf16.msra.mxu0 %v6984_v42  ;;  %4091 = vmatprep.subr.bf16.mxu1 %v7242_v47 }
 0x152   : > { %3295 = vmatprep.subr.bf16.mxu0 %v6991_v44  ;;  %3321 = vmatprep.mubr.bf16.mxu0 %v5802_v9  ;;  %v7578_v9 = vld [vmem:[%s7700_s2 + $0x890] ss:$8 sps:$4 sm:$0xff]  }
 0x154   : > { %4092 = vmatpush1.bf16.msra.mxu1 %v7250_v11 }
 0x155   : > { %3296 = vmatpush1.bf16.msra.mxu0 %v6999_v52  ;;  %4093 = vmatprep.subr.bf16.mxu1 %v7257_v49 }
 0x156   : > { %3297 = vmatprep.subr.bf16.mxu0 %v7006_v53 }
 0x158   : > { %4094 = vmatpush1.bf16.msra.mxu1 %v7264_v13 }
 0x159   : > { %3298 = vmatpush1.bf16.msra.mxu0 %v7013_v54  ;;  %4095 = vmatprep.subr.bf16.mxu1 %v7271_v15  ;;  %v7336_v54 = vld [vmem:[%s7700_s2 + $0x794] ss:$8 sps:$4 sm:$0xff]  }
 0x15a   : > { %3299 = vmatprep.subr.bf16.mxu0 %v7020_v55 }
 0x15c   : > { %4096 = vmatpush1.bf16.msra.mxu1 %v7278_v51 }
 0x15d   : > { %3300 = vmatpush1.bf16.msra.mxu0 %v7027_v56  ;;  %4097 = vmatprep.subr.bf16.mxu1 %v7285_v17  ;;  %v7346_v56 = vld [vmem:[%s7700_s2 + $0x790] ss:$8 sps:$4 sm:$0xff]  }
 0x15e   : > { %3301 = vmatprep.subr.bf16.mxu0 %v7034_v57  ;;  %v7353_v57 = vld [vmem:[%s7700_s2 + $0x7a4] ss:$8 sps:$4 sm:$0xff]  }
 0x160   : > { %4098 = vmatpush1.bf16.msra.mxu1 %v7292_v21 }
 0x161   : > { %3302 = vmatpush1.bf16.msra.mxu0 %v7045_v60  ;;  %4099 = vmatprep.subr.bf16.mxu1 %v7299_v23  ;;  %v7360_v60 = vld [vmem:[%s7700_s2 + $0x7a0] ss:$8 sps:$4 sm:$0xff]  }
 0x162   : > { %3303 = vmatprep.subr.bf16.mxu0 %v7054_v62  ;;  %v7367_v62 = vld [vmem:[%s7700_s2 + $0x7b4] ss:$8 sps:$4 sm:$0xff]  }
 0x163   : > { %v1118_v27 = vpop.f32.mrb[4].mxu0 }
 0x164   : > { %v7316_v36 = vadd.f32 %v1118_v27, %v7114_v48  ;;  %v1120_v40 = vpop.f32.mrb[5].mxu0  ;;  %4100 = vmatpush1.bf16.msra.mxu1 %v7306_v28  ;;  %v7430_v48 = vld [vmem:[%s7700_s2 + $0x7f0] ss:$8 sps:$4 sm:$0xff]   ;;  %v5853_v27 = vld [vmem:[%s7700_s2 + $0x8f4] ss:$8 sps:$4 sm:$0xff]  }
 0x165   : > { %v7319_v42 = vadd.f32 %v1120_v40, %v7116_v30  ;;  %v1122_v44 = vpop.f32.mrb[6].mxu0  ;;  %3304 = vmatpush1.bf16.msra.mxu0 %v7063_v0  ;;  %4101 = vmatprep.subr.bf16.mxu1 %v7313_v25  ;;  %v7374_v0 = vld [vmem:[%s7700_s2 + $0x7b0] ss:$8 sps:$4 sm:$0xff]   ;;  %v7437_v30 = vld [vmem:[%s7700_s2 + $0x804] ss:$8 sps:$4 sm:$0xff]  }
 0x166   : > { %v7329_v52 = vadd.f32 %v1122_v44, %v7125_v10  ;;  %v1124_v53 = vpop.f32.mrb[7].mxu0  ;;  %3305 = vmatprep.subr.bf16.mxu0 %v7070_v1  ;;  %v7381_v1 = vld [vmem:[%s7700_s2 + $0x7c4] ss:$8 sps:$4 sm:$0xff]   ;;  %v5803_v10 = vld [vmem:[%s6279_s14 + $0x8] ss:$24 sps:$4 sm:$0xff]  }
 0x167   : > { %v7339_v55 = vadd.f32 %v1124_v53, %v7134_v12  ;;  %v7449_v12 = vld [vmem:[%s7700_s2 + $0x800] ss:$8 sps:$4 sm:$0xff]   ;;  %v5851_v40 = vld [vmem:[%s7700_s2 + $0x8f0] ss:$8 sps:$4 sm:$0xff]  }
 0x168   : > { %4102 = vmatpush1.bf16.msra.mxu1 %v7326_v50  ;;  %v2678_v44 = vld [vmem:[%s6068_s22 + $0x40] sm:$0xff] }
 0x169   : > { %3306 = vmatpush1.bf16.msra.mxu0 %v7077_v2  ;;  %4103 = vmatprep.subr.bf16.mxu1 %v7336_v54  ;;  %v7388_v2 = vld [vmem:[%s7700_s2 + $0x7c0] ss:$8 sps:$4 sm:$0xff]  }
 0x16a   : > { %3307 = vmatprep.subr.bf16.mxu0 %v7084_v3  ;;  %v7395_v3 = vld [vmem:[%s7700_s2 + $0x7d4] ss:$8 sps:$4 sm:$0xff]  }
 0x16c   : > { %4104 = vmatpush1.bf16.msra.mxu1 %v7346_v56 }
 0x16d   : > { %3308 = vmatpush1.bf16.msra.mxu0 %v7091_v4  ;;  %4105 = vmatprep.subr.bf16.mxu1 %v7353_v57  ;;  %v7402_v4 = vld [vmem:[%s7700_s2 + $0x7d0] ss:$8 sps:$4 sm:$0xff]  }
 0x16e   : > { %3309 = vmatprep.subr.bf16.mxu0 %v7098_v6  ;;  %v7409_v6 = vld [vmem:[%s7700_s2 + $0x7e4] ss:$8 sps:$4 sm:$0xff]  }
 0x170   : > { %4106 = vmatpush1.bf16.msra.mxu1 %v7360_v60 }
 0x171   : > { %3310 = vmatpush1.bf16.msra.mxu0 %v7105_v7  ;;  %4107 = vmatprep.subr.bf16.mxu1 %v7367_v62  ;;  %v7416_v7 = vld [vmem:[%s7700_s2 + $0x7e0] ss:$8 sps:$4 sm:$0xff]  }
 0x172   : > { %3311 = vmatprep.subr.bf16.mxu0 %v7112_v8  ;;  %v7423_v8 = vld [vmem:[%s7700_s2 + $0x7f4] ss:$8 sps:$4 sm:$0xff]  }
 0x174   : > { %4108 = vmatpush1.bf16.msra.mxu1 %v7374_v0 }
 0x175   : > { %3312 = vmatpush1.bf16.msra.mxu0 %v7123_v34  ;;  %4109 = vmatprep.subr.bf16.mxu1 %v7381_v1  ;;  %v5800_v34 = vld [vmem:[%s6068_s22 + $0x30] ss:$24 sps:$4 sm:$0xff]  }
 0x176   : > { %3313 = vmatprep.subr.bf16.mxu0 %v7132_v32  ;;  %v7442_v32 = vld [vmem:[%s6068_s22 + $0x38] sm:$0xff] }
 0x177   : > { %v4977_v53 = vcombine.low %v7442_v32, %v6944_v19 }
 0x178   : > { %4110 = vmatpush1.bf16.msra.mxu1 %v7388_v2 }
 0x179   : > { %3314 = vmatpush1.bf16.msra.mxu0 %v7141_v14  ;;  %4111 = vmatprep.subr.bf16.mxu1 %v7395_v3  ;;  %v7456_v14 = vld [vmem:[%s7700_s2 + $0x814] ss:$8 sps:$4 sm:$0xff]  }
 0x17a   : > { %3315 = vmatprep.subr.bf16.mxu0 %v7148_v16  ;;  %v5856_v16 = vld [vmem:[%s6279_s14 + $0x14] ss:$24 sps:$4 sm:$0xff]  }
 0x17c   : > { %4112 = vmatpush1.bf16.msra.mxu1 %v7402_v4 }
 0x17d   : > { %3316 = vmatpush1.bf16.msra.mxu0 %v7155_v18  ;;  %4113 = vmatprep.subr.bf16.mxu1 %v7409_v6  ;;  %v4978_v18 = vcombine.high %v7442_v32, %v6944_v19 }
 0x17e   : > { %3317 = vmatprep.subr.bf16.mxu0 %v7162_v20  ;;  %v7466_v20 = vld [vmem:[%s7700_s2 + $0x810] ss:$8 sps:$4 sm:$0xff]  }
 0x180   : > { %4114 = vmatpush1.bf16.msra.mxu1 %v7416_v7 }
 0x181   : > { %3318 = vmatpush1.bf16.msra.mxu0 %v7169_v22  ;;  %4115 = vmatprep.subr.bf16.mxu1 %v7423_v8  ;;  %v7473_v22 = vld [vmem:[%s7700_s2 + $0x824] ss:$8 sps:$4 sm:$0xff]  }
 0x182   : > { %3319 = vmatprep.subr.bf16.mxu0 %v7176_v24  ;;  %v7480_v24 = vld [vmem:[%s7700_s2 + $0x820] ss:$8 sps:$4 sm:$0xff]  }
 0x184   : > { %4116 = vmatpush1.bf16.msra.mxu1 %v7430_v48 }
 0x185   : > { %3320 = vmatpush1.bf16.msra.mxu0 %v7183_v26  ;;  %4128 = vmatprep.subr.bf16.mxu1 %v7437_v30  ;;  %v7487_v26 = vld [vmem:[%s7700_s2 + $0x834] ss:$8 sps:$4 sm:$0xff]  }
 0x186   : > { %3332 = vmatprep.subr.bf16.mxu0 %v7190_v29  ;;  %v7494_v29 = vld [vmem:[%s7700_s2 + $0x830] ss:$8 sps:$4 sm:$0xff]  }
 0x187   : > { %4118 = vmatmul.mubr.bf16.vlgmr.msra.gmra.mrb[12].mxu1 %v5803_v10 }
 0x188   : > { %3322 = vmatmul.mubr.bf16.vlgmr.msra.gmra.mrb[0].mxu0 %v5800_v34  ;;  %4129 = vmatpush1.bf16.msra.mxu1 %v7449_v12 }
 0x189   : > { %3333 = vmatpush1.bf16.msra.mxu0 %v7202_v37  ;;  %4130 = vmatprep.subr.bf16.mxu1 %v7456_v14  ;;  %v7515_v37 = vld [vmem:[%s7700_s2 + $0x854] ss:$8 sps:$4 sm:$0xff]  }
 0x18a   : > { %3334 = vmatprep.subr.bf16.mxu0 %v7209_v38  ;;  %4160 = vmatprep.mubr.bf16.mxu1 %v5856_v16  ;;  %v7522_v38 = vld [vmem:[%s7700_s2 + $0x850] ss:$8 sps:$4 sm:$0xff]  }
 0x18b   : > { %3364 = vmatprep.mubr.bf16.mxu0 %v4978_v18 }
 0x18c   : > { %4131 = vmatpush1.bf16.msra.mxu1 %v7466_v20 }
 0x18d   : > { %3335 = vmatpush1.bf16.msra.mxu0 %v7219_v43  ;;  %4132 = vmatprep.subr.bf16.mxu1 %v7473_v22  ;;  %v7543_v43 = vld [vmem:[%s7700_s2 + $0x874] ss:$8 sps:$4 sm:$0xff]  }
 0x18e   : > { %3336 = vmatprep.subr.bf16.mxu0 %v7226_v45  ;;  %v7550_v45 = vld [vmem:[%s7700_s2 + $0x870] ss:$8 sps:$4 sm:$0xff]  }
 0x190   : > { %4133 = vmatpush1.bf16.msra.mxu1 %v7480_v24 }
 0x191   : > { %3337 = vmatpush1.bf16.msra.mxu0 %v7235_v46  ;;  %4134 = vmatprep.subr.bf16.mxu1 %v7487_v26  ;;  %v7564_v46 = vld [vmem:[%s7700_s2 + $0x880] ss:$8 sps:$4 sm:$0xff]  }
 0x192   : > { %3338 = vmatprep.subr.bf16.mxu0 %v7242_v47  ;;  %v7571_v47 = vld [vmem:[%s7700_s2 + $0x894] ss:$8 sps:$4 sm:$0xff]  }
 0x194   : > { %4135 = vmatpush1.bf16.msra.mxu1 %v7494_v29 }
 0x195   : > { %3339 = vmatpush1.bf16.msra.mxu0 %v7250_v11  ;;  %4136 = vmatprep.subr.bf16.mxu1 %v7501_v31  ;;  %v7585_v11 = vld [vmem:[%s7700_s2 + $0x8a4] ss:$8 sps:$4 sm:$0xff]  }
 0x196   : > { %3340 = vmatprep.subr.bf16.mxu0 %v7257_v49  ;;  %v7592_v49 = vld [vmem:[%s7700_s2 + $0x8a0] ss:$8 sps:$4 sm:$0xff]  }
 0x198   : > { %4137 = vmatpush1.bf16.msra.mxu1 %v7508_v33 }
 0x199   : > { %3341 = vmatpush1.bf16.msra.mxu0 %v7264_v13  ;;  %4138 = vmatprep.subr.bf16.mxu1 %v7515_v37  ;;  %v7599_v13 = vld [vmem:[%s7700_s2 + $0x8b4] ss:$8 sps:$4 sm:$0xff]  }
 0x19a   : > { %3342 = vmatprep.subr.bf16.mxu0 %v7271_v15  ;;  %v7606_v15 = vld [vmem:[%s7700_s2 + $0x8b0] ss:$8 sps:$4 sm:$0xff]  }
 0x19c   : > { %4139 = vmatpush1.bf16.msra.mxu1 %v7522_v38 }
 0x19d   : > { %3343 = vmatpush1.bf16.msra.mxu0 %v7278_v51  ;;  %4140 = vmatprep.subr.bf16.mxu1 %v7529_v39  ;;  %v5844_v51 = vld [vmem:[%s7700_s2 + $0x8c4] ss:$8 sps:$4 sm:$0xff]  }
 0x19e   : > { %3344 = vmatprep.subr.bf16.mxu0 %v7285_v17  ;;  %v5842_v17 = vld [vmem:[%s7700_s2 + $0x8c0] ss:$8 sps:$4 sm:$0xff]  }
 0x1a0   : > { %4141 = vmatpush1.bf16.msra.mxu1 %v7536_v41 }
 0x1a1   : > { %3345 = vmatpush1.bf16.msra.mxu0 %v7292_v21  ;;  %4142 = vmatprep.subr.bf16.mxu1 %v7543_v43  ;;  %v5847_v21 = vld [vmem:[%s7700_s2 + $0x8d4] ss:$8 sps:$4 sm:$0xff]  }
 0x1a2   : > { %3346 = vmatprep.subr.bf16.mxu0 %v7299_v23  ;;  %v5845_v23 = vld [vmem:[%s7700_s2 + $0x8d0] ss:$8 sps:$4 sm:$0xff]  }
 0x1a4   : > { %4143 = vmatpush1.bf16.msra.mxu1 %v7550_v45 }
 0x1a5   : > { %3347 = vmatpush1.bf16.msra.mxu0 %v7306_v28  ;;  %4144 = vmatprep.subr.bf16.mxu1 %v7557_v5  ;;  %v5850_v28 = vld [vmem:[%s7700_s2 + $0x8e4] ss:$8 sps:$4 sm:$0xff]  }
 0x1a6   : > { %3348 = vmatprep.subr.bf16.mxu0 %v7313_v25  ;;  %v5848_v25 = vld [vmem:[%s7700_s2 + $0x8e0] ss:$8 sps:$4 sm:$0xff]  }
 0x1a8   : > { %4145 = vmatpush1.bf16.msra.mxu1 %v7564_v46 }
 0x1a9   : > { %3349 = vmatpush1.bf16.msra.mxu0 %v7326_v50  ;;  %4146 = vmatprep.subr.bf16.mxu1 %v7571_v47  ;;  %v5854_v50 = vld [vmem:[%s6279_s14 + $0x10] ss:$24 sps:$4 sm:$0xff]  }
 0x1aa   : > { %3350 = vmatprep.subr.bf16.mxu0 %v7336_v54  ;;  %v4980_v54 = vcombine.high %v2678_v44, %v7195_v35 }
 0x1ac   : > { %4147 = vmatpush1.bf16.msra.mxu1 %v7578_v9 }
 0x1ad   : > { %3351 = vmatpush1.bf16.msra.mxu0 %v7346_v56  ;;  %4148 = vmatprep.subr.bf16.mxu1 %v7585_v11 }
 0x1ae   : > { %3352 = vmatprep.subr.bf16.mxu0 %v7353_v57 }
 0x1b0   : > { %4149 = vmatpush1.bf16.msra.mxu1 %v7592_v49 }
 0x1b1   : > { %3353 = vmatpush1.bf16.msra.mxu0 %v7360_v60  ;;  %4150 = vmatprep.subr.bf16.mxu1 %v7599_v13 }
 0x1b2   : > { %3354 = vmatprep.subr.bf16.mxu0 %v7367_v62 }
 0x1b4   : > { %4151 = vmatpush1.bf16.msra.mxu1 %v7606_v15 }
 0x1b5   : > { %3355 = vmatpush1.bf16.msra.mxu0 %v7374_v0  ;;  %4152 = vmatprep.subr.bf16.mxu1 %v5844_v51 }
 0x1b6   : > { %3356 = vmatprep.subr.bf16.mxu0 %v7381_v1 }
 0x1b8   : > { %4153 = vmatpush1.bf16.msra.mxu1 %v5842_v17 }
 0x1b9   : > { %3357 = vmatpush1.bf16.msra.mxu0 %v7388_v2  ;;  %4154 = vmatprep.subr.bf16.mxu1 %v5847_v21 }
 0x1ba   : > { %3358 = vmatprep.subr.bf16.mxu0 %v7395_v3 }
 0x1bc   : > { %4155 = vmatpush1.bf16.msra.mxu1 %v5845_v23 }
 0x1bd   : > { %3359 = vmatpush1.bf16.msra.mxu0 %v7402_v4  ;;  %4156 = vmatprep.subr.bf16.mxu1 %v5850_v28 }
 0x1be   : > { %3360 = vmatprep.subr.bf16.mxu0 %v7409_v6 }
 0x1c0   : > { %4157 = vmatpush1.bf16.msra.mxu1 %v5848_v25 }
 0x1c1   : > { %3361 = vmatpush1.bf16.msra.mxu0 %v7416_v7  ;;  %4158 = vmatprep.subr.bf16.mxu1 %v5853_v27  ;;  %v4189_v7 = vlaneseq }
 0x1c2   : > { %3362 = vmatprep.subr.bf16.mxu0 %v7423_v8 }
 0x1c3   : > { %v4190_v8 = vshrl.u32 %v4189_v7, 7 }
 0x1c4   : > { %4159 = vmatpush1.bf16.msra.mxu1 %v5851_v40 }
 0x1c5   : > { %3363 = vmatpush1.bf16.msra.mxu0 %v7430_v48  ;;  %v4191_v48 = vsub.s32 0, %v4190_v8  ;;  %v4195_v34 = vsub.s32 1, %v4190_v8 }
 0x1c6   : > { %3375 = vmatprep.subr.bf16.mxu0 %v7437_v30  ;;  %v4187_v30 = vld [vmem:[%s7701_s3] sm:$0x3] }
 0x1c7   : > { %4161 = vmatmul.mubr.bf16.vlgmr.msra.gmra.mrb[12].mxu1 %v5854_v50  ;;  %v4196_v32 = vrot.slane %v4187_v30, %v4195_v34 }
 0x1c8   : > { %3365 = vmatmul.mubr.bf16.vlgmr.msra.gmra.mrb[0].mxu0 %v4977_v53 }
 0x1c9   : > { %3376 = vmatpush1.bf16.msra.mxu0 %v7449_v12  ;;  %3407 = vmatprep.mubr.bf16.mxu0 %v4980_v54 }
 0x1ca   : > { %3377 = vmatprep.subr.bf16.mxu0 %v7456_v14 }
 0x1cd   : > { %3378 = vmatpush1.bf16.msra.mxu0 %v7466_v20 }
 0x1ce   : > { %3379 = vmatprep.subr.bf16.mxu0 %v7473_v22 }
 0x1d1   : > { %3380 = vmatpush1.bf16.msra.mxu0 %v7480_v24 }
 0x1d2   : > { %3381 = vmatprep.subr.bf16.mxu0 %v7487_v26 }
 0x1d5   : > { %3382 = vmatpush1.bf16.msra.mxu0 %v7494_v29 }
 0x1d6   : > { %3383 = vmatprep.subr.bf16.mxu0 %v7501_v31 }
 0x1d9   : > { %3384 = vmatpush1.bf16.msra.mxu0 %v7508_v33 }
 0x1da   : > { %3385 = vmatprep.subr.bf16.mxu0 %v7515_v37  ;;  %v2661_v19 = vpop.f32.mrb[8].mxu1 }
 0x1db   : > { %v2668_v56 = vadd.f32 %v7329_v52, %v2661_v19  ;;  %v2663_v57 = vpop.f32.mrb[9].mxu1  ;;  %v4979_v52 = vcombine.low %v2678_v44, %v7195_v35  ;;  %v4192_v35 = vrot.slane %v4187_v30, %v4191_v48 }
 0x1dc   : > { %v2669_v60 = vadd.f32 %v7339_v55, %v2663_v57  ;;  %v2665_v62 = vpop.f32.mrb[10].mxu1 }
 0x1dd   : > { %3386 = vmatpush1.bf16.msra.mxu0 %v7522_v38  ;;  %v2666_v0 = vpop.f32.mrb[11].mxu1 }
 0x1de   : > { %3387 = vmatprep.subr.bf16.mxu0 %v7529_v39 }
 0x1e1   : > { %3388 = vmatpush1.bf16.msra.mxu0 %v7536_v41 }
 0x1e2   : > { %3389 = vmatprep.subr.bf16.mxu0 %v7543_v43 }
 0x1e5   : > { %3390 = vmatpush1.bf16.msra.mxu0 %v7550_v45 }
 0x1e6   : > { %3391 = vmatprep.subr.bf16.mxu0 %v7557_v5 }
 0x1e9   : > { %3392 = vmatpush1.bf16.msra.mxu0 %v7564_v46 }
 0x1ea   : > { %3393 = vmatprep.subr.bf16.mxu0 %v7571_v47 }
 0x1ed   : > { %3394 = vmatpush1.bf16.msra.mxu0 %v7578_v9 }
 0x1ee   : > { %3395 = vmatprep.subr.bf16.mxu0 %v7585_v11 }
 0x1f1   : > { %3396 = vmatpush1.bf16.msra.mxu0 %v7592_v49 }
 0x1f2   : > { %3397 = vmatprep.subr.bf16.mxu0 %v7599_v13 }
 0x1f5   : > { %3398 = vmatpush1.bf16.msra.mxu0 %v7606_v15 }
 0x1f6   : > { %3399 = vmatprep.subr.bf16.mxu0 %v5844_v51 }
 0x1f9   : > { %3400 = vmatpush1.bf16.msra.mxu0 %v5842_v17 }
 0x1fa   : > { %3401 = vmatprep.subr.bf16.mxu0 %v5847_v21 }
 0x1fd   : > { %3402 = vmatpush1.bf16.msra.mxu0 %v5845_v23 }
 0x1fe   : > { %3403 = vmatprep.subr.bf16.mxu0 %v5850_v28 }
 0x201   : > { %3404 = vmatpush1.bf16.msra.mxu0 %v5848_v25 }
 0x202   : > { %3405 = vmatprep.subr.bf16.mxu0 %v5853_v27 }
 0x205   : > { %3406 = vmatpush1.bf16.msra.mxu0 %v5851_v40 }
 0x208   : > { %3408 = vmatmul.mubr.bf16.vlgmr.msra.gmra.mrb[0].mxu0 %v4979_v52 }
 0x223   : > { %v1924_v55 = vpop.f32.mrb[8].mxu0 }
 0x224   : > { %v1935_v1 = vadd.f32 %v7316_v36, %v1924_v55  ;;  %v1926_v2 = vpop.f32.mrb[9].mxu0 }
 0x225   : > { %v1936_v3 = vadd.f32 %v7319_v42, %v1926_v2  ;;  %v1928_v4 = vpop.f32.mrb[10].mxu0 }
 0x226   : > { %v1929_v6 = vpop.f32.mrb[11].mxu0 }
 0x29a   : > { %v4162_v10 = vpop.f32.mrb[12].mxu1 }
 0x29b   : > { %v4171_v12 = vadd.f32 %v4162_v10, %v1935_v1  ;;  %v4164_v14 = vpop.f32.mrb[13].mxu1 }
 0x29c   : > { %v4172_v36 = vadd.f32 %v4164_v14, %v1936_v3  ;;  %v4166_v16 = vpop.f32.mrb[14].mxu1 }
 0x29d   : > { %v4203_v18 = vadd.f32 %v4192_v35, %v4171_v12  ;;  %v4173_v42 = vadd.f32 %v4166_v16, %v2668_v56  ;;  %v4168_v20 = vpop.f32.mrb[15].mxu1 }
 0x29e   : > { %v4204_v22 = vadd.f32 %v4196_v32, %v4172_v36  ;;  %v4174_v24 = vadd.f32 %v4168_v20, %v2669_v60 }
 0x29f   : > { %v4211_v26 = vmax.f32 %v4203_v18, 0.0  ;;  %v4205_v29 = vadd.f32 %v4192_v35, %v4173_v42 }
 0x2a0   : > { %v4212_v31 = vmax.f32 %v4204_v22, 0.0  ;;  %v4206_v33 = vadd.f32 %v4196_v32, %v4174_v24 }
 0x2a1   : > { %v4213_v37 = vmax.f32 %v4205_v29, 0.0 }
 0x2a2   : > { %v5286_v38 = vpack.c.bf16 %v4212_v31, %v4211_v26  ;;  %v4214_v39 = vmax.f32 %v4206_v33, 0.0 }
 0x2a4   : > { %4241 = vst [vmem:[%s318_s12 + $0x10] sm:$0xff] %v5286_v38  ;;  %v5287_v41 = vpack.c.bf16 %v4214_v39, %v4213_v37 }
 0x2a6   : > { %4242 = vst [vmem:[%s318_s12 + $0x18] sm:$0xff] %v5287_v41 }
 0x2db   : > { %v3409_v43 = vpop.f32.mrb[0].mxu0 }
 0x2dc   : > { %v5288_v45 = vadd.f32 %v3409_v43, %v7036_v58  ;;  %v3411_v5 = vpop.f32.mrb[1].mxu0 }
 0x2dd   : > { %v5289_v46 = vadd.f32 %v3411_v5, %v7038_v59  ;;  %v3413_v47 = vpop.f32.mrb[2].mxu0 }
 0x2de   : > { %v4199_v9 = vadd.f32 %v5288_v45, %v4192_v35  ;;  %v5290_v11 = vadd.f32 %v3413_v47, %v7047_v61  ;;  %v3415_v49 = vpop.f32.mrb[3].mxu0 }
 0x2df   : > { %v4200_v13 = vadd.f32 %v5289_v46, %v4196_v32  ;;  %v5291_v15 = vadd.f32 %v3415_v49, %v7056_v63 }
 0x2e0   : > { %v4207_v51 = vmax.f32 %v4199_v9, 0.0  ;;  %v4201_v17 = vadd.f32 %v5290_v11, %v4192_v35 }
 0x2e1   : > { %v4208_v21 = vmax.f32 %v4200_v13, 0.0  ;;  %v4202_v23 = vadd.f32 %v5291_v15, %v4196_v32 }
 0x2e2   : > { %v4209_v28 = vmax.f32 %v4201_v17, 0.0 }
 0x2e3   : > { %v5284_v25 = vpack.c.bf16 %v4208_v21, %v4207_v51  ;;  %v4210_v27 = vmax.f32 %v4202_v23, 0.0 }
 0x2e5   : > { %4239 = vst [vmem:[%s318_s12] sm:$0xff] %v5284_v25  ;;  %v5285_v58 = vpack.c.bf16 %v4210_v27, %v4209_v28 }
 0x2e7   : > { %4240 = vst [vmem:[%s318_s12 + $0x8] sm:$0xff] %v5285_v58 }
 0x2e8 PF: > { %s14_s17 = sadd.s32 1, %s5883_s17   ;;  %s7703_s15 = smov %s5879_s16 }
 0x2e9   : > { %p11_p5 = scmp.ge.s32.totalorder %s14_s17, 4   ;;  %s7704_s16 = smov %s7706_s18 }
 0x2eb   :  { %13 = sbr.rel (!%p11_p5) target bundleno = 2 (0x2), region = 71 }

// kernel: feature_extractor.17
= control target key start
LH: loop header
LB: loop body
LE: loop exit
PB: predicated region body
PF: predicated region fallthrough
CT: control target
= control target key end

     0   :  { %s5902_s15 = smov 0   ;;  %s5904_s16 = smov 0   ;;  %s7690_s0 = inlined_call_operand.vmem [shape: bf16[2,48,768], index: 0, kind: input, shape index: {}, may-alias: {0,1}]   ;;  %s7691_s1 = inlined_call_operand.vmem [shape: bf16[2,48,768], index: 1, kind: input, shape index: {}, may-alias: {0,1}]   ;;  %s7692_s2 = inlined_call_operand.vmem [shape: bf16[3,768,256], index: 2, kind: input, shape index: {}]   ;;  %s7693_s3 = inlined_call_operand.vmem [shape: f32[1,256], index: 3, kind: input, shape index: {}]   ;;  %s7694_s4 = inlined_call_operand.vmem [shape: bf16[2,32,256], index: 4, kind: output, shape index: {}]  }
   0x1   :  { %s5906_s17 = smov 0  }
   0x2 LB: > { %s26_s18 = sadd.s32 1, %s5871_s16  ;;  %p4356_p0 = scmp.ge.s32.totalorder %s5875_s17, 1  ;;  %s5875_s17 = sphi %s5906_s17, %s14_s17   ;;  %s5871_s16 = sphi %s5904_s16, %s7696_s16   ;;  %s5867_s15 = sphi %s5902_s15, %s7695_s15  }
   0x3   : > { %p28_p1 = scmp.ge.s32.totalorder %s26_s18, 2  ;;  %p220_p2 = scmp.lt.s32.totalorder %s5875_s17, 3 }
   0x5   : > { %s7698_s18 = smov (%p28_p1, %s26_s18), 0  ;;  %p221_p3 = pnand %p4356_p0, %p220_p2 }
   0x6   : > { %v5371_v0 = vld [vmem:[%s7692_s2 + $0x4] ss:$8 sps:$4 sm:$0xff] (!%p221_p3)   ;;  %p279_p4 = scmp.lt.s32.totalorder (!%p221_p3), %s5867_s15, 1  ;;  %v5375_v2 = vld [vmem:[%s7692_s2] ss:$8 sps:$4 sm:$0xff] (!%p221_p3)  }
   0x7   : > { %224 = sbr.rel (%p221_p3) target bundleno = 742 (0x2e6), region = 36  ;;  %v5373_v1 = vld [vmem:[%s7692_s2 + $0x104] ss:$8 sps:$4 sm:$0xff] (!%p221_p3)   ;;  %968 = vmatprep.subr.bf16.mxu1 (!%p221_p3), %v5371_v0  ;;  %v5376_v3 = vld [vmem:[%s7692_s2 + $0x100] ss:$8 sps:$4 sm:$0xff] (!%p221_p3)  }
   0x8   : > { %1021 = vmatprep.subr.bf16.mxu0 (!%p221_p3), %v5373_v1  ;;  %v5377_v4 = vld [vmem:[%s7692_s2 + $0x14] ss:$8 sps:$4 sm:$0xff] (!%p221_p3)   ;;  %969 = vmatpush1.bf16.msra.mxu1 (!%p221_p3), %v5375_v2  ;;  %v5381_v6 = vld [vmem:[%s7692_s2 + $0x10] ss:$8 sps:$4 sm:$0xff] (!%p221_p3)   ;;  %v5383_v8 = vld [vmem:[%s7692_s2 + $0x24] ss:$8 sps:$4 sm:$0xff] (!%p221_p3)  }
   0x9   : > { %1022 = vmatpush1.bf16.msra.mxu0 (!%p221_p3), %v5376_v3  ;;  %v5379_v5 = vld [vmem:[%s7692_s2 + $0x114] ss:$8 sps:$4 sm:$0xff] (!%p221_p3)   ;;  %970 = vmatprep.subr.bf16.mxu1 (!%p221_p3), %v5377_v4  ;;  %v5382_v7 = vld [vmem:[%s7692_s2 + $0x110] ss:$8 sps:$4 sm:$0xff] (!%p221_p3)   ;;  %v5385_v9 = vld [vmem:[%s7692_s2 + $0x124] ss:$8 sps:$4 sm:$0xff] (!%p221_p3)  }
   0xa   : > { %1023 = vmatprep.subr.bf16.mxu0 (!%p221_p3), %v5379_v5  ;;  %v5387_v10 = vld [vmem:[%s7692_s2 + $0x20] ss:$8 sps:$4 sm:$0xff] (!%p221_p3)   ;;  %v5389_v12 = vld [vmem:[%s7692_s2 + $0x34] ss:$8 sps:$4 sm:$0xff] (!%p221_p3)   ;;  %v5393_v14 = vld [vmem:[%s7692_s2 + $0x30] ss:$8 sps:$4 sm:$0xff] (!%p221_p3)  }
   0xb   : > { %v5388_v11 = vld [vmem:[%s7692_s2 + $0x120] ss:$8 sps:$4 sm:$0xff] (!%p221_p3)   ;;  %v5391_v13 = vld [vmem:[%s7692_s2 + $0x134] ss:$8 sps:$4 sm:$0xff] (!%p221_p3)   ;;  %v5394_v15 = vld [vmem:[%s7692_s2 + $0x130] ss:$8 sps:$4 sm:$0xff] (!%p221_p3)  }
   0xc   : > { %971 = vmatpush1.bf16.msra.mxu1 (!%p221_p3), %v5381_v6  ;;  %v5395_v16 = vld [vmem:[%s7692_s2 + $0x44] ss:$8 sps:$4 sm:$0xff] (!%p221_p3)   ;;  %v5399_v18 = vld [vmem:[%s7692_s2 + $0x40] ss:$8 sps:$4 sm:$0xff] (!%p221_p3)   ;;  %v5401_v20 = vld [vmem:[%s7692_s2 + $0x54] ss:$8 sps:$4 sm:$0xff] (!%p221_p3)  }
   0xd   : > { %1024 = vmatpush1.bf16.msra.mxu0 (!%p221_p3), %v5382_v7  ;;  %972 = vmatprep.subr.bf16.mxu1 (!%p221_p3), %v5383_v8  ;;  %v5397_v17 = vld [vmem:[%s7692_s2 + $0x144] ss:$8 sps:$4 sm:$0xff] (!%p221_p3)   ;;  %v5400_v19 = vld [vmem:[%s7692_s2 + $0x140] ss:$8 sps:$4 sm:$0xff] (!%p221_p3)   ;;  %v5403_v21 = vld [vmem:[%s7692_s2 + $0x154] ss:$8 sps:$4 sm:$0xff] (!%p221_p3)  }
   0xe   : > { %s7700_s15 = smov (!%p279_p4, %s5867_s15), 1  ;;  %1025 = vmatprep.subr.bf16.mxu0 %v5385_v9  ;;  %v5405_v22 = vld [vmem:[%s7692_s2 + $0x50] ss:$8 sps:$4 sm:$0xff]   ;;  %v5407_v24 = vld [vmem:[%s7692_s2 + $0x64] ss:$8 sps:$4 sm:$0xff]  }
   0xf   : > { %v5406_v23 = vld [vmem:[%s7692_s2 + $0x150] ss:$8 sps:$4 sm:$0xff]   ;;  %v5409_v25 = vld [vmem:[%s7692_s2 + $0x164] ss:$8 sps:$4 sm:$0xff]   ;;  %v5411_v26 = vld [vmem:[%s7692_s2 + $0x60] ss:$8 sps:$4 sm:$0xff]  }
  0x10   : > { %973 = vmatpush1.bf16.msra.mxu1 %v5387_v10  ;;  %v5412_v27 = vld [vmem:[%s7692_s2 + $0x160] ss:$8 sps:$4 sm:$0xff]   ;;  %v5413_v28 = vld [vmem:[%s7692_s2 + $0x74] ss:$8 sps:$4 sm:$0xff]   ;;  %v5417_v30 = vld [vmem:[%s7692_s2 + $0x70] ss:$8 sps:$4 sm:$0xff]  }
  0x11   : > { %1026 = vmatpush1.bf16.msra.mxu0 %v5388_v11  ;;  %974 = vmatprep.subr.bf16.mxu1 %v5389_v12  ;;  %v5415_v29 = vld [vmem:[%s7692_s2 + $0x174] ss:$8 sps:$4 sm:$0xff]   ;;  %v5418_v31 = vld [vmem:[%s7692_s2 + $0x170] ss:$8 sps:$4 sm:$0xff]   ;;  %v5419_v32 = vld [vmem:[%s7692_s2 + $0x84] ss:$8 sps:$4 sm:$0xff]  }
  0x12   : > { %1027 = vmatprep.subr.bf16.mxu0 %v5391_v13  ;;  %v5421_v33 = vld [vmem:[%s7692_s2 + $0x184] ss:$8 sps:$4 sm:$0xff]   ;;  %v5423_v34 = vld [vmem:[%s7692_s2 + $0x80] ss:$8 sps:$4 sm:$0xff]   ;;  %v5425_v36 = vld [vmem:[%s7692_s2 + $0x94] ss:$8 sps:$4 sm:$0xff]  }
  0x13   : > { %v5424_v35 = vld [vmem:[%s7692_s2 + $0x180] ss:$8 sps:$4 sm:$0xff]   ;;  %v5427_v37 = vld [vmem:[%s7692_s2 + $0x194] ss:$8 sps:$4 sm:$0xff]   ;;  %v5429_v38 = vld [vmem:[%s7692_s2 + $0x90] ss:$8 sps:$4 sm:$0xff]  }
  0x14   : > { %975 = vmatpush1.bf16.msra.mxu1 %v5393_v14  ;;  %s5344_s5 = smul.u32 144, %s7700_s15  ;;  %v5430_v39 = vld [vmem:[%s7692_s2 + $0x190] ss:$8 sps:$4 sm:$0xff]   ;;  %v5431_v40 = vld [vmem:[%s7692_s2 + $0xa4] ss:$8 sps:$4 sm:$0xff]   ;;  %s5275_s9 = sshll.u32 %s7700_s15, 5 }
  0x15   : > { %1028 = vmatpush1.bf16.msra.mxu0 %v5394_v15  ;;  %976 = vmatprep.subr.bf16.mxu1 %v5395_v16  ;;  %v5433_v41 = vld [vmem:[%s7692_s2 + $0x1a4] ss:$8 sps:$4 sm:$0xff]   ;;  %v5435_v42 = vld [vmem:[%s7692_s2 + $0xa0] ss:$8 sps:$4 sm:$0xff]   ;;  %v5437_v44 = vld [vmem:[%s7692_s2 + $0xb4] ss:$8 sps:$4 sm:$0xff]   ;;  %s318_s12 = scalar_lea.vmem %s7694_s4, %s5275_s9 }
  0x16   : > { %1029 = vmatprep.subr.bf16.mxu0 %v5397_v17  ;;  %v5436_v43 = vld [vmem:[%s7692_s2 + $0x1a0] ss:$8 sps:$4 sm:$0xff]   ;;  %s6060_s22 = scalar_lea.vmem %s7690_s0, %s5344_s5  ;;  %v5439_v45 = vld [vmem:[%s7692_s2 + $0x1b4] ss:$8 sps:$4 sm:$0xff]   ;;  %v5441_v46 = vld [vmem:[%s7692_s2 + $0xb0] ss:$8 sps:$4 sm:$0xff]  }
  0x17   : > { %v320_v47 = vld [vmem:[%s6060_s22] sm:$0xff]  ;;  %v6073_v48 = vld [vmem:[%s6060_s22 + $0x18] sm:$0xff]  ;;  %s5274_s6 = sadd.s32 96, %s5344_s5 }
  0x18   : > { %977 = vmatpush1.bf16.msra.mxu1 %v5399_v18  ;;  %v5442_v49 = vld [vmem:[%s7692_s2 + $0x1b0] ss:$8 sps:$4 sm:$0xff]   ;;  %v4362_v50 = vcombine.high %v320_v47, %v6073_v48  ;;  %v5471_v51 = vld [vmem:[%s6060_s22 + $0xc] ss:$24 sps:$4 sm:$0xff]   ;;  %v5447_v54 = vld [vmem:[%s7692_s2 + $0xc0] ss:$8 sps:$4 sm:$0xff]   ;;  %v4361_v6 = vcombine.low %v320_v47, %v6073_v48  ;;  %s6271_s14 = scalar_lea.vmem %s7691_s1, %s5274_s6 }
  0x19   : > { %1030 = vmatpush1.bf16.msra.mxu0 %v5400_v19  ;;  %978 = vmatprep.subr.bf16.mxu1 %v5401_v20  ;;  %v5443_v52 = vld [vmem:[%s7692_s2 + $0xc4] ss:$8 sps:$4 sm:$0xff]   ;;  %v5448_v55 = vld [vmem:[%s7692_s2 + $0x1c0] ss:$8 sps:$4 sm:$0xff]   ;;  %v5449_v56 = vld [vmem:[%s7692_s2 + $0xd4] ss:$8 sps:$4 sm:$0xff]  }
  0x1a   : > { %1031 = vmatprep.subr.bf16.mxu0 %v5403_v21  ;;  %v5445_v53 = vld [vmem:[%s7692_s2 + $0x1c4] ss:$8 sps:$4 sm:$0xff]   ;;  %1000 = vmatprep.mubr.bf16.mxu1 %v4362_v50  ;;  %v5451_v57 = vld [vmem:[%s7692_s2 + $0x1d4] ss:$8 sps:$4 sm:$0xff]   ;;  %v5453_v58 = vld [vmem:[%s7692_s2 + $0xd0] ss:$8 sps:$4 sm:$0xff]  }
  0x1b   : > { %1053 = vmatprep.mubr.bf16.mxu0 %v5471_v51  ;;  %v5454_v59 = vld [vmem:[%s7692_s2 + $0x1d0] ss:$8 sps:$4 sm:$0xff]   ;;  %v5455_v60 = vld [vmem:[%s7692_s2 + $0xe4] ss:$8 sps:$4 sm:$0xff]   ;;  %v5459_v62 = vld [vmem:[%s7692_s2 + $0xe0] ss:$8 sps:$4 sm:$0xff]  }
  0x1c   : > { %979 = vmatpush1.bf16.msra.mxu1 %v5405_v22  ;;  %v5457_v61 = vld [vmem:[%s7692_s2 + $0x1e4] ss:$8 sps:$4 sm:$0xff]   ;;  %v5460_v63 = vld [vmem:[%s7692_s2 + $0x1e0] ss:$8 sps:$4 sm:$0xff]   ;;  %v5461_v0 = vld [vmem:[%s7692_s2 + $0xf4] ss:$8 sps:$4 sm:$0xff]  }
  0x1d   : > { %1032 = vmatpush1.bf16.msra.mxu0 %v5406_v23  ;;  %980 = vmatprep.subr.bf16.mxu1 %v5407_v24  ;;  %v5463_v1 = vld [vmem:[%s7692_s2 + $0x1f4] ss:$8 sps:$4 sm:$0xff]   ;;  %v5465_v2 = vld [vmem:[%s7692_s2 + $0xf0] ss:$8 sps:$4 sm:$0xff]   ;;  %v5474_v4 = vld [vmem:[%s7692_s2 + $0x204] ss:$8 sps:$4 sm:$0xff]  }
  0x1e   : > { %1033 = vmatprep.subr.bf16.mxu0 %v5409_v25  ;;  %v5466_v3 = vld [vmem:[%s7692_s2 + $0x1f0] ss:$8 sps:$4 sm:$0xff]   ;;  %v6134_v5 = vld [vmem:[%s7692_s2 + $0x304] ss:$8 sps:$4 sm:$0xff]   ;;  %v5469_v7 = vld [vmem:[%s6060_s22 + $0x8] ss:$24 sps:$4 sm:$0xff]  }
  0x1f   : > { %v5472_v8 = vld [vmem:[%s7692_s2 + $0x200] ss:$8 sps:$4 sm:$0xff]   ;;  %v5480_v10 = vld [vmem:[%s7692_s2 + $0x214] ss:$8 sps:$4 sm:$0xff]   ;;  %v5478_v12 = vld [vmem:[%s7692_s2 + $0x210] ss:$8 sps:$4 sm:$0xff]  }
  0x20   : > { %981 = vmatpush1.bf16.msra.mxu1 %v5411_v26  ;;  %v6144_v9 = vld [vmem:[%s7692_s2 + $0x300] ss:$8 sps:$4 sm:$0xff]   ;;  %v6153_v11 = vld [vmem:[%s7692_s2 + $0x314] ss:$8 sps:$4 sm:$0xff]   ;;  %v6162_v13 = vld [vmem:[%s7692_s2 + $0x310] ss:$8 sps:$4 sm:$0xff]  }
  0x21   : > { %1034 = vmatpush1.bf16.msra.mxu0 %v5412_v27  ;;  %982 = vmatprep.subr.bf16.mxu1 %v5413_v28  ;;  %v5486_v14 = vld [vmem:[%s7692_s2 + $0x224] ss:$8 sps:$4 sm:$0xff]   ;;  %v5484_v16 = vld [vmem:[%s7692_s2 + $0x220] ss:$8 sps:$4 sm:$0xff]   ;;  %v5492_v18 = vld [vmem:[%s7692_s2 + $0x234] ss:$8 sps:$4 sm:$0xff]  }
  0x22   : > { %1035 = vmatprep.subr.bf16.mxu0 %v5415_v29  ;;  %v6171_v15 = vld [vmem:[%s7692_s2 + $0x324] ss:$8 sps:$4 sm:$0xff]   ;;  %v6180_v17 = vld [vmem:[%s7692_s2 + $0x320] ss:$8 sps:$4 sm:$0xff]   ;;  %v6189_v19 = vld [vmem:[%s7692_s2 + $0x334] ss:$8 sps:$4 sm:$0xff]  }
  0x23   : > { %v5490_v20 = vld [vmem:[%s7692_s2 + $0x230] ss:$8 sps:$4 sm:$0xff]   ;;  %v5498_v22 = vld [vmem:[%s7692_s2 + $0x244] ss:$8 sps:$4 sm:$0xff]   ;;  %v5496_v24 = vld [vmem:[%s7692_s2 + $0x240] ss:$8 sps:$4 sm:$0xff]  }
  0x24   : > { %983 = vmatpush1.bf16.msra.mxu1 %v5417_v30  ;;  %v6198_v21 = vld [vmem:[%s7692_s2 + $0x330] ss:$8 sps:$4 sm:$0xff]   ;;  %v6207_v23 = vld [vmem:[%s7692_s2 + $0x344] ss:$8 sps:$4 sm:$0xff]   ;;  %v6216_v25 = vld [vmem:[%s7692_s2 + $0x340] ss:$8 sps:$4 sm:$0xff]  }
  0x25   : > { %1036 = vmatpush1.bf16.msra.mxu0 %v5418_v31  ;;  %984 = vmatprep.subr.bf16.mxu1 %v5419_v32  ;;  %v5504_v26 = vld [vmem:[%s7692_s2 + $0x254] ss:$8 sps:$4 sm:$0xff]   ;;  %v6236_v32 = vld [vmem:[%s6060_s22 + $0x48] sm:$0xff]  ;;  %v5514_v47 = vld [vmem:[%s7692_s2 + $0x270] ss:$8 sps:$4 sm:$0xff]  }
  0x26   : > { %1037 = vmatprep.subr.bf16.mxu0 %v5421_v33  ;;  %v6225_v27 = vld [vmem:[%s7692_s2 + $0x354] ss:$8 sps:$4 sm:$0xff]   ;;  %v6301_v50 = vld [vmem:[%s7692_s2 + $0x370] ss:$8 sps:$4 sm:$0xff]   ;;  %v5522_v51 = vld [vmem:[%s7692_s2 + $0x284] ss:$8 sps:$4 sm:$0xff]  }
  0x27   : > { %v6228_v28 = vld [vmem:[%s6060_s22 + $0x38] sm:$0xff]  ;;  %v330_v29 = vld [vmem:[%s6060_s22 + $0x50] sm:$0xff] }
  0x28   : > { %985 = vmatpush1.bf16.msra.mxu1 %v5423_v34  ;;  %v6232_v30 = vld [vmem:[%s6060_s22 + $0x30] sm:$0xff]  ;;  %v4370_v31 = vcombine.high %v6228_v28, %v330_v29  ;;  %v4369_v33 = vcombine.low %v6228_v28, %v330_v29 }
  0x29   : > { %1038 = vmatpush1.bf16.msra.mxu0 %v5424_v35  ;;  %986 = vmatprep.subr.bf16.mxu1 %v5425_v36  ;;  %v4565_v34 = vcombine.low %v6073_v48, %v6232_v30  ;;  %v5502_v35 = vld [vmem:[%s7692_s2 + $0x250] ss:$8 sps:$4 sm:$0xff]  }
  0x2a   : > { %1039 = vmatprep.subr.bf16.mxu0 %v5427_v37  ;;  %v6248_v36 = vld [vmem:[%s7692_s2 + $0x350] ss:$8 sps:$4 sm:$0xff]   ;;  %v4368_v37 = vcombine.high %v6232_v30, %v6236_v32 }
  0x2b   : > { %v5566_v29 = vld [vmem:[%s7692_s2 + $0x2f0] ss:$8 sps:$4 sm:$0xff]  }
  0x2c   : > { %987 = vmatpush1.bf16.msra.mxu1 %v5429_v38  ;;  %v4367_v38 = vcombine.low %v6232_v30, %v6236_v32 }
  0x2d   : > { %1040 = vmatpush1.bf16.msra.mxu0 %v5430_v39  ;;  %988 = vmatprep.subr.bf16.mxu1 %v5431_v40  ;;  %v5510_v39 = vld [vmem:[%s7692_s2 + $0x264] ss:$8 sps:$4 sm:$0xff]  }
  0x2e   : > { %1041 = vmatprep.subr.bf16.mxu0 %v5433_v41  ;;  %v6263_v40 = vld [vmem:[%s7692_s2 + $0x364] ss:$8 sps:$4 sm:$0xff]   ;;  %v5508_v41 = vld [vmem:[%s7692_s2 + $0x260] ss:$8 sps:$4 sm:$0xff]  }
  0x30   : > { %989 = vmatpush1.bf16.msra.mxu1 %v5435_v42  ;;  %v6277_v42 = vld [vmem:[%s7692_s2 + $0x360] ss:$8 sps:$4 sm:$0xff]  }
  0x31   : > { %1042 = vmatpush1.bf16.msra.mxu0 %v5436_v43  ;;  %990 = vmatprep.subr.bf16.mxu1 %v5437_v44  ;;  %v5516_v43 = vld [vmem:[%s7692_s2 + $0x274] ss:$8 sps:$4 sm:$0xff]  }
  0x32   : > { %1043 = vmatprep.subr.bf16.mxu0 %v5439_v45  ;;  %v6286_v44 = vld [vmem:[%s7692_s2 + $0x374] ss:$8 sps:$4 sm:$0xff]  }
  0x33   : > { %v5574_v45 = vld [vmem:[%s6060_s22 + $0x14] ss:$24 sps:$4 sm:$0xff]  }
  0x34   : > { %991 = vmatpush1.bf16.msra.mxu1 %v5441_v46  ;;  %v6290_v46 = vld [vmem:[%s6271_s14] sm:$0xff] }
  0x35   : > { %1044 = vmatpush1.bf16.msra.mxu0 %v5442_v49  ;;  %992 = vmatprep.subr.bf16.mxu1 %v5443_v52  ;;  %v4770_v49 = vcombine.high %v6290_v46, %v6290_v46  ;;  %v6310_v52 = vld [vmem:[%s7692_s2 + $0x384] ss:$8 sps:$4 sm:$0xff]  }
  0x36   : > { %1045 = vmatprep.subr.bf16.mxu0 %v5445_v53  ;;  %v5520_v53 = vld [vmem:[%s7692_s2 + $0x280] ss:$8 sps:$4 sm:$0xff]  }
  0x38   : > { %993 = vmatpush1.bf16.msra.mxu1 %v5447_v54  ;;  %v6319_v54 = vld [vmem:[%s7692_s2 + $0x380] ss:$8 sps:$4 sm:$0xff]  }
  0x39   : > { %1046 = vmatpush1.bf16.msra.mxu0 %v5448_v55  ;;  %994 = vmatprep.subr.bf16.mxu1 %v5449_v56  ;;  %v5528_v55 = vld [vmem:[%s7692_s2 + $0x294] ss:$8 sps:$4 sm:$0xff]  }
  0x3a   : > { %1047 = vmatprep.subr.bf16.mxu0 %v5451_v57  ;;  %v6328_v56 = vld [vmem:[%s7692_s2 + $0x394] ss:$8 sps:$4 sm:$0xff]   ;;  %v5526_v57 = vld [vmem:[%s7692_s2 + $0x290] ss:$8 sps:$4 sm:$0xff]  }
  0x3c   : > { %995 = vmatpush1.bf16.msra.mxu1 %v5453_v58  ;;  %v6337_v58 = vld [vmem:[%s7692_s2 + $0x390] ss:$8 sps:$4 sm:$0xff]  }
  0x3d   : > { %1048 = vmatpush1.bf16.msra.mxu0 %v5454_v59  ;;  %996 = vmatprep.subr.bf16.mxu1 %v5455_v60  ;;  %v5534_v59 = vld [vmem:[%s7692_s2 + $0x2a4] ss:$8 sps:$4 sm:$0xff]  }
  0x3e   : > { %1049 = vmatprep.subr.bf16.mxu0 %v5457_v61  ;;  %v6346_v60 = vld [vmem:[%s7692_s2 + $0x3a4] ss:$8 sps:$4 sm:$0xff]   ;;  %v5532_v61 = vld [vmem:[%s7692_s2 + $0x2a0] ss:$8 sps:$4 sm:$0xff]  }
  0x40   : > { %997 = vmatpush1.bf16.msra.mxu1 %v5459_v62  ;;  %v6355_v62 = vld [vmem:[%s7692_s2 + $0x3a0] ss:$8 sps:$4 sm:$0xff]  }
  0x41   : > { %1050 = vmatpush1.bf16.msra.mxu0 %v5460_v63  ;;  %998 = vmatprep.subr.bf16.mxu1 %v5461_v0  ;;  %v5540_v63 = vld [vmem:[%s7692_s2 + $0x2b4] ss:$8 sps:$4 sm:$0xff]  }
  0x42   : > { %1051 = vmatprep.subr.bf16.mxu0 %v5463_v1  ;;  %v6364_v0 = vld [vmem:[%s7692_s2 + $0x3b4] ss:$8 sps:$4 sm:$0xff]   ;;  %v5538_v1 = vld [vmem:[%s7692_s2 + $0x2b0] ss:$8 sps:$4 sm:$0xff]  }
  0x44   : > { %999 = vmatpush1.bf16.msra.mxu1 %v5465_v2  ;;  %v6373_v2 = vld [vmem:[%s7692_s2 + $0x3b0] ss:$8 sps:$4 sm:$0xff]  }
  0x45   : > { %1052 = vmatpush1.bf16.msra.mxu0 %v5466_v3  ;;  %2545 = vmatprep.subr.bf16.mxu1 %v6134_v5  ;;  %v5546_v3 = vld [vmem:[%s7692_s2 + $0x2c4] ss:$8 sps:$4 sm:$0xff]  }
  0x46   : > { %1074 = vmatprep.subr.bf16.mxu0 %v5474_v4  ;;  %v6382_v4 = vld [vmem:[%s7692_s2 + $0x3c4] ss:$8 sps:$4 sm:$0xff]  }
  0x47   : > { %1001 = vmatmul.mubr.bf16.vlgmr.msra.gmra.mrb[0].mxu1 %v4361_v6  ;;  %v5544_v6 = vld [vmem:[%s7692_s2 + $0x2c0] ss:$8 sps:$4 sm:$0xff]  }
  0x48   : > { %1054 = vmatmul.mubr.bf16.vlgmr.msra.gmra.mrb[0].mxu0 %v5469_v7  ;;  %2546 = vmatpush1.bf16.msra.mxu1 %v6144_v9  ;;  %v6391_v7 = vld [vmem:[%s7692_s2 + $0x3c0] ss:$8 sps:$4 sm:$0xff]  }
  0x49   : > { %1075 = vmatpush1.bf16.msra.mxu0 %v5472_v8  ;;  %2547 = vmatprep.subr.bf16.mxu1 %v6153_v11  ;;  %v5552_v8 = vld [vmem:[%s7692_s2 + $0x2d4] ss:$8 sps:$4 sm:$0xff]  }
  0x4a   : > { %1076 = vmatprep.subr.bf16.mxu0 %v5480_v10  ;;  %1063 = vmatprep.mubr.bf16.mxu0 %v4370_v31  ;;  %v6400_v10 = vld [vmem:[%s7692_s2 + $0x3d4] ss:$8 sps:$4 sm:$0xff]   ;;  %v6445_v31 = vld [vmem:[%s7692_s2 + $0x3f0] ss:$8 sps:$4 sm:$0xff]  }
  0x4b   : > { %1010 = vmatprep.mubr.bf16.mxu1 %v4368_v37  ;;  %v4769_v37 = vcombine.low %v6290_v46, %v6290_v46  ;;  %v6487_v46 = vld [vmem:[%s7692_s2 + $0x424] ss:$8 sps:$4 sm:$0xff]  }
  0x4c   : > { %2548 = vmatpush1.bf16.msra.mxu1 %v6162_v13 }
  0x4d   : > { %1077 = vmatpush1.bf16.msra.mxu0 %v5478_v12  ;;  %2549 = vmatprep.subr.bf16.mxu1 %v6171_v15  ;;  %v5550_v12 = vld [vmem:[%s7692_s2 + $0x2d0] ss:$8 sps:$4 sm:$0xff]  }
  0x4e   : > { %1078 = vmatprep.subr.bf16.mxu0 %v5486_v14  ;;  %v6408_v14 = vld [vmem:[%s7692_s2 + $0x3d0] ss:$8 sps:$4 sm:$0xff]  }
  0x4f   : > { %1011 = vmatmul.mubr.bf16.gmra.mrb[4].mxu1 %v4367_v38  ;;  %v6457_v38 = vld [vmem:[%s6271_s14 + $0x8] sm:$0xff] }
  0x50   : > { %2550 = vmatpush1.bf16.msra.mxu1 %v6180_v17  ;;  %1064 = vmatmul.mubr.bf16.gmra.mrb[4].mxu0 %v4369_v33  ;;  %v6451_v33 = vld [vmem:[%s7692_s2 + $0x404] ss:$8 sps:$4 sm:$0xff]  }
  0x51   : > { %1079 = vmatpush1.bf16.msra.mxu0 %v5484_v16  ;;  %2551 = vmatprep.subr.bf16.mxu1 %v6189_v19  ;;  %v5561_v16 = vld [vmem:[%s7692_s2 + $0x2e4] ss:$8 sps:$4 sm:$0xff]  }
  0x52   : > { %1080 = vmatprep.subr.bf16.mxu0 %v5492_v18  ;;  %1106 = vmatprep.mubr.bf16.mxu0 %v5574_v45  ;;  %v6418_v18 = vld [vmem:[%s7692_s2 + $0x3e4] ss:$8 sps:$4 sm:$0xff]   ;;  %v4772_v45 = vcombine.high %v6457_v38, %v6457_v38 }
  0x53   : > { %2577 = vmatprep.mubr.bf16.mxu1 %v4770_v49  ;;  %v4566_v49 = vcombine.high %v6073_v48, %v6232_v30  ;;  %v4571_v48 = vcombine.low %v6236_v32, %v6236_v32  ;;  %v6731_v30 = vld [vmem:[%s6060_s22 + $0x20] sm:$0xff] }
  0x54   : > { %2552 = vmatpush1.bf16.msra.mxu1 %v6198_v21 }
  0x55   : > { %1081 = vmatpush1.bf16.msra.mxu0 %v5490_v20  ;;  %2553 = vmatprep.subr.bf16.mxu1 %v6207_v23  ;;  %v5559_v20 = vld [vmem:[%s7692_s2 + $0x2e0] ss:$8 sps:$4 sm:$0xff]  }
  0x56   : > { %1082 = vmatprep.subr.bf16.mxu0 %v5498_v22  ;;  %v6426_v22 = vld [vmem:[%s7692_s2 + $0x3e0] ss:$8 sps:$4 sm:$0xff]  }
  0x58   : > { %2554 = vmatpush1.bf16.msra.mxu1 %v6216_v25 }
  0x59   : > { %1083 = vmatpush1.bf16.msra.mxu0 %v5496_v24  ;;  %2555 = vmatprep.subr.bf16.mxu1 %v6225_v27  ;;  %v5568_v24 = vld [vmem:[%s7692_s2 + $0x2f4] ss:$8 sps:$4 sm:$0xff]  }
  0x5a   : > { %1084 = vmatprep.subr.bf16.mxu0 %v5504_v26  ;;  %v6436_v26 = vld [vmem:[%s7692_s2 + $0x3f4] ss:$8 sps:$4 sm:$0xff]  }
  0x5c   : > { %2556 = vmatpush1.bf16.msra.mxu1 %v6248_v36 }
  0x5d   : > { %1085 = vmatpush1.bf16.msra.mxu0 %v5502_v35  ;;  %2557 = vmatprep.subr.bf16.mxu1 %v6263_v40  ;;  %v5572_v35 = vld [vmem:[%s6060_s22 + $0x10] ss:$24 sps:$4 sm:$0xff]  }
  0x5e   : > { %1086 = vmatprep.subr.bf16.mxu0 %v5510_v39  ;;  %v6463_v39 = vld [vmem:[%s7692_s2 + $0x400] ss:$8 sps:$4 sm:$0xff]  }
  0x60   : > { %2558 = vmatpush1.bf16.msra.mxu1 %v6277_v42 }
  0x61   : > { %1087 = vmatpush1.bf16.msra.mxu0 %v5508_v41  ;;  %2559 = vmatprep.subr.bf16.mxu1 %v6286_v44  ;;  %v6470_v41 = vld [vmem:[%s7692_s2 + $0x414] ss:$8 sps:$4 sm:$0xff]  }
  0x62   : > { %1088 = vmatprep.subr.bf16.mxu0 %v5516_v43  ;;  %v5583_v43 = vld [vmem:[%s6060_s22 + $0x44] ss:$24 sps:$4 sm:$0xff]  }
  0x64   : > { %2560 = vmatpush1.bf16.msra.mxu1 %v6301_v50 }
  0x65   : > { %1089 = vmatpush1.bf16.msra.mxu0 %v5514_v47  ;;  %2561 = vmatprep.subr.bf16.mxu1 %v6310_v52  ;;  %v5585_v47 = vld [vmem:[%s6060_s22 + $0x40] ss:$24 sps:$4 sm:$0xff]  }
  0x66   : > { %1090 = vmatprep.subr.bf16.mxu0 %v5522_v51  ;;  %v6523_v51 = vld [vmem:[%s7692_s2 + $0x440] ss:$8 sps:$4 sm:$0xff]  }
  0x68   : > { %2562 = vmatpush1.bf16.msra.mxu1 %v6319_v54 }
  0x69   : > { %1091 = vmatpush1.bf16.msra.mxu0 %v5520_v53  ;;  %2563 = vmatprep.subr.bf16.mxu1 %v6328_v56  ;;  %v6616_v53 = vld [vmem:[%s7692_s2 + $0x4b4] ss:$8 sps:$4 sm:$0xff]  }
  0x6a   : > { %1092 = vmatprep.subr.bf16.mxu0 %v5528_v55  ;;  %v6630_v55 = vld [vmem:[%s7692_s2 + $0x4c4] ss:$8 sps:$4 sm:$0xff]  }
  0x6c   : > { %2564 = vmatpush1.bf16.msra.mxu1 %v6337_v58 }
  0x6d   : > { %1093 = vmatpush1.bf16.msra.mxu0 %v5526_v57  ;;  %2565 = vmatprep.subr.bf16.mxu1 %v6346_v60  ;;  %v6644_v57 = vld [vmem:[%s7692_s2 + $0x4d4] ss:$8 sps:$4 sm:$0xff]  }
  0x6e   : > { %1094 = vmatprep.subr.bf16.mxu0 %v5534_v59  ;;  %v6658_v59 = vld [vmem:[%s7692_s2 + $0x4e4] ss:$8 sps:$4 sm:$0xff]  }
  0x70   : > { %2566 = vmatpush1.bf16.msra.mxu1 %v6355_v62 }
  0x71   : > { %1095 = vmatpush1.bf16.msra.mxu0 %v5532_v61  ;;  %2567 = vmatprep.subr.bf16.mxu1 %v6364_v0  ;;  %v6672_v61 = vld [vmem:[%s7692_s2 + $0x4f4] ss:$8 sps:$4 sm:$0xff]  }
  0x72   : > { %1096 = vmatprep.subr.bf16.mxu0 %v5540_v63  ;;  %v6686_v63 = vld [vmem:[%s7692_s2 + $0x504] ss:$8 sps:$4 sm:$0xff]  }
  0x74   : > { %2568 = vmatpush1.bf16.msra.mxu1 %v6373_v2 }
  0x75   : > { %1097 = vmatpush1.bf16.msra.mxu0 %v5538_v1  ;;  %2569 = vmatprep.subr.bf16.mxu1 %v6382_v4  ;;  %v6691_v1 = vld [vmem:[%s6271_s14 + $0x10] sm:$0xff] }
  0x76   : > { %1098 = vmatprep.subr.bf16.mxu0 %v5546_v3  ;;  %v6705_v3 = vld [vmem:[%s7692_s2 + $0x514] ss:$8 sps:$4 sm:$0xff]  }
  0x78   : > { %2570 = vmatpush1.bf16.msra.mxu1 %v6391_v7 }
  0x79   : > { %1099 = vmatpush1.bf16.msra.mxu0 %v5544_v6  ;;  %2571 = vmatprep.subr.bf16.mxu1 %v6400_v10  ;;  %v4774_v6 = vcombine.high %v6691_v1, %v6691_v1 }
  0x7a   : > { %1100 = vmatprep.subr.bf16.mxu0 %v5552_v8  ;;  %v6726_v8 = vld [vmem:[%s7692_s2 + $0x524] ss:$8 sps:$4 sm:$0xff]  }
  0x7c   : > { %2572 = vmatpush1.bf16.msra.mxu1 %v6408_v14 }
  0x7d   : > { %1101 = vmatpush1.bf16.msra.mxu0 %v5550_v12  ;;  %2573 = vmatprep.subr.bf16.mxu1 %v6418_v18  ;;  %v6754_v12 = vld [vmem:[%s7692_s2 + $0x530] ss:$8 sps:$4 sm:$0xff]  }
  0x7e   : > { %1102 = vmatprep.subr.bf16.mxu0 %v5561_v16  ;;  %v6768_v16 = vld [vmem:[%s7692_s2 + $0x540] ss:$8 sps:$4 sm:$0xff]  }
  0x80   : > { %2574 = vmatpush1.bf16.msra.mxu1 %v6426_v22 }
  0x81   : > { %1103 = vmatpush1.bf16.msra.mxu0 %v5559_v20  ;;  %2575 = vmatprep.subr.bf16.mxu1 %v6436_v26  ;;  %v6782_v20 = vld [vmem:[%s7692_s2 + $0x550] ss:$8 sps:$4 sm:$0xff]  }
  0x82   : > { %1104 = vmatprep.subr.bf16.mxu0 %v5568_v24  ;;  %v6796_v24 = vld [vmem:[%s7692_s2 + $0x560] ss:$8 sps:$4 sm:$0xff]  }
  0x84   : > { %2576 = vmatpush1.bf16.msra.mxu1 %v6445_v31 }
  0x85   : > { %1105 = vmatpush1.bf16.msra.mxu0 %v5566_v29  ;;  %2586 = vmatprep.subr.bf16.mxu1 %v6451_v33  ;;  %v6810_v29 = vld [vmem:[%s7692_s2 + $0x570] ss:$8 sps:$4 sm:$0xff]  }
  0x86   : > { %1778 = vmatprep.subr.bf16.mxu0 %v6134_v5  ;;  %v6480_v5 = vld [vmem:[%s7692_s2 + $0x410] ss:$8 sps:$4 sm:$0xff]  }
  0x87   : > { %2578 = vmatmul.mubr.bf16.vlgmr.msra.gmra.mrb[8].mxu1 %v4769_v37  ;;  %v6838_v37 = vld [vmem:[%s7692_s2 + $0x590] ss:$8 sps:$4 sm:$0xff]  }
  0x88   : > { %1107 = vmatmul.mubr.bf16.vlgmr.msra.gmra.mrb[0].mxu0 %v5572_v35  ;;  %2587 = vmatpush1.bf16.msra.mxu1 %v6463_v39  ;;  %v6831_v35 = vld [vmem:[%s7692_s2 + $0x594] ss:$8 sps:$4 sm:$0xff]  }
  0x89   : > { %1779 = vmatpush1.bf16.msra.mxu0 %v6144_v9  ;;  %2588 = vmatprep.subr.bf16.mxu1 %v6470_v41  ;;  %v6495_v9 = vld [vmem:[%s7692_s2 + $0x420] ss:$8 sps:$4 sm:$0xff]  }
  0x8a   : > { %1780 = vmatprep.subr.bf16.mxu0 %v6153_v11  ;;  %1116 = vmatprep.mubr.bf16.mxu0 %v5583_v43  ;;  %v6502_v11 = vld [vmem:[%s7692_s2 + $0x434] ss:$8 sps:$4 sm:$0xff]   ;;  %v6866_v43 = vld [vmem:[%s7692_s2 + $0x5b0] ss:$8 sps:$4 sm:$0xff]  }
  0x8b   : > { %2618 = vmatprep.mubr.bf16.mxu1 %v4772_v45  ;;  %v6873_v45 = vld [vmem:[%s7692_s2 + $0x5c4] ss:$8 sps:$4 sm:$0xff]  }
  0x8c   : > { %2589 = vmatpush1.bf16.msra.mxu1 %v6480_v5 }
  0x8d   : > { %1781 = vmatpush1.bf16.msra.mxu0 %v6162_v13  ;;  %2590 = vmatprep.subr.bf16.mxu1 %v6487_v46  ;;  %v6509_v13 = vld [vmem:[%s7692_s2 + $0x430] ss:$8 sps:$4 sm:$0xff]  }
  0x8e   : > { %1782 = vmatprep.subr.bf16.mxu0 %v6171_v15  ;;  %v6518_v15 = vld [vmem:[%s7692_s2 + $0x444] ss:$8 sps:$4 sm:$0xff]  }
  0x90   : > { %1117 = vmatmul.mubr.bf16.gmra.mrb[4].mxu0 %v5585_v47  ;;  %2591 = vmatpush1.bf16.msra.mxu1 %v6495_v9  ;;  %v6894_v47 = vld [vmem:[%s7692_s2 + $0x5d0] ss:$8 sps:$4 sm:$0xff]  }
  0x91   : > { %1783 = vmatpush1.bf16.msra.mxu0 %v6180_v17  ;;  %2592 = vmatprep.subr.bf16.mxu1 %v6502_v11  ;;  %v6532_v17 = vld [vmem:[%s7692_s2 + $0x454] ss:$8 sps:$4 sm:$0xff]  }
  0x92   : > { %1784 = vmatprep.subr.bf16.mxu0 %v6189_v19  ;;  %1810 = vmatprep.mubr.bf16.mxu0 %v4566_v49  ;;  %v6537_v19 = vld [vmem:[%s7692_s2 + $0x450] ss:$8 sps:$4 sm:$0xff]   ;;  %v6915_v49 = vld [vmem:[%s7692_s2 + $0x5f4] ss:$8 sps:$4 sm:$0xff]  }
  0x94   : > { %2593 = vmatpush1.bf16.msra.mxu1 %v6509_v13 }
  0x95   : > { %1785 = vmatpush1.bf16.msra.mxu0 %v6198_v21  ;;  %2594 = vmatprep.subr.bf16.mxu1 %v6518_v15  ;;  %v6546_v21 = vld [vmem:[%s7692_s2 + $0x464] ss:$8 sps:$4 sm:$0xff]  }
  0x96   : > { %1786 = vmatprep.subr.bf16.mxu0 %v6207_v23  ;;  %v6551_v23 = vld [vmem:[%s7692_s2 + $0x460] ss:$8 sps:$4 sm:$0xff]  }
  0x98   : > { %2595 = vmatpush1.bf16.msra.mxu1 %v6523_v51 }
  0x99   : > { %1787 = vmatpush1.bf16.msra.mxu0 %v6216_v25  ;;  %2596 = vmatprep.subr.bf16.mxu1 %v6532_v17  ;;  %v6560_v25 = vld [vmem:[%s7692_s2 + $0x474] ss:$8 sps:$4 sm:$0xff]  }
  0x9a   : > { %1788 = vmatprep.subr.bf16.mxu0 %v6225_v27  ;;  %v6565_v27 = vld [vmem:[%s7692_s2 + $0x470] ss:$8 sps:$4 sm:$0xff]  }
  0x9c   : > { %2597 = vmatpush1.bf16.msra.mxu1 %v6537_v19 }
  0x9d   : > { %1789 = vmatpush1.bf16.msra.mxu0 %v6248_v36  ;;  %2598 = vmatprep.subr.bf16.mxu1 %v6546_v21  ;;  %v6574_v36 = vld [vmem:[%s7692_s2 + $0x484] ss:$8 sps:$4 sm:$0xff]  }
  0x9e   : > { %1790 = vmatprep.subr.bf16.mxu0 %v6263_v40  ;;  %v6579_v40 = vld [vmem:[%s7692_s2 + $0x480] ss:$8 sps:$4 sm:$0xff]  }
  0xa0   : > { %2599 = vmatpush1.bf16.msra.mxu1 %v6551_v23 }
  0xa1   : > { %1791 = vmatpush1.bf16.msra.mxu0 %v6277_v42  ;;  %2600 = vmatprep.subr.bf16.mxu1 %v6560_v25  ;;  %v6588_v42 = vld [vmem:[%s7692_s2 + $0x494] ss:$8 sps:$4 sm:$0xff]  }
  0xa2   : > { %1792 = vmatprep.subr.bf16.mxu0 %v6286_v44  ;;  %v6593_v44 = vld [vmem:[%s7692_s2 + $0x490] ss:$8 sps:$4 sm:$0xff]  }
  0xa4   : > { %2601 = vmatpush1.bf16.msra.mxu1 %v6565_v27 }
  0xa5   : > { %1793 = vmatpush1.bf16.msra.mxu0 %v6301_v50  ;;  %2602 = vmatprep.subr.bf16.mxu1 %v6574_v36  ;;  %v6602_v50 = vld [vmem:[%s7692_s2 + $0x4a4] ss:$8 sps:$4 sm:$0xff]  }
  0xa6   : > { %1794 = vmatprep.subr.bf16.mxu0 %v6310_v52  ;;  %v6607_v52 = vld [vmem:[%s7692_s2 + $0x4a0] ss:$8 sps:$4 sm:$0xff]  }
  0xa8   : > { %2603 = vmatpush1.bf16.msra.mxu1 %v6579_v40 }
  0xa9   : > { %1795 = vmatpush1.bf16.msra.mxu0 %v6319_v54  ;;  %2604 = vmatprep.subr.bf16.mxu1 %v6588_v42  ;;  %v6621_v54 = vld [vmem:[%s7692_s2 + $0x4b0] ss:$8 sps:$4 sm:$0xff]  }
  0xaa   : > { %1796 = vmatprep.subr.bf16.mxu0 %v6328_v56  ;;  %v6635_v56 = vld [vmem:[%s7692_s2 + $0x4c0] ss:$8 sps:$4 sm:$0xff]  }
  0xac   : > { %2605 = vmatpush1.bf16.msra.mxu1 %v6593_v44 }
  0xad   : > { %1797 = vmatpush1.bf16.msra.mxu0 %v6337_v58  ;;  %2606 = vmatprep.subr.bf16.mxu1 %v6602_v50  ;;  %v6651_v58 = vld [vmem:[%s7692_s2 + $0x4d0] ss:$8 sps:$4 sm:$0xff]  }
  0xae   : > { %1798 = vmatprep.subr.bf16.mxu0 %v6346_v60  ;;  %v6665_v60 = vld [vmem:[%s7692_s2 + $0x4e0] ss:$8 sps:$4 sm:$0xff]  }
  0xb0   : > { %2607 = vmatpush1.bf16.msra.mxu1 %v6607_v52 }
  0xb1   : > { %1799 = vmatpush1.bf16.msra.mxu0 %v6355_v62  ;;  %2608 = vmatprep.subr.bf16.mxu1 %v6616_v53  ;;  %v6679_v62 = vld [vmem:[%s7692_s2 + $0x4f0] ss:$8 sps:$4 sm:$0xff]  }
  0xb2   : > { %1800 = vmatprep.subr.bf16.mxu0 %v6364_v0  ;;  %v4771_v0 = vcombine.low %v6457_v38, %v6457_v38  ;;  %v6845_v38 = vld [vmem:[%s7692_s2 + $0x5a4] ss:$8 sps:$4 sm:$0xff]  }
  0xb4   : > { %2609 = vmatpush1.bf16.msra.mxu1 %v6621_v54 }
  0xb5   : > { %1801 = vmatpush1.bf16.msra.mxu0 %v6373_v2  ;;  %2610 = vmatprep.subr.bf16.mxu1 %v6630_v55  ;;  %v6698_v2 = vld [vmem:[%s7692_s2 + $0x500] ss:$8 sps:$4 sm:$0xff]  }
  0xb6   : > { %1802 = vmatprep.subr.bf16.mxu0 %v6382_v4  ;;  %v4572_v4 = vcombine.high %v6236_v32, %v6236_v32  ;;  %v4568_v32 = vcombine.high %v6731_v30, %v6228_v28 }
  0xb8   : > { %2611 = vmatpush1.bf16.msra.mxu1 %v6635_v56 }
  0xb9   : > { %1803 = vmatpush1.bf16.msra.mxu0 %v6391_v7  ;;  %2612 = vmatprep.subr.bf16.mxu1 %v6644_v57  ;;  %v6719_v7 = vld [vmem:[%s7692_s2 + $0x510] ss:$8 sps:$4 sm:$0xff]  }
  0xba   : > { %1804 = vmatprep.subr.bf16.mxu0 %v6400_v10  ;;  %v6745_v10 = vld [vmem:[%s7692_s2 + $0x534] ss:$8 sps:$4 sm:$0xff]  }
  0xbc   : > { %2613 = vmatpush1.bf16.msra.mxu1 %v6651_v58 }
  0xbd   : > { %1805 = vmatpush1.bf16.msra.mxu0 %v6408_v14  ;;  %2614 = vmatprep.subr.bf16.mxu1 %v6658_v59  ;;  %v6761_v14 = vld [vmem:[%s7692_s2 + $0x544] ss:$8 sps:$4 sm:$0xff]  }
  0xbe   : > { %1806 = vmatprep.subr.bf16.mxu0 %v6418_v18  ;;  %v6775_v18 = vld [vmem:[%s7692_s2 + $0x554] ss:$8 sps:$4 sm:$0xff]  }
  0xc0   : > { %2615 = vmatpush1.bf16.msra.mxu1 %v6665_v60 }
  0xc1   : > { %1807 = vmatpush1.bf16.msra.mxu0 %v6426_v22  ;;  %2616 = vmatprep.subr.bf16.mxu1 %v6672_v61  ;;  %v6789_v22 = vld [vmem:[%s7692_s2 + $0x564] ss:$8 sps:$4 sm:$0xff]  }
  0xc2   : > { %1808 = vmatprep.subr.bf16.mxu0 %v6436_v26  ;;  %v6803_v26 = vld [vmem:[%s7692_s2 + $0x574] ss:$8 sps:$4 sm:$0xff]  }
  0xc4   : > { %2617 = vmatpush1.bf16.msra.mxu1 %v6679_v62 }
  0xc5   : > { %1809 = vmatpush1.bf16.msra.mxu0 %v6445_v31  ;;  %2627 = vmatprep.subr.bf16.mxu1 %v6686_v63  ;;  %v6817_v31 = vld [vmem:[%s7692_s2 + $0x584] ss:$8 sps:$4 sm:$0xff]  }
  0xc6   : > { %1829 = vmatprep.subr.bf16.mxu0 %v6451_v33  ;;  %v6824_v33 = vld [vmem:[%s7692_s2 + $0x580] ss:$8 sps:$4 sm:$0xff]  }
  0xc7   : > { %2619 = vmatmul.mubr.bf16.vlgmr.msra.gmra.mrb[8].mxu1 %v4771_v0  ;;  %v7055_v0 = vld [vmem:[%s7692_s2 + $0x670] ss:$8 sps:$4 sm:$0xff]  }
  0xc8   : > { %1811 = vmatmul.mubr.bf16.vlgmr.msra.gmra.mrb[0].mxu0 %v4565_v34  ;;  %2628 = vmatpush1.bf16.msra.mxu1 %v6698_v2  ;;  %v6738_v34 = vld [vmem:[%s7692_s2 + $0x520] ss:$8 sps:$4 sm:$0xff]  }
  0xc9   : > { %1830 = vmatpush1.bf16.msra.mxu0 %v6463_v39  ;;  %2629 = vmatprep.subr.bf16.mxu1 %v6705_v3  ;;  %v6852_v39 = vld [vmem:[%s7692_s2 + $0x5a0] ss:$8 sps:$4 sm:$0xff]  }
  0xca   : > { %1831 = vmatprep.subr.bf16.mxu0 %v6470_v41  ;;  %1820 = vmatprep.mubr.bf16.mxu0 %v4572_v4  ;;  %v6859_v41 = vld [vmem:[%s7692_s2 + $0x5b4] ss:$8 sps:$4 sm:$0xff]   ;;  %v7083_v4 = vld [vmem:[%s7692_s2 + $0x690] ss:$8 sps:$4 sm:$0xff]  }
  0xcb   : > { %2659 = vmatprep.mubr.bf16.mxu1 %v4774_v6  ;;  %v7090_v6 = vld [vmem:[%s7692_s2 + $0x6a4] ss:$8 sps:$4 sm:$0xff]  }
  0xcc   : > { %2630 = vmatpush1.bf16.msra.mxu1 %v6719_v7 }
  0xcd   : > { %1832 = vmatpush1.bf16.msra.mxu0 %v6480_v5  ;;  %2631 = vmatprep.subr.bf16.mxu1 %v6726_v8  ;;  %v6880_v5 = vld [vmem:[%s7692_s2 + $0x5c0] ss:$8 sps:$4 sm:$0xff]  }
  0xce   : > { %1833 = vmatprep.subr.bf16.mxu0 %v6487_v46  ;;  %v6887_v46 = vld [vmem:[%s7692_s2 + $0x5d4] ss:$8 sps:$4 sm:$0xff]  }
  0xd0   : > { %1821 = vmatmul.mubr.bf16.gmra.mrb[8].mxu0 %v4571_v48  ;;  %2632 = vmatpush1.bf16.msra.mxu1 %v6738_v34 }
  0xd1   : > { %1834 = vmatpush1.bf16.msra.mxu0 %v6495_v9  ;;  %2633 = vmatprep.subr.bf16.mxu1 %v6745_v10  ;;  %v6901_v9 = vld [vmem:[%s7692_s2 + $0x5e4] ss:$8 sps:$4 sm:$0xff]  }
  0xd2   : > { %1835 = vmatprep.subr.bf16.mxu0 %v6502_v11  ;;  %1861 = vmatprep.mubr.bf16.mxu0 %v4568_v32  ;;  %v6908_v11 = vld [vmem:[%s7692_s2 + $0x5e0] ss:$8 sps:$4 sm:$0xff]   ;;  %v7124_v32 = vld [vmem:[%s7692_s2 + $0x6c4] ss:$8 sps:$4 sm:$0xff]  }
  0xd4   : > { %2634 = vmatpush1.bf16.msra.mxu1 %v6754_v12 }
  0xd5   : > { %1836 = vmatpush1.bf16.msra.mxu0 %v6509_v13  ;;  %2635 = vmatprep.subr.bf16.mxu1 %v6761_v14  ;;  %v6922_v13 = vld [vmem:[%s7692_s2 + $0x5f0] ss:$8 sps:$4 sm:$0xff]  }
  0xd6   : > { %1837 = vmatprep.subr.bf16.mxu0 %v6518_v15  ;;  %v6929_v15 = vld [vmem:[%s7692_s2 + $0x604] ss:$8 sps:$4 sm:$0xff]  }
  0xd8   : > { %2636 = vmatpush1.bf16.msra.mxu1 %v6768_v16 }
  0xd9   : > { %1838 = vmatpush1.bf16.msra.mxu0 %v6523_v51  ;;  %2637 = vmatprep.subr.bf16.mxu1 %v6775_v18  ;;  %v4773_v51 = vcombine.low %v6691_v1, %v6691_v1  ;;  %v7062_v1 = vld [vmem:[%s7692_s2 + $0x684] ss:$8 sps:$4 sm:$0xff]  }
  0xda   : > { %1839 = vmatprep.subr.bf16.mxu0 %v6532_v17  ;;  %v4567_v17 = vcombine.low %v6731_v30, %v6228_v28 }
  0xdc   : > { %2638 = vmatpush1.bf16.msra.mxu1 %v6782_v20 }
  0xdd   : > { %1840 = vmatpush1.bf16.msra.mxu0 %v6537_v19  ;;  %2639 = vmatprep.subr.bf16.mxu1 %v6789_v22  ;;  %v6936_v19 = vld [vmem:[%s6060_s22 + $0x50] sm:$0xff] }
  0xde   : > { %1841 = vmatprep.subr.bf16.mxu0 %v6546_v21  ;;  %v6943_v21 = vld [vmem:[%s7692_s2 + $0x600] ss:$8 sps:$4 sm:$0xff]   ;;  %v4574_v28 = vcombine.high %v6936_v19, %v6936_v19 }
  0xe0   : > { %2640 = vmatpush1.bf16.msra.mxu1 %v6796_v24 }
  0xe1   : > { %1842 = vmatpush1.bf16.msra.mxu0 %v6551_v23  ;;  %2641 = vmatprep.subr.bf16.mxu1 %v6803_v26  ;;  %v6950_v23 = vld [vmem:[%s7692_s2 + $0x614] ss:$8 sps:$4 sm:$0xff]  }
  0xe2   : > { %1843 = vmatprep.subr.bf16.mxu0 %v6560_v25  ;;  %v5741_v25 = vld [vmem:[%s6271_s14 + $0x4] ss:$24 sps:$4 sm:$0xff]  }
  0xe4   : > { %2642 = vmatpush1.bf16.msra.mxu1 %v6810_v29 }
  0xe5   : > { %1844 = vmatpush1.bf16.msra.mxu0 %v6565_v27  ;;  %2643 = vmatprep.subr.bf16.mxu1 %v6817_v31  ;;  %v6960_v27 = vld [vmem:[%s7692_s2 + $0x610] ss:$8 sps:$4 sm:$0xff]  }
  0xe6   : > { %1845 = vmatprep.subr.bf16.mxu0 %v6574_v36  ;;  %v6967_v36 = vld [vmem:[%s7692_s2 + $0x624] ss:$8 sps:$4 sm:$0xff]  }
  0xe8   : > { %2644 = vmatpush1.bf16.msra.mxu1 %v6824_v33 }
  0xe9   : > { %1846 = vmatpush1.bf16.msra.mxu0 %v6579_v40  ;;  %2645 = vmatprep.subr.bf16.mxu1 %v6831_v35  ;;  %v4573_v40 = vcombine.low %v6936_v19, %v6936_v19 }
  0xea   : > { %1847 = vmatprep.subr.bf16.mxu0 %v6588_v42  ;;  %v6976_v42 = vld [vmem:[%s7692_s2 + $0x620] ss:$8 sps:$4 sm:$0xff]  }
  0xec   : > { %2646 = vmatpush1.bf16.msra.mxu1 %v6838_v37 }
  0xed   : > { %1848 = vmatpush1.bf16.msra.mxu0 %v6593_v44  ;;  %2647 = vmatprep.subr.bf16.mxu1 %v6845_v38  ;;  %v6983_v44 = vld [vmem:[%s7692_s2 + $0x634] ss:$8 sps:$4 sm:$0xff]  }
  0xee   : > { %1849 = vmatprep.subr.bf16.mxu0 %v6602_v50  ;;  %v5738_v50 = vld [vmem:[%s6060_s22 + $0x2c] ss:$24 sps:$4 sm:$0xff]  }
  0xf0   : > { %2648 = vmatpush1.bf16.msra.mxu1 %v6852_v39 }
  0xf1   : > { %1850 = vmatpush1.bf16.msra.mxu0 %v6607_v52  ;;  %2649 = vmatprep.subr.bf16.mxu1 %v6859_v41  ;;  %v6991_v52 = vld [vmem:[%s7692_s2 + $0x630] ss:$8 sps:$4 sm:$0xff]  }
  0xf2   : > { %1851 = vmatprep.subr.bf16.mxu0 %v6616_v53  ;;  %v6998_v53 = vld [vmem:[%s7692_s2 + $0x644] ss:$8 sps:$4 sm:$0xff]  }
  0xf4   : > { %2650 = vmatpush1.bf16.msra.mxu1 %v6866_v43 }
  0xf5   : > { %1852 = vmatpush1.bf16.msra.mxu0 %v6621_v54  ;;  %2651 = vmatprep.subr.bf16.mxu1 %v6873_v45  ;;  %v7005_v54 = vld [vmem:[%s7692_s2 + $0x640] ss:$8 sps:$4 sm:$0xff]  }
  0xf6   : > { %1853 = vmatprep.subr.bf16.mxu0 %v6630_v55  ;;  %v7012_v55 = vld [vmem:[%s7692_s2 + $0x654] ss:$8 sps:$4 sm:$0xff]  }
  0xf8   : > { %2652 = vmatpush1.bf16.msra.mxu1 %v6880_v5 }
  0xf9   : > { %1854 = vmatpush1.bf16.msra.mxu0 %v6635_v56  ;;  %2653 = vmatprep.subr.bf16.mxu1 %v6887_v46  ;;  %v7019_v56 = vld [vmem:[%s7692_s2 + $0x650] ss:$8 sps:$4 sm:$0xff]  }
  0xfa   : > { %1855 = vmatprep.subr.bf16.mxu0 %v6644_v57  ;;  %v7026_v57 = vld [vmem:[%s7692_s2 + $0x664] ss:$8 sps:$4 sm:$0xff]  }
  0xfc   : > { %2654 = vmatpush1.bf16.msra.mxu1 %v6894_v47 }
  0xfd   : > { %1856 = vmatpush1.bf16.msra.mxu0 %v6651_v58  ;;  %2655 = vmatprep.subr.bf16.mxu1 %v6901_v9 }
  0xfe   : > { %1857 = vmatprep.subr.bf16.mxu0 %v6658_v59 }
 0x100   : > { %2656 = vmatpush1.bf16.msra.mxu1 %v6908_v11 }
 0x101   : > { %1858 = vmatpush1.bf16.msra.mxu0 %v6665_v60  ;;  %2657 = vmatprep.subr.bf16.mxu1 %v6915_v49  ;;  %v7037_v60 = vld [vmem:[%s7692_s2 + $0x660] ss:$8 sps:$4 sm:$0xff]  }
 0x102   : > { %1859 = vmatprep.subr.bf16.mxu0 %v6672_v61 }
 0x104   : > { %2658 = vmatpush1.bf16.msra.mxu1 %v6922_v13 }
 0x105   : > { %1860 = vmatpush1.bf16.msra.mxu0 %v6679_v62  ;;  %4042 = vmatprep.subr.bf16.mxu1 %v6929_v15  ;;  %v7046_v62 = vld [vmem:[%s7692_s2 + $0x674] ss:$8 sps:$4 sm:$0xff]  }
 0x106   : > { %1880 = vmatprep.subr.bf16.mxu0 %v6686_v63 }
 0x107   : > { %2660 = vmatmul.mubr.bf16.vlgmr.msra.gmra.mrb[8].mxu1 %v4773_v51  ;;  %v7270_v51 = vld [vmem:[%s7692_s2 + $0x750] ss:$8 sps:$4 sm:$0xff]  }
 0x108   : > { %1862 = vmatmul.mubr.bf16.vlgmr.msra.gmra.mrb[0].mxu0 %v4567_v17  ;;  %4043 = vmatpush1.bf16.msra.mxu1 %v6943_v21  ;;  %v7277_v17 = vld [vmem:[%s7692_s2 + $0x764] ss:$8 sps:$4 sm:$0xff]  }
 0x109   : > { %1881 = vmatpush1.bf16.msra.mxu0 %v6698_v2  ;;  %4044 = vmatprep.subr.bf16.mxu1 %v6950_v23  ;;  %v7069_v2 = vld [vmem:[%s7692_s2 + $0x680] ss:$8 sps:$4 sm:$0xff]  }
 0x10a   : > { %1882 = vmatprep.subr.bf16.mxu0 %v6705_v3  ;;  %1871 = vmatprep.mubr.bf16.mxu0 %v4574_v28  ;;  %v7076_v3 = vld [vmem:[%s7692_s2 + $0x694] ss:$8 sps:$4 sm:$0xff]   ;;  %v7298_v28 = vld [vmem:[%s7692_s2 + $0x770] ss:$8 sps:$4 sm:$0xff]  }
 0x10b   : > { %4074 = vmatprep.mubr.bf16.mxu1 %v5741_v25  ;;  %v7305_v25 = vld [vmem:[%s7692_s2 + $0x784] ss:$8 sps:$4 sm:$0xff]  }
 0x10c   : > { %4045 = vmatpush1.bf16.msra.mxu1 %v6960_v27 }
 0x10d   : > { %1883 = vmatpush1.bf16.msra.mxu0 %v6719_v7  ;;  %4046 = vmatprep.subr.bf16.mxu1 %v6967_v36  ;;  %v7097_v7 = vld [vmem:[%s7692_s2 + $0x6a0] ss:$8 sps:$4 sm:$0xff]  }
 0x10e   : > { %1884 = vmatprep.subr.bf16.mxu0 %v6726_v8  ;;  %v7104_v8 = vld [vmem:[%s7692_s2 + $0x6b4] ss:$8 sps:$4 sm:$0xff]  }
 0x110   : > { %1872 = vmatmul.mubr.bf16.gmra.mrb[8].mxu0 %v4573_v40  ;;  %4047 = vmatpush1.bf16.msra.mxu1 %v6976_v42 }
 0x111   : > { %1885 = vmatpush1.bf16.msra.mxu0 %v6738_v34  ;;  %4048 = vmatprep.subr.bf16.mxu1 %v6983_v44  ;;  %v7115_v34 = vld [vmem:[%s7692_s2 + $0x6b0] ss:$8 sps:$4 sm:$0xff]  }
 0x112   : > { %1886 = vmatprep.subr.bf16.mxu0 %v6745_v10  ;;  %1912 = vmatprep.mubr.bf16.mxu0 %v5738_v50  ;;  %v7318_v50 = vld [vmem:[%s7692_s2 + $0x780] ss:$8 sps:$4 sm:$0xff]  }
 0x114   : > { %4049 = vmatpush1.bf16.msra.mxu1 %v6991_v52 }
 0x115   : > { %1887 = vmatpush1.bf16.msra.mxu0 %v6754_v12  ;;  %4050 = vmatprep.subr.bf16.mxu1 %v6998_v53 }
 0x116   : > { %1888 = vmatprep.subr.bf16.mxu0 %v6761_v14  ;;  %v7133_v14 = vld [vmem:[%s7692_s2 + $0x6c0] ss:$8 sps:$4 sm:$0xff]  }
 0x118   : > { %4051 = vmatpush1.bf16.msra.mxu1 %v7005_v54 }
 0x119   : > { %1889 = vmatpush1.bf16.msra.mxu0 %v6768_v16  ;;  %4052 = vmatprep.subr.bf16.mxu1 %v7012_v55  ;;  %v7140_v16 = vld [vmem:[%s7692_s2 + $0x6d4] ss:$8 sps:$4 sm:$0xff]  }
 0x11a   : > { %1890 = vmatprep.subr.bf16.mxu0 %v6775_v18  ;;  %v7028_v58 = vpop.f32.mrb[0].mxu1  ;;  %v7147_v18 = vld [vmem:[%s7692_s2 + $0x6d0] ss:$8 sps:$4 sm:$0xff]  }
 0x11b   : > { %v7030_v59 = vpop.f32.mrb[1].mxu1 }
 0x11c   : > { %4053 = vmatpush1.bf16.msra.mxu1 %v7019_v56  ;;  %v7039_v61 = vpop.f32.mrb[2].mxu1 }
 0x11d   : > { %1891 = vmatpush1.bf16.msra.mxu0 %v6782_v20  ;;  %4054 = vmatprep.subr.bf16.mxu1 %v7026_v57  ;;  %v7048_v63 = vpop.f32.mrb[3].mxu1  ;;  %v7154_v20 = vld [vmem:[%s7692_s2 + $0x6e4] ss:$8 sps:$4 sm:$0xff]  }
 0x11e   : > { %1892 = vmatprep.subr.bf16.mxu0 %v6789_v22  ;;  %v7161_v22 = vld [vmem:[%s7692_s2 + $0x6e0] ss:$8 sps:$4 sm:$0xff]  }
 0x120   : > { %4055 = vmatpush1.bf16.msra.mxu1 %v7037_v60 }
 0x121   : > { %1893 = vmatpush1.bf16.msra.mxu0 %v6796_v24  ;;  %4056 = vmatprep.subr.bf16.mxu1 %v7046_v62  ;;  %v7168_v24 = vld [vmem:[%s7692_s2 + $0x6f4] ss:$8 sps:$4 sm:$0xff]  }
 0x122   : > { %1894 = vmatprep.subr.bf16.mxu0 %v6803_v26  ;;  %v7106_v48 = vpop.f32.mrb[4].mxu1  ;;  %v7175_v26 = vld [vmem:[%s7692_s2 + $0x6f0] ss:$8 sps:$4 sm:$0xff]  }
 0x123   : > { %v7108_v30 = vpop.f32.mrb[5].mxu1 }
 0x124   : > { %4057 = vmatpush1.bf16.msra.mxu1 %v7055_v0  ;;  %v7117_v10 = vpop.f32.mrb[6].mxu1 }
 0x125   : > { %1895 = vmatpush1.bf16.msra.mxu0 %v6810_v29  ;;  %4058 = vmatprep.subr.bf16.mxu1 %v7062_v1  ;;  %v7126_v12 = vpop.f32.mrb[7].mxu1  ;;  %v7182_v29 = vld [vmem:[%s7692_s2 + $0x704] ss:$8 sps:$4 sm:$0xff]  }
 0x126   : > { %1896 = vmatprep.subr.bf16.mxu0 %v6817_v31  ;;  %v5736_v31 = vld [vmem:[%s6060_s22 + $0x28] ss:$24 sps:$4 sm:$0xff]  }
 0x128   : > { %4059 = vmatpush1.bf16.msra.mxu1 %v7069_v2 }
 0x129   : > { %1897 = vmatpush1.bf16.msra.mxu0 %v6824_v33  ;;  %4060 = vmatprep.subr.bf16.mxu1 %v7076_v3  ;;  %v5739_v33 = vld [vmem:[%s6271_s14] ss:$24 sps:$4 sm:$0xff]  }
 0x12a   : > { %1898 = vmatprep.subr.bf16.mxu0 %v6831_v35  ;;  %v7187_v35 = vld [vmem:[%s6060_s22 + $0x58] sm:$0xff] }
 0x12c   : > { %4061 = vmatpush1.bf16.msra.mxu1 %v7083_v4 }
 0x12d   : > { %1899 = vmatpush1.bf16.msra.mxu0 %v6838_v37  ;;  %4062 = vmatprep.subr.bf16.mxu1 %v7090_v6  ;;  %v7194_v37 = vld [vmem:[%s7692_s2 + $0x700] ss:$8 sps:$4 sm:$0xff]  }
 0x12e   : > { %1900 = vmatprep.subr.bf16.mxu0 %v6845_v38  ;;  %v7201_v38 = vld [vmem:[%s7692_s2 + $0x714] ss:$8 sps:$4 sm:$0xff]  }
 0x130   : > { %4063 = vmatpush1.bf16.msra.mxu1 %v7097_v7 }
 0x131   : > { %1901 = vmatpush1.bf16.msra.mxu0 %v6852_v39  ;;  %4064 = vmatprep.subr.bf16.mxu1 %v7104_v8  ;;  %v4576_v39 = vcombine.high %v7187_v35, %v7187_v35 }
 0x132   : > { %1902 = vmatprep.subr.bf16.mxu0 %v6859_v41  ;;  %v5797_v41 = vld [vmem:[%s6271_s14 + $0xc] ss:$24 sps:$4 sm:$0xff]  }
 0x134   : > { %4065 = vmatpush1.bf16.msra.mxu1 %v7115_v34 }
 0x135   : > { %1903 = vmatpush1.bf16.msra.mxu0 %v6866_v43  ;;  %4066 = vmatprep.subr.bf16.mxu1 %v7124_v32  ;;  %v7211_v43 = vld [vmem:[%s7692_s2 + $0x710] ss:$8 sps:$4 sm:$0xff]  }
 0x136   : > { %1904 = vmatprep.subr.bf16.mxu0 %v6873_v45  ;;  %v7218_v45 = vld [vmem:[%s7692_s2 + $0x724] ss:$8 sps:$4 sm:$0xff]  }
 0x138   : > { %4067 = vmatpush1.bf16.msra.mxu1 %v7133_v14 }
 0x139   : > { %1905 = vmatpush1.bf16.msra.mxu0 %v6880_v5  ;;  %4068 = vmatprep.subr.bf16.mxu1 %v7140_v16  ;;  %v4575_v5 = vcombine.low %v7187_v35, %v7187_v35 }
 0x13a   : > { %1906 = vmatprep.subr.bf16.mxu0 %v6887_v46  ;;  %v7227_v46 = vld [vmem:[%s7692_s2 + $0x720] ss:$8 sps:$4 sm:$0xff]  }
 0x13c   : > { %4069 = vmatpush1.bf16.msra.mxu1 %v7147_v18 }
 0x13d   : > { %1907 = vmatpush1.bf16.msra.mxu0 %v6894_v47  ;;  %4070 = vmatprep.subr.bf16.mxu1 %v7154_v20  ;;  %v7234_v47 = vld [vmem:[%s7692_s2 + $0x734] ss:$8 sps:$4 sm:$0xff]  }
 0x13e   : > { %1908 = vmatprep.subr.bf16.mxu0 %v6901_v9  ;;  %v5794_v9 = vld [vmem:[%s6060_s22 + $0x34] ss:$24 sps:$4 sm:$0xff]  }
 0x140   : > { %4071 = vmatpush1.bf16.msra.mxu1 %v7161_v22 }
 0x141   : > { %1909 = vmatpush1.bf16.msra.mxu0 %v6908_v11  ;;  %4072 = vmatprep.subr.bf16.mxu1 %v7168_v24  ;;  %v7242_v11 = vld [vmem:[%s7692_s2 + $0x730] ss:$8 sps:$4 sm:$0xff]  }
 0x142   : > { %1910 = vmatprep.subr.bf16.mxu0 %v6915_v49  ;;  %v7249_v49 = vld [vmem:[%s7692_s2 + $0x744] ss:$8 sps:$4 sm:$0xff]  }
 0x144   : > { %4073 = vmatpush1.bf16.msra.mxu1 %v7175_v26 }
 0x145   : > { %1911 = vmatpush1.bf16.msra.mxu0 %v6922_v13  ;;  %4085 = vmatprep.subr.bf16.mxu1 %v7182_v29  ;;  %v7256_v13 = vld [vmem:[%s7692_s2 + $0x740] ss:$8 sps:$4 sm:$0xff]  }
 0x146   : > { %3289 = vmatprep.subr.bf16.mxu0 %v6929_v15  ;;  %v7263_v15 = vld [vmem:[%s7692_s2 + $0x754] ss:$8 sps:$4 sm:$0xff]  }
 0x147   : > { %4075 = vmatmul.mubr.bf16.vlgmr.msra.gmra.mrb[12].mxu1 %v5739_v33  ;;  %v7500_v33 = vld [vmem:[%s7692_s2 + $0x840] ss:$8 sps:$4 sm:$0xff]  }
 0x148   : > { %1913 = vmatmul.mubr.bf16.vlgmr.msra.gmra.mrb[0].mxu0 %v5736_v31  ;;  %4086 = vmatpush1.bf16.msra.mxu1 %v7194_v37  ;;  %v7493_v31 = vld [vmem:[%s7692_s2 + $0x844] ss:$8 sps:$4 sm:$0xff]  }
 0x149   : > { %3290 = vmatpush1.bf16.msra.mxu0 %v6943_v21  ;;  %4087 = vmatprep.subr.bf16.mxu1 %v7201_v38  ;;  %v7284_v21 = vld [vmem:[%s7692_s2 + $0x760] ss:$8 sps:$4 sm:$0xff]  }
 0x14a   : > { %3291 = vmatprep.subr.bf16.mxu0 %v6950_v23  ;;  %1922 = vmatprep.mubr.bf16.mxu0 %v4576_v39  ;;  %v7291_v23 = vld [vmem:[%s7692_s2 + $0x774] ss:$8 sps:$4 sm:$0xff]   ;;  %v7521_v39 = vld [vmem:[%s7692_s2 + $0x864] ss:$8 sps:$4 sm:$0xff]  }
 0x14b   : > { %4117 = vmatprep.mubr.bf16.mxu1 %v5797_v41  ;;  %v7528_v41 = vld [vmem:[%s7692_s2 + $0x860] ss:$8 sps:$4 sm:$0xff]  }
 0x14c   : > { %4088 = vmatpush1.bf16.msra.mxu1 %v7211_v43 }
 0x14d   : > { %3292 = vmatpush1.bf16.msra.mxu0 %v6960_v27  ;;  %4089 = vmatprep.subr.bf16.mxu1 %v7218_v45 }
 0x14e   : > { %3293 = vmatprep.subr.bf16.mxu0 %v6967_v36 }
 0x150   : > { %1923 = vmatmul.mubr.bf16.gmra.mrb[8].mxu0 %v4575_v5  ;;  %4090 = vmatpush1.bf16.msra.mxu1 %v7227_v46  ;;  %v7549_v5 = vld [vmem:[%s7692_s2 + $0x884] ss:$8 sps:$4 sm:$0xff]  }
 0x151   : > { %3294 = vmatpush1.bf16.msra.mxu0 %v6976_v42  ;;  %4091 = vmatprep.subr.bf16.mxu1 %v7234_v47 }
 0x152   : > { %3295 = vmatprep.subr.bf16.mxu0 %v6983_v44  ;;  %3321 = vmatprep.mubr.bf16.mxu0 %v5794_v9  ;;  %v7570_v9 = vld [vmem:[%s7692_s2 + $0x890] ss:$8 sps:$4 sm:$0xff]  }
 0x154   : > { %4092 = vmatpush1.bf16.msra.mxu1 %v7242_v11 }
 0x155   : > { %3296 = vmatpush1.bf16.msra.mxu0 %v6991_v52  ;;  %4093 = vmatprep.subr.bf16.mxu1 %v7249_v49 }
 0x156   : > { %3297 = vmatprep.subr.bf16.mxu0 %v6998_v53 }
 0x158   : > { %4094 = vmatpush1.bf16.msra.mxu1 %v7256_v13 }
 0x159   : > { %3298 = vmatpush1.bf16.msra.mxu0 %v7005_v54  ;;  %4095 = vmatprep.subr.bf16.mxu1 %v7263_v15  ;;  %v7328_v54 = vld [vmem:[%s7692_s2 + $0x794] ss:$8 sps:$4 sm:$0xff]  }
 0x15a   : > { %3299 = vmatprep.subr.bf16.mxu0 %v7012_v55 }
 0x15c   : > { %4096 = vmatpush1.bf16.msra.mxu1 %v7270_v51 }
 0x15d   : > { %3300 = vmatpush1.bf16.msra.mxu0 %v7019_v56  ;;  %4097 = vmatprep.subr.bf16.mxu1 %v7277_v17  ;;  %v7338_v56 = vld [vmem:[%s7692_s2 + $0x790] ss:$8 sps:$4 sm:$0xff]  }
 0x15e   : > { %3301 = vmatprep.subr.bf16.mxu0 %v7026_v57  ;;  %v7345_v57 = vld [vmem:[%s7692_s2 + $0x7a4] ss:$8 sps:$4 sm:$0xff]  }
 0x160   : > { %4098 = vmatpush1.bf16.msra.mxu1 %v7284_v21 }
 0x161   : > { %3302 = vmatpush1.bf16.msra.mxu0 %v7037_v60  ;;  %4099 = vmatprep.subr.bf16.mxu1 %v7291_v23  ;;  %v7352_v60 = vld [vmem:[%s7692_s2 + $0x7a0] ss:$8 sps:$4 sm:$0xff]  }
 0x162   : > { %3303 = vmatprep.subr.bf16.mxu0 %v7046_v62  ;;  %v7359_v62 = vld [vmem:[%s7692_s2 + $0x7b4] ss:$8 sps:$4 sm:$0xff]  }
 0x163   : > { %v1118_v27 = vpop.f32.mrb[4].mxu0 }
 0x164   : > { %v7308_v36 = vadd.f32 %v1118_v27, %v7106_v48  ;;  %v1120_v40 = vpop.f32.mrb[5].mxu0  ;;  %4100 = vmatpush1.bf16.msra.mxu1 %v7298_v28  ;;  %v7422_v48 = vld [vmem:[%s7692_s2 + $0x7f0] ss:$8 sps:$4 sm:$0xff]   ;;  %v5845_v27 = vld [vmem:[%s7692_s2 + $0x8f4] ss:$8 sps:$4 sm:$0xff]  }
 0x165   : > { %v7311_v42 = vadd.f32 %v1120_v40, %v7108_v30  ;;  %v1122_v44 = vpop.f32.mrb[6].mxu0  ;;  %3304 = vmatpush1.bf16.msra.mxu0 %v7055_v0  ;;  %4101 = vmatprep.subr.bf16.mxu1 %v7305_v25  ;;  %v7366_v0 = vld [vmem:[%s7692_s2 + $0x7b0] ss:$8 sps:$4 sm:$0xff]   ;;  %v7429_v30 = vld [vmem:[%s7692_s2 + $0x804] ss:$8 sps:$4 sm:$0xff]  }
 0x166   : > { %v7321_v52 = vadd.f32 %v1122_v44, %v7117_v10  ;;  %v1124_v53 = vpop.f32.mrb[7].mxu0  ;;  %3305 = vmatprep.subr.bf16.mxu0 %v7062_v1  ;;  %v7373_v1 = vld [vmem:[%s7692_s2 + $0x7c4] ss:$8 sps:$4 sm:$0xff]   ;;  %v5795_v10 = vld [vmem:[%s6271_s14 + $0x8] ss:$24 sps:$4 sm:$0xff]  }
 0x167   : > { %v7331_v55 = vadd.f32 %v1124_v53, %v7126_v12  ;;  %v7441_v12 = vld [vmem:[%s7692_s2 + $0x800] ss:$8 sps:$4 sm:$0xff]   ;;  %v5843_v40 = vld [vmem:[%s7692_s2 + $0x8f0] ss:$8 sps:$4 sm:$0xff]  }
 0x168   : > { %4102 = vmatpush1.bf16.msra.mxu1 %v7318_v50  ;;  %v2678_v44 = vld [vmem:[%s6060_s22 + $0x40] sm:$0xff] }
 0x169   : > { %3306 = vmatpush1.bf16.msra.mxu0 %v7069_v2  ;;  %4103 = vmatprep.subr.bf16.mxu1 %v7328_v54  ;;  %v7380_v2 = vld [vmem:[%s7692_s2 + $0x7c0] ss:$8 sps:$4 sm:$0xff]  }
 0x16a   : > { %3307 = vmatprep.subr.bf16.mxu0 %v7076_v3  ;;  %v7387_v3 = vld [vmem:[%s7692_s2 + $0x7d4] ss:$8 sps:$4 sm:$0xff]  }
 0x16c   : > { %4104 = vmatpush1.bf16.msra.mxu1 %v7338_v56 }
 0x16d   : > { %3308 = vmatpush1.bf16.msra.mxu0 %v7083_v4  ;;  %4105 = vmatprep.subr.bf16.mxu1 %v7345_v57  ;;  %v7394_v4 = vld [vmem:[%s7692_s2 + $0x7d0] ss:$8 sps:$4 sm:$0xff]  }
 0x16e   : > { %3309 = vmatprep.subr.bf16.mxu0 %v7090_v6  ;;  %v7401_v6 = vld [vmem:[%s7692_s2 + $0x7e4] ss:$8 sps:$4 sm:$0xff]  }
 0x170   : > { %4106 = vmatpush1.bf16.msra.mxu1 %v7352_v60 }
 0x171   : > { %3310 = vmatpush1.bf16.msra.mxu0 %v7097_v7  ;;  %4107 = vmatprep.subr.bf16.mxu1 %v7359_v62  ;;  %v7408_v7 = vld [vmem:[%s7692_s2 + $0x7e0] ss:$8 sps:$4 sm:$0xff]  }
 0x172   : > { %3311 = vmatprep.subr.bf16.mxu0 %v7104_v8  ;;  %v7415_v8 = vld [vmem:[%s7692_s2 + $0x7f4] ss:$8 sps:$4 sm:$0xff]  }
 0x174   : > { %4108 = vmatpush1.bf16.msra.mxu1 %v7366_v0 }
 0x175   : > { %3312 = vmatpush1.bf16.msra.mxu0 %v7115_v34  ;;  %4109 = vmatprep.subr.bf16.mxu1 %v7373_v1  ;;  %v5792_v34 = vld [vmem:[%s6060_s22 + $0x30] ss:$24 sps:$4 sm:$0xff]  }
 0x176   : > { %3313 = vmatprep.subr.bf16.mxu0 %v7124_v32  ;;  %v7434_v32 = vld [vmem:[%s6060_s22 + $0x38] sm:$0xff] }
 0x177   : > { %v4969_v53 = vcombine.low %v7434_v32, %v6936_v19 }
 0x178   : > { %4110 = vmatpush1.bf16.msra.mxu1 %v7380_v2 }
 0x179   : > { %3314 = vmatpush1.bf16.msra.mxu0 %v7133_v14  ;;  %4111 = vmatprep.subr.bf16.mxu1 %v7387_v3  ;;  %v7448_v14 = vld [vmem:[%s7692_s2 + $0x814] ss:$8 sps:$4 sm:$0xff]  }
 0x17a   : > { %3315 = vmatprep.subr.bf16.mxu0 %v7140_v16  ;;  %v5848_v16 = vld [vmem:[%s6271_s14 + $0x14] ss:$24 sps:$4 sm:$0xff]  }
 0x17c   : > { %4112 = vmatpush1.bf16.msra.mxu1 %v7394_v4 }
 0x17d   : > { %3316 = vmatpush1.bf16.msra.mxu0 %v7147_v18  ;;  %4113 = vmatprep.subr.bf16.mxu1 %v7401_v6  ;;  %v4970_v18 = vcombine.high %v7434_v32, %v6936_v19 }
 0x17e   : > { %3317 = vmatprep.subr.bf16.mxu0 %v7154_v20  ;;  %v7458_v20 = vld [vmem:[%s7692_s2 + $0x810] ss:$8 sps:$4 sm:$0xff]  }
 0x180   : > { %4114 = vmatpush1.bf16.msra.mxu1 %v7408_v7 }
 0x181   : > { %3318 = vmatpush1.bf16.msra.mxu0 %v7161_v22  ;;  %4115 = vmatprep.subr.bf16.mxu1 %v7415_v8  ;;  %v7465_v22 = vld [vmem:[%s7692_s2 + $0x824] ss:$8 sps:$4 sm:$0xff]  }
 0x182   : > { %3319 = vmatprep.subr.bf16.mxu0 %v7168_v24  ;;  %v7472_v24 = vld [vmem:[%s7692_s2 + $0x820] ss:$8 sps:$4 sm:$0xff]  }
 0x184   : > { %4116 = vmatpush1.bf16.msra.mxu1 %v7422_v48 }
 0x185   : > { %3320 = vmatpush1.bf16.msra.mxu0 %v7175_v26  ;;  %4128 = vmatprep.subr.bf16.mxu1 %v7429_v30  ;;  %v7479_v26 = vld [vmem:[%s7692_s2 + $0x834] ss:$8 sps:$4 sm:$0xff]  }
 0x186   : > { %3332 = vmatprep.subr.bf16.mxu0 %v7182_v29  ;;  %v7486_v29 = vld [vmem:[%s7692_s2 + $0x830] ss:$8 sps:$4 sm:$0xff]  }
 0x187   : > { %4118 = vmatmul.mubr.bf16.vlgmr.msra.gmra.mrb[12].mxu1 %v5795_v10 }
 0x188   : > { %3322 = vmatmul.mubr.bf16.vlgmr.msra.gmra.mrb[0].mxu0 %v5792_v34  ;;  %4129 = vmatpush1.bf16.msra.mxu1 %v7441_v12 }
 0x189   : > { %3333 = vmatpush1.bf16.msra.mxu0 %v7194_v37  ;;  %4130 = vmatprep.subr.bf16.mxu1 %v7448_v14  ;;  %v7507_v37 = vld [vmem:[%s7692_s2 + $0x854] ss:$8 sps:$4 sm:$0xff]  }
 0x18a   : > { %3334 = vmatprep.subr.bf16.mxu0 %v7201_v38  ;;  %4160 = vmatprep.mubr.bf16.mxu1 %v5848_v16  ;;  %v7514_v38 = vld [vmem:[%s7692_s2 + $0x850] ss:$8 sps:$4 sm:$0xff]  }
 0x18b   : > { %3364 = vmatprep.mubr.bf16.mxu0 %v4970_v18 }
 0x18c   : > { %4131 = vmatpush1.bf16.msra.mxu1 %v7458_v20 }
 0x18d   : > { %3335 = vmatpush1.bf16.msra.mxu0 %v7211_v43  ;;  %4132 = vmatprep.subr.bf16.mxu1 %v7465_v22  ;;  %v7535_v43 = vld [vmem:[%s7692_s2 + $0x874] ss:$8 sps:$4 sm:$0xff]  }
 0x18e   : > { %3336 = vmatprep.subr.bf16.mxu0 %v7218_v45  ;;  %v7542_v45 = vld [vmem:[%s7692_s2 + $0x870] ss:$8 sps:$4 sm:$0xff]  }
 0x190   : > { %4133 = vmatpush1.bf16.msra.mxu1 %v7472_v24 }
 0x191   : > { %3337 = vmatpush1.bf16.msra.mxu0 %v7227_v46  ;;  %4134 = vmatprep.subr.bf16.mxu1 %v7479_v26  ;;  %v7556_v46 = vld [vmem:[%s7692_s2 + $0x880] ss:$8 sps:$4 sm:$0xff]  }
 0x192   : > { %3338 = vmatprep.subr.bf16.mxu0 %v7234_v47  ;;  %v7563_v47 = vld [vmem:[%s7692_s2 + $0x894] ss:$8 sps:$4 sm:$0xff]  }
 0x194   : > { %4135 = vmatpush1.bf16.msra.mxu1 %v7486_v29 }
 0x195   : > { %3339 = vmatpush1.bf16.msra.mxu0 %v7242_v11  ;;  %4136 = vmatprep.subr.bf16.mxu1 %v7493_v31  ;;  %v7577_v11 = vld [vmem:[%s7692_s2 + $0x8a4] ss:$8 sps:$4 sm:$0xff]  }
 0x196   : > { %3340 = vmatprep.subr.bf16.mxu0 %v7249_v49  ;;  %v7584_v49 = vld [vmem:[%s7692_s2 + $0x8a0] ss:$8 sps:$4 sm:$0xff]  }
 0x198   : > { %4137 = vmatpush1.bf16.msra.mxu1 %v7500_v33 }
 0x199   : > { %3341 = vmatpush1.bf16.msra.mxu0 %v7256_v13  ;;  %4138 = vmatprep.subr.bf16.mxu1 %v7507_v37  ;;  %v7591_v13 = vld [vmem:[%s7692_s2 + $0x8b4] ss:$8 sps:$4 sm:$0xff]  }
 0x19a   : > { %3342 = vmatprep.subr.bf16.mxu0 %v7263_v15  ;;  %v7598_v15 = vld [vmem:[%s7692_s2 + $0x8b0] ss:$8 sps:$4 sm:$0xff]  }
 0x19c   : > { %4139 = vmatpush1.bf16.msra.mxu1 %v7514_v38 }
 0x19d   : > { %3343 = vmatpush1.bf16.msra.mxu0 %v7270_v51  ;;  %4140 = vmatprep.subr.bf16.mxu1 %v7521_v39  ;;  %v5836_v51 = vld [vmem:[%s7692_s2 + $0x8c4] ss:$8 sps:$4 sm:$0xff]  }
 0x19e   : > { %3344 = vmatprep.subr.bf16.mxu0 %v7277_v17  ;;  %v5834_v17 = vld [vmem:[%s7692_s2 + $0x8c0] ss:$8 sps:$4 sm:$0xff]  }
 0x1a0   : > { %4141 = vmatpush1.bf16.msra.mxu1 %v7528_v41 }
 0x1a1   : > { %3345 = vmatpush1.bf16.msra.mxu0 %v7284_v21  ;;  %4142 = vmatprep.subr.bf16.mxu1 %v7535_v43  ;;  %v5839_v21 = vld [vmem:[%s7692_s2 + $0x8d4] ss:$8 sps:$4 sm:$0xff]  }
 0x1a2   : > { %3346 = vmatprep.subr.bf16.mxu0 %v7291_v23  ;;  %v5837_v23 = vld [vmem:[%s7692_s2 + $0x8d0] ss:$8 sps:$4 sm:$0xff]  }
 0x1a4   : > { %4143 = vmatpush1.bf16.msra.mxu1 %v7542_v45 }
 0x1a5   : > { %3347 = vmatpush1.bf16.msra.mxu0 %v7298_v28  ;;  %4144 = vmatprep.subr.bf16.mxu1 %v7549_v5  ;;  %v5842_v28 = vld [vmem:[%s7692_s2 + $0x8e4] ss:$8 sps:$4 sm:$0xff]  }
 0x1a6   : > { %3348 = vmatprep.subr.bf16.mxu0 %v7305_v25  ;;  %v5840_v25 = vld [vmem:[%s7692_s2 + $0x8e0] ss:$8 sps:$4 sm:$0xff]  }
 0x1a8   : > { %4145 = vmatpush1.bf16.msra.mxu1 %v7556_v46 }
 0x1a9   : > { %3349 = vmatpush1.bf16.msra.mxu0 %v7318_v50  ;;  %4146 = vmatprep.subr.bf16.mxu1 %v7563_v47  ;;  %v5846_v50 = vld [vmem:[%s6271_s14 + $0x10] ss:$24 sps:$4 sm:$0xff]  }
 0x1aa   : > { %3350 = vmatprep.subr.bf16.mxu0 %v7328_v54  ;;  %v4972_v54 = vcombine.high %v2678_v44, %v7187_v35 }
 0x1ac   : > { %4147 = vmatpush1.bf16.msra.mxu1 %v7570_v9 }
 0x1ad   : > { %3351 = vmatpush1.bf16.msra.mxu0 %v7338_v56  ;;  %4148 = vmatprep.subr.bf16.mxu1 %v7577_v11 }
 0x1ae   : > { %3352 = vmatprep.subr.bf16.mxu0 %v7345_v57 }
 0x1b0   : > { %4149 = vmatpush1.bf16.msra.mxu1 %v7584_v49 }
 0x1b1   : > { %3353 = vmatpush1.bf16.msra.mxu0 %v7352_v60  ;;  %4150 = vmatprep.subr.bf16.mxu1 %v7591_v13 }
 0x1b2   : > { %3354 = vmatprep.subr.bf16.mxu0 %v7359_v62 }
 0x1b4   : > { %4151 = vmatpush1.bf16.msra.mxu1 %v7598_v15 }
 0x1b5   : > { %3355 = vmatpush1.bf16.msra.mxu0 %v7366_v0  ;;  %4152 = vmatprep.subr.bf16.mxu1 %v5836_v51 }
 0x1b6   : > { %3356 = vmatprep.subr.bf16.mxu0 %v7373_v1 }
 0x1b8   : > { %4153 = vmatpush1.bf16.msra.mxu1 %v5834_v17 }
 0x1b9   : > { %3357 = vmatpush1.bf16.msra.mxu0 %v7380_v2  ;;  %4154 = vmatprep.subr.bf16.mxu1 %v5839_v21 }
 0x1ba   : > { %3358 = vmatprep.subr.bf16.mxu0 %v7387_v3 }
 0x1bc   : > { %4155 = vmatpush1.bf16.msra.mxu1 %v5837_v23 }
 0x1bd   : > { %3359 = vmatpush1.bf16.msra.mxu0 %v7394_v4  ;;  %4156 = vmatprep.subr.bf16.mxu1 %v5842_v28 }
 0x1be   : > { %3360 = vmatprep.subr.bf16.mxu0 %v7401_v6 }
 0x1c0   : > { %4157 = vmatpush1.bf16.msra.mxu1 %v5840_v25 }
 0x1c1   : > { %3361 = vmatpush1.bf16.msra.mxu0 %v7408_v7  ;;  %4158 = vmatprep.subr.bf16.mxu1 %v5845_v27  ;;  %v4189_v7 = vlaneseq }
 0x1c2   : > { %3362 = vmatprep.subr.bf16.mxu0 %v7415_v8 }
 0x1c3   : > { %v4190_v8 = vshrl.u32 %v4189_v7, 7 }
 0x1c4   : > { %4159 = vmatpush1.bf16.msra.mxu1 %v5843_v40 }
 0x1c5   : > { %3363 = vmatpush1.bf16.msra.mxu0 %v7422_v48  ;;  %v4191_v48 = vsub.s32 0, %v4190_v8  ;;  %v4195_v34 = vsub.s32 1, %v4190_v8 }
 0x1c6   : > { %3375 = vmatprep.subr.bf16.mxu0 %v7429_v30  ;;  %v4187_v30 = vld [vmem:[%s7693_s3] sm:$0x3] }
 0x1c7   : > { %4161 = vmatmul.mubr.bf16.vlgmr.msra.gmra.mrb[12].mxu1 %v5846_v50  ;;  %v4196_v32 = vrot.slane %v4187_v30, %v4195_v34 }
 0x1c8   : > { %3365 = vmatmul.mubr.bf16.vlgmr.msra.gmra.mrb[0].mxu0 %v4969_v53 }
 0x1c9   : > { %3376 = vmatpush1.bf16.msra.mxu0 %v7441_v12  ;;  %3407 = vmatprep.mubr.bf16.mxu0 %v4972_v54 }
 0x1ca   : > { %3377 = vmatprep.subr.bf16.mxu0 %v7448_v14 }
 0x1cd   : > { %3378 = vmatpush1.bf16.msra.mxu0 %v7458_v20 }
 0x1ce   : > { %3379 = vmatprep.subr.bf16.mxu0 %v7465_v22 }
 0x1d1   : > { %3380 = vmatpush1.bf16.msra.mxu0 %v7472_v24 }
 0x1d2   : > { %3381 = vmatprep.subr.bf16.mxu0 %v7479_v26 }
 0x1d5   : > { %3382 = vmatpush1.bf16.msra.mxu0 %v7486_v29 }
 0x1d6   : > { %3383 = vmatprep.subr.bf16.mxu0 %v7493_v31 }
 0x1d9   : > { %3384 = vmatpush1.bf16.msra.mxu0 %v7500_v33 }
 0x1da   : > { %3385 = vmatprep.subr.bf16.mxu0 %v7507_v37  ;;  %v2661_v19 = vpop.f32.mrb[8].mxu1 }
 0x1db   : > { %v2668_v56 = vadd.f32 %v7321_v52, %v2661_v19  ;;  %v2663_v57 = vpop.f32.mrb[9].mxu1  ;;  %v4971_v52 = vcombine.low %v2678_v44, %v7187_v35  ;;  %v4192_v35 = vrot.slane %v4187_v30, %v4191_v48 }
 0x1dc   : > { %v2669_v60 = vadd.f32 %v7331_v55, %v2663_v57  ;;  %v2665_v62 = vpop.f32.mrb[10].mxu1 }
 0x1dd   : > { %3386 = vmatpush1.bf16.msra.mxu0 %v7514_v38  ;;  %v2666_v0 = vpop.f32.mrb[11].mxu1 }
 0x1de   : > { %3387 = vmatprep.subr.bf16.mxu0 %v7521_v39 }
 0x1e1   : > { %3388 = vmatpush1.bf16.msra.mxu0 %v7528_v41 }
 0x1e2   : > { %3389 = vmatprep.subr.bf16.mxu0 %v7535_v43 }
 0x1e5   : > { %3390 = vmatpush1.bf16.msra.mxu0 %v7542_v45 }
 0x1e6   : > { %3391 = vmatprep.subr.bf16.mxu0 %v7549_v5 }
 0x1e9   : > { %3392 = vmatpush1.bf16.msra.mxu0 %v7556_v46 }
 0x1ea   : > { %3393 = vmatprep.subr.bf16.mxu0 %v7563_v47 }
 0x1ed   : > { %3394 = vmatpush1.bf16.msra.mxu0 %v7570_v9 }
 0x1ee   : > { %3395 = vmatprep.subr.bf16.mxu0 %v7577_v11 }
 0x1f1   : > { %3396 = vmatpush1.bf16.msra.mxu0 %v7584_v49 }
 0x1f2   : > { %3397 = vmatprep.subr.bf16.mxu0 %v7591_v13 }
 0x1f5   : > { %3398 = vmatpush1.bf16.msra.mxu0 %v7598_v15 }
 0x1f6   : > { %3399 = vmatprep.subr.bf16.mxu0 %v5836_v51 }
 0x1f9   : > { %3400 = vmatpush1.bf16.msra.mxu0 %v5834_v17 }
 0x1fa   : > { %3401 = vmatprep.subr.bf16.mxu0 %v5839_v21 }
 0x1fd   : > { %3402 = vmatpush1.bf16.msra.mxu0 %v5837_v23 }
 0x1fe   : > { %3403 = vmatprep.subr.bf16.mxu0 %v5842_v28 }
 0x201   : > { %3404 = vmatpush1.bf16.msra.mxu0 %v5840_v25 }
 0x202   : > { %3405 = vmatprep.subr.bf16.mxu0 %v5845_v27 }
 0x205   : > { %3406 = vmatpush1.bf16.msra.mxu0 %v5843_v40 }
 0x208   : > { %3408 = vmatmul.mubr.bf16.vlgmr.msra.gmra.mrb[0].mxu0 %v4971_v52 }
 0x223   : > { %v1924_v55 = vpop.f32.mrb[8].mxu0 }
 0x224   : > { %v1935_v1 = vadd.f32 %v7308_v36, %v1924_v55  ;;  %v1926_v2 = vpop.f32.mrb[9].mxu0 }
 0x225   : > { %v1936_v3 = vadd.f32 %v7311_v42, %v1926_v2  ;;  %v1928_v4 = vpop.f32.mrb[10].mxu0 }
 0x226   : > { %v1929_v6 = vpop.f32.mrb[11].mxu0 }
 0x29a   : > { %v4162_v10 = vpop.f32.mrb[12].mxu1 }
 0x29b   : > { %v4171_v12 = vadd.f32 %v4162_v10, %v1935_v1  ;;  %v4164_v14 = vpop.f32.mrb[13].mxu1 }
 0x29c   : > { %v4172_v36 = vadd.f32 %v4164_v14, %v1936_v3  ;;  %v4166_v16 = vpop.f32.mrb[14].mxu1 }
 0x29d   : > { %v4203_v18 = vadd.f32 %v4192_v35, %v4171_v12  ;;  %v4173_v42 = vadd.f32 %v4166_v16, %v2668_v56  ;;  %v4168_v20 = vpop.f32.mrb[15].mxu1 }
 0x29e   : > { %v4204_v22 = vadd.f32 %v4196_v32, %v4172_v36  ;;  %v4174_v24 = vadd.f32 %v4168_v20, %v2669_v60 }
 0x29f   : > { %v4205_v26 = vadd.f32 %v4192_v35, %v4173_v42 }
 0x2a0   : > { %v5278_v29 = vpack.c.bf16 %v4204_v22, %v4203_v18  ;;  %v4206_v31 = vadd.f32 %v4196_v32, %v4174_v24 }
 0x2a2   : > { %4233 = vst [vmem:[%s318_s12 + $0x10] sm:$0xff] %v5278_v29  ;;  %v5279_v33 = vpack.c.bf16 %v4206_v31, %v4205_v26 }
 0x2a4   : > { %4234 = vst [vmem:[%s318_s12 + $0x18] sm:$0xff] %v5279_v33 }
 0x2db   : > { %v3409_v37 = vpop.f32.mrb[0].mxu0 }
 0x2dc   : > { %v5280_v38 = vadd.f32 %v3409_v37, %v7028_v58  ;;  %v3411_v39 = vpop.f32.mrb[1].mxu0 }
 0x2dd   : > { %v5281_v41 = vadd.f32 %v3411_v39, %v7030_v59  ;;  %v3413_v43 = vpop.f32.mrb[2].mxu0 }
 0x2de   : > { %v4199_v45 = vadd.f32 %v5280_v38, %v4192_v35  ;;  %v5282_v5 = vadd.f32 %v3413_v43, %v7039_v61  ;;  %v3415_v46 = vpop.f32.mrb[3].mxu0 }
 0x2df   : > { %v4200_v47 = vadd.f32 %v5281_v41, %v4196_v32  ;;  %v5283_v9 = vadd.f32 %v3415_v46, %v7048_v63 }
 0x2e0   : > { %v4201_v11 = vadd.f32 %v5282_v5, %v4192_v35 }
 0x2e1   : > { %v5276_v49 = vpack.c.bf16 %v4200_v47, %v4199_v45  ;;  %v4202_v13 = vadd.f32 %v5283_v9, %v4196_v32 }
 0x2e3   : > { %4231 = vst [vmem:[%s318_s12] sm:$0xff] %v5276_v49  ;;  %v5277_v15 = vpack.c.bf16 %v4202_v13, %v4201_v11 }
 0x2e5   : > { %4232 = vst [vmem:[%s318_s12 + $0x8] sm:$0xff] %v5277_v15 }
 0x2e6 PF: > { %s14_s17 = sadd.s32 1, %s5875_s17   ;;  %s7695_s15 = smov %s5871_s16 }
 0x2e7   : > { %p11_p5 = scmp.ge.s32.totalorder %s14_s17, 4   ;;  %s7696_s16 = smov %s7698_s18 }
 0x2e9   :  { %13 = sbr.rel (!%p11_p5) target bundleno = 2 (0x2), region = 71 }

</bundles_post_ra>
